<compile_context>
chip_gen: v7x
topology: tpu7x:2x2x1
jax: 0.10.0
libtpu: 0.0.40
codegen_flags: <defaults>
</compile_context>

<pallas_src>
import jax
import jax.numpy as jnp
from jax.experimental import pallas as pl
from jax.experimental.pallas import tpu as pltpu

_LANES = 128
_WIDTHS = (2048, 1024, 512, 256, 128)   # preferred lane-dense widths
_FAST_PATH_BYTES = 4 << 20              # below this, plain jnp wins


def _sigmoid_density_kernel(alpha_ref, sdf_ref, out_ref):
    """out = alpha * sigmoid(-sdf * alpha), computed in f32 vregs."""
    alpha = alpha_ref[0, 0]                      # (1,1) f32 scalar in SMEM
    x = sdf_ref[...].astype(jnp.float32)
    # sigmoid(-x * alpha) == 1 / (1 + exp(x * alpha)).
    # pl.reciprocal(..., approx=True) would keep the divide fully on the EUP
    # (a v7x sweep knob), but exact math is kept so results match the f32
    # reference tightly; the kernel is HBM-bound on all current chips anyway.
    denom = 1.0 + jnp.exp(x * alpha)
    out_ref[...] = (alpha * pl.reciprocal(denom, approx=False)).astype(out_ref.dtype)


_CHIP_CONFIG = None


def _chip_config():
    """Per-generation tile / VMEM / core-parallel settings (safe defaults)."""
    global _CHIP_CONFIG
    if _CHIP_CONFIG is not None:
        return _CHIP_CONFIG
    try:
        kind = jax.devices()[0].device_kind.lower()
    except Exception:
        kind = ""
    if "v5 lite" in kind or "v5e" in kind or "v5lite" in kind:
        # v5e: ~0.8 TB/s HBM, 16 MiB default scoped VMEM -> raise it explicitly.
        cfg = dict(step_bytes=4 << 20, vmem_limit=32 << 20, core_parallel=False)
    elif "v6" in kind:
        # v6e: ~1.4 TB/s HBM, 128 MiB VMEM.
        cfg = dict(step_bytes=8 << 20, vmem_limit=64 << 20, core_parallel=False)
    elif "v7" in kind or "7x" in kind:
        # v7x: 3.2 TB/s HBM but only 64 MiB VMEM; 2 TCs -> core-parallel rows.
        cfg = dict(step_bytes=12 << 20, vmem_limit=40 << 20, core_parallel=True)
    else:
        # Unknown chip: conservative settings valid everywhere.
        cfg = dict(step_bytes=4 << 20, vmem_limit=32 << 20, core_parallel=False)
    _CHIP_CONFIG = cfg
    return cfg


def _choose_width(total):
    """Largest lane-dense width (multiple of 128) dividing `total`, else 0."""
    for w in _WIDTHS:
        if total % w == 0:
            return w
    return 0


def _choose_block_rows(rows, width, in_dtype, out_dtype, step_bytes):
    """Rows per block so one grid step moves ~step_bytes of in+out traffic."""
    in_item = jnp.dtype(in_dtype).itemsize
    out_item = jnp.dtype(out_dtype).itemsize
    pack = 32 // min(in_item, out_item)          # sublane packing: f32->8, bf16->16
    blk = max(pack, step_bytes // (width * (in_item + out_item)))
    blk = (blk // pack) * pack
    if blk >= rows:
        return rows                              # full extent is always legal
    return blk


def _run_kernel(sdf_2d, alpha_smem, out_dtype):
    cfg = _chip_config()
    m, w = sdf_2d.shape
    block_rows = _choose_block_rows(m, w, sdf_2d.dtype, out_dtype, cfg["step_bytes"])
    grid = (pl.cdiv(m, block_rows),)

    def call(dim_semantics):
        return pl.pallas_call(
            _sigmoid_density_kernel,
            out_shape=jax.ShapeDtypeStruct((m, w), out_dtype),
            grid_spec=pltpu.PrefetchScalarGridSpec(
                num_scalar_prefetch=0,
                grid=grid,
                in_specs=[
                    # (1,1) SMEM scalar.  A 1-D (1,) block / scalar prefetch
                    # would shave ~4 KiB of SMEM padding; kept 2-D as the
                    # proven-clean lowering (negligible per the perf review).
                    pl.BlockSpec((1, 1), lambda i: (0, 0),
                                 memory_space=pltpu.SMEM),
                    pl.BlockSpec((block_rows, w), lambda i: (i, 0)),
                ],
                out_specs=pl.BlockSpec((block_rows, w), lambda i: (i, 0)),
            ),
            compiler_params=pltpu.CompilerParams(
                dimension_semantics=dim_semantics,
                vmem_limit_bytes=cfg["vmem_limit"],
            ),
        )(alpha_smem, sdf_2d)

    if cfg["core_parallel"] and grid[0] >= 2:
        # v7x: make sure BOTH TensorCores stream the row axis.  Guarded with a
        # fallback so an unsupported semantics value can never break the call.
        try:
            return call((pltpu.CORE_PARALLEL,))
        except Exception:
            pass
    return call(("parallel",))


class SigmoidDensity:
    """JAX/Pallas port of nerfstudio SigmoidDensity (forward pass only)."""
    # TODO(synk): only the forward pass is implemented (no autograd through beta).

    def __init__(self, init_val, beta_min=0.0001):
        # Deterministic parameter init, mirroring the PyTorch module.
        self.beta_min = jnp.full((1,), beta_min, dtype=jnp.float32)
        self.beta = jnp.full((1,), init_val, dtype=jnp.float32)

    def get_beta(self):
        return jnp.abs(self.beta) + self.beta_min        # shape (1,)

    def __call__(self, sdf, beta=None):
        sdf = jnp.asarray(sdf)
        if beta is None:
            beta = self.get_beta()
        beta = jnp.asarray(beta)

        # Broadcastable (non-scalar) beta: plain jnp reproduces the PyTorch
        # broadcast semantics exactly; the Pallas path covers the scalar
        # (learnable) beta that dominates in practice.
        if beta.size != 1:
            alpha = 1.0 / beta
            return alpha * jax.nn.sigmoid(-sdf * alpha)

        alpha0 = 1.0 / beta.astype(jnp.float32).reshape(())   # scalar 1/beta
        # PyTorch promotes with the f32 beta param: half-precision sdf -> f32 out.
        out_dtype = jnp.result_type(sdf.dtype, jnp.float32)

        total = sdf.size
        nbytes = total * sdf.dtype.itemsize
        if total == 0 or nbytes < _FAST_PATH_BYTES:
            # Tiny input: pallas_call launch overhead would dominate; XLA
            # fuses this elementwise op essentially for free.
            return (alpha0 * jax.nn.sigmoid(-sdf * alpha0)).astype(out_dtype)

        alpha_smem = alpha0.reshape(1, 1)                     # (1,1) f32 for SMEM
        orig_shape = sdf.shape
        flat = sdf.reshape(-1)

        w = _choose_width(total)
        if w:
            # Common case: a lane-dense width divides the element count ->
            # no pad, no tail, no extra HBM passes.
            out = _run_kernel(flat.reshape(total // w, w), alpha_smem,
                              out_dtype).reshape(-1)
        else:
            # Odd element count: kernel on the 2048-aligned prefix, short
            # (<2048 elem) tail in plain jnp, then concatenate -- avoids the
            # two full-tensor HBM passes a pad + slice would cost.
            w = _WIDTHS[0]
            n_main = (total // w) * w
            main = _run_kernel(flat[:n_main].reshape(n_main // w, w),
                               alpha_smem, out_dtype).reshape(-1)
            tail = (alpha0 * jax.nn.sigmoid(-flat[n_main:] * alpha0)).astype(out_dtype)
            out = jnp.concatenate([main, tail])
        return out.reshape(orig_shape)


if __name__ == "__main__":
    key = jax.random.PRNGKey(0)
    k1, k2, k3, k4 = jax.random.split(key, 4)

    module = SigmoidDensity(init_val=0.1, beta_min=0.0001)

    def reference(sdf, beta=None):
        if beta is None:
            beta = jnp.abs(module.beta) + module.beta_min
        alpha = 1.0 / beta
        return alpha * jax.nn.sigmoid(-sdf * alpha)

    def check(out, ref):
        out = jax.block_until_ready(out)
        assert out.shape == ref.shape, (out.shape, ref.shape)
        assert out.dtype == ref.dtype, (out.dtype, ref.dtype)
        assert jnp.allclose(out, ref, rtol=1e-5, atol=1e-5), \
            float(jnp.max(jnp.abs(out - ref)))

    # 1) Small input (2, 4, 16, 16): plain-jnp fast path.
    sdf_small = jax.random.normal(k1, (2, 4, 16, 16), dtype=jnp.float32)
    check(module(sdf_small), reference(sdf_small))

    # 2) Non-scalar (broadcastable) beta: jnp broadcast path.
    beta_map = jnp.full(sdf_small.shape, 0.2, dtype=jnp.float32)
    check(module(sdf_small, beta=beta_map), reference(sdf_small, beta=beta_map))

    # 3) f32 input large enough for the Pallas path (>= 2 grid steps everywhere).
    sdf_f32 = jax.random.normal(k2, (8, 128, 64, 32), dtype=jnp.float32)   # 8 MiB
    check(module(sdf_f32), reference(sdf_f32))

    # 4) bf16 input: kernel streams bf16 in, writes the promoted f32 output.
    sdf_bf16 = jax.random.normal(k3, (8, 1024, 512), dtype=jnp.bfloat16)   # 8 MiB
    check(module(sdf_bf16), reference(sdf_bf16))

    # 5) Odd element count: kernel on the 2048-aligned prefix + jnp tail.
    sdf_odd = jax.random.normal(k4, (2**20 + 37,), dtype=jnp.float32)
    check(module(sdf_odd), reference(sdf_odd))

    print("KERNEL_OK")
</pallas_src>

<mosaic_0001>
module attributes {stable_mosaic.version = 11 : i64} {
  func.func @_sigmoid_density_kernel(%arg0: i32, %arg1: memref<1x1xf32, #tpu.memory_space<smem>>, %arg2: memref<256x2048xf32, #tpu.memory_space<vmem>>, %arg3: memref<256x2048xf32, #tpu.memory_space<vmem>>) attributes {dimension_semantics = [#tpu.dimension_semantics<parallel>], iteration_bounds = array<i64: 4>, scalar_prefetch = 0 : i64, scratch_operands = 0 : i64, tpu.core_type = #tpu.core_type<tc>, window_params = [{transform_indices = @transform_0, window_bounds = array<i64: 1, 1>}, {transform_indices = @transform_1, window_bounds = array<i64: 256, 2048>}, {transform_indices = @transform_2, window_bounds = array<i64: 256, 2048>}]} {
    %c0 = arith.constant 0 : index
    %c0_0 = arith.constant 0 : index
    %0 = memref.load %arg1[%c0, %c0_0] : memref<1x1xf32, #tpu.memory_space<smem>>
    %c0_1 = arith.constant 0 : index
    %c0_2 = arith.constant 0 : index
    %1 = vector.load %arg2[%c0_1, %c0_2] : memref<256x2048xf32, #tpu.memory_space<vmem>>, vector<256x2048xf32>
    %2 = vector.broadcast %0 : f32 to vector<256x2048xf32>
    %3 = arith.mulf %1, %2 : vector<256x2048xf32>
    %4 = math.exp %3 : vector<256x2048xf32>
    %cst = arith.constant 1.000000e+00 : f32
    %5 = vector.broadcast %cst : f32 to vector<256x2048xf32>
    %6 = arith.addf %5, %4 : vector<256x2048xf32>
    %7 = tpu.reciprocal %6 : vector<256x2048xf32> -> vector<256x2048xf32>
    %8 = vector.broadcast %0 : f32 to vector<256x2048xf32>
    %9 = arith.mulf %8, %7 : vector<256x2048xf32>
    %c0_3 = arith.constant 0 : index
    %c0_4 = arith.constant 0 : index
    %10 = vector.load %arg3[%c0_3, %c0_4] : memref<256x2048xf32, #tpu.memory_space<vmem>>, vector<256x2048xf32>
    tpu.vector_store %arg3[%c0_3, %c0_4], %9 {strides = array<i32>} : memref<256x2048xf32, #tpu.memory_space<vmem>>, vector<256x2048xf32>,
    return
  }
  func.func @transform_0(%arg0: i32) -> (i32, i32) {
    %c0_i32 = arith.constant 0 : i32
    %c0_i32_0 = arith.constant 0 : i32
    %c0_i32_1 = arith.constant 0 : i32
    return %c0_i32, %c0_i32_0 : i32, i32
  }
  func.func @transform_1(%arg0: i32) -> (i32, i32) {
    %c0_i32 = arith.constant 0 : i32
    %c0_i32_0 = arith.constant 0 : i32
    return %arg0, %c0_i32 : i32, i32
  }
  func.func @transform_2(%arg0: i32) -> (i32, i32) {
    %c0_i32 = arith.constant 0 : i32
    %c0_i32_0 = arith.constant 0 : i32
    return %arg0, %c0_i32 : i32, i32
  }
}

</mosaic_0001>

<bundles_post_ra>
// kernel: tpu_custom_call.1
= control target key start
LH: loop header
LB: loop body
LE: loop exit
PB: predicated region body
PF: predicated region fallthrough
CT: control target
= control target key end

     0   :  { %s8811_s0 = inlined_call_operand.<no memory space> [shape: f32[1,1], index: 0, kind: input, shape index: {}]   ;;  %s8812_s1 = inlined_call_operand.hbm [shape: f32[1024,2048], index: 1, kind: input, shape index: {}]   ;;  %s8813_s2 = inlined_call_operand.hbm [shape: f32[1024,2048], index: 2, kind: output, shape index: {}]  }
   0x1   :  { %7 = sst [smem:[#allocation2]] %s8811_s0 }
   0x2   :  { %8 = vsyncpa [#allocation4], 0 }
   0x3   :  { %10 = vsyncpa [#allocation4 + $0x1], 0 }
   0x4   :  { %11 = vsyncpa [#allocation5], 0 }
   0x5   :  { %13 = vsyncpa [#allocation5 + $0x1], 0  ;;  %s6592_s11 = smov 0   ;;  %s6594_s12 = smov 0  }
   0x6   :  { %s6596_s13 = smov 0   ;;  %s6598_s14 = smov 0  }
   0x7 LB: > { %s6613_s0 = sadd.s32 4294967295, %s6566_s14   ;;  %s4352_s15 = sadd.s32 4294967294, %s6566_s14   ;;  %s6566_s14 = sphi %s6598_s14, %s8825_s14   ;;  %s6562_s13 = sphi %s6596_s13, %s8824_s13   ;;  %s6558_s12 = sphi %s6594_s12, %s8823_s12   ;;  %s6554_s11 = sphi %s6592_s11, %s8822_s11  }
   0x8   : > { %s6617_s16 = sadd.s32 1, %s6566_s14   ;;  %s47_s17 = sadd.s32 1, %s6562_s13 }
   0x9   : > { %s44_s18 = ssub.s32 %s6566_s14, %s6617_s16  ;;  %p54_p0 = scmp.ne.s32.totalorder %s6562_s13, %s6558_s12 }
   0xa   : > { %p45_p1 = scmp.eq.s32.totalorder %s44_s18, 0  ;;  %p55_p2 = scmp.eq.s32.totalorder %s6566_s14, 0 }
   0xb   : > { %p60_p3 = scmp.ne.s32.totalorder %s6558_s12, %s6554_s11  ;;  %p61_p4 = scmp.eq.s32.totalorder %s6613_s0, 0 }
   0xc   : > { %s6629_s19 = scalar_select %p45_p1, %s6562_s13, %s47_s17  }
   0xd   : > { %p6631_p5 = por %p55_p2, %p54_p0  ;;  %p6635_p6 = por %p61_p4, %p60_p3 }
   0xe   : > { %p84_p7 = scmp.eq.s32.totalorder %s6613_s0, 3  ;;  %p90_p8 = scmp.eq.s32.totalorder %s4352_s15, 3 }
   0xf   : > { %p4384_p9 = scmp.lt.s32.totalorder %s6566_s14, 4  ;;  %s113_s24 = sand.u32 1, %s6562_s13  }
  0x10   : > { %p6641_p10 = por %p84_p7, %p54_p0  ;;  %p6645_p11 = por %p90_p8, %p60_p3 }
  0x11   : > { %s4369_s25 = sshll.u32 %s6566_s14, 16  ;;  %s4355_s26 = sshll.u32 %s113_s24, 12 }
  0x12   : > { %s8817_s22 = scalar_select %p6641_p10, 1, 0 }
  0x13   : > { %s8818_s23 = scalar_select %p6645_p11, 1, 0 }
  0x14   : > { %s6654_s29 = scalar_lea.hbm %s8812_s1, %s4369_s25  ;;  %s117_s30 = scalar_lea.vmem [#allocation3], %s4355_s26 }
  0x15   : > { %s125_s3 = sshll.u32 %s117_s30, 4  ;;  %p6658_p12 = pnand %p4384_p9, %p6631_p5  ;;  %s6662_s3 = int_to_ptr.vmem [resolvable:$true] %s125_s3 }
  0x16   : > { %s6664_s5 = scalar_lea.sflag [#allocation4], %s113_s24  ;;  %s6470_s6 = scalar_lea.hbm %s6654_s29, 65536 }
  0x17   : > { %p6471_p13 = scmp.ne.s32.totalorder %s6654_s29, %s6470_s6  ;;  %p6472_p0 = pneg %p6658_p12 }
  0x18   : > { %s6475_s9 = scalar_lea.hbm %s8812_s1, 262144  ;;  %p6476_p3 = scmp.lt.u32.totalorder %s6654_s29, %s8812_s1 }
  0x19   : > { %p6473_p1 = pnand %p6472_p0, %p6471_p13  ;;  %p6477_p4 = scmp.lt.u32.totalorder %s6475_s9, %s6470_s6 }
  0x1a   : > { %p6479_p7 = scmp.lt.u32.totalorder %s6470_s6, %s6654_s29 }
  0x1b   : > { %p6474_p2 = pneg %p6473_p1  ;;  %p6478_p5 = por %p6477_p4, %p6476_p3 }
  0x1d   : > { %p6480_p8 = por %p6479_p7, %p6478_p5 }
  0x1f   : > { %p6481_p9 = pnand %p6480_p8, %p6474_p2 }
  0x21   : > { %6484 = shalt.err (!%p6481_p9)
}
  0x22   : > { %s6485_s17 = scalar_lea.vmem %s6662_s3, 65536  ;;  %s6568_s18 = smov [#allocation3]  }
  0x23   : > { %p6486_p13 = scmp.ne.s32.totalorder %s6662_s3, %s6485_s17  ;;  %s6490_s20 = sshll.u32 %s6568_s18, 4  ;;  %s6491_s20 = int_to_ptr.vmem [resolvable:$false] %s6490_s20 }
  0x24   : > { %s6492_s24 = scalar_lea.vmem %s6491_s20, 131072  ;;  %p6493_p10 = scmp.lt.s32.totalorder %s6662_s3, %s6491_s20 }
  0x25   : > { %p6488_p1 = pnand %p6486_p13, %p6472_p0  ;;  %p6494_p3 = scmp.lt.s32.totalorder %s6492_s24, %s6485_s17 }
  0x27   : > { %p6489_p11 = pneg %p6488_p1  ;;  %p6495_p4 = por %p6494_p3, %p6493_p10 }
  0x29   : > { %p6496_p5 = pnand %p6495_p4, %p6489_p11 }
  0x2b   : > { %6499 = shalt.err (!%p6496_p5)
}
  0x2c   : > { %s6569_s25 = smov 2048   ;;  %s6570_s26 = smov 128  }
  0x2d   : > { %4379 = dma.hbm_to_vmem [thread:$0]  (!%p6658_p12), %s6654_s29, 65536, %s6662_s3, %s6664_s5, %s6569_s25, %s6569_s25, %s6570_s26  }
  0x2e   : > { %p4359_p0 = scmp.ge.s32.totalorder %s6566_s14, 1  ;;  %p133_p2 = scmp.lt.s32.totalorder %s6566_s14, 5 }
  0x30   : > { %p134_p7 = pnand %p4359_p0, %p133_p2 }
  0x31   : > { %s6695_s27 = sand.u32 (!%p134_p7), 1, %s6558_s12  }
  0x32   : > { %137 = sbr.rel (%p134_p7) target bundleno = 1128 (0x468), region = 28  ;;  %s4360_s28 = sshll.u32 (!%p134_p7), %s6695_s27, 12 }
  0x33   : > { %s140_s30 = scalar_lea.sflag (!%p134_p7), [#allocation4], %s6695_s27  ;;  %s6701_s6 = scalar_lea.vmem (!%p134_p7), [#allocation3], %s4360_s28 }
  0x39   : > { %6545 = dma.done.wait (%p6635_p6), %s140_s30, 65536  }
  0x3a   : > { %6547 = vsyncadd (%p6635_p6), %s140_s30, 4294901760  ;;  %s166_s29 = sld [smem:[#allocation2]]  ;;  %v167_v0 = vld [vmem:[%s6701_s6] sm:$0xff]  ;;  %v168_v2 = vld [vmem:[%s6701_s6 + $0x8] sm:$0xff]  ;;  %s6758_s21 = scalar_lea.vmem [#allocation6], %s4360_s28 }
  0x3b   : > { %v169_v3 = vld [vmem:[%s6701_s6 + $0x10] sm:$0xff]  ;;  %v170_v7 = vld [vmem:[%s6701_s6 + $0x18] sm:$0xff]  ;;  %v171_v8 = vld [vmem:[%s6701_s6 + $0x20] sm:$0xff]  ;;  %s4371_s3 = sshll.u32 %s6613_s0, 16  ;;  %s4279_s4 = sshll.u32 %s6758_s21, 4  ;;  %s8764_s4 = int_to_ptr.vmem [resolvable:$true] %s4279_s4 }
  0x3c   : > { %v172_v9 = vld [vmem:[%s6701_s6 + $0x28] sm:$0xff]  ;;  %v173_v13 = vld [vmem:[%s6701_s6 + $0x30] sm:$0xff]  ;;  %v174_v14 = vld [vmem:[%s6701_s6 + $0x38] sm:$0xff]  ;;  %s8762_s8 = scalar_lea.hbm %s8813_s2, %s4371_s3  ;;  %s4265_s0 = scalar_lea.sflag [#allocation5], %s6695_s27 }
  0x3d   : > { %v175_v15 = vld [vmem:[%s6701_s6 + $0x40] sm:$0xff]  ;;  %v176_v24 = vld [vmem:[%s6701_s6 + $0x48] sm:$0xff]  ;;  %v177_v25 = vld [vmem:[%s6701_s6 + $0x50] sm:$0xff]  ;;  %s6500_s9 = scalar_lea.vmem %s8764_s4, 65536  ;;  %p8820_p10 = scmp.ne.s32.totalorder %s8817_s22, 0 }
  0x3e   : > { %v178_v26 = vld [vmem:[%s6701_s6 + $0x58] sm:$0xff]  ;;  %v179_v29 = vld [vmem:[%s6701_s6 + $0x60] sm:$0xff]  ;;  %v180_v51 = vld [vmem:[%s6701_s6 + $0x68] sm:$0xff]  ;;  %p6501_p6 = scmp.ne.s32.totalorder %s8764_s4, %s6500_s9  ;;  %s6571_s10 = smov [#allocation6]  }
  0x3f   : > { %v181_v54 = vld [vmem:[%s6701_s6 + $0x70] sm:$0xff]  ;;  %v182_v57 = vld [vmem:[%s6701_s6 + $0x78] sm:$0xff]  ;;  %v183_v61 = vld [vmem:[%s6701_s6 + $0x80] sm:$0xff]  ;;  %s6504_s15 = sshll.u32 %s6571_s10, 4  ;;  %s6505_s15 = int_to_ptr.vmem [resolvable:$false] %s6504_s15 }
  0x40   : > { %v6708_v1 = vstv %s166_s29  ;;  %p6502_p11 = pnand %p6501_p6, %p8820_p10  ;;  %s6506_s17 = scalar_lea.vmem %s6505_s15, 131072 }
  0x41   : > { %v680_v4 = vmul.f32 %v6708_v1, %v167_v0  ;;  %v681_v5 = vmul.f32 %v6708_v1, %v168_v2  ;;  %v682_v6 = vmul.f32 %v6708_v1, %v169_v3  ;;  %v683_v10 = vmul.f32 %v6708_v1, %v170_v7  ;;  %v184_v2 = vld [vmem:[%s6701_s6 + $0x88] sm:$0xff]  ;;  %p6507_p8 = scmp.lt.s32.totalorder %s8764_s4, %s6505_s15  ;;  %p6508_p9 = scmp.lt.s32.totalorder %s6506_s17, %s6500_s9 }
  0x42   : > { %v684_v11 = vmul.f32 %v6708_v1, %v171_v8  ;;  %v685_v12 = vmul.f32 %v6708_v1, %v172_v9  ;;  %v686_v19 = vmul.f32 %v6708_v1, %v173_v13  ;;  %v687_v21 = vmul.f32 %v6708_v1, %v174_v14  ;;  %p6503_p12 = pneg %p6502_p11 }
  0x43   : > { %v1192_v16 = vmul.f32 1.442695, %v680_v4  ;;  %v1194_v17 = vmul.f32 1.442695, %v681_v5  ;;  %v1196_v18 = vmul.f32 1.442695, %v682_v6  ;;  %v688_v23 = vmul.f32 %v6708_v1, %v175_v15  ;;  %p6509_p13 = por %p6508_p9, %p6507_p8 }
  0x44   : > { %v1198_v20 = vmul.f32 1.442695, %v683_v10  ;;  %v1200_v22 = vmul.f32 1.442695, %v684_v11  ;;  %v1202_v27 = vmul.f32 1.442695, %v685_v12  ;;  %v689_v28 = vmul.f32 %v6708_v1, %v176_v24 }
  0x45   : > { %4422 = vpow2.f32 %v1192_v16  ;;  %v1204_v30 = vmul.f32 1.442695, %v686_v19  ;;  %v690_v31 = vmul.f32 %v6708_v1, %v177_v25  ;;  %v1206_v32 = vmul.f32 1.442695, %v687_v21  ;;  %v185_v6 = vld [vmem:[%s6701_s6 + $0x90] sm:$0xff]  ;;  %v186_v10 = vld [vmem:[%s6701_s6 + $0x98] sm:$0xff]  ;;  %p6510_p1 = pnand %p6509_p13, %p6503_p12 }
  0x46   : > { %4424 = vpow2.f32 %v1194_v17  ;;  %v691_v33 = vmul.f32 %v6708_v1, %v178_v26  ;;  %v1208_v34 = vmul.f32 1.442695, %v688_v23  ;;  %v692_v35 = vmul.f32 %v6708_v1, %v179_v29  ;;  %v187_v15 = vld [vmem:[%s6701_s6 + $0xa0] sm:$0xff]  ;;  %v189_v25 = vld [vmem:[%s6701_s6 + $0xb0] sm:$0xff] }
  0x47   : > { %4426 = vpow2.f32 %v1196_v18  ;;  %v1210_v36 = vmul.f32 1.442695, %v689_v28  ;;  %v1212_v37 = vmul.f32 1.442695, %v690_v31  ;;  %v693_v60 = vmul.f32 %v6708_v1, %v180_v51 }
  0x48   : > { %4428 = vpow2.f32 %v1198_v20  ;;  %v1214_v38 = vmul.f32 1.442695, %v691_v33  ;;  %v1216_v39 = vmul.f32 1.442695, %v692_v35  ;;  %v694_v0 = vmul.f32 %v6708_v1, %v181_v54  ;;  %v188_v20 = vld [vmem:[%s6701_s6 + $0xa8] sm:$0xff]  ;;  %v191_v35 = vld [vmem:[%s6701_s6 + $0xc0] sm:$0xff] }
  0x49   : > { %4430 = vpow2.f32 %v1200_v22  ;;  %v695_v5 = vmul.f32 %v6708_v1, %v182_v57  ;;  %v696_v9 = vmul.f32 %v6708_v1, %v183_v61  ;;  %v1218_v13 = vmul.f32 1.442695, %v693_v60 }
  0x4a   : > { %4432 = vpow2.f32 %v1202_v27  ;;  %v697_v14 = vmul.f32 %v6708_v1, %v184_v2  ;;  %v1220_v18 = vmul.f32 1.442695, %v694_v0  ;;  %v698_v19 = vmul.f32 %v6708_v1, %v185_v6 }
  0x4b   : > { %4434 = vpow2.f32 %v1204_v30  ;;  %v1222_v23 = vmul.f32 1.442695, %v695_v5  ;;  %v699_v24 = vmul.f32 %v6708_v1, %v186_v10  ;;  %v1224_v28 = vmul.f32 1.442695, %v696_v9  ;;  %v190_v30 = vld [vmem:[%s6701_s6 + $0xb8] sm:$0xff] }
  0x4c   : > { %4436 = vpow2.f32 %v1206_v32  ;;  %v700_v29 = vmul.f32 %v6708_v1, %v187_v15  ;;  %v1226_v33 = vmul.f32 1.442695, %v697_v14 }
  0x4d   : > { %4438 = vpow2.f32 %v1208_v34  ;;  %v701_v34 = vmul.f32 %v6708_v1, %v188_v20 }
  0x4e   : > { %4440 = vpow2.f32 %v1210_v36 }
  0x4f   : > { %v4423_v40 = vpop.eup %4422  ;;  %4442 = vpow2.f32 %v1212_v37  ;;  %v1234_v51 = vmul.f32 1.442695, %v701_v34  ;;  %v198_v34 = vld [vmem:[%s6701_s6 + $0xf8] sm:$0xff] }
  0x50   : > { %v4425_v41 = vpop.eup %4424  ;;  %v2216_v42 = vadd.f32 1.0, %v4423_v40  ;;  %4444 = vpow2.f32 %v1214_v38  ;;  %v1228_v38 = vmul.f32 1.442695, %v698_v19  ;;  %v192_v40 = vld [vmem:[%s6701_s6 + $0xc8] sm:$0xff]  ;;  %v194_v19 = vld [vmem:[%s6701_s6 + $0xd8] sm:$0xff] }
  0x51   : > { %v4427_v43 = vpop.eup %4426  ;;  %v2217_v44 = vadd.f32 1.0, %v4425_v41  ;;  %4446 = vpow2.f32 %v1216_v39  ;;  %v702_v39 = vmul.f32 %v6708_v1, %v189_v25 }
  0x52   : > { %v4429_v45 = vpop.eup %4428  ;;  %4448 = vrcp.f32 %v2216_v42  ;;  %v2218_v46 = vadd.f32 1.0, %v4427_v43  ;;  %v1230_v43 = vmul.f32 1.442695, %v699_v24 }
  0x53   : > { %v4431_v47 = vpop.eup %4430  ;;  %4450 = vrcp.f32 %v2217_v44  ;;  %v2219_v48 = vadd.f32 1.0, %v4429_v45  ;;  %v703_v44 = vmul.f32 %v6708_v1, %v190_v30  ;;  %v197_v30 = vld [vmem:[%s6701_s6 + $0xf0] sm:$0xff] }
  0x54   : > { %v4433_v49 = vpop.eup %4432  ;;  %4452 = vrcp.f32 %v2218_v46  ;;  %v2220_v50 = vadd.f32 1.0, %v4431_v47  ;;  %v1232_v47 = vmul.f32 1.442695, %v700_v29  ;;  %v707_v29 = vmul.f32 %v6708_v1, %v194_v19 }
  0x55   : > { %v4435_v52 = vpop.eup %4434  ;;  %4454 = vrcp.f32 %v2219_v48  ;;  %v2221_v53 = vadd.f32 1.0, %v4433_v49  ;;  %v704_v48 = vmul.f32 %v6708_v1, %v191_v35 }
  0x56   : > { %v4437_v55 = vpop.eup %4436  ;;  %4456 = vrcp.f32 %v2220_v50  ;;  %v2222_v56 = vadd.f32 1.0, %v4435_v52  ;;  %v705_v52 = vmul.f32 %v6708_v1, %v192_v40 }
  0x57   : > { %v4439_v58 = vpop.eup %4438  ;;  %4458 = vrcp.f32 %v2221_v53  ;;  %v2223_v59 = vadd.f32 1.0, %v4437_v55  ;;  %v1236_v55 = vmul.f32 1.442695, %v702_v39  ;;  %v1240_v61 = vmul.f32 1.442695, %v704_v48  ;;  %v201_v48 = vld [vmem:[%s6701_s6 + $0x110] sm:$0xff] }
  0x58   : > { %v4441_v62 = vpop.eup %4440  ;;  %4460 = vrcp.f32 %v2222_v56  ;;  %v2224_v63 = vadd.f32 1.0, %v4439_v58  ;;  %v1238_v58 = vmul.f32 1.442695, %v703_v44  ;;  %v1242_v0 = vmul.f32 1.442695, %v705_v52 }
  0x59   : > { %v4443_v3 = vpop.eup %4442  ;;  %4462 = vrcp.f32 %v2223_v59  ;;  %v2225_v4 = vadd.f32 1.0, %v4441_v62 }
  0x5a   : > { %v4445_v7 = vpop.eup %4444  ;;  %4464 = vrcp.f32 %v2224_v63  ;;  %v2226_v8 = vadd.f32 1.0, %v4443_v3 }
  0x5b   : > { %v4447_v11 = vpop.eup %4446  ;;  %4466 = vrcp.f32 %v2225_v4  ;;  %v2227_v12 = vadd.f32 1.0, %v4445_v7 }
  0x5c   : > { %v4449_v16 = vpop.eup %4448  ;;  %4468 = vrcp.f32 %v2226_v8  ;;  %v2228_v17 = vadd.f32 1.0, %v4447_v11 }
  0x5d   : > { %v4451_v21 = vpop.eup %4450  ;;  %v3240_v22 = vmul.f32 %v4449_v16, %v6708_v1  ;;  %4470 = vrcp.f32 %v2227_v12  ;;  %v193_v16 = vld [vmem:[%s6701_s6 + $0xd0] sm:$0xff] }
  0x5e   : > { %v4453_v26 = vpop.eup %4452  ;;  %v3241_v27 = vmul.f32 %v4451_v21, %v6708_v1  ;;  %4472 = vrcp.f32 %v2228_v17  ;;  %v706_v25 = vmul.f32 %v6708_v1, %v193_v16 }
  0x5f   : > { %v4455_v31 = vpop.eup %4454  ;;  %3752 = vst [vmem:[%s6758_s21] sm:$0xff] %v3240_v22  ;;  %v3242_v32 = vmul.f32 %v4453_v26, %v6708_v1  ;;  %4474 = vpow2.f32 %v1218_v13  ;;  %v195_v22 = vld [vmem:[%s6701_s6 + $0xe0] sm:$0xff]  ;;  %v196_v26 = vld [vmem:[%s6701_s6 + $0xe8] sm:$0xff] }
  0x60   : > { %v4457_v36 = vpop.eup %4456  ;;  %3753 = vst [vmem:[%s6758_s21 + $0x8] sm:$0xff] %v3241_v27  ;;  %v3243_v37 = vmul.f32 %v4455_v31, %v6708_v1  ;;  %4476 = vpow2.f32 %v1220_v18 }
  0x61   : > { %v4459_v41 = vpop.eup %4458  ;;  %3754 = vst [vmem:[%s6758_s21 + $0x10] sm:$0xff] %v3242_v32  ;;  %v3244_v42 = vmul.f32 %v4457_v36, %v6708_v1  ;;  %4478 = vpow2.f32 %v1222_v23 }
  0x62   : > { %v4461_v45 = vpop.eup %4460  ;;  %3755 = vst [vmem:[%s6758_s21 + $0x18] sm:$0xff] %v3243_v37  ;;  %v3245_v46 = vmul.f32 %v4459_v41, %v6708_v1  ;;  %4480 = vpow2.f32 %v1224_v28  ;;  %v709_v37 = vmul.f32 %v6708_v1, %v196_v26  ;;  %v1244_v41 = vmul.f32 1.442695, %v706_v25 }
  0x63   : > { %v4463_v49 = vpop.eup %4462  ;;  %3756 = vst [vmem:[%s6758_s21 + $0x20] sm:$0xff] %v3244_v42  ;;  %v3246_v50 = vmul.f32 %v4461_v45, %v6708_v1  ;;  %4482 = vpow2.f32 %v1226_v33  ;;  %v708_v33 = vmul.f32 %v6708_v1, %v195_v22  ;;  %v710_v42 = vmul.f32 %v6708_v1, %v197_v30 }
  0x64   : > { %v4465_v53 = vpop.eup %4464  ;;  %3757 = vst [vmem:[%s6758_s21 + $0x28] sm:$0xff] %v3245_v46  ;;  %v3247_v54 = vmul.f32 %v4463_v49, %v6708_v1  ;;  %4484 = vpow2.f32 %v1228_v38  ;;  %v199_v38 = vld [vmem:[%s6701_s6 + $0x100] sm:$0xff]  ;;  %v1246_v46 = vmul.f32 1.442695, %v707_v29 }
  0x65   : > { %v4467_v56 = vpop.eup %4466  ;;  %3758 = vst [vmem:[%s6758_s21 + $0x30] sm:$0xff] %v3246_v50  ;;  %v3248_v57 = vmul.f32 %v4465_v53, %v6708_v1  ;;  %4486 = vpow2.f32 %v1230_v43  ;;  %v200_v43 = vld [vmem:[%s6701_s6 + $0x108] sm:$0xff]  ;;  %v712_v52 = vmul.f32 %v6708_v1, %v199_v38  ;;  %v202_v53 = vld [vmem:[%s6701_s6 + $0x118] sm:$0xff] }
  0x66   : > { %v4469_v59 = vpop.eup %4468  ;;  %3759 = vst [vmem:[%s6758_s21 + $0x38] sm:$0xff] %v3247_v54  ;;  %v3249_v60 = vmul.f32 %v4467_v56, %v6708_v1  ;;  %4488 = vpow2.f32 %v1232_v47  ;;  %v711_v47 = vmul.f32 %v6708_v1, %v198_v34  ;;  %v1250_v56 = vmul.f32 1.442695, %v709_v37 }
  0x67   : > { %v4471_v62 = vpop.eup %4470  ;;  %3760 = vst [vmem:[%s6758_s21 + $0x40] sm:$0xff] %v3248_v57  ;;  %v3250_v63 = vmul.f32 %v4469_v59, %v6708_v1  ;;  %4490 = vpow2.f32 %v1234_v51  ;;  %v1248_v51 = vmul.f32 1.442695, %v708_v33  ;;  %v713_v57 = vmul.f32 %v6708_v1, %v200_v43 }
  0x68   : > { %v4473_v2 = vpop.eup %4472  ;;  %3761 = vst [vmem:[%s6758_s21 + $0x48] sm:$0xff] %v3249_v60  ;;  %v3251_v3 = vmul.f32 %v4471_v62, %v6708_v1  ;;  %4492 = vpow2.f32 %v1236_v55  ;;  %v714_v62 = vmul.f32 %v6708_v1, %v201_v48 }
  0x69   : > { %v4475_v4 = vpop.eup %4474  ;;  %3762 = vst [vmem:[%s6758_s21 + $0x50] sm:$0xff] %v3250_v63  ;;  %v3252_v5 = vmul.f32 %v4473_v2, %v6708_v1  ;;  %4494 = vpow2.f32 %v1238_v58  ;;  %v203_v58 = vld [vmem:[%s6701_s6 + $0x120] sm:$0xff]  ;;  %v204_v63 = vld [vmem:[%s6701_s6 + $0x128] sm:$0xff] }
  0x6a   : > { %v4477_v6 = vpop.eup %4476  ;;  %3763 = vst [vmem:[%s6758_s21 + $0x58] sm:$0xff] %v3251_v3  ;;  %v2229_v7 = vadd.f32 1.0, %v4475_v4  ;;  %4496 = vpow2.f32 %v1240_v61  ;;  %v1252_v61 = vmul.f32 1.442695, %v710_v42  ;;  %v1254_v3 = vmul.f32 1.442695, %v711_v47 }
  0x6b   : > { %v4479_v8 = vpop.eup %4478  ;;  %3764 = vst [vmem:[%s6758_s21 + $0x60] sm:$0xff] %v3252_v5  ;;  %v2230_v9 = vadd.f32 1.0, %v4477_v6  ;;  %4498 = vpow2.f32 %v1242_v0  ;;  %v715_v4 = vmul.f32 %v6708_v1, %v202_v53  ;;  %v205_v5 = vld [vmem:[%s6701_s6 + $0x130] sm:$0xff]  ;;  %v1260_v16 = vmul.f32 1.442695, %v714_v62  ;;  %v207_v47 = vld [vmem:[%s6701_s6 + $0x140] sm:$0xff] }
  0x6c   : > { %v4481_v10 = vpop.eup %4480  ;;  %4500 = vrcp.f32 %v2229_v7  ;;  %v2231_v11 = vadd.f32 1.0, %v4479_v8  ;;  %v1256_v8 = vmul.f32 1.442695, %v712_v52  ;;  %v211_v62 = vld [vmem:[%s6701_s6 + $0x160] sm:$0xff] }
  0x6d   : > { %v4483_v12 = vpop.eup %4482  ;;  %4502 = vrcp.f32 %v2230_v9  ;;  %v2232_v13 = vadd.f32 1.0, %v4481_v10  ;;  %v716_v9 = vmul.f32 %v6708_v1, %v203_v58  ;;  %v210_v58 = vld [vmem:[%s6701_s6 + $0x158] sm:$0xff] }
  0x6e   : > { %v4485_v14 = vpop.eup %4484  ;;  %4504 = vrcp.f32 %v2231_v11  ;;  %v2233_v15 = vadd.f32 1.0, %v4483_v12  ;;  %v1258_v12 = vmul.f32 1.442695, %v713_v57  ;;  %v720_v57 = vmul.f32 %v6708_v1, %v207_v47 }
  0x6f   : > { %v4487_v17 = vpop.eup %4486  ;;  %4506 = vrcp.f32 %v2232_v13  ;;  %v2234_v18 = vadd.f32 1.0, %v4485_v14  ;;  %v717_v13 = vmul.f32 %v6708_v1, %v204_v63 }
  0x70   : > { %v4489_v20 = vpop.eup %4488  ;;  %4508 = vrcp.f32 %v2233_v15  ;;  %v2235_v21 = vadd.f32 1.0, %v4487_v17  ;;  %v718_v17 = vmul.f32 %v6708_v1, %v205_v5 }
  0x71   : > { %v4491_v23 = vpop.eup %4490  ;;  %4510 = vrcp.f32 %v2234_v18  ;;  %v2236_v24 = vadd.f32 1.0, %v4489_v20  ;;  %v1262_v20 = vmul.f32 1.442695, %v715_v4  ;;  %v1266_v26 = vmul.f32 1.442695, %v717_v13  ;;  %v214_v13 = vld [vmem:[%s6701_s6 + $0x178] sm:$0xff] }
  0x72   : > { %v4493_v27 = vpop.eup %4492  ;;  %4512 = vrcp.f32 %v2235_v21  ;;  %v2237_v28 = vadd.f32 1.0, %v4491_v23  ;;  %v1264_v23 = vmul.f32 1.442695, %v716_v9  ;;  %v1268_v29 = vmul.f32 1.442695, %v718_v17 }
  0x73   : > { %v4495_v31 = vpop.eup %4494  ;;  %4514 = vrcp.f32 %v2236_v24  ;;  %v2238_v32 = vadd.f32 1.0, %v4493_v27 }
  0x74   : > { %v4497_v35 = vpop.eup %4496  ;;  %4516 = vrcp.f32 %v2237_v28  ;;  %v2239_v36 = vadd.f32 1.0, %v4495_v31 }
  0x75   : > { %v4499_v39 = vpop.eup %4498  ;;  %4518 = vrcp.f32 %v2238_v32  ;;  %v2240_v40 = vadd.f32 1.0, %v4497_v35 }
  0x76   : > { %v4501_v44 = vpop.eup %4500  ;;  %4520 = vrcp.f32 %v2239_v36  ;;  %v2241_v45 = vadd.f32 1.0, %v4499_v39 }
  0x77   : > { %v4503_v49 = vpop.eup %4502  ;;  %v3253_v50 = vmul.f32 %v4501_v44, %v6708_v1  ;;  %4522 = vrcp.f32 %v2240_v40  ;;  %v206_v44 = vld [vmem:[%s6701_s6 + $0x138] sm:$0xff] }
  0x78   : > { %v4505_v54 = vpop.eup %4504  ;;  %v3254_v55 = vmul.f32 %v4503_v49, %v6708_v1  ;;  %4524 = vrcp.f32 %v2241_v45  ;;  %v719_v53 = vmul.f32 %v6708_v1, %v206_v44 }
  0x79   : > { %v4507_v59 = vpop.eup %4506  ;;  %3765 = vst [vmem:[%s6758_s21 + $0x68] sm:$0xff] %v3253_v50  ;;  %v3255_v60 = vmul.f32 %v4505_v54, %v6708_v1  ;;  %4526 = vpow2.f32 %v1244_v41  ;;  %v208_v50 = vld [vmem:[%s6701_s6 + $0x148] sm:$0xff]  ;;  %v209_v54 = vld [vmem:[%s6701_s6 + $0x150] sm:$0xff] }
  0x7a   : > { %v4509_v0 = vpop.eup %4508  ;;  %3766 = vst [vmem:[%s6758_s21 + $0x70] sm:$0xff] %v3254_v55  ;;  %v3256_v2 = vmul.f32 %v4507_v59, %v6708_v1  ;;  %4528 = vpow2.f32 %v1246_v46 }
  0x7b   : > { %v4511_v6 = vpop.eup %4510  ;;  %3767 = vst [vmem:[%s6758_s21 + $0x78] sm:$0xff] %v3255_v60  ;;  %v3257_v7 = vmul.f32 %v4509_v0, %v6708_v1  ;;  %4530 = vpow2.f32 %v1248_v51 }
  0x7c   : > { %v4513_v10 = vpop.eup %4512  ;;  %3768 = vst [vmem:[%s6758_s21 + $0x80] sm:$0xff] %v3256_v2  ;;  %v3258_v11 = vmul.f32 %v4511_v6, %v6708_v1  ;;  %4532 = vpow2.f32 %v1250_v56  ;;  %v722_v2 = vmul.f32 %v6708_v1, %v209_v54  ;;  %v1270_v6 = vmul.f32 1.442695, %v719_v53 }
  0x7d   : > { %v4515_v14 = vpop.eup %4514  ;;  %3769 = vst [vmem:[%s6758_s21 + $0x88] sm:$0xff] %v3257_v7  ;;  %v3259_v15 = vmul.f32 %v4513_v10, %v6708_v1  ;;  %4534 = vpow2.f32 %v1252_v61  ;;  %v721_v61 = vmul.f32 %v6708_v1, %v208_v50  ;;  %v723_v7 = vmul.f32 %v6708_v1, %v210_v58 }
  0x7e   : > { %v4517_v18 = vpop.eup %4516  ;;  %3770 = vst [vmem:[%s6758_s21 + $0x90] sm:$0xff] %v3258_v11  ;;  %v3260_v19 = vmul.f32 %v4515_v14, %v6708_v1  ;;  %4536 = vpow2.f32 %v1254_v3  ;;  %v212_v3 = vld [vmem:[%s6701_s6 + $0x168] sm:$0xff]  ;;  %v1272_v11 = vmul.f32 1.442695, %v720_v57 }
  0x7f   : > { %v4519_v21 = vpop.eup %4518  ;;  %3771 = vst [vmem:[%s6758_s21 + $0x98] sm:$0xff] %v3259_v15  ;;  %v3261_v22 = vmul.f32 %v4517_v18, %v6708_v1  ;;  %4538 = vpow2.f32 %v1256_v8  ;;  %v213_v8 = vld [vmem:[%s6701_s6 + $0x170] sm:$0xff]  ;;  %v725_v17 = vmul.f32 %v6708_v1, %v212_v3  ;;  %v215_v18 = vld [vmem:[%s6701_s6 + $0x180] sm:$0xff] }
  0x80   : > { %v4521_v24 = vpop.eup %4520  ;;  %3772 = vst [vmem:[%s6758_s21 + $0xa0] sm:$0xff] %v3260_v19  ;;  %v3262_v25 = vmul.f32 %v4519_v21, %v6708_v1  ;;  %4540 = vpow2.f32 %v1258_v12  ;;  %v724_v12 = vmul.f32 %v6708_v1, %v211_v62  ;;  %v1276_v21 = vmul.f32 1.442695, %v722_v2 }
  0x81   : > { %v4523_v27 = vpop.eup %4522  ;;  %3773 = vst [vmem:[%s6758_s21 + $0xa8] sm:$0xff] %v3261_v22  ;;  %v3263_v28 = vmul.f32 %v4521_v24, %v6708_v1  ;;  %4542 = vpow2.f32 %v1260_v16  ;;  %v1274_v16 = vmul.f32 1.442695, %v721_v61  ;;  %v726_v22 = vmul.f32 %v6708_v1, %v213_v8 }
  0x82   : > { %v4525_v30 = vpop.eup %4524  ;;  %3774 = vst [vmem:[%s6758_s21 + $0xb0] sm:$0xff] %v3262_v25  ;;  %v3264_v31 = vmul.f32 %v4523_v27, %v6708_v1  ;;  %4544 = vpow2.f32 %v1262_v20  ;;  %v727_v27 = vmul.f32 %v6708_v1, %v214_v13 }
  0x83   : > { %v4527_v32 = vpop.eup %4526  ;;  %3775 = vst [vmem:[%s6758_s21 + $0xb8] sm:$0xff] %v3263_v28  ;;  %v3265_v33 = vmul.f32 %v4525_v30, %v6708_v1  ;;  %4546 = vpow2.f32 %v1264_v23  ;;  %v216_v23 = vld [vmem:[%s6701_s6 + $0x188] sm:$0xff]  ;;  %v217_v28 = vld [vmem:[%s6701_s6 + $0x190] sm:$0xff] }
  0x84   : > { %v4529_v34 = vpop.eup %4528  ;;  %3776 = vst [vmem:[%s6758_s21 + $0xc0] sm:$0xff] %v3264_v31  ;;  %v2242_v35 = vadd.f32 1.0, %v4527_v32  ;;  %4548 = vpow2.f32 %v1266_v26  ;;  %v1278_v26 = vmul.f32 1.442695, %v723_v7  ;;  %v1280_v31 = vmul.f32 1.442695, %v724_v12 }
  0x85   : > { %v4531_v36 = vpop.eup %4530  ;;  %3777 = vst [vmem:[%s6758_s21 + $0xc8] sm:$0xff] %v3265_v33  ;;  %v2243_v37 = vadd.f32 1.0, %v4529_v34  ;;  %4550 = vpow2.f32 %v1268_v29  ;;  %v728_v32 = vmul.f32 %v6708_v1, %v215_v18  ;;  %v218_v33 = vld [vmem:[%s6701_s6 + $0x198] sm:$0xff]  ;;  %v1286_v44 = vmul.f32 1.442695, %v727_v27  ;;  %v220_v12 = vld [vmem:[%s6701_s6 + $0x1a8] sm:$0xff] }
  0x86   : > { %v4533_v38 = vpop.eup %4532  ;;  %4552 = vrcp.f32 %v2242_v35  ;;  %v2244_v39 = vadd.f32 1.0, %v4531_v36  ;;  %v1282_v36 = vmul.f32 1.442695, %v725_v17  ;;  %v224_v27 = vld [vmem:[%s6701_s6 + $0x1c8] sm:$0xff] }
  0x87   : > { %v4535_v40 = vpop.eup %4534  ;;  %4554 = vrcp.f32 %v2243_v37  ;;  %v2245_v41 = vadd.f32 1.0, %v4533_v38  ;;  %v729_v37 = vmul.f32 %v6708_v1, %v216_v23  ;;  %v223_v23 = vld [vmem:[%s6701_s6 + $0x1c0] sm:$0xff] }
  0x88   : > { %v4537_v42 = vpop.eup %4536  ;;  %4556 = vrcp.f32 %v2244_v39  ;;  %v2246_v43 = vadd.f32 1.0, %v4535_v40  ;;  %v1284_v40 = vmul.f32 1.442695, %v726_v22  ;;  %v733_v22 = vmul.f32 %v6708_v1, %v220_v12 }
  0x89   : > { %v4539_v45 = vpop.eup %4538  ;;  %4558 = vrcp.f32 %v2245_v41  ;;  %v2247_v46 = vadd.f32 1.0, %v4537_v42  ;;  %v730_v41 = vmul.f32 %v6708_v1, %v217_v28 }
  0x8a   : > { %v4541_v48 = vpop.eup %4540  ;;  %4560 = vrcp.f32 %v2246_v43  ;;  %v2248_v49 = vadd.f32 1.0, %v4539_v45  ;;  %v731_v45 = vmul.f32 %v6708_v1, %v218_v33 }
  0x8b   : > { %v4543_v51 = vpop.eup %4542  ;;  %4562 = vrcp.f32 %v2247_v46  ;;  %v2249_v52 = vadd.f32 1.0, %v4541_v48  ;;  %v1288_v48 = vmul.f32 1.442695, %v728_v32  ;;  %v1292_v54 = vmul.f32 1.442695, %v730_v41  ;;  %v227_v41 = vld [vmem:[%s6701_s6 + $0x1e0] sm:$0xff] }
  0x8c   : > { %v4545_v55 = vpop.eup %4544  ;;  %4564 = vrcp.f32 %v2248_v49  ;;  %v2250_v56 = vadd.f32 1.0, %v4543_v51  ;;  %v1290_v51 = vmul.f32 1.442695, %v729_v37  ;;  %v1294_v57 = vmul.f32 1.442695, %v731_v45 }
  0x8d   : > { %v4547_v59 = vpop.eup %4546  ;;  %4566 = vrcp.f32 %v2249_v52  ;;  %v2251_v60 = vadd.f32 1.0, %v4545_v55 }
  0x8e   : > { %v4549_v63 = vpop.eup %4548  ;;  %4568 = vrcp.f32 %v2250_v56  ;;  %v2252_v0 = vadd.f32 1.0, %v4547_v59 }
  0x8f   : > { %v4551_v4 = vpop.eup %4550  ;;  %4570 = vrcp.f32 %v2251_v60  ;;  %v2253_v5 = vadd.f32 1.0, %v4549_v63 }
  0x90   : > { %v4553_v9 = vpop.eup %4552  ;;  %4572 = vrcp.f32 %v2252_v0  ;;  %v2254_v10 = vadd.f32 1.0, %v4551_v4 }
  0x91   : > { %v4555_v14 = vpop.eup %4554  ;;  %v3266_v15 = vmul.f32 %v4553_v9, %v6708_v1  ;;  %4574 = vrcp.f32 %v2253_v5  ;;  %v219_v9 = vld [vmem:[%s6701_s6 + $0x1a0] sm:$0xff] }
  0x92   : > { %v4557_v19 = vpop.eup %4556  ;;  %v3267_v20 = vmul.f32 %v4555_v14, %v6708_v1  ;;  %4576 = vrcp.f32 %v2254_v10  ;;  %v732_v18 = vmul.f32 %v6708_v1, %v219_v9 }
  0x93   : > { %v4559_v24 = vpop.eup %4558  ;;  %3778 = vst [vmem:[%s6758_s21 + $0xd0] sm:$0xff] %v3266_v15  ;;  %v3268_v25 = vmul.f32 %v4557_v19, %v6708_v1  ;;  %4578 = vpow2.f32 %v1270_v6  ;;  %v221_v15 = vld [vmem:[%s6701_s6 + $0x1b0] sm:$0xff]  ;;  %v222_v19 = vld [vmem:[%s6701_s6 + $0x1b8] sm:$0xff] }
  0x94   : > { %v4561_v29 = vpop.eup %4560  ;;  %3779 = vst [vmem:[%s6758_s21 + $0xd8] sm:$0xff] %v3267_v20  ;;  %v3269_v30 = vmul.f32 %v4559_v24, %v6708_v1  ;;  %4580 = vpow2.f32 %v1272_v11 }
  0x95   : > { %v4563_v34 = vpop.eup %4562  ;;  %3780 = vst [vmem:[%s6758_s21 + $0xe0] sm:$0xff] %v3268_v25  ;;  %v3270_v35 = vmul.f32 %v4561_v29, %v6708_v1  ;;  %4582 = vpow2.f32 %v1274_v16 }
  0x96   : > { %v4565_v38 = vpop.eup %4564  ;;  %3781 = vst [vmem:[%s6758_s21 + $0xe8] sm:$0xff] %v3269_v30  ;;  %v3271_v39 = vmul.f32 %v4563_v34, %v6708_v1  ;;  %4584 = vpow2.f32 %v1276_v21  ;;  %v735_v30 = vmul.f32 %v6708_v1, %v222_v19  ;;  %v1296_v34 = vmul.f32 1.442695, %v732_v18 }
  0x97   : > { %v4567_v42 = vpop.eup %4566  ;;  %3782 = vst [vmem:[%s6758_s21 + $0xf0] sm:$0xff] %v3270_v35  ;;  %v3272_v43 = vmul.f32 %v4565_v38, %v6708_v1  ;;  %4586 = vpow2.f32 %v1278_v26  ;;  %v734_v26 = vmul.f32 %v6708_v1, %v221_v15  ;;  %v736_v35 = vmul.f32 %v6708_v1, %v223_v23 }
  0x98   : > { %v4569_v46 = vpop.eup %4568  ;;  %3783 = vst [vmem:[%s6758_s21 + $0xf8] sm:$0xff] %v3271_v39  ;;  %v3273_v47 = vmul.f32 %v4567_v42, %v6708_v1  ;;  %4588 = vpow2.f32 %v1280_v31  ;;  %v225_v31 = vld [vmem:[%s6701_s6 + $0x1d0] sm:$0xff]  ;;  %v1298_v39 = vmul.f32 1.442695, %v733_v22 }
  0x99   : > { %v4571_v49 = vpop.eup %4570  ;;  %3784 = vst [vmem:[%s6758_s21 + $0x100] sm:$0xff] %v3272_v43  ;;  %v3274_v50 = vmul.f32 %v4569_v46, %v6708_v1  ;;  %4590 = vpow2.f32 %v1282_v36  ;;  %v226_v36 = vld [vmem:[%s6701_s6 + $0x1d8] sm:$0xff]  ;;  %v738_v45 = vmul.f32 %v6708_v1, %v225_v31  ;;  %v228_v46 = vld [vmem:[%s6701_s6 + $0x1e8] sm:$0xff] }
  0x9a   : > { %v4573_v52 = vpop.eup %4572  ;;  %3785 = vst [vmem:[%s6758_s21 + $0x108] sm:$0xff] %v3273_v47  ;;  %v3275_v53 = vmul.f32 %v4571_v49, %v6708_v1  ;;  %4592 = vpow2.f32 %v1284_v40  ;;  %v737_v40 = vmul.f32 %v6708_v1, %v224_v27  ;;  %v1302_v49 = vmul.f32 1.442695, %v735_v30 }
  0x9b   : > { %v4575_v55 = vpop.eup %4574  ;;  %3786 = vst [vmem:[%s6758_s21 + $0x110] sm:$0xff] %v3274_v50  ;;  %v3276_v56 = vmul.f32 %v4573_v52, %v6708_v1  ;;  %4594 = vpow2.f32 %v1286_v44  ;;  %v1300_v44 = vmul.f32 1.442695, %v734_v26  ;;  %v739_v50 = vmul.f32 %v6708_v1, %v226_v36 }
  0x9c   : > { %v4577_v58 = vpop.eup %4576  ;;  %3787 = vst [vmem:[%s6758_s21 + $0x118] sm:$0xff] %v3275_v53  ;;  %v3277_v59 = vmul.f32 %v4575_v55, %v6708_v1  ;;  %4596 = vpow2.f32 %v1288_v48  ;;  %v740_v55 = vmul.f32 %v6708_v1, %v227_v41 }
  0x9d   : > { %v4579_v60 = vpop.eup %4578  ;;  %3788 = vst [vmem:[%s6758_s21 + $0x120] sm:$0xff] %v3276_v56  ;;  %v3278_v61 = vmul.f32 %v4577_v58, %v6708_v1  ;;  %4598 = vpow2.f32 %v1290_v51  ;;  %v229_v51 = vld [vmem:[%s6701_s6 + $0x1f0] sm:$0xff]  ;;  %v230_v56 = vld [vmem:[%s6701_s6 + $0x1f8] sm:$0xff] }
  0x9e   : > { %v4581_v62 = vpop.eup %4580  ;;  %3789 = vst [vmem:[%s6758_s21 + $0x128] sm:$0xff] %v3277_v59  ;;  %v2255_v63 = vadd.f32 1.0, %v4579_v60  ;;  %4600 = vpow2.f32 %v1292_v54  ;;  %v1304_v54 = vmul.f32 1.442695, %v736_v35  ;;  %v1306_v59 = vmul.f32 1.442695, %v737_v40 }
  0x9f   : > { %v4583_v0 = vpop.eup %4582  ;;  %3790 = vst [vmem:[%s6758_s21 + $0x130] sm:$0xff] %v3278_v61  ;;  %v2256_v2 = vadd.f32 1.0, %v4581_v62  ;;  %4602 = vpow2.f32 %v1294_v57  ;;  %v741_v60 = vmul.f32 %v6708_v1, %v228_v46  ;;  %v231_v61 = vld [vmem:[%s6701_s6 + $0x200] sm:$0xff]  ;;  %v1312_v9 = vmul.f32 1.442695, %v740_v55  ;;  %v233_v40 = vld [vmem:[%s6701_s6 + $0x210] sm:$0xff] }
  0xa0   : > { %v4585_v3 = vpop.eup %4584  ;;  %4604 = vrcp.f32 %v2255_v63  ;;  %v2257_v4 = vadd.f32 1.0, %v4583_v0  ;;  %v1308_v0 = vmul.f32 1.442695, %v738_v45  ;;  %v237_v55 = vld [vmem:[%s6701_s6 + $0x230] sm:$0xff] }
  0xa1   : > { %v4587_v5 = vpop.eup %4586  ;;  %4606 = vrcp.f32 %v2256_v2  ;;  %v2258_v6 = vadd.f32 1.0, %v4585_v3  ;;  %v742_v2 = vmul.f32 %v6708_v1, %v229_v51  ;;  %v236_v51 = vld [vmem:[%s6701_s6 + $0x228] sm:$0xff] }
  0xa2   : > { %v4589_v7 = vpop.eup %4588  ;;  %4608 = vrcp.f32 %v2257_v4  ;;  %v2259_v8 = vadd.f32 1.0, %v4587_v5  ;;  %v1310_v5 = vmul.f32 1.442695, %v739_v50  ;;  %v746_v50 = vmul.f32 %v6708_v1, %v233_v40 }
  0xa3   : > { %v4591_v10 = vpop.eup %4590  ;;  %4610 = vrcp.f32 %v2258_v6  ;;  %v2260_v11 = vadd.f32 1.0, %v4589_v7  ;;  %v743_v6 = vmul.f32 %v6708_v1, %v230_v56 }
  0xa4   : > { %v4593_v13 = vpop.eup %4592  ;;  %4612 = vrcp.f32 %v2259_v8  ;;  %v2261_v14 = vadd.f32 1.0, %v4591_v10  ;;  %v744_v10 = vmul.f32 %v6708_v1, %v231_v61 }
  0xa5   : > { %v4595_v16 = vpop.eup %4594  ;;  %4614 = vrcp.f32 %v2260_v11  ;;  %v2262_v17 = vadd.f32 1.0, %v4593_v13  ;;  %v1314_v13 = vmul.f32 1.442695, %v741_v60  ;;  %v1318_v19 = vmul.f32 1.442695, %v743_v6  ;;  %v240_v6 = vld [vmem:[%s6701_s6 + $0x248] sm:$0xff] }
  0xa6   : > { %v4597_v20 = vpop.eup %4596  ;;  %4616 = vrcp.f32 %v2261_v14  ;;  %v2263_v21 = vadd.f32 1.0, %v4595_v16  ;;  %v1316_v16 = vmul.f32 1.442695, %v742_v2  ;;  %v1320_v22 = vmul.f32 1.442695, %v744_v10 }
  0xa7   : > { %v4599_v24 = vpop.eup %4598  ;;  %4618 = vrcp.f32 %v2262_v17  ;;  %v2264_v25 = vadd.f32 1.0, %v4597_v20 }
  0xa8   : > { %v4601_v28 = vpop.eup %4600  ;;  %4620 = vrcp.f32 %v2263_v21  ;;  %v2265_v29 = vadd.f32 1.0, %v4599_v24 }
  0xa9   : > { %v4603_v32 = vpop.eup %4602  ;;  %4622 = vrcp.f32 %v2264_v25  ;;  %v2266_v33 = vadd.f32 1.0, %v4601_v28 }
  0xaa   : > { %v4605_v37 = vpop.eup %4604  ;;  %4624 = vrcp.f32 %v2265_v29  ;;  %v2267_v38 = vadd.f32 1.0, %v4603_v32 }
  0xab   : > { %v4607_v42 = vpop.eup %4606  ;;  %v3279_v43 = vmul.f32 %v4605_v37, %v6708_v1  ;;  %4626 = vrcp.f32 %v2266_v33  ;;  %v232_v37 = vld [vmem:[%s6701_s6 + $0x208] sm:$0xff] }
  0xac   : > { %v4609_v47 = vpop.eup %4608  ;;  %v3280_v48 = vmul.f32 %v4607_v42, %v6708_v1  ;;  %4628 = vrcp.f32 %v2267_v38  ;;  %v745_v46 = vmul.f32 %v6708_v1, %v232_v37 }
  0xad   : > { %v4611_v52 = vpop.eup %4610  ;;  %3791 = vst [vmem:[%s6758_s21 + $0x138] sm:$0xff] %v3279_v43  ;;  %v3281_v53 = vmul.f32 %v4609_v47, %v6708_v1  ;;  %4630 = vpow2.f32 %v1296_v34  ;;  %v234_v43 = vld [vmem:[%s6701_s6 + $0x218] sm:$0xff]  ;;  %v235_v47 = vld [vmem:[%s6701_s6 + $0x220] sm:$0xff] }
  0xae   : > { %v4613_v57 = vpop.eup %4612  ;;  %3792 = vst [vmem:[%s6758_s21 + $0x140] sm:$0xff] %v3280_v48  ;;  %v3282_v58 = vmul.f32 %v4611_v52, %v6708_v1  ;;  %4632 = vpow2.f32 %v1298_v39 }
  0xaf   : > { %v4615_v62 = vpop.eup %4614  ;;  %3793 = vst [vmem:[%s6758_s21 + $0x148] sm:$0xff] %v3281_v53  ;;  %v3283_v63 = vmul.f32 %v4613_v57, %v6708_v1  ;;  %4634 = vpow2.f32 %v1300_v44 }
  0xb0   : > { %v4617_v3 = vpop.eup %4616  ;;  %3794 = vst [vmem:[%s6758_s21 + $0x150] sm:$0xff] %v3282_v58  ;;  %v3284_v4 = vmul.f32 %v4615_v62, %v6708_v1  ;;  %4636 = vpow2.f32 %v1302_v49  ;;  %v748_v58 = vmul.f32 %v6708_v1, %v235_v47  ;;  %v1322_v62 = vmul.f32 1.442695, %v745_v46 }
  0xb1   : > { %v4619_v7 = vpop.eup %4618  ;;  %3795 = vst [vmem:[%s6758_s21 + $0x158] sm:$0xff] %v3283_v63  ;;  %v3285_v8 = vmul.f32 %v4617_v3, %v6708_v1  ;;  %4638 = vpow2.f32 %v1304_v54  ;;  %v747_v54 = vmul.f32 %v6708_v1, %v234_v43  ;;  %v749_v63 = vmul.f32 %v6708_v1, %v236_v51 }
  0xb2   : > { %v4621_v11 = vpop.eup %4620  ;;  %3796 = vst [vmem:[%s6758_s21 + $0x160] sm:$0xff] %v3284_v4  ;;  %v3286_v12 = vmul.f32 %v4619_v7, %v6708_v1  ;;  %4640 = vpow2.f32 %v1306_v59  ;;  %v238_v59 = vld [vmem:[%s6701_s6 + $0x238] sm:$0xff]  ;;  %v1324_v4 = vmul.f32 1.442695, %v746_v50 }
  0xb3   : > { %v4623_v14 = vpop.eup %4622  ;;  %3797 = vst [vmem:[%s6758_s21 + $0x168] sm:$0xff] %v3285_v8  ;;  %v3287_v15 = vmul.f32 %v4621_v11, %v6708_v1  ;;  %4642 = vpow2.f32 %v1308_v0  ;;  %v239_v0 = vld [vmem:[%s6701_s6 + $0x240] sm:$0xff]  ;;  %v751_v10 = vmul.f32 %v6708_v1, %v238_v59  ;;  %v241_v11 = vld [vmem:[%s6701_s6 + $0x250] sm:$0xff] }
  0xb4   : > { %v4625_v17 = vpop.eup %4624  ;;  %3798 = vst [vmem:[%s6758_s21 + $0x170] sm:$0xff] %v3286_v12  ;;  %v3288_v18 = vmul.f32 %v4623_v14, %v6708_v1  ;;  %4644 = vpow2.f32 %v1310_v5  ;;  %v750_v5 = vmul.f32 %v6708_v1, %v237_v55  ;;  %v1328_v14 = vmul.f32 1.442695, %v748_v58 }
  0xb5   : > { %v4627_v20 = vpop.eup %4626  ;;  %3799 = vst [vmem:[%s6758_s21 + $0x178] sm:$0xff] %v3287_v15  ;;  %v3289_v21 = vmul.f32 %v4625_v17, %v6708_v1  ;;  %4646 = vpow2.f32 %v1312_v9  ;;  %v1326_v9 = vmul.f32 1.442695, %v747_v54  ;;  %v752_v15 = vmul.f32 %v6708_v1, %v239_v0 }
  0xb6   : > { %v4629_v23 = vpop.eup %4628  ;;  %3800 = vst [vmem:[%s6758_s21 + $0x180] sm:$0xff] %v3288_v18  ;;  %v3290_v24 = vmul.f32 %v4627_v20, %v6708_v1  ;;  %4648 = vpow2.f32 %v1314_v13  ;;  %v753_v20 = vmul.f32 %v6708_v1, %v240_v6 }
  0xb7   : > { %v4631_v25 = vpop.eup %4630  ;;  %3801 = vst [vmem:[%s6758_s21 + $0x188] sm:$0xff] %v3289_v21  ;;  %v3291_v26 = vmul.f32 %v4629_v23, %v6708_v1  ;;  %4650 = vpow2.f32 %v1316_v16  ;;  %v242_v16 = vld [vmem:[%s6701_s6 + $0x258] sm:$0xff]  ;;  %v243_v21 = vld [vmem:[%s6701_s6 + $0x260] sm:$0xff] }
  0xb8   : > { %v4633_v27 = vpop.eup %4632  ;;  %3802 = vst [vmem:[%s6758_s21 + $0x190] sm:$0xff] %v3290_v24  ;;  %v2268_v28 = vadd.f32 1.0, %v4631_v25  ;;  %4652 = vpow2.f32 %v1318_v19  ;;  %v1330_v19 = vmul.f32 1.442695, %v749_v63  ;;  %v1332_v24 = vmul.f32 1.442695, %v750_v5 }
  0xb9   : > { %v4635_v29 = vpop.eup %4634  ;;  %3803 = vst [vmem:[%s6758_s21 + $0x198] sm:$0xff] %v3291_v26  ;;  %v2269_v30 = vadd.f32 1.0, %v4633_v27  ;;  %4654 = vpow2.f32 %v1320_v22  ;;  %v754_v25 = vmul.f32 %v6708_v1, %v241_v11  ;;  %v244_v26 = vld [vmem:[%s6701_s6 + $0x268] sm:$0xff]  ;;  %v1338_v37 = vmul.f32 1.442695, %v753_v20  ;;  %v246_v5 = vld [vmem:[%s6701_s6 + $0x278] sm:$0xff] }
  0xba   : > { %v4637_v31 = vpop.eup %4636  ;;  %4656 = vrcp.f32 %v2268_v28  ;;  %v2270_v32 = vadd.f32 1.0, %v4635_v29  ;;  %v1334_v29 = vmul.f32 1.442695, %v751_v10  ;;  %v250_v20 = vld [vmem:[%s6701_s6 + $0x298] sm:$0xff] }
  0xbb   : > { %v4639_v33 = vpop.eup %4638  ;;  %4658 = vrcp.f32 %v2269_v30  ;;  %v2271_v34 = vadd.f32 1.0, %v4637_v31  ;;  %v755_v30 = vmul.f32 %v6708_v1, %v242_v16  ;;  %v249_v16 = vld [vmem:[%s6701_s6 + $0x290] sm:$0xff] }
  0xbc   : > { %v4641_v35 = vpop.eup %4640  ;;  %4660 = vrcp.f32 %v2270_v32  ;;  %v2272_v36 = vadd.f32 1.0, %v4639_v33  ;;  %v1336_v33 = vmul.f32 1.442695, %v752_v15  ;;  %v759_v15 = vmul.f32 %v6708_v1, %v246_v5 }
  0xbd   : > { %v4643_v38 = vpop.eup %4642  ;;  %4662 = vrcp.f32 %v2271_v34  ;;  %v2273_v39 = vadd.f32 1.0, %v4641_v35  ;;  %v756_v34 = vmul.f32 %v6708_v1, %v243_v21 }
  0xbe   : > { %v4645_v41 = vpop.eup %4644  ;;  %4664 = vrcp.f32 %v2272_v36  ;;  %v2274_v42 = vadd.f32 1.0, %v4643_v38  ;;  %v757_v38 = vmul.f32 %v6708_v1, %v244_v26 }
  0xbf   : > { %v4647_v44 = vpop.eup %4646  ;;  %4666 = vrcp.f32 %v2273_v39  ;;  %v2275_v45 = vadd.f32 1.0, %v4645_v41  ;;  %v1340_v41 = vmul.f32 1.442695, %v754_v25  ;;  %v1344_v47 = vmul.f32 1.442695, %v756_v34  ;;  %v253_v34 = vld [vmem:[%s6701_s6 + $0x2b0] sm:$0xff] }
  0xc0   : > { %v4649_v48 = vpop.eup %4648  ;;  %4668 = vrcp.f32 %v2274_v42  ;;  %v2276_v49 = vadd.f32 1.0, %v4647_v44  ;;  %v1342_v44 = vmul.f32 1.442695, %v755_v30  ;;  %v1346_v50 = vmul.f32 1.442695, %v757_v38 }
  0xc1   : > { %v4651_v52 = vpop.eup %4650  ;;  %4670 = vrcp.f32 %v2275_v45  ;;  %v2277_v53 = vadd.f32 1.0, %v4649_v48 }
  0xc2   : > { %v4653_v56 = vpop.eup %4652  ;;  %4672 = vrcp.f32 %v2276_v49  ;;  %v2278_v57 = vadd.f32 1.0, %v4651_v52 }
  0xc3   : > { %v4655_v60 = vpop.eup %4654  ;;  %4674 = vrcp.f32 %v2277_v53  ;;  %v2279_v61 = vadd.f32 1.0, %v4653_v56 }
  0xc4   : > { %v4657_v2 = vpop.eup %4656  ;;  %4676 = vrcp.f32 %v2278_v57  ;;  %v2280_v3 = vadd.f32 1.0, %v4655_v60 }
  0xc5   : > { %v4659_v7 = vpop.eup %4658  ;;  %v3292_v8 = vmul.f32 %v4657_v2, %v6708_v1  ;;  %4678 = vrcp.f32 %v2279_v61  ;;  %v245_v2 = vld [vmem:[%s6701_s6 + $0x270] sm:$0xff] }
  0xc6   : > { %v4661_v12 = vpop.eup %4660  ;;  %v3293_v13 = vmul.f32 %v4659_v7, %v6708_v1  ;;  %4680 = vrcp.f32 %v2280_v3  ;;  %v758_v11 = vmul.f32 %v6708_v1, %v245_v2 }
  0xc7   : > { %v4663_v17 = vpop.eup %4662  ;;  %3804 = vst [vmem:[%s6758_s21 + $0x1a0] sm:$0xff] %v3292_v8  ;;  %v3294_v18 = vmul.f32 %v4661_v12, %v6708_v1  ;;  %4682 = vpow2.f32 %v1322_v62  ;;  %v247_v8 = vld [vmem:[%s6701_s6 + $0x280] sm:$0xff]  ;;  %v248_v12 = vld [vmem:[%s6701_s6 + $0x288] sm:$0xff] }
  0xc8   : > { %v4665_v22 = vpop.eup %4664  ;;  %3805 = vst [vmem:[%s6758_s21 + $0x1a8] sm:$0xff] %v3293_v13  ;;  %v3295_v23 = vmul.f32 %v4663_v17, %v6708_v1  ;;  %4684 = vpow2.f32 %v1324_v4 }
  0xc9   : > { %v4667_v27 = vpop.eup %4666  ;;  %3806 = vst [vmem:[%s6758_s21 + $0x1b0] sm:$0xff] %v3294_v18  ;;  %v3296_v28 = vmul.f32 %v4665_v22, %v6708_v1  ;;  %4686 = vpow2.f32 %v1326_v9 }
  0xca   : > { %v4669_v31 = vpop.eup %4668  ;;  %3807 = vst [vmem:[%s6758_s21 + $0x1b8] sm:$0xff] %v3295_v23  ;;  %v3297_v32 = vmul.f32 %v4667_v27, %v6708_v1  ;;  %4688 = vpow2.f32 %v1328_v14  ;;  %v761_v23 = vmul.f32 %v6708_v1, %v248_v12  ;;  %v1348_v27 = vmul.f32 1.442695, %v758_v11 }
  0xcb   : > { %v4671_v35 = vpop.eup %4670  ;;  %3808 = vst [vmem:[%s6758_s21 + $0x1c0] sm:$0xff] %v3296_v28  ;;  %v3298_v36 = vmul.f32 %v4669_v31, %v6708_v1  ;;  %4690 = vpow2.f32 %v1330_v19  ;;  %v760_v19 = vmul.f32 %v6708_v1, %v247_v8  ;;  %v762_v28 = vmul.f32 %v6708_v1, %v249_v16 }
  0xcc   : > { %v4673_v39 = vpop.eup %4672  ;;  %3809 = vst [vmem:[%s6758_s21 + $0x1c8] sm:$0xff] %v3297_v32  ;;  %v3299_v40 = vmul.f32 %v4671_v35, %v6708_v1  ;;  %4692 = vpow2.f32 %v1332_v24  ;;  %v251_v24 = vld [vmem:[%s6701_s6 + $0x2a0] sm:$0xff]  ;;  %v1350_v32 = vmul.f32 1.442695, %v759_v15 }
  0xcd   : > { %v4675_v42 = vpop.eup %4674  ;;  %3810 = vst [vmem:[%s6758_s21 + $0x1d0] sm:$0xff] %v3298_v36  ;;  %v3300_v43 = vmul.f32 %v4673_v39, %v6708_v1  ;;  %4694 = vpow2.f32 %v1334_v29  ;;  %v252_v29 = vld [vmem:[%s6701_s6 + $0x2a8] sm:$0xff]  ;;  %v764_v38 = vmul.f32 %v6708_v1, %v251_v24  ;;  %v254_v39 = vld [vmem:[%s6701_s6 + $0x2b8] sm:$0xff] }
  0xce   : > { %v4677_v45 = vpop.eup %4676  ;;  %3811 = vst [vmem:[%s6758_s21 + $0x1d8] sm:$0xff] %v3299_v40  ;;  %v3301_v46 = vmul.f32 %v4675_v42, %v6708_v1  ;;  %4696 = vpow2.f32 %v1336_v33  ;;  %v763_v33 = vmul.f32 %v6708_v1, %v250_v20  ;;  %v1354_v42 = vmul.f32 1.442695, %v761_v23 }
  0xcf   : > { %v4679_v48 = vpop.eup %4678  ;;  %3812 = vst [vmem:[%s6758_s21 + $0x1e0] sm:$0xff] %v3300_v43  ;;  %v3302_v49 = vmul.f32 %v4677_v45, %v6708_v1  ;;  %4698 = vpow2.f32 %v1338_v37  ;;  %v1352_v37 = vmul.f32 1.442695, %v760_v19  ;;  %v765_v43 = vmul.f32 %v6708_v1, %v252_v29 }
  0xd0   : > { %v4681_v51 = vpop.eup %4680  ;;  %3813 = vst [vmem:[%s6758_s21 + $0x1e8] sm:$0xff] %v3301_v46  ;;  %v3303_v52 = vmul.f32 %v4679_v48, %v6708_v1  ;;  %4700 = vpow2.f32 %v1340_v41  ;;  %v766_v48 = vmul.f32 %v6708_v1, %v253_v34 }
  0xd1   : > { %v4683_v53 = vpop.eup %4682  ;;  %3814 = vst [vmem:[%s6758_s21 + $0x1f0] sm:$0xff] %v3302_v49  ;;  %v3304_v54 = vmul.f32 %v4681_v51, %v6708_v1  ;;  %4702 = vpow2.f32 %v1342_v44  ;;  %v255_v44 = vld [vmem:[%s6701_s6 + $0x2c0] sm:$0xff]  ;;  %v256_v49 = vld [vmem:[%s6701_s6 + $0x2c8] sm:$0xff] }
  0xd2   : > { %v4685_v55 = vpop.eup %4684  ;;  %3815 = vst [vmem:[%s6758_s21 + $0x1f8] sm:$0xff] %v3303_v52  ;;  %v2281_v56 = vadd.f32 1.0, %v4683_v53  ;;  %4704 = vpow2.f32 %v1344_v47  ;;  %v1356_v47 = vmul.f32 1.442695, %v762_v28  ;;  %v1358_v52 = vmul.f32 1.442695, %v763_v33 }
  0xd3   : > { %v4687_v57 = vpop.eup %4686  ;;  %3816 = vst [vmem:[%s6758_s21 + $0x200] sm:$0xff] %v3304_v54  ;;  %v2282_v58 = vadd.f32 1.0, %v4685_v55  ;;  %4706 = vpow2.f32 %v1346_v50  ;;  %v767_v53 = vmul.f32 %v6708_v1, %v254_v39  ;;  %v257_v54 = vld [vmem:[%s6701_s6 + $0x2d0] sm:$0xff]  ;;  %v1364_v2 = vmul.f32 1.442695, %v766_v48  ;;  %v259_v33 = vld [vmem:[%s6701_s6 + $0x2e0] sm:$0xff] }
  0xd4   : > { %v4689_v59 = vpop.eup %4688  ;;  %4708 = vrcp.f32 %v2281_v56  ;;  %v2283_v60 = vadd.f32 1.0, %v4687_v57  ;;  %v1360_v57 = vmul.f32 1.442695, %v764_v38  ;;  %v263_v48 = vld [vmem:[%s6701_s6 + $0x300] sm:$0xff] }
  0xd5   : > { %v4691_v61 = vpop.eup %4690  ;;  %4710 = vrcp.f32 %v2282_v58  ;;  %v2284_v62 = vadd.f32 1.0, %v4689_v59  ;;  %v768_v58 = vmul.f32 %v6708_v1, %v255_v44  ;;  %v262_v44 = vld [vmem:[%s6701_s6 + $0x2f8] sm:$0xff] }
  0xd6   : > { %v4693_v63 = vpop.eup %4692  ;;  %4712 = vrcp.f32 %v2283_v60  ;;  %v2285_v0 = vadd.f32 1.0, %v4691_v61  ;;  %v1362_v61 = vmul.f32 1.442695, %v765_v43  ;;  %v772_v43 = vmul.f32 %v6708_v1, %v259_v33 }
  0xd7   : > { %v4695_v3 = vpop.eup %4694  ;;  %4714 = vrcp.f32 %v2284_v62  ;;  %v2286_v4 = vadd.f32 1.0, %v4693_v63  ;;  %v769_v62 = vmul.f32 %v6708_v1, %v256_v49 }
  0xd8   : > { %v4697_v6 = vpop.eup %4696  ;;  %4716 = vrcp.f32 %v2285_v0  ;;  %v2287_v7 = vadd.f32 1.0, %v4695_v3  ;;  %v770_v3 = vmul.f32 %v6708_v1, %v257_v54 }
  0xd9   : > { %v4699_v9 = vpop.eup %4698  ;;  %4718 = vrcp.f32 %v2286_v4  ;;  %v2288_v10 = vadd.f32 1.0, %v4697_v6  ;;  %v1366_v6 = vmul.f32 1.442695, %v767_v53  ;;  %v1370_v12 = vmul.f32 1.442695, %v769_v62  ;;  %v266_v62 = vld [vmem:[%s6701_s6 + $0x318] sm:$0xff] }
  0xda   : > { %v4701_v13 = vpop.eup %4700  ;;  %4720 = vrcp.f32 %v2287_v7  ;;  %v2289_v14 = vadd.f32 1.0, %v4699_v9  ;;  %v1368_v9 = vmul.f32 1.442695, %v768_v58  ;;  %v1372_v15 = vmul.f32 1.442695, %v770_v3 }
  0xdb   : > { %v4703_v17 = vpop.eup %4702  ;;  %4722 = vrcp.f32 %v2288_v10  ;;  %v2290_v18 = vadd.f32 1.0, %v4701_v13 }
  0xdc   : > { %v4705_v21 = vpop.eup %4704  ;;  %4724 = vrcp.f32 %v2289_v14  ;;  %v2291_v22 = vadd.f32 1.0, %v4703_v17 }
  0xdd   : > { %v4707_v25 = vpop.eup %4706  ;;  %4726 = vrcp.f32 %v2290_v18  ;;  %v2292_v26 = vadd.f32 1.0, %v4705_v21 }
  0xde   : > { %v4709_v30 = vpop.eup %4708  ;;  %4728 = vrcp.f32 %v2291_v22  ;;  %v2293_v31 = vadd.f32 1.0, %v4707_v25 }
  0xdf   : > { %v4711_v35 = vpop.eup %4710  ;;  %v3305_v36 = vmul.f32 %v4709_v30, %v6708_v1  ;;  %4730 = vrcp.f32 %v2292_v26  ;;  %v258_v30 = vld [vmem:[%s6701_s6 + $0x2d8] sm:$0xff] }
  0xe0   : > { %v4713_v40 = vpop.eup %4712  ;;  %v3306_v41 = vmul.f32 %v4711_v35, %v6708_v1  ;;  %4732 = vrcp.f32 %v2293_v31  ;;  %v771_v39 = vmul.f32 %v6708_v1, %v258_v30 }
  0xe1   : > { %v4715_v45 = vpop.eup %4714  ;;  %3817 = vst [vmem:[%s6758_s21 + $0x208] sm:$0xff] %v3305_v36  ;;  %v3307_v46 = vmul.f32 %v4713_v40, %v6708_v1  ;;  %4734 = vpow2.f32 %v1348_v27  ;;  %v260_v36 = vld [vmem:[%s6701_s6 + $0x2e8] sm:$0xff]  ;;  %v261_v40 = vld [vmem:[%s6701_s6 + $0x2f0] sm:$0xff] }
  0xe2   : > { %v4717_v50 = vpop.eup %4716  ;;  %3818 = vst [vmem:[%s6758_s21 + $0x210] sm:$0xff] %v3306_v41  ;;  %v3308_v51 = vmul.f32 %v4715_v45, %v6708_v1  ;;  %4736 = vpow2.f32 %v1350_v32 }
  0xe3   : > { %v4719_v55 = vpop.eup %4718  ;;  %3819 = vst [vmem:[%s6758_s21 + $0x218] sm:$0xff] %v3307_v46  ;;  %v3309_v56 = vmul.f32 %v4717_v50, %v6708_v1  ;;  %4738 = vpow2.f32 %v1352_v37 }
  0xe4   : > { %v4721_v59 = vpop.eup %4720  ;;  %3820 = vst [vmem:[%s6758_s21 + $0x220] sm:$0xff] %v3308_v51  ;;  %v3310_v60 = vmul.f32 %v4719_v55, %v6708_v1  ;;  %4740 = vpow2.f32 %v1354_v42  ;;  %v774_v51 = vmul.f32 %v6708_v1, %v261_v40  ;;  %v1374_v55 = vmul.f32 1.442695, %v771_v39 }
  0xe5   : > { %v4723_v63 = vpop.eup %4722  ;;  %3821 = vst [vmem:[%s6758_s21 + $0x228] sm:$0xff] %v3309_v56  ;;  %v3311_v0 = vmul.f32 %v4721_v59, %v6708_v1  ;;  %4742 = vpow2.f32 %v1356_v47  ;;  %v773_v47 = vmul.f32 %v6708_v1, %v260_v36  ;;  %v775_v56 = vmul.f32 %v6708_v1, %v262_v44 }
  0xe6   : > { %v4725_v4 = vpop.eup %4724  ;;  %3822 = vst [vmem:[%s6758_s21 + $0x230] sm:$0xff] %v3310_v60  ;;  %v3312_v5 = vmul.f32 %v4723_v63, %v6708_v1  ;;  %4744 = vpow2.f32 %v1358_v52  ;;  %v264_v52 = vld [vmem:[%s6701_s6 + $0x308] sm:$0xff]  ;;  %v1376_v60 = vmul.f32 1.442695, %v772_v43 }
  0xe7   : > { %v4727_v7 = vpop.eup %4726  ;;  %3823 = vst [vmem:[%s6758_s21 + $0x238] sm:$0xff] %v3311_v0  ;;  %v3313_v8 = vmul.f32 %v4725_v4, %v6708_v1  ;;  %4746 = vpow2.f32 %v1360_v57  ;;  %v265_v57 = vld [vmem:[%s6701_s6 + $0x310] sm:$0xff]  ;;  %v777_v3 = vmul.f32 %v6708_v1, %v264_v52  ;;  %v267_v4 = vld [vmem:[%s6701_s6 + $0x320] sm:$0xff] }
  0xe8   : > { %v4729_v10 = vpop.eup %4728  ;;  %3824 = vst [vmem:[%s6758_s21 + $0x240] sm:$0xff] %v3312_v5  ;;  %v3314_v11 = vmul.f32 %v4727_v7, %v6708_v1  ;;  %4748 = vpow2.f32 %v1362_v61  ;;  %v776_v61 = vmul.f32 %v6708_v1, %v263_v48  ;;  %v1380_v7 = vmul.f32 1.442695, %v774_v51 }
  0xe9   : > { %v4731_v13 = vpop.eup %4730  ;;  %3825 = vst [vmem:[%s6758_s21 + $0x248] sm:$0xff] %v3313_v8  ;;  %v3315_v14 = vmul.f32 %v4729_v10, %v6708_v1  ;;  %4750 = vpow2.f32 %v1364_v2  ;;  %v1378_v2 = vmul.f32 1.442695, %v773_v47  ;;  %v778_v8 = vmul.f32 %v6708_v1, %v265_v57 }
  0xea   : > { %v4733_v16 = vpop.eup %4732  ;;  %3826 = vst [vmem:[%s6758_s21 + $0x250] sm:$0xff] %v3314_v11  ;;  %v3316_v17 = vmul.f32 %v4731_v13, %v6708_v1  ;;  %4752 = vpow2.f32 %v1366_v6  ;;  %v779_v13 = vmul.f32 %v6708_v1, %v266_v62 }
  0xeb   : > { %v4735_v18 = vpop.eup %4734  ;;  %3827 = vst [vmem:[%s6758_s21 + $0x258] sm:$0xff] %v3315_v14  ;;  %v3317_v19 = vmul.f32 %v4733_v16, %v6708_v1  ;;  %4754 = vpow2.f32 %v1368_v9  ;;  %v268_v9 = vld [vmem:[%s6701_s6 + $0x328] sm:$0xff]  ;;  %v269_v14 = vld [vmem:[%s6701_s6 + $0x330] sm:$0xff] }
  0xec   : > { %v4737_v20 = vpop.eup %4736  ;;  %3828 = vst [vmem:[%s6758_s21 + $0x260] sm:$0xff] %v3316_v17  ;;  %v2294_v21 = vadd.f32 1.0, %v4735_v18  ;;  %4756 = vpow2.f32 %v1370_v12  ;;  %v1382_v12 = vmul.f32 1.442695, %v775_v56  ;;  %v1384_v17 = vmul.f32 1.442695, %v776_v61 }
  0xed   : > { %v4739_v22 = vpop.eup %4738  ;;  %3829 = vst [vmem:[%s6758_s21 + $0x268] sm:$0xff] %v3317_v19  ;;  %v2295_v23 = vadd.f32 1.0, %v4737_v20  ;;  %4758 = vpow2.f32 %v1372_v15  ;;  %v780_v18 = vmul.f32 %v6708_v1, %v267_v4  ;;  %v270_v19 = vld [vmem:[%s6701_s6 + $0x338] sm:$0xff]  ;;  %v1390_v30 = vmul.f32 1.442695, %v779_v13  ;;  %v272_v61 = vld [vmem:[%s6701_s6 + $0x348] sm:$0xff] }
  0xee   : > { %v4741_v24 = vpop.eup %4740  ;;  %4760 = vrcp.f32 %v2294_v21  ;;  %v2296_v25 = vadd.f32 1.0, %v4739_v22  ;;  %v1386_v22 = vmul.f32 1.442695, %v777_v3  ;;  %v276_v13 = vld [vmem:[%s6701_s6 + $0x368] sm:$0xff] }
  0xef   : > { %v4743_v26 = vpop.eup %4742  ;;  %4762 = vrcp.f32 %v2295_v23  ;;  %v2297_v27 = vadd.f32 1.0, %v4741_v24  ;;  %v781_v23 = vmul.f32 %v6708_v1, %v268_v9  ;;  %v275_v9 = vld [vmem:[%s6701_s6 + $0x360] sm:$0xff] }
  0xf0   : > { %v4745_v28 = vpop.eup %4744  ;;  %4764 = vrcp.f32 %v2296_v25  ;;  %v2298_v29 = vadd.f32 1.0, %v4743_v26  ;;  %v1388_v26 = vmul.f32 1.442695, %v778_v8  ;;  %v785_v8 = vmul.f32 %v6708_v1, %v272_v61 }
  0xf1   : > { %v4747_v31 = vpop.eup %4746  ;;  %4766 = vrcp.f32 %v2297_v27  ;;  %v2299_v32 = vadd.f32 1.0, %v4745_v28  ;;  %v782_v27 = vmul.f32 %v6708_v1, %v269_v14 }
  0xf2   : > { %v4749_v34 = vpop.eup %4748  ;;  %4768 = vrcp.f32 %v2298_v29  ;;  %v2300_v35 = vadd.f32 1.0, %v4747_v31  ;;  %v783_v31 = vmul.f32 %v6708_v1, %v270_v19 }
  0xf3   : > { %v4751_v37 = vpop.eup %4750  ;;  %4770 = vrcp.f32 %v2299_v32  ;;  %v2301_v38 = vadd.f32 1.0, %v4749_v34  ;;  %v1392_v34 = vmul.f32 1.442695, %v780_v18  ;;  %v1396_v40 = vmul.f32 1.442695, %v782_v27  ;;  %v279_v27 = vld [vmem:[%s6701_s6 + $0x380] sm:$0xff] }
  0xf4   : > { %v4753_v41 = vpop.eup %4752  ;;  %4772 = vrcp.f32 %v2300_v35  ;;  %v2302_v42 = vadd.f32 1.0, %v4751_v37  ;;  %v1394_v37 = vmul.f32 1.442695, %v781_v23  ;;  %v1398_v43 = vmul.f32 1.442695, %v783_v31 }
  0xf5   : > { %v4755_v45 = vpop.eup %4754  ;;  %4774 = vrcp.f32 %v2301_v38  ;;  %v2303_v46 = vadd.f32 1.0, %v4753_v41 }
  0xf6   : > { %v4757_v49 = vpop.eup %4756  ;;  %4776 = vrcp.f32 %v2302_v42  ;;  %v2304_v50 = vadd.f32 1.0, %v4755_v45 }
  0xf7   : > { %v4759_v53 = vpop.eup %4758  ;;  %4778 = vrcp.f32 %v2303_v46  ;;  %v2305_v54 = vadd.f32 1.0, %v4757_v49 }
  0xf8   : > { %v4761_v58 = vpop.eup %4760  ;;  %4780 = vrcp.f32 %v2304_v50  ;;  %v2306_v59 = vadd.f32 1.0, %v4759_v53 }
  0xf9   : > { %v4763_v63 = vpop.eup %4762  ;;  %v3318_v0 = vmul.f32 %v4761_v58, %v6708_v1  ;;  %4782 = vrcp.f32 %v2305_v54  ;;  %v271_v58 = vld [vmem:[%s6701_s6 + $0x340] sm:$0xff] }
  0xfa   : > { %v4765_v5 = vpop.eup %4764  ;;  %v3319_v6 = vmul.f32 %v4763_v63, %v6708_v1  ;;  %4784 = vrcp.f32 %v2306_v59  ;;  %v784_v4 = vmul.f32 %v6708_v1, %v271_v58 }
  0xfb   : > { %v4767_v10 = vpop.eup %4766  ;;  %3830 = vst [vmem:[%s6758_s21 + $0x270] sm:$0xff] %v3318_v0  ;;  %v3320_v11 = vmul.f32 %v4765_v5, %v6708_v1  ;;  %4786 = vpow2.f32 %v1374_v55  ;;  %v273_v0 = vld [vmem:[%s6701_s6 + $0x350] sm:$0xff]  ;;  %v274_v5 = vld [vmem:[%s6701_s6 + $0x358] sm:$0xff] }
  0xfc   : > { %v4769_v15 = vpop.eup %4768  ;;  %3831 = vst [vmem:[%s6758_s21 + $0x278] sm:$0xff] %v3319_v6  ;;  %v3321_v16 = vmul.f32 %v4767_v10, %v6708_v1  ;;  %4788 = vpow2.f32 %v1376_v60 }
  0xfd   : > { %v4771_v20 = vpop.eup %4770  ;;  %3832 = vst [vmem:[%s6758_s21 + $0x280] sm:$0xff] %v3320_v11  ;;  %v3322_v21 = vmul.f32 %v4769_v15, %v6708_v1  ;;  %4790 = vpow2.f32 %v1378_v2 }
  0xfe   : > { %v4773_v24 = vpop.eup %4772  ;;  %3833 = vst [vmem:[%s6758_s21 + $0x288] sm:$0xff] %v3321_v16  ;;  %v3323_v25 = vmul.f32 %v4771_v20, %v6708_v1  ;;  %4792 = vpow2.f32 %v1380_v7  ;;  %v787_v16 = vmul.f32 %v6708_v1, %v274_v5  ;;  %v1400_v20 = vmul.f32 1.442695, %v784_v4 }
  0xff   : > { %v4775_v28 = vpop.eup %4774  ;;  %3834 = vst [vmem:[%s6758_s21 + $0x290] sm:$0xff] %v3322_v21  ;;  %v3324_v29 = vmul.f32 %v4773_v24, %v6708_v1  ;;  %4794 = vpow2.f32 %v1382_v12  ;;  %v786_v12 = vmul.f32 %v6708_v1, %v273_v0  ;;  %v788_v21 = vmul.f32 %v6708_v1, %v275_v9 }
 0x100   : > { %v4777_v32 = vpop.eup %4776  ;;  %3835 = vst [vmem:[%s6758_s21 + $0x298] sm:$0xff] %v3323_v25  ;;  %v3325_v33 = vmul.f32 %v4775_v28, %v6708_v1  ;;  %4796 = vpow2.f32 %v1384_v17  ;;  %v277_v17 = vld [vmem:[%s6701_s6 + $0x370] sm:$0xff]  ;;  %v1402_v25 = vmul.f32 1.442695, %v785_v8 }
 0x101   : > { %v4779_v35 = vpop.eup %4778  ;;  %3836 = vst [vmem:[%s6758_s21 + $0x2a0] sm:$0xff] %v3324_v29  ;;  %v3326_v36 = vmul.f32 %v4777_v32, %v6708_v1  ;;  %4798 = vpow2.f32 %v1386_v22  ;;  %v278_v22 = vld [vmem:[%s6701_s6 + $0x378] sm:$0xff]  ;;  %v790_v31 = vmul.f32 %v6708_v1, %v277_v17  ;;  %v280_v32 = vld [vmem:[%s6701_s6 + $0x388] sm:$0xff] }
 0x102   : > { %v4781_v38 = vpop.eup %4780  ;;  %3837 = vst [vmem:[%s6758_s21 + $0x2a8] sm:$0xff] %v3325_v33  ;;  %v3327_v39 = vmul.f32 %v4779_v35, %v6708_v1  ;;  %4800 = vpow2.f32 %v1388_v26  ;;  %v789_v26 = vmul.f32 %v6708_v1, %v276_v13  ;;  %v1406_v35 = vmul.f32 1.442695, %v787_v16 }
 0x103   : > { %v4783_v41 = vpop.eup %4782  ;;  %3838 = vst [vmem:[%s6758_s21 + $0x2b0] sm:$0xff] %v3326_v36  ;;  %v3328_v42 = vmul.f32 %v4781_v38, %v6708_v1  ;;  %4802 = vpow2.f32 %v1390_v30  ;;  %v1404_v30 = vmul.f32 1.442695, %v786_v12  ;;  %v791_v36 = vmul.f32 %v6708_v1, %v278_v22 }
 0x104   : > { %v4785_v44 = vpop.eup %4784  ;;  %3839 = vst [vmem:[%s6758_s21 + $0x2b8] sm:$0xff] %v3327_v39  ;;  %v3329_v45 = vmul.f32 %v4783_v41, %v6708_v1  ;;  %4804 = vpow2.f32 %v1392_v34  ;;  %v792_v41 = vmul.f32 %v6708_v1, %v279_v27 }
 0x105   : > { %v4787_v46 = vpop.eup %4786  ;;  %3840 = vst [vmem:[%s6758_s21 + $0x2c0] sm:$0xff] %v3328_v42  ;;  %v3330_v47 = vmul.f32 %v4785_v44, %v6708_v1  ;;  %4806 = vpow2.f32 %v1394_v37  ;;  %v281_v37 = vld [vmem:[%s6701_s6 + $0x390] sm:$0xff]  ;;  %v282_v42 = vld [vmem:[%s6701_s6 + $0x398] sm:$0xff] }
 0x106   : > { %v4789_v48 = vpop.eup %4788  ;;  %3841 = vst [vmem:[%s6758_s21 + $0x2c8] sm:$0xff] %v3329_v45  ;;  %v2307_v49 = vadd.f32 1.0, %v4787_v46  ;;  %4808 = vpow2.f32 %v1396_v40  ;;  %v1408_v40 = vmul.f32 1.442695, %v788_v21  ;;  %v1410_v45 = vmul.f32 1.442695, %v789_v26 }
 0x107   : > { %v4791_v50 = vpop.eup %4790  ;;  %3842 = vst [vmem:[%s6758_s21 + $0x2d0] sm:$0xff] %v3330_v47  ;;  %v2308_v51 = vadd.f32 1.0, %v4789_v48  ;;  %4810 = vpow2.f32 %v1398_v43  ;;  %v793_v46 = vmul.f32 %v6708_v1, %v280_v32  ;;  %v283_v47 = vld [vmem:[%s6701_s6 + $0x3a0] sm:$0xff]  ;;  %v1416_v58 = vmul.f32 1.442695, %v792_v41  ;;  %v285_v26 = vld [vmem:[%s6701_s6 + $0x3b0] sm:$0xff] }
 0x108   : > { %v4793_v52 = vpop.eup %4792  ;;  %4812 = vrcp.f32 %v2307_v49  ;;  %v2309_v53 = vadd.f32 1.0, %v4791_v50  ;;  %v1412_v50 = vmul.f32 1.442695, %v790_v31  ;;  %v289_v41 = vld [vmem:[%s6701_s6 + $0x3d0] sm:$0xff] }
 0x109   : > { %v4795_v54 = vpop.eup %4794  ;;  %4814 = vrcp.f32 %v2308_v51  ;;  %v2310_v55 = vadd.f32 1.0, %v4793_v52  ;;  %v794_v51 = vmul.f32 %v6708_v1, %v281_v37  ;;  %v288_v37 = vld [vmem:[%s6701_s6 + $0x3c8] sm:$0xff] }
 0x10a   : > { %v4797_v56 = vpop.eup %4796  ;;  %4816 = vrcp.f32 %v2309_v53  ;;  %v2311_v57 = vadd.f32 1.0, %v4795_v54  ;;  %v1414_v54 = vmul.f32 1.442695, %v791_v36  ;;  %v798_v36 = vmul.f32 %v6708_v1, %v285_v26 }
 0x10b   : > { %v4799_v59 = vpop.eup %4798  ;;  %4818 = vrcp.f32 %v2310_v55  ;;  %v2312_v60 = vadd.f32 1.0, %v4797_v56  ;;  %v795_v55 = vmul.f32 %v6708_v1, %v282_v42 }
 0x10c   : > { %v4801_v62 = vpop.eup %4800  ;;  %4820 = vrcp.f32 %v2311_v57  ;;  %v2313_v63 = vadd.f32 1.0, %v4799_v59  ;;  %v796_v59 = vmul.f32 %v6708_v1, %v283_v47 }
 0x10d   : > { %v4803_v2 = vpop.eup %4802  ;;  %4822 = vrcp.f32 %v2312_v60  ;;  %v2314_v3 = vadd.f32 1.0, %v4801_v62  ;;  %v1418_v62 = vmul.f32 1.442695, %v793_v46  ;;  %v1422_v5 = vmul.f32 1.442695, %v795_v55  ;;  %v292_v55 = vld [vmem:[%s6701_s6 + $0x3e8] sm:$0xff] }
 0x10e   : > { %v4805_v6 = vpop.eup %4804  ;;  %4824 = vrcp.f32 %v2313_v63  ;;  %v2315_v7 = vadd.f32 1.0, %v4803_v2  ;;  %v1420_v2 = vmul.f32 1.442695, %v794_v51  ;;  %v1424_v8 = vmul.f32 1.442695, %v796_v59 }
 0x10f   : > { %v4807_v10 = vpop.eup %4806  ;;  %4826 = vrcp.f32 %v2314_v3  ;;  %v2316_v11 = vadd.f32 1.0, %v4805_v6 }
 0x110   : > { %v4809_v14 = vpop.eup %4808  ;;  %4828 = vrcp.f32 %v2315_v7  ;;  %v2317_v15 = vadd.f32 1.0, %v4807_v10 }
 0x111   : > { %v4811_v18 = vpop.eup %4810  ;;  %4830 = vrcp.f32 %v2316_v11  ;;  %v2318_v19 = vadd.f32 1.0, %v4809_v14 }
 0x112   : > { %v4813_v23 = vpop.eup %4812  ;;  %4832 = vrcp.f32 %v2317_v15  ;;  %v2319_v24 = vadd.f32 1.0, %v4811_v18 }
 0x113   : > { %v4815_v28 = vpop.eup %4814  ;;  %v3331_v29 = vmul.f32 %v4813_v23, %v6708_v1  ;;  %4834 = vrcp.f32 %v2318_v19  ;;  %v284_v23 = vld [vmem:[%s6701_s6 + $0x3a8] sm:$0xff] }
 0x114   : > { %v4817_v33 = vpop.eup %4816  ;;  %v3332_v34 = vmul.f32 %v4815_v28, %v6708_v1  ;;  %4836 = vrcp.f32 %v2319_v24  ;;  %v797_v32 = vmul.f32 %v6708_v1, %v284_v23 }
 0x115   : > { %v4819_v38 = vpop.eup %4818  ;;  %3843 = vst [vmem:[%s6758_s21 + $0x2d8] sm:$0xff] %v3331_v29  ;;  %v3333_v39 = vmul.f32 %v4817_v33, %v6708_v1  ;;  %4838 = vpow2.f32 %v1400_v20  ;;  %v286_v29 = vld [vmem:[%s6701_s6 + $0x3b8] sm:$0xff]  ;;  %v287_v33 = vld [vmem:[%s6701_s6 + $0x3c0] sm:$0xff] }
 0x116   : > { %v4821_v43 = vpop.eup %4820  ;;  %3844 = vst [vmem:[%s6758_s21 + $0x2e0] sm:$0xff] %v3332_v34  ;;  %v3334_v44 = vmul.f32 %v4819_v38, %v6708_v1  ;;  %4840 = vpow2.f32 %v1402_v25 }
 0x117   : > { %v4823_v48 = vpop.eup %4822  ;;  %3845 = vst [vmem:[%s6758_s21 + $0x2e8] sm:$0xff] %v3333_v39  ;;  %v3335_v49 = vmul.f32 %v4821_v43, %v6708_v1  ;;  %4842 = vpow2.f32 %v1404_v30 }
 0x118   : > { %v4825_v52 = vpop.eup %4824  ;;  %3846 = vst [vmem:[%s6758_s21 + $0x2f0] sm:$0xff] %v3334_v44  ;;  %v3336_v53 = vmul.f32 %v4823_v48, %v6708_v1  ;;  %4844 = vpow2.f32 %v1406_v35  ;;  %v800_v44 = vmul.f32 %v6708_v1, %v287_v33  ;;  %v1426_v48 = vmul.f32 1.442695, %v797_v32 }
 0x119   : > { %v4827_v56 = vpop.eup %4826  ;;  %3847 = vst [vmem:[%s6758_s21 + $0x2f8] sm:$0xff] %v3335_v49  ;;  %v3337_v57 = vmul.f32 %v4825_v52, %v6708_v1  ;;  %4846 = vpow2.f32 %v1408_v40  ;;  %v799_v40 = vmul.f32 %v6708_v1, %v286_v29  ;;  %v801_v49 = vmul.f32 %v6708_v1, %v288_v37 }
 0x11a   : > { %v4829_v60 = vpop.eup %4828  ;;  %3848 = vst [vmem:[%s6758_s21 + $0x300] sm:$0xff] %v3336_v53  ;;  %v3338_v61 = vmul.f32 %v4827_v56, %v6708_v1  ;;  %4848 = vpow2.f32 %v1410_v45  ;;  %v290_v45 = vld [vmem:[%s6701_s6 + $0x3d8] sm:$0xff]  ;;  %v1428_v53 = vmul.f32 1.442695, %v798_v36 }
 0x11b   : > { %v4831_v63 = vpop.eup %4830  ;;  %3849 = vst [vmem:[%s6758_s21 + $0x308] sm:$0xff] %v3337_v57  ;;  %v3339_v0 = vmul.f32 %v4829_v60, %v6708_v1  ;;  %4850 = vpow2.f32 %v1412_v50  ;;  %v291_v50 = vld [vmem:[%s6701_s6 + $0x3e0] sm:$0xff]  ;;  %v803_v59 = vmul.f32 %v6708_v1, %v290_v45  ;;  %v293_v60 = vld [vmem:[%s6701_s6 + $0x3f0] sm:$0xff] }
 0x11c   : > { %v4833_v3 = vpop.eup %4832  ;;  %3850 = vst [vmem:[%s6758_s21 + $0x310] sm:$0xff] %v3338_v61  ;;  %v3340_v4 = vmul.f32 %v4831_v63, %v6708_v1  ;;  %4852 = vpow2.f32 %v1414_v54  ;;  %v802_v54 = vmul.f32 %v6708_v1, %v289_v41  ;;  %v1432_v63 = vmul.f32 1.442695, %v800_v44 }
 0x11d   : > { %v4835_v6 = vpop.eup %4834  ;;  %3851 = vst [vmem:[%s6758_s21 + $0x318] sm:$0xff] %v3339_v0  ;;  %v3341_v7 = vmul.f32 %v4833_v3, %v6708_v1  ;;  %4854 = vpow2.f32 %v1416_v58  ;;  %v1430_v58 = vmul.f32 1.442695, %v799_v40  ;;  %v804_v0 = vmul.f32 %v6708_v1, %v291_v50 }
 0x11e   : > { %v4837_v9 = vpop.eup %4836  ;;  %3852 = vst [vmem:[%s6758_s21 + $0x320] sm:$0xff] %v3340_v4  ;;  %v3342_v10 = vmul.f32 %v4835_v6, %v6708_v1  ;;  %4856 = vpow2.f32 %v1418_v62  ;;  %v805_v6 = vmul.f32 %v6708_v1, %v292_v55 }
 0x11f   : > { %v4839_v11 = vpop.eup %4838  ;;  %3853 = vst [vmem:[%s6758_s21 + $0x328] sm:$0xff] %v3341_v7  ;;  %v3343_v12 = vmul.f32 %v4837_v9, %v6708_v1  ;;  %4858 = vpow2.f32 %v1420_v2  ;;  %v294_v2 = vld [vmem:[%s6701_s6 + $0x3f8] sm:$0xff]  ;;  %v295_v7 = vld [vmem:[%s6701_s6 + $0x400] sm:$0xff] }
 0x120   : > { %v4841_v13 = vpop.eup %4840  ;;  %3854 = vst [vmem:[%s6758_s21 + $0x330] sm:$0xff] %v3342_v10  ;;  %v2320_v14 = vadd.f32 1.0, %v4839_v11  ;;  %4860 = vpow2.f32 %v1422_v5  ;;  %v1434_v5 = vmul.f32 1.442695, %v801_v49  ;;  %v1436_v10 = vmul.f32 1.442695, %v802_v54 }
 0x121   : > { %v4843_v15 = vpop.eup %4842  ;;  %3855 = vst [vmem:[%s6758_s21 + $0x338] sm:$0xff] %v3343_v12  ;;  %v2321_v16 = vadd.f32 1.0, %v4841_v13  ;;  %4862 = vpow2.f32 %v1424_v8  ;;  %v806_v11 = vmul.f32 %v6708_v1, %v293_v60  ;;  %v296_v12 = vld [vmem:[%s6701_s6 + $0x408] sm:$0xff]  ;;  %v1442_v23 = vmul.f32 1.442695, %v805_v6  ;;  %v298_v54 = vld [vmem:[%s6701_s6 + $0x418] sm:$0xff] }
 0x122   : > { %v4845_v17 = vpop.eup %4844  ;;  %4864 = vrcp.f32 %v2320_v14  ;;  %v2322_v18 = vadd.f32 1.0, %v4843_v15  ;;  %v1438_v15 = vmul.f32 1.442695, %v803_v59  ;;  %v302_v6 = vld [vmem:[%s6701_s6 + $0x438] sm:$0xff] }
 0x123   : > { %v4847_v19 = vpop.eup %4846  ;;  %4866 = vrcp.f32 %v2321_v16  ;;  %v2323_v20 = vadd.f32 1.0, %v4845_v17  ;;  %v807_v16 = vmul.f32 %v6708_v1, %v294_v2  ;;  %v301_v2 = vld [vmem:[%s6701_s6 + $0x430] sm:$0xff] }
 0x124   : > { %v4849_v21 = vpop.eup %4848  ;;  %4868 = vrcp.f32 %v2322_v18  ;;  %v2324_v22 = vadd.f32 1.0, %v4847_v19  ;;  %v1440_v19 = vmul.f32 1.442695, %v804_v0  ;;  %v811_v0 = vmul.f32 %v6708_v1, %v298_v54 }
 0x125   : > { %v4851_v24 = vpop.eup %4850  ;;  %4870 = vrcp.f32 %v2323_v20  ;;  %v2325_v25 = vadd.f32 1.0, %v4849_v21  ;;  %v808_v20 = vmul.f32 %v6708_v1, %v295_v7 }
 0x126   : > { %v4853_v27 = vpop.eup %4852  ;;  %4872 = vrcp.f32 %v2324_v22  ;;  %v2326_v28 = vadd.f32 1.0, %v4851_v24  ;;  %v809_v24 = vmul.f32 %v6708_v1, %v296_v12 }
 0x127   : > { %v4855_v30 = vpop.eup %4854  ;;  %4874 = vrcp.f32 %v2325_v25  ;;  %v2327_v31 = vadd.f32 1.0, %v4853_v27  ;;  %v1444_v27 = vmul.f32 1.442695, %v806_v11  ;;  %v1448_v33 = vmul.f32 1.442695, %v808_v20  ;;  %v305_v20 = vld [vmem:[%s6701_s6 + $0x450] sm:$0xff] }
 0x128   : > { %v4857_v34 = vpop.eup %4856  ;;  %4876 = vrcp.f32 %v2326_v28  ;;  %v2328_v35 = vadd.f32 1.0, %v4855_v30  ;;  %v1446_v30 = vmul.f32 1.442695, %v807_v16  ;;  %v1450_v36 = vmul.f32 1.442695, %v809_v24 }
 0x129   : > { %v4859_v38 = vpop.eup %4858  ;;  %4878 = vrcp.f32 %v2327_v31  ;;  %v2329_v39 = vadd.f32 1.0, %v4857_v34 }
 0x12a   : > { %v4861_v42 = vpop.eup %4860  ;;  %4880 = vrcp.f32 %v2328_v35  ;;  %v2330_v43 = vadd.f32 1.0, %v4859_v38 }
 0x12b   : > { %v4863_v46 = vpop.eup %4862  ;;  %4882 = vrcp.f32 %v2329_v39  ;;  %v2331_v47 = vadd.f32 1.0, %v4861_v42 }
 0x12c   : > { %v4865_v51 = vpop.eup %4864  ;;  %4884 = vrcp.f32 %v2330_v43  ;;  %v2332_v52 = vadd.f32 1.0, %v4863_v46 }
 0x12d   : > { %v4867_v56 = vpop.eup %4866  ;;  %v3344_v57 = vmul.f32 %v4865_v51, %v6708_v1  ;;  %4886 = vrcp.f32 %v2331_v47  ;;  %v297_v51 = vld [vmem:[%s6701_s6 + $0x410] sm:$0xff] }
 0x12e   : > { %v4869_v61 = vpop.eup %4868  ;;  %v3345_v62 = vmul.f32 %v4867_v56, %v6708_v1  ;;  %4888 = vrcp.f32 %v2332_v52  ;;  %v810_v60 = vmul.f32 %v6708_v1, %v297_v51 }
 0x12f   : > { %v4871_v3 = vpop.eup %4870  ;;  %3856 = vst [vmem:[%s6758_s21 + $0x340] sm:$0xff] %v3344_v57  ;;  %v3346_v4 = vmul.f32 %v4869_v61, %v6708_v1  ;;  %4890 = vpow2.f32 %v1426_v48  ;;  %v299_v57 = vld [vmem:[%s6701_s6 + $0x420] sm:$0xff]  ;;  %v300_v61 = vld [vmem:[%s6701_s6 + $0x428] sm:$0xff] }
 0x130   : > { %v4873_v8 = vpop.eup %4872  ;;  %3857 = vst [vmem:[%s6758_s21 + $0x348] sm:$0xff] %v3345_v62  ;;  %v3347_v9 = vmul.f32 %v4871_v3, %v6708_v1  ;;  %4892 = vpow2.f32 %v1428_v53 }
 0x131   : > { %v4875_v13 = vpop.eup %4874  ;;  %3858 = vst [vmem:[%s6758_s21 + $0x350] sm:$0xff] %v3346_v4  ;;  %v3348_v14 = vmul.f32 %v4873_v8, %v6708_v1  ;;  %4894 = vpow2.f32 %v1430_v58 }
 0x132   : > { %v4877_v17 = vpop.eup %4876  ;;  %3859 = vst [vmem:[%s6758_s21 + $0x358] sm:$0xff] %v3347_v9  ;;  %v3349_v18 = vmul.f32 %v4875_v13, %v6708_v1  ;;  %4896 = vpow2.f32 %v1432_v63  ;;  %v813_v9 = vmul.f32 %v6708_v1, %v300_v61  ;;  %v1452_v13 = vmul.f32 1.442695, %v810_v60 }
 0x133   : > { %v4879_v21 = vpop.eup %4878  ;;  %3860 = vst [vmem:[%s6758_s21 + $0x360] sm:$0xff] %v3348_v14  ;;  %v3350_v22 = vmul.f32 %v4877_v17, %v6708_v1  ;;  %4898 = vpow2.f32 %v1434_v5  ;;  %v812_v5 = vmul.f32 %v6708_v1, %v299_v57  ;;  %v814_v14 = vmul.f32 %v6708_v1, %v301_v2 }
 0x134   : > { %v4881_v25 = vpop.eup %4880  ;;  %3861 = vst [vmem:[%s6758_s21 + $0x368] sm:$0xff] %v3349_v18  ;;  %v3351_v26 = vmul.f32 %v4879_v21, %v6708_v1  ;;  %4900 = vpow2.f32 %v1436_v10  ;;  %v303_v10 = vld [vmem:[%s6701_s6 + $0x440] sm:$0xff]  ;;  %v1454_v18 = vmul.f32 1.442695, %v811_v0 }
 0x135   : > { %v4883_v28 = vpop.eup %4882  ;;  %3862 = vst [vmem:[%s6758_s21 + $0x370] sm:$0xff] %v3350_v22  ;;  %v3352_v29 = vmul.f32 %v4881_v25, %v6708_v1  ;;  %4902 = vpow2.f32 %v1438_v15  ;;  %v304_v15 = vld [vmem:[%s6701_s6 + $0x448] sm:$0xff]  ;;  %v816_v24 = vmul.f32 %v6708_v1, %v303_v10  ;;  %v306_v25 = vld [vmem:[%s6701_s6 + $0x458] sm:$0xff] }
 0x136   : > { %v4885_v31 = vpop.eup %4884  ;;  %3863 = vst [vmem:[%s6758_s21 + $0x378] sm:$0xff] %v3351_v26  ;;  %v3353_v32 = vmul.f32 %v4883_v28, %v6708_v1  ;;  %4904 = vpow2.f32 %v1440_v19  ;;  %v815_v19 = vmul.f32 %v6708_v1, %v302_v6  ;;  %v1458_v28 = vmul.f32 1.442695, %v813_v9 }
 0x137   : > { %v4887_v34 = vpop.eup %4886  ;;  %3864 = vst [vmem:[%s6758_s21 + $0x380] sm:$0xff] %v3352_v29  ;;  %v3354_v35 = vmul.f32 %v4885_v31, %v6708_v1  ;;  %4906 = vpow2.f32 %v1442_v23  ;;  %v1456_v23 = vmul.f32 1.442695, %v812_v5  ;;  %v817_v29 = vmul.f32 %v6708_v1, %v304_v15 }
 0x138   : > { %v4889_v37 = vpop.eup %4888  ;;  %3865 = vst [vmem:[%s6758_s21 + $0x388] sm:$0xff] %v3353_v32  ;;  %v3355_v38 = vmul.f32 %v4887_v34, %v6708_v1  ;;  %4908 = vpow2.f32 %v1444_v27  ;;  %v818_v34 = vmul.f32 %v6708_v1, %v305_v20 }
 0x139   : > { %v4891_v39 = vpop.eup %4890  ;;  %3866 = vst [vmem:[%s6758_s21 + $0x390] sm:$0xff] %v3354_v35  ;;  %v3356_v40 = vmul.f32 %v4889_v37, %v6708_v1  ;;  %4910 = vpow2.f32 %v1446_v30  ;;  %v307_v30 = vld [vmem:[%s6701_s6 + $0x460] sm:$0xff]  ;;  %v308_v35 = vld [vmem:[%s6701_s6 + $0x468] sm:$0xff] }
 0x13a   : > { %v4893_v41 = vpop.eup %4892  ;;  %3867 = vst [vmem:[%s6758_s21 + $0x398] sm:$0xff] %v3355_v38  ;;  %v2333_v42 = vadd.f32 1.0, %v4891_v39  ;;  %4912 = vpow2.f32 %v1448_v33  ;;  %v1460_v33 = vmul.f32 1.442695, %v814_v14  ;;  %v1462_v38 = vmul.f32 1.442695, %v815_v19 }
 0x13b   : > { %v4895_v43 = vpop.eup %4894  ;;  %3868 = vst [vmem:[%s6758_s21 + $0x3a0] sm:$0xff] %v3356_v40  ;;  %v2334_v44 = vadd.f32 1.0, %v4893_v41  ;;  %4914 = vpow2.f32 %v1450_v36  ;;  %v819_v39 = vmul.f32 %v6708_v1, %v306_v25  ;;  %v309_v40 = vld [vmem:[%s6701_s6 + $0x470] sm:$0xff]  ;;  %v1468_v51 = vmul.f32 1.442695, %v818_v34  ;;  %v311_v19 = vld [vmem:[%s6701_s6 + $0x480] sm:$0xff] }
 0x13c   : > { %v4897_v45 = vpop.eup %4896  ;;  %4916 = vrcp.f32 %v2333_v42  ;;  %v2335_v46 = vadd.f32 1.0, %v4895_v43  ;;  %v1464_v43 = vmul.f32 1.442695, %v816_v24  ;;  %v315_v34 = vld [vmem:[%s6701_s6 + $0x4a0] sm:$0xff] }
 0x13d   : > { %v4899_v47 = vpop.eup %4898  ;;  %4918 = vrcp.f32 %v2334_v44  ;;  %v2336_v48 = vadd.f32 1.0, %v4897_v45  ;;  %v820_v44 = vmul.f32 %v6708_v1, %v307_v30  ;;  %v314_v30 = vld [vmem:[%s6701_s6 + $0x498] sm:$0xff] }
 0x13e   : > { %v4901_v49 = vpop.eup %4900  ;;  %4920 = vrcp.f32 %v2335_v46  ;;  %v2337_v50 = vadd.f32 1.0, %v4899_v47  ;;  %v1466_v47 = vmul.f32 1.442695, %v817_v29  ;;  %v824_v29 = vmul.f32 %v6708_v1, %v311_v19 }
 0x13f   : > { %v4903_v52 = vpop.eup %4902  ;;  %4922 = vrcp.f32 %v2336_v48  ;;  %v2338_v53 = vadd.f32 1.0, %v4901_v49  ;;  %v821_v48 = vmul.f32 %v6708_v1, %v308_v35 }
 0x140   : > { %v4905_v55 = vpop.eup %4904  ;;  %4924 = vrcp.f32 %v2337_v50  ;;  %v2339_v56 = vadd.f32 1.0, %v4903_v52  ;;  %v822_v52 = vmul.f32 %v6708_v1, %v309_v40 }
 0x141   : > { %v4907_v58 = vpop.eup %4906  ;;  %4926 = vrcp.f32 %v2338_v53  ;;  %v2340_v59 = vadd.f32 1.0, %v4905_v55  ;;  %v1470_v55 = vmul.f32 1.442695, %v819_v39  ;;  %v1474_v61 = vmul.f32 1.442695, %v821_v48  ;;  %v318_v48 = vld [vmem:[%s6701_s6 + $0x4b8] sm:$0xff] }
 0x142   : > { %v4909_v62 = vpop.eup %4908  ;;  %4928 = vrcp.f32 %v2339_v56  ;;  %v2341_v63 = vadd.f32 1.0, %v4907_v58  ;;  %v1472_v58 = vmul.f32 1.442695, %v820_v44  ;;  %v1476_v0 = vmul.f32 1.442695, %v822_v52 }
 0x143   : > { %v4911_v3 = vpop.eup %4910  ;;  %4930 = vrcp.f32 %v2340_v59  ;;  %v2342_v4 = vadd.f32 1.0, %v4909_v62 }
 0x144   : > { %v4913_v7 = vpop.eup %4912  ;;  %4932 = vrcp.f32 %v2341_v63  ;;  %v2343_v8 = vadd.f32 1.0, %v4911_v3 }
 0x145   : > { %v4915_v11 = vpop.eup %4914  ;;  %4934 = vrcp.f32 %v2342_v4  ;;  %v2344_v12 = vadd.f32 1.0, %v4913_v7 }
 0x146   : > { %v4917_v16 = vpop.eup %4916  ;;  %4936 = vrcp.f32 %v2343_v8  ;;  %v2345_v17 = vadd.f32 1.0, %v4915_v11 }
 0x147   : > { %v4919_v21 = vpop.eup %4918  ;;  %v3357_v22 = vmul.f32 %v4917_v16, %v6708_v1  ;;  %4938 = vrcp.f32 %v2344_v12  ;;  %v310_v16 = vld [vmem:[%s6701_s6 + $0x478] sm:$0xff] }
 0x148   : > { %v4921_v26 = vpop.eup %4920  ;;  %v3358_v27 = vmul.f32 %v4919_v21, %v6708_v1  ;;  %4940 = vrcp.f32 %v2345_v17  ;;  %v823_v25 = vmul.f32 %v6708_v1, %v310_v16 }
 0x149   : > { %v4923_v31 = vpop.eup %4922  ;;  %3869 = vst [vmem:[%s6758_s21 + $0x3a8] sm:$0xff] %v3357_v22  ;;  %v3359_v32 = vmul.f32 %v4921_v26, %v6708_v1  ;;  %4942 = vpow2.f32 %v1452_v13  ;;  %v312_v22 = vld [vmem:[%s6701_s6 + $0x488] sm:$0xff]  ;;  %v313_v26 = vld [vmem:[%s6701_s6 + $0x490] sm:$0xff] }
 0x14a   : > { %v4925_v36 = vpop.eup %4924  ;;  %3870 = vst [vmem:[%s6758_s21 + $0x3b0] sm:$0xff] %v3358_v27  ;;  %v3360_v37 = vmul.f32 %v4923_v31, %v6708_v1  ;;  %4944 = vpow2.f32 %v1454_v18 }
 0x14b   : > { %v4927_v41 = vpop.eup %4926  ;;  %3871 = vst [vmem:[%s6758_s21 + $0x3b8] sm:$0xff] %v3359_v32  ;;  %v3361_v42 = vmul.f32 %v4925_v36, %v6708_v1  ;;  %4946 = vpow2.f32 %v1456_v23 }
 0x14c   : > { %v4929_v45 = vpop.eup %4928  ;;  %3872 = vst [vmem:[%s6758_s21 + $0x3c0] sm:$0xff] %v3360_v37  ;;  %v3362_v46 = vmul.f32 %v4927_v41, %v6708_v1  ;;  %4948 = vpow2.f32 %v1458_v28  ;;  %v826_v37 = vmul.f32 %v6708_v1, %v313_v26  ;;  %v1478_v41 = vmul.f32 1.442695, %v823_v25 }
 0x14d   : > { %v4931_v49 = vpop.eup %4930  ;;  %3873 = vst [vmem:[%s6758_s21 + $0x3c8] sm:$0xff] %v3361_v42  ;;  %v3363_v50 = vmul.f32 %v4929_v45, %v6708_v1  ;;  %4950 = vpow2.f32 %v1460_v33  ;;  %v825_v33 = vmul.f32 %v6708_v1, %v312_v22  ;;  %v827_v42 = vmul.f32 %v6708_v1, %v314_v30 }
 0x14e   : > { %v4933_v53 = vpop.eup %4932  ;;  %3874 = vst [vmem:[%s6758_s21 + $0x3d0] sm:$0xff] %v3362_v46  ;;  %v3364_v54 = vmul.f32 %v4931_v49, %v6708_v1  ;;  %4952 = vpow2.f32 %v1462_v38  ;;  %v316_v38 = vld [vmem:[%s6701_s6 + $0x4a8] sm:$0xff]  ;;  %v1480_v46 = vmul.f32 1.442695, %v824_v29 }
 0x14f   : > { %v4935_v56 = vpop.eup %4934  ;;  %3875 = vst [vmem:[%s6758_s21 + $0x3d8] sm:$0xff] %v3363_v50  ;;  %v3365_v57 = vmul.f32 %v4933_v53, %v6708_v1  ;;  %4954 = vpow2.f32 %v1464_v43  ;;  %v317_v43 = vld [vmem:[%s6701_s6 + $0x4b0] sm:$0xff]  ;;  %v829_v52 = vmul.f32 %v6708_v1, %v316_v38  ;;  %v319_v53 = vld [vmem:[%s6701_s6 + $0x4c0] sm:$0xff] }
 0x150   : > { %v4937_v59 = vpop.eup %4936  ;;  %3876 = vst [vmem:[%s6758_s21 + $0x3e0] sm:$0xff] %v3364_v54  ;;  %v3366_v60 = vmul.f32 %v4935_v56, %v6708_v1  ;;  %4956 = vpow2.f32 %v1466_v47  ;;  %v828_v47 = vmul.f32 %v6708_v1, %v315_v34  ;;  %v1484_v56 = vmul.f32 1.442695, %v826_v37 }
 0x151   : > { %v4939_v62 = vpop.eup %4938  ;;  %3877 = vst [vmem:[%s6758_s21 + $0x3e8] sm:$0xff] %v3365_v57  ;;  %v3367_v63 = vmul.f32 %v4937_v59, %v6708_v1  ;;  %4958 = vpow2.f32 %v1468_v51  ;;  %v1482_v51 = vmul.f32 1.442695, %v825_v33  ;;  %v830_v57 = vmul.f32 %v6708_v1, %v317_v43 }
 0x152   : > { %v4941_v2 = vpop.eup %4940  ;;  %3878 = vst [vmem:[%s6758_s21 + $0x3f0] sm:$0xff] %v3366_v60  ;;  %v3368_v3 = vmul.f32 %v4939_v62, %v6708_v1  ;;  %4960 = vpow2.f32 %v1470_v55  ;;  %v831_v62 = vmul.f32 %v6708_v1, %v318_v48 }
 0x153   : > { %v4943_v4 = vpop.eup %4942  ;;  %3879 = vst [vmem:[%s6758_s21 + $0x3f8] sm:$0xff] %v3367_v63  ;;  %v3369_v5 = vmul.f32 %v4941_v2, %v6708_v1  ;;  %4962 = vpow2.f32 %v1472_v58  ;;  %v320_v58 = vld [vmem:[%s6701_s6 + $0x4c8] sm:$0xff]  ;;  %v321_v63 = vld [vmem:[%s6701_s6 + $0x4d0] sm:$0xff] }
 0x154   : > { %v4945_v6 = vpop.eup %4944  ;;  %3880 = vst [vmem:[%s6758_s21 + $0x400] sm:$0xff] %v3368_v3  ;;  %v2346_v7 = vadd.f32 1.0, %v4943_v4  ;;  %4964 = vpow2.f32 %v1474_v61  ;;  %v1486_v61 = vmul.f32 1.442695, %v827_v42  ;;  %v1488_v3 = vmul.f32 1.442695, %v828_v47 }
 0x155   : > { %v4947_v8 = vpop.eup %4946  ;;  %3881 = vst [vmem:[%s6758_s21 + $0x408] sm:$0xff] %v3369_v5  ;;  %v2347_v9 = vadd.f32 1.0, %v4945_v6  ;;  %4966 = vpow2.f32 %v1476_v0  ;;  %v832_v4 = vmul.f32 %v6708_v1, %v319_v53  ;;  %v322_v5 = vld [vmem:[%s6701_s6 + $0x4d8] sm:$0xff]  ;;  %v1494_v16 = vmul.f32 1.442695, %v831_v62  ;;  %v324_v47 = vld [vmem:[%s6701_s6 + $0x4e8] sm:$0xff] }
 0x156   : > { %v4949_v10 = vpop.eup %4948  ;;  %4968 = vrcp.f32 %v2346_v7  ;;  %v2348_v11 = vadd.f32 1.0, %v4947_v8  ;;  %v1490_v8 = vmul.f32 1.442695, %v829_v52  ;;  %v328_v62 = vld [vmem:[%s6701_s6 + $0x508] sm:$0xff] }
 0x157   : > { %v4951_v12 = vpop.eup %4950  ;;  %4970 = vrcp.f32 %v2347_v9  ;;  %v2349_v13 = vadd.f32 1.0, %v4949_v10  ;;  %v833_v9 = vmul.f32 %v6708_v1, %v320_v58  ;;  %v327_v58 = vld [vmem:[%s6701_s6 + $0x500] sm:$0xff] }
 0x158   : > { %v4953_v14 = vpop.eup %4952  ;;  %4972 = vrcp.f32 %v2348_v11  ;;  %v2350_v15 = vadd.f32 1.0, %v4951_v12  ;;  %v1492_v12 = vmul.f32 1.442695, %v830_v57  ;;  %v837_v57 = vmul.f32 %v6708_v1, %v324_v47 }
 0x159   : > { %v4955_v17 = vpop.eup %4954  ;;  %4974 = vrcp.f32 %v2349_v13  ;;  %v2351_v18 = vadd.f32 1.0, %v4953_v14  ;;  %v834_v13 = vmul.f32 %v6708_v1, %v321_v63 }
 0x15a   : > { %v4957_v20 = vpop.eup %4956  ;;  %4976 = vrcp.f32 %v2350_v15  ;;  %v2352_v21 = vadd.f32 1.0, %v4955_v17  ;;  %v835_v17 = vmul.f32 %v6708_v1, %v322_v5 }
 0x15b   : > { %v4959_v23 = vpop.eup %4958  ;;  %4978 = vrcp.f32 %v2351_v18  ;;  %v2353_v24 = vadd.f32 1.0, %v4957_v20  ;;  %v1496_v20 = vmul.f32 1.442695, %v832_v4  ;;  %v1500_v26 = vmul.f32 1.442695, %v834_v13  ;;  %v331_v13 = vld [vmem:[%s6701_s6 + $0x520] sm:$0xff] }
 0x15c   : > { %v4961_v27 = vpop.eup %4960  ;;  %4980 = vrcp.f32 %v2352_v21  ;;  %v2354_v28 = vadd.f32 1.0, %v4959_v23  ;;  %v1498_v23 = vmul.f32 1.442695, %v833_v9  ;;  %v1502_v29 = vmul.f32 1.442695, %v835_v17 }
 0x15d   : > { %v4963_v31 = vpop.eup %4962  ;;  %4982 = vrcp.f32 %v2353_v24  ;;  %v2355_v32 = vadd.f32 1.0, %v4961_v27 }
 0x15e   : > { %v4965_v35 = vpop.eup %4964  ;;  %4984 = vrcp.f32 %v2354_v28  ;;  %v2356_v36 = vadd.f32 1.0, %v4963_v31 }
 0x15f   : > { %v4967_v39 = vpop.eup %4966  ;;  %4986 = vrcp.f32 %v2355_v32  ;;  %v2357_v40 = vadd.f32 1.0, %v4965_v35 }
 0x160   : > { %v4969_v44 = vpop.eup %4968  ;;  %4988 = vrcp.f32 %v2356_v36  ;;  %v2358_v45 = vadd.f32 1.0, %v4967_v39 }
 0x161   : > { %v4971_v49 = vpop.eup %4970  ;;  %v3370_v50 = vmul.f32 %v4969_v44, %v6708_v1  ;;  %4990 = vrcp.f32 %v2357_v40  ;;  %v323_v44 = vld [vmem:[%s6701_s6 + $0x4e0] sm:$0xff] }
 0x162   : > { %v4973_v54 = vpop.eup %4972  ;;  %v3371_v55 = vmul.f32 %v4971_v49, %v6708_v1  ;;  %4992 = vrcp.f32 %v2358_v45  ;;  %v836_v53 = vmul.f32 %v6708_v1, %v323_v44 }
 0x163   : > { %v4975_v59 = vpop.eup %4974  ;;  %3882 = vst [vmem:[%s6758_s21 + $0x410] sm:$0xff] %v3370_v50  ;;  %v3372_v60 = vmul.f32 %v4973_v54, %v6708_v1  ;;  %4994 = vpow2.f32 %v1478_v41  ;;  %v325_v50 = vld [vmem:[%s6701_s6 + $0x4f0] sm:$0xff]  ;;  %v326_v54 = vld [vmem:[%s6701_s6 + $0x4f8] sm:$0xff] }
 0x164   : > { %v4977_v0 = vpop.eup %4976  ;;  %3883 = vst [vmem:[%s6758_s21 + $0x418] sm:$0xff] %v3371_v55  ;;  %v3373_v2 = vmul.f32 %v4975_v59, %v6708_v1  ;;  %4996 = vpow2.f32 %v1480_v46 }
 0x165   : > { %v4979_v6 = vpop.eup %4978  ;;  %3884 = vst [vmem:[%s6758_s21 + $0x420] sm:$0xff] %v3372_v60  ;;  %v3374_v7 = vmul.f32 %v4977_v0, %v6708_v1  ;;  %4998 = vpow2.f32 %v1482_v51 }
 0x166   : > { %v4981_v10 = vpop.eup %4980  ;;  %3885 = vst [vmem:[%s6758_s21 + $0x428] sm:$0xff] %v3373_v2  ;;  %v3375_v11 = vmul.f32 %v4979_v6, %v6708_v1  ;;  %5000 = vpow2.f32 %v1484_v56  ;;  %v839_v2 = vmul.f32 %v6708_v1, %v326_v54  ;;  %v1504_v6 = vmul.f32 1.442695, %v836_v53 }
 0x167   : > { %v4983_v14 = vpop.eup %4982  ;;  %3886 = vst [vmem:[%s6758_s21 + $0x430] sm:$0xff] %v3374_v7  ;;  %v3376_v15 = vmul.f32 %v4981_v10, %v6708_v1  ;;  %5002 = vpow2.f32 %v1486_v61  ;;  %v838_v61 = vmul.f32 %v6708_v1, %v325_v50  ;;  %v840_v7 = vmul.f32 %v6708_v1, %v327_v58 }
 0x168   : > { %v4985_v18 = vpop.eup %4984  ;;  %3887 = vst [vmem:[%s6758_s21 + $0x438] sm:$0xff] %v3375_v11  ;;  %v3377_v19 = vmul.f32 %v4983_v14, %v6708_v1  ;;  %5004 = vpow2.f32 %v1488_v3  ;;  %v329_v3 = vld [vmem:[%s6701_s6 + $0x510] sm:$0xff]  ;;  %v1506_v11 = vmul.f32 1.442695, %v837_v57 }
 0x169   : > { %v4987_v21 = vpop.eup %4986  ;;  %3888 = vst [vmem:[%s6758_s21 + $0x440] sm:$0xff] %v3376_v15  ;;  %v3378_v22 = vmul.f32 %v4985_v18, %v6708_v1  ;;  %5006 = vpow2.f32 %v1490_v8  ;;  %v330_v8 = vld [vmem:[%s6701_s6 + $0x518] sm:$0xff]  ;;  %v842_v17 = vmul.f32 %v6708_v1, %v329_v3  ;;  %v332_v18 = vld [vmem:[%s6701_s6 + $0x528] sm:$0xff] }
 0x16a   : > { %v4989_v24 = vpop.eup %4988  ;;  %3889 = vst [vmem:[%s6758_s21 + $0x448] sm:$0xff] %v3377_v19  ;;  %v3379_v25 = vmul.f32 %v4987_v21, %v6708_v1  ;;  %5008 = vpow2.f32 %v1492_v12  ;;  %v841_v12 = vmul.f32 %v6708_v1, %v328_v62  ;;  %v1510_v21 = vmul.f32 1.442695, %v839_v2 }
 0x16b   : > { %v4991_v27 = vpop.eup %4990  ;;  %3890 = vst [vmem:[%s6758_s21 + $0x450] sm:$0xff] %v3378_v22  ;;  %v3380_v28 = vmul.f32 %v4989_v24, %v6708_v1  ;;  %5010 = vpow2.f32 %v1494_v16  ;;  %v1508_v16 = vmul.f32 1.442695, %v838_v61  ;;  %v843_v22 = vmul.f32 %v6708_v1, %v330_v8 }
 0x16c   : > { %v4993_v30 = vpop.eup %4992  ;;  %3891 = vst [vmem:[%s6758_s21 + $0x458] sm:$0xff] %v3379_v25  ;;  %v3381_v31 = vmul.f32 %v4991_v27, %v6708_v1  ;;  %5012 = vpow2.f32 %v1496_v20  ;;  %v844_v27 = vmul.f32 %v6708_v1, %v331_v13 }
 0x16d   : > { %v4995_v32 = vpop.eup %4994  ;;  %3892 = vst [vmem:[%s6758_s21 + $0x460] sm:$0xff] %v3380_v28  ;;  %v3382_v33 = vmul.f32 %v4993_v30, %v6708_v1  ;;  %5014 = vpow2.f32 %v1498_v23  ;;  %v333_v23 = vld [vmem:[%s6701_s6 + $0x530] sm:$0xff]  ;;  %v334_v28 = vld [vmem:[%s6701_s6 + $0x538] sm:$0xff] }
 0x16e   : > { %v4997_v34 = vpop.eup %4996  ;;  %3893 = vst [vmem:[%s6758_s21 + $0x468] sm:$0xff] %v3381_v31  ;;  %v2359_v35 = vadd.f32 1.0, %v4995_v32  ;;  %5016 = vpow2.f32 %v1500_v26  ;;  %v1512_v26 = vmul.f32 1.442695, %v840_v7  ;;  %v1514_v31 = vmul.f32 1.442695, %v841_v12 }
 0x16f   : > { %v4999_v36 = vpop.eup %4998  ;;  %3894 = vst [vmem:[%s6758_s21 + $0x470] sm:$0xff] %v3382_v33  ;;  %v2360_v37 = vadd.f32 1.0, %v4997_v34  ;;  %5018 = vpow2.f32 %v1502_v29  ;;  %v845_v32 = vmul.f32 %v6708_v1, %v332_v18  ;;  %v335_v33 = vld [vmem:[%s6701_s6 + $0x540] sm:$0xff]  ;;  %v1520_v44 = vmul.f32 1.442695, %v844_v27  ;;  %v337_v12 = vld [vmem:[%s6701_s6 + $0x550] sm:$0xff] }
 0x170   : > { %v5001_v38 = vpop.eup %5000  ;;  %5020 = vrcp.f32 %v2359_v35  ;;  %v2361_v39 = vadd.f32 1.0, %v4999_v36  ;;  %v1516_v36 = vmul.f32 1.442695, %v842_v17  ;;  %v341_v27 = vld [vmem:[%s6701_s6 + $0x570] sm:$0xff] }
 0x171   : > { %v5003_v40 = vpop.eup %5002  ;;  %5022 = vrcp.f32 %v2360_v37  ;;  %v2362_v41 = vadd.f32 1.0, %v5001_v38  ;;  %v846_v37 = vmul.f32 %v6708_v1, %v333_v23  ;;  %v340_v23 = vld [vmem:[%s6701_s6 + $0x568] sm:$0xff] }
 0x172   : > { %v5005_v42 = vpop.eup %5004  ;;  %5024 = vrcp.f32 %v2361_v39  ;;  %v2363_v43 = vadd.f32 1.0, %v5003_v40  ;;  %v1518_v40 = vmul.f32 1.442695, %v843_v22  ;;  %v850_v22 = vmul.f32 %v6708_v1, %v337_v12 }
 0x173   : > { %v5007_v45 = vpop.eup %5006  ;;  %5026 = vrcp.f32 %v2362_v41  ;;  %v2364_v46 = vadd.f32 1.0, %v5005_v42  ;;  %v847_v41 = vmul.f32 %v6708_v1, %v334_v28 }
 0x174   : > { %v5009_v48 = vpop.eup %5008  ;;  %5028 = vrcp.f32 %v2363_v43  ;;  %v2365_v49 = vadd.f32 1.0, %v5007_v45  ;;  %v848_v45 = vmul.f32 %v6708_v1, %v335_v33 }
 0x175   : > { %v5011_v51 = vpop.eup %5010  ;;  %5030 = vrcp.f32 %v2364_v46  ;;  %v2366_v52 = vadd.f32 1.0, %v5009_v48  ;;  %v1522_v48 = vmul.f32 1.442695, %v845_v32  ;;  %v1526_v54 = vmul.f32 1.442695, %v847_v41  ;;  %v344_v41 = vld [vmem:[%s6701_s6 + $0x588] sm:$0xff] }
 0x176   : > { %v5013_v55 = vpop.eup %5012  ;;  %5032 = vrcp.f32 %v2365_v49  ;;  %v2367_v56 = vadd.f32 1.0, %v5011_v51  ;;  %v1524_v51 = vmul.f32 1.442695, %v846_v37  ;;  %v1528_v57 = vmul.f32 1.442695, %v848_v45 }
 0x177   : > { %v5015_v59 = vpop.eup %5014  ;;  %5034 = vrcp.f32 %v2366_v52  ;;  %v2368_v60 = vadd.f32 1.0, %v5013_v55 }
 0x178   : > { %v5017_v63 = vpop.eup %5016  ;;  %5036 = vrcp.f32 %v2367_v56  ;;  %v2369_v0 = vadd.f32 1.0, %v5015_v59 }
 0x179   : > { %v5019_v4 = vpop.eup %5018  ;;  %5038 = vrcp.f32 %v2368_v60  ;;  %v2370_v5 = vadd.f32 1.0, %v5017_v63 }
 0x17a   : > { %v5021_v9 = vpop.eup %5020  ;;  %5040 = vrcp.f32 %v2369_v0  ;;  %v2371_v10 = vadd.f32 1.0, %v5019_v4 }
 0x17b   : > { %v5023_v14 = vpop.eup %5022  ;;  %v3383_v15 = vmul.f32 %v5021_v9, %v6708_v1  ;;  %5042 = vrcp.f32 %v2370_v5  ;;  %v336_v9 = vld [vmem:[%s6701_s6 + $0x548] sm:$0xff] }
 0x17c   : > { %v5025_v19 = vpop.eup %5024  ;;  %v3384_v20 = vmul.f32 %v5023_v14, %v6708_v1  ;;  %5044 = vrcp.f32 %v2371_v10  ;;  %v849_v18 = vmul.f32 %v6708_v1, %v336_v9 }
 0x17d   : > { %v5027_v24 = vpop.eup %5026  ;;  %3895 = vst [vmem:[%s6758_s21 + $0x478] sm:$0xff] %v3383_v15  ;;  %v3385_v25 = vmul.f32 %v5025_v19, %v6708_v1  ;;  %5046 = vpow2.f32 %v1504_v6  ;;  %v338_v15 = vld [vmem:[%s6701_s6 + $0x558] sm:$0xff]  ;;  %v339_v19 = vld [vmem:[%s6701_s6 + $0x560] sm:$0xff] }
 0x17e   : > { %v5029_v29 = vpop.eup %5028  ;;  %3896 = vst [vmem:[%s6758_s21 + $0x480] sm:$0xff] %v3384_v20  ;;  %v3386_v30 = vmul.f32 %v5027_v24, %v6708_v1  ;;  %5048 = vpow2.f32 %v1506_v11 }
 0x17f   : > { %v5031_v34 = vpop.eup %5030  ;;  %3897 = vst [vmem:[%s6758_s21 + $0x488] sm:$0xff] %v3385_v25  ;;  %v3387_v35 = vmul.f32 %v5029_v29, %v6708_v1  ;;  %5050 = vpow2.f32 %v1508_v16 }
 0x180   : > { %v5033_v38 = vpop.eup %5032  ;;  %3898 = vst [vmem:[%s6758_s21 + $0x490] sm:$0xff] %v3386_v30  ;;  %v3388_v39 = vmul.f32 %v5031_v34, %v6708_v1  ;;  %5052 = vpow2.f32 %v1510_v21  ;;  %v852_v30 = vmul.f32 %v6708_v1, %v339_v19  ;;  %v1530_v34 = vmul.f32 1.442695, %v849_v18 }
 0x181   : > { %v5035_v42 = vpop.eup %5034  ;;  %3899 = vst [vmem:[%s6758_s21 + $0x498] sm:$0xff] %v3387_v35  ;;  %v3389_v43 = vmul.f32 %v5033_v38, %v6708_v1  ;;  %5054 = vpow2.f32 %v1512_v26  ;;  %v851_v26 = vmul.f32 %v6708_v1, %v338_v15  ;;  %v853_v35 = vmul.f32 %v6708_v1, %v340_v23 }
 0x182   : > { %v5037_v46 = vpop.eup %5036  ;;  %3900 = vst [vmem:[%s6758_s21 + $0x4a0] sm:$0xff] %v3388_v39  ;;  %v3390_v47 = vmul.f32 %v5035_v42, %v6708_v1  ;;  %5056 = vpow2.f32 %v1514_v31  ;;  %v342_v31 = vld [vmem:[%s6701_s6 + $0x578] sm:$0xff]  ;;  %v1532_v39 = vmul.f32 1.442695, %v850_v22 }
 0x183   : > { %v5039_v49 = vpop.eup %5038  ;;  %3901 = vst [vmem:[%s6758_s21 + $0x4a8] sm:$0xff] %v3389_v43  ;;  %v3391_v50 = vmul.f32 %v5037_v46, %v6708_v1  ;;  %5058 = vpow2.f32 %v1516_v36  ;;  %v343_v36 = vld [vmem:[%s6701_s6 + $0x580] sm:$0xff]  ;;  %v855_v45 = vmul.f32 %v6708_v1, %v342_v31  ;;  %v345_v46 = vld [vmem:[%s6701_s6 + $0x590] sm:$0xff] }
 0x184   : > { %v5041_v52 = vpop.eup %5040  ;;  %3902 = vst [vmem:[%s6758_s21 + $0x4b0] sm:$0xff] %v3390_v47  ;;  %v3392_v53 = vmul.f32 %v5039_v49, %v6708_v1  ;;  %5060 = vpow2.f32 %v1518_v40  ;;  %v854_v40 = vmul.f32 %v6708_v1, %v341_v27  ;;  %v1536_v49 = vmul.f32 1.442695, %v852_v30 }
 0x185   : > { %v5043_v55 = vpop.eup %5042  ;;  %3903 = vst [vmem:[%s6758_s21 + $0x4b8] sm:$0xff] %v3391_v50  ;;  %v3393_v56 = vmul.f32 %v5041_v52, %v6708_v1  ;;  %5062 = vpow2.f32 %v1520_v44  ;;  %v1534_v44 = vmul.f32 1.442695, %v851_v26  ;;  %v856_v50 = vmul.f32 %v6708_v1, %v343_v36 }
 0x186   : > { %v5045_v58 = vpop.eup %5044  ;;  %3904 = vst [vmem:[%s6758_s21 + $0x4c0] sm:$0xff] %v3392_v53  ;;  %v3394_v59 = vmul.f32 %v5043_v55, %v6708_v1  ;;  %5064 = vpow2.f32 %v1522_v48  ;;  %v857_v55 = vmul.f32 %v6708_v1, %v344_v41 }
 0x187   : > { %v5047_v60 = vpop.eup %5046  ;;  %3905 = vst [vmem:[%s6758_s21 + $0x4c8] sm:$0xff] %v3393_v56  ;;  %v3395_v61 = vmul.f32 %v5045_v58, %v6708_v1  ;;  %5066 = vpow2.f32 %v1524_v51  ;;  %v346_v51 = vld [vmem:[%s6701_s6 + $0x598] sm:$0xff]  ;;  %v347_v56 = vld [vmem:[%s6701_s6 + $0x5a0] sm:$0xff] }
 0x188   : > { %v5049_v62 = vpop.eup %5048  ;;  %3906 = vst [vmem:[%s6758_s21 + $0x4d0] sm:$0xff] %v3394_v59  ;;  %v2372_v63 = vadd.f32 1.0, %v5047_v60  ;;  %5068 = vpow2.f32 %v1526_v54  ;;  %v1538_v54 = vmul.f32 1.442695, %v853_v35  ;;  %v1540_v59 = vmul.f32 1.442695, %v854_v40 }
 0x189   : > { %v5051_v0 = vpop.eup %5050  ;;  %3907 = vst [vmem:[%s6758_s21 + $0x4d8] sm:$0xff] %v3395_v61  ;;  %v2373_v2 = vadd.f32 1.0, %v5049_v62  ;;  %5070 = vpow2.f32 %v1528_v57  ;;  %v858_v60 = vmul.f32 %v6708_v1, %v345_v46  ;;  %v348_v61 = vld [vmem:[%s6701_s6 + $0x5a8] sm:$0xff]  ;;  %v1546_v9 = vmul.f32 1.442695, %v857_v55  ;;  %v350_v40 = vld [vmem:[%s6701_s6 + $0x5b8] sm:$0xff] }
 0x18a   : > { %v5053_v3 = vpop.eup %5052  ;;  %5072 = vrcp.f32 %v2372_v63  ;;  %v2374_v4 = vadd.f32 1.0, %v5051_v0  ;;  %v1542_v0 = vmul.f32 1.442695, %v855_v45  ;;  %v354_v55 = vld [vmem:[%s6701_s6 + $0x5d8] sm:$0xff] }
 0x18b   : > { %v5055_v5 = vpop.eup %5054  ;;  %5074 = vrcp.f32 %v2373_v2  ;;  %v2375_v6 = vadd.f32 1.0, %v5053_v3  ;;  %v859_v2 = vmul.f32 %v6708_v1, %v346_v51  ;;  %v353_v51 = vld [vmem:[%s6701_s6 + $0x5d0] sm:$0xff] }
 0x18c   : > { %v5057_v7 = vpop.eup %5056  ;;  %5076 = vrcp.f32 %v2374_v4  ;;  %v2376_v8 = vadd.f32 1.0, %v5055_v5  ;;  %v1544_v5 = vmul.f32 1.442695, %v856_v50  ;;  %v863_v50 = vmul.f32 %v6708_v1, %v350_v40 }
 0x18d   : > { %v5059_v10 = vpop.eup %5058  ;;  %5078 = vrcp.f32 %v2375_v6  ;;  %v2377_v11 = vadd.f32 1.0, %v5057_v7  ;;  %v860_v6 = vmul.f32 %v6708_v1, %v347_v56 }
 0x18e   : > { %v5061_v13 = vpop.eup %5060  ;;  %5080 = vrcp.f32 %v2376_v8  ;;  %v2378_v14 = vadd.f32 1.0, %v5059_v10  ;;  %v861_v10 = vmul.f32 %v6708_v1, %v348_v61 }
 0x18f   : > { %v5063_v16 = vpop.eup %5062  ;;  %5082 = vrcp.f32 %v2377_v11  ;;  %v2379_v17 = vadd.f32 1.0, %v5061_v13  ;;  %v1548_v13 = vmul.f32 1.442695, %v858_v60  ;;  %v1552_v19 = vmul.f32 1.442695, %v860_v6  ;;  %v357_v6 = vld [vmem:[%s6701_s6 + $0x5f0] sm:$0xff] }
 0x190   : > { %v5065_v20 = vpop.eup %5064  ;;  %5084 = vrcp.f32 %v2378_v14  ;;  %v2380_v21 = vadd.f32 1.0, %v5063_v16  ;;  %v1550_v16 = vmul.f32 1.442695, %v859_v2  ;;  %v1554_v22 = vmul.f32 1.442695, %v861_v10 }
 0x191   : > { %v5067_v24 = vpop.eup %5066  ;;  %5086 = vrcp.f32 %v2379_v17  ;;  %v2381_v25 = vadd.f32 1.0, %v5065_v20 }
 0x192   : > { %v5069_v28 = vpop.eup %5068  ;;  %5088 = vrcp.f32 %v2380_v21  ;;  %v2382_v29 = vadd.f32 1.0, %v5067_v24 }
 0x193   : > { %v5071_v32 = vpop.eup %5070  ;;  %5090 = vrcp.f32 %v2381_v25  ;;  %v2383_v33 = vadd.f32 1.0, %v5069_v28 }
 0x194   : > { %v5073_v37 = vpop.eup %5072  ;;  %5092 = vrcp.f32 %v2382_v29  ;;  %v2384_v38 = vadd.f32 1.0, %v5071_v32 }
 0x195   : > { %v5075_v42 = vpop.eup %5074  ;;  %v3396_v43 = vmul.f32 %v5073_v37, %v6708_v1  ;;  %5094 = vrcp.f32 %v2383_v33  ;;  %v349_v37 = vld [vmem:[%s6701_s6 + $0x5b0] sm:$0xff] }
 0x196   : > { %v5077_v47 = vpop.eup %5076  ;;  %v3397_v48 = vmul.f32 %v5075_v42, %v6708_v1  ;;  %5096 = vrcp.f32 %v2384_v38  ;;  %v862_v46 = vmul.f32 %v6708_v1, %v349_v37 }
 0x197   : > { %v5079_v52 = vpop.eup %5078  ;;  %3908 = vst [vmem:[%s6758_s21 + $0x4e0] sm:$0xff] %v3396_v43  ;;  %v3398_v53 = vmul.f32 %v5077_v47, %v6708_v1  ;;  %5098 = vpow2.f32 %v1530_v34  ;;  %v351_v43 = vld [vmem:[%s6701_s6 + $0x5c0] sm:$0xff]  ;;  %v352_v47 = vld [vmem:[%s6701_s6 + $0x5c8] sm:$0xff] }
 0x198   : > { %v5081_v57 = vpop.eup %5080  ;;  %3909 = vst [vmem:[%s6758_s21 + $0x4e8] sm:$0xff] %v3397_v48  ;;  %v3399_v58 = vmul.f32 %v5079_v52, %v6708_v1  ;;  %5100 = vpow2.f32 %v1532_v39 }
 0x199   : > { %v5083_v62 = vpop.eup %5082  ;;  %3910 = vst [vmem:[%s6758_s21 + $0x4f0] sm:$0xff] %v3398_v53  ;;  %v3400_v63 = vmul.f32 %v5081_v57, %v6708_v1  ;;  %5102 = vpow2.f32 %v1534_v44 }
 0x19a   : > { %v5085_v3 = vpop.eup %5084  ;;  %3911 = vst [vmem:[%s6758_s21 + $0x4f8] sm:$0xff] %v3399_v58  ;;  %v3401_v4 = vmul.f32 %v5083_v62, %v6708_v1  ;;  %5104 = vpow2.f32 %v1536_v49  ;;  %v865_v58 = vmul.f32 %v6708_v1, %v352_v47  ;;  %v1556_v62 = vmul.f32 1.442695, %v862_v46 }
 0x19b   : > { %v5087_v7 = vpop.eup %5086  ;;  %3912 = vst [vmem:[%s6758_s21 + $0x500] sm:$0xff] %v3400_v63  ;;  %v3402_v8 = vmul.f32 %v5085_v3, %v6708_v1  ;;  %5106 = vpow2.f32 %v1538_v54  ;;  %v864_v54 = vmul.f32 %v6708_v1, %v351_v43  ;;  %v866_v63 = vmul.f32 %v6708_v1, %v353_v51 }
 0x19c   : > { %v5089_v11 = vpop.eup %5088  ;;  %3913 = vst [vmem:[%s6758_s21 + $0x508] sm:$0xff] %v3401_v4  ;;  %v3403_v12 = vmul.f32 %v5087_v7, %v6708_v1  ;;  %5108 = vpow2.f32 %v1540_v59  ;;  %v355_v59 = vld [vmem:[%s6701_s6 + $0x5e0] sm:$0xff]  ;;  %v1558_v4 = vmul.f32 1.442695, %v863_v50 }
 0x19d   : > { %v5091_v14 = vpop.eup %5090  ;;  %3914 = vst [vmem:[%s6758_s21 + $0x510] sm:$0xff] %v3402_v8  ;;  %v3404_v15 = vmul.f32 %v5089_v11, %v6708_v1  ;;  %5110 = vpow2.f32 %v1542_v0  ;;  %v356_v0 = vld [vmem:[%s6701_s6 + $0x5e8] sm:$0xff]  ;;  %v868_v10 = vmul.f32 %v6708_v1, %v355_v59  ;;  %v358_v11 = vld [vmem:[%s6701_s6 + $0x5f8] sm:$0xff] }
 0x19e   : > { %v5093_v17 = vpop.eup %5092  ;;  %3915 = vst [vmem:[%s6758_s21 + $0x518] sm:$0xff] %v3403_v12  ;;  %v3405_v18 = vmul.f32 %v5091_v14, %v6708_v1  ;;  %5112 = vpow2.f32 %v1544_v5  ;;  %v867_v5 = vmul.f32 %v6708_v1, %v354_v55  ;;  %v1562_v14 = vmul.f32 1.442695, %v865_v58 }
 0x19f   : > { %v5095_v20 = vpop.eup %5094  ;;  %3916 = vst [vmem:[%s6758_s21 + $0x520] sm:$0xff] %v3404_v15  ;;  %v3406_v21 = vmul.f32 %v5093_v17, %v6708_v1  ;;  %5114 = vpow2.f32 %v1546_v9  ;;  %v1560_v9 = vmul.f32 1.442695, %v864_v54  ;;  %v869_v15 = vmul.f32 %v6708_v1, %v356_v0 }
 0x1a0   : > { %v5097_v23 = vpop.eup %5096  ;;  %3917 = vst [vmem:[%s6758_s21 + $0x528] sm:$0xff] %v3405_v18  ;;  %v3407_v24 = vmul.f32 %v5095_v20, %v6708_v1  ;;  %5116 = vpow2.f32 %v1548_v13  ;;  %v870_v20 = vmul.f32 %v6708_v1, %v357_v6 }
 0x1a1   : > { %v5099_v25 = vpop.eup %5098  ;;  %3918 = vst [vmem:[%s6758_s21 + $0x530] sm:$0xff] %v3406_v21  ;;  %v3408_v26 = vmul.f32 %v5097_v23, %v6708_v1  ;;  %5118 = vpow2.f32 %v1550_v16  ;;  %v359_v16 = vld [vmem:[%s6701_s6 + $0x600] sm:$0xff]  ;;  %v360_v21 = vld [vmem:[%s6701_s6 + $0x608] sm:$0xff] }
 0x1a2   : > { %v5101_v27 = vpop.eup %5100  ;;  %3919 = vst [vmem:[%s6758_s21 + $0x538] sm:$0xff] %v3407_v24  ;;  %v2385_v28 = vadd.f32 1.0, %v5099_v25  ;;  %5120 = vpow2.f32 %v1552_v19  ;;  %v1564_v19 = vmul.f32 1.442695, %v866_v63  ;;  %v1566_v24 = vmul.f32 1.442695, %v867_v5 }
 0x1a3   : > { %v5103_v29 = vpop.eup %5102  ;;  %3920 = vst [vmem:[%s6758_s21 + $0x540] sm:$0xff] %v3408_v26  ;;  %v2386_v30 = vadd.f32 1.0, %v5101_v27  ;;  %5122 = vpow2.f32 %v1554_v22  ;;  %v871_v25 = vmul.f32 %v6708_v1, %v358_v11  ;;  %v361_v26 = vld [vmem:[%s6701_s6 + $0x610] sm:$0xff]  ;;  %v1572_v37 = vmul.f32 1.442695, %v870_v20  ;;  %v363_v5 = vld [vmem:[%s6701_s6 + $0x620] sm:$0xff] }
 0x1a4   : > { %v5105_v31 = vpop.eup %5104  ;;  %5124 = vrcp.f32 %v2385_v28  ;;  %v2387_v32 = vadd.f32 1.0, %v5103_v29  ;;  %v1568_v29 = vmul.f32 1.442695, %v868_v10  ;;  %v367_v20 = vld [vmem:[%s6701_s6 + $0x640] sm:$0xff] }
 0x1a5   : > { %v5107_v33 = vpop.eup %5106  ;;  %5126 = vrcp.f32 %v2386_v30  ;;  %v2388_v34 = vadd.f32 1.0, %v5105_v31  ;;  %v872_v30 = vmul.f32 %v6708_v1, %v359_v16  ;;  %v366_v16 = vld [vmem:[%s6701_s6 + $0x638] sm:$0xff] }
 0x1a6   : > { %v5109_v35 = vpop.eup %5108  ;;  %5128 = vrcp.f32 %v2387_v32  ;;  %v2389_v36 = vadd.f32 1.0, %v5107_v33  ;;  %v1570_v33 = vmul.f32 1.442695, %v869_v15  ;;  %v876_v15 = vmul.f32 %v6708_v1, %v363_v5 }
 0x1a7   : > { %v5111_v38 = vpop.eup %5110  ;;  %5130 = vrcp.f32 %v2388_v34  ;;  %v2390_v39 = vadd.f32 1.0, %v5109_v35  ;;  %v873_v34 = vmul.f32 %v6708_v1, %v360_v21 }
 0x1a8   : > { %v5113_v41 = vpop.eup %5112  ;;  %5132 = vrcp.f32 %v2389_v36  ;;  %v2391_v42 = vadd.f32 1.0, %v5111_v38  ;;  %v874_v38 = vmul.f32 %v6708_v1, %v361_v26 }
 0x1a9   : > { %v5115_v44 = vpop.eup %5114  ;;  %5134 = vrcp.f32 %v2390_v39  ;;  %v2392_v45 = vadd.f32 1.0, %v5113_v41  ;;  %v1574_v41 = vmul.f32 1.442695, %v871_v25  ;;  %v1578_v47 = vmul.f32 1.442695, %v873_v34  ;;  %v370_v34 = vld [vmem:[%s6701_s6 + $0x658] sm:$0xff] }
 0x1aa   : > { %v5117_v48 = vpop.eup %5116  ;;  %5136 = vrcp.f32 %v2391_v42  ;;  %v2393_v49 = vadd.f32 1.0, %v5115_v44  ;;  %v1576_v44 = vmul.f32 1.442695, %v872_v30  ;;  %v1580_v50 = vmul.f32 1.442695, %v874_v38 }
 0x1ab   : > { %v5119_v52 = vpop.eup %5118  ;;  %5138 = vrcp.f32 %v2392_v45  ;;  %v2394_v53 = vadd.f32 1.0, %v5117_v48 }
 0x1ac   : > { %v5121_v56 = vpop.eup %5120  ;;  %5140 = vrcp.f32 %v2393_v49  ;;  %v2395_v57 = vadd.f32 1.0, %v5119_v52 }
 0x1ad   : > { %v5123_v60 = vpop.eup %5122  ;;  %5142 = vrcp.f32 %v2394_v53  ;;  %v2396_v61 = vadd.f32 1.0, %v5121_v56 }
 0x1ae   : > { %v5125_v2 = vpop.eup %5124  ;;  %5144 = vrcp.f32 %v2395_v57  ;;  %v2397_v3 = vadd.f32 1.0, %v5123_v60 }
 0x1af   : > { %v5127_v7 = vpop.eup %5126  ;;  %v3409_v8 = vmul.f32 %v5125_v2, %v6708_v1  ;;  %5146 = vrcp.f32 %v2396_v61  ;;  %v362_v2 = vld [vmem:[%s6701_s6 + $0x618] sm:$0xff] }
 0x1b0   : > { %v5129_v12 = vpop.eup %5128  ;;  %v3410_v13 = vmul.f32 %v5127_v7, %v6708_v1  ;;  %5148 = vrcp.f32 %v2397_v3  ;;  %v875_v11 = vmul.f32 %v6708_v1, %v362_v2 }
 0x1b1   : > { %v5131_v17 = vpop.eup %5130  ;;  %3921 = vst [vmem:[%s6758_s21 + $0x548] sm:$0xff] %v3409_v8  ;;  %v3411_v18 = vmul.f32 %v5129_v12, %v6708_v1  ;;  %5150 = vpow2.f32 %v1556_v62  ;;  %v364_v8 = vld [vmem:[%s6701_s6 + $0x628] sm:$0xff]  ;;  %v365_v12 = vld [vmem:[%s6701_s6 + $0x630] sm:$0xff] }
 0x1b2   : > { %v5133_v22 = vpop.eup %5132  ;;  %3922 = vst [vmem:[%s6758_s21 + $0x550] sm:$0xff] %v3410_v13  ;;  %v3412_v23 = vmul.f32 %v5131_v17, %v6708_v1  ;;  %5152 = vpow2.f32 %v1558_v4 }
 0x1b3   : > { %v5135_v27 = vpop.eup %5134  ;;  %3923 = vst [vmem:[%s6758_s21 + $0x558] sm:$0xff] %v3411_v18  ;;  %v3413_v28 = vmul.f32 %v5133_v22, %v6708_v1  ;;  %5154 = vpow2.f32 %v1560_v9 }
 0x1b4   : > { %v5137_v31 = vpop.eup %5136  ;;  %3924 = vst [vmem:[%s6758_s21 + $0x560] sm:$0xff] %v3412_v23  ;;  %v3414_v32 = vmul.f32 %v5135_v27, %v6708_v1  ;;  %5156 = vpow2.f32 %v1562_v14  ;;  %v878_v23 = vmul.f32 %v6708_v1, %v365_v12  ;;  %v1582_v27 = vmul.f32 1.442695, %v875_v11 }
 0x1b5   : > { %v5139_v35 = vpop.eup %5138  ;;  %3925 = vst [vmem:[%s6758_s21 + $0x568] sm:$0xff] %v3413_v28  ;;  %v3415_v36 = vmul.f32 %v5137_v31, %v6708_v1  ;;  %5158 = vpow2.f32 %v1564_v19  ;;  %v877_v19 = vmul.f32 %v6708_v1, %v364_v8  ;;  %v879_v28 = vmul.f32 %v6708_v1, %v366_v16 }
 0x1b6   : > { %v5141_v39 = vpop.eup %5140  ;;  %3926 = vst [vmem:[%s6758_s21 + $0x570] sm:$0xff] %v3414_v32  ;;  %v3416_v40 = vmul.f32 %v5139_v35, %v6708_v1  ;;  %5160 = vpow2.f32 %v1566_v24  ;;  %v368_v24 = vld [vmem:[%s6701_s6 + $0x648] sm:$0xff]  ;;  %v1584_v32 = vmul.f32 1.442695, %v876_v15 }
 0x1b7   : > { %v5143_v42 = vpop.eup %5142  ;;  %3927 = vst [vmem:[%s6758_s21 + $0x578] sm:$0xff] %v3415_v36  ;;  %v3417_v43 = vmul.f32 %v5141_v39, %v6708_v1  ;;  %5162 = vpow2.f32 %v1568_v29  ;;  %v369_v29 = vld [vmem:[%s6701_s6 + $0x650] sm:$0xff]  ;;  %v881_v38 = vmul.f32 %v6708_v1, %v368_v24  ;;  %v371_v39 = vld [vmem:[%s6701_s6 + $0x660] sm:$0xff] }
 0x1b8   : > { %v5145_v45 = vpop.eup %5144  ;;  %3928 = vst [vmem:[%s6758_s21 + $0x580] sm:$0xff] %v3416_v40  ;;  %v3418_v46 = vmul.f32 %v5143_v42, %v6708_v1  ;;  %5164 = vpow2.f32 %v1570_v33  ;;  %v880_v33 = vmul.f32 %v6708_v1, %v367_v20  ;;  %v1588_v42 = vmul.f32 1.442695, %v878_v23 }
 0x1b9   : > { %v5147_v48 = vpop.eup %5146  ;;  %3929 = vst [vmem:[%s6758_s21 + $0x588] sm:$0xff] %v3417_v43  ;;  %v3419_v49 = vmul.f32 %v5145_v45, %v6708_v1  ;;  %5166 = vpow2.f32 %v1572_v37  ;;  %v1586_v37 = vmul.f32 1.442695, %v877_v19  ;;  %v882_v43 = vmul.f32 %v6708_v1, %v369_v29 }
 0x1ba   : > { %v5149_v51 = vpop.eup %5148  ;;  %3930 = vst [vmem:[%s6758_s21 + $0x590] sm:$0xff] %v3418_v46  ;;  %v3420_v52 = vmul.f32 %v5147_v48, %v6708_v1  ;;  %5168 = vpow2.f32 %v1574_v41  ;;  %v883_v48 = vmul.f32 %v6708_v1, %v370_v34 }
 0x1bb   : > { %v5151_v53 = vpop.eup %5150  ;;  %3931 = vst [vmem:[%s6758_s21 + $0x598] sm:$0xff] %v3419_v49  ;;  %v3421_v54 = vmul.f32 %v5149_v51, %v6708_v1  ;;  %5170 = vpow2.f32 %v1576_v44  ;;  %v372_v44 = vld [vmem:[%s6701_s6 + $0x668] sm:$0xff]  ;;  %v373_v49 = vld [vmem:[%s6701_s6 + $0x670] sm:$0xff] }
 0x1bc   : > { %v5153_v55 = vpop.eup %5152  ;;  %3932 = vst [vmem:[%s6758_s21 + $0x5a0] sm:$0xff] %v3420_v52  ;;  %v2398_v56 = vadd.f32 1.0, %v5151_v53  ;;  %5172 = vpow2.f32 %v1578_v47  ;;  %v1590_v47 = vmul.f32 1.442695, %v879_v28  ;;  %v1592_v52 = vmul.f32 1.442695, %v880_v33 }
 0x1bd   : > { %v5155_v57 = vpop.eup %5154  ;;  %3933 = vst [vmem:[%s6758_s21 + $0x5a8] sm:$0xff] %v3421_v54  ;;  %v2399_v58 = vadd.f32 1.0, %v5153_v55  ;;  %5174 = vpow2.f32 %v1580_v50  ;;  %v884_v53 = vmul.f32 %v6708_v1, %v371_v39  ;;  %v374_v54 = vld [vmem:[%s6701_s6 + $0x678] sm:$0xff]  ;;  %v1598_v2 = vmul.f32 1.442695, %v883_v48  ;;  %v376_v33 = vld [vmem:[%s6701_s6 + $0x688] sm:$0xff] }
 0x1be   : > { %v5157_v59 = vpop.eup %5156  ;;  %5176 = vrcp.f32 %v2398_v56  ;;  %v2400_v60 = vadd.f32 1.0, %v5155_v57  ;;  %v1594_v57 = vmul.f32 1.442695, %v881_v38  ;;  %v380_v48 = vld [vmem:[%s6701_s6 + $0x6a8] sm:$0xff] }
 0x1bf   : > { %v5159_v61 = vpop.eup %5158  ;;  %5178 = vrcp.f32 %v2399_v58  ;;  %v2401_v62 = vadd.f32 1.0, %v5157_v59  ;;  %v885_v58 = vmul.f32 %v6708_v1, %v372_v44  ;;  %v379_v44 = vld [vmem:[%s6701_s6 + $0x6a0] sm:$0xff] }
 0x1c0   : > { %v5161_v63 = vpop.eup %5160  ;;  %5180 = vrcp.f32 %v2400_v60  ;;  %v2402_v0 = vadd.f32 1.0, %v5159_v61  ;;  %v1596_v61 = vmul.f32 1.442695, %v882_v43  ;;  %v889_v43 = vmul.f32 %v6708_v1, %v376_v33 }
 0x1c1   : > { %v5163_v3 = vpop.eup %5162  ;;  %5182 = vrcp.f32 %v2401_v62  ;;  %v2403_v4 = vadd.f32 1.0, %v5161_v63  ;;  %v886_v62 = vmul.f32 %v6708_v1, %v373_v49 }
 0x1c2   : > { %v5165_v6 = vpop.eup %5164  ;;  %5184 = vrcp.f32 %v2402_v0  ;;  %v2404_v7 = vadd.f32 1.0, %v5163_v3  ;;  %v887_v3 = vmul.f32 %v6708_v1, %v374_v54 }
 0x1c3   : > { %v5167_v9 = vpop.eup %5166  ;;  %5186 = vrcp.f32 %v2403_v4  ;;  %v2405_v10 = vadd.f32 1.0, %v5165_v6  ;;  %v1600_v6 = vmul.f32 1.442695, %v884_v53  ;;  %v1604_v12 = vmul.f32 1.442695, %v886_v62  ;;  %v383_v62 = vld [vmem:[%s6701_s6 + $0x6c0] sm:$0xff] }
 0x1c4   : > { %v5169_v13 = vpop.eup %5168  ;;  %5188 = vrcp.f32 %v2404_v7  ;;  %v2406_v14 = vadd.f32 1.0, %v5167_v9  ;;  %v1602_v9 = vmul.f32 1.442695, %v885_v58  ;;  %v1606_v15 = vmul.f32 1.442695, %v887_v3 }
 0x1c5   : > { %v5171_v17 = vpop.eup %5170  ;;  %5190 = vrcp.f32 %v2405_v10  ;;  %v2407_v18 = vadd.f32 1.0, %v5169_v13 }
 0x1c6   : > { %v5173_v21 = vpop.eup %5172  ;;  %5192 = vrcp.f32 %v2406_v14  ;;  %v2408_v22 = vadd.f32 1.0, %v5171_v17 }
 0x1c7   : > { %v5175_v25 = vpop.eup %5174  ;;  %5194 = vrcp.f32 %v2407_v18  ;;  %v2409_v26 = vadd.f32 1.0, %v5173_v21 }
 0x1c8   : > { %v5177_v30 = vpop.eup %5176  ;;  %5196 = vrcp.f32 %v2408_v22  ;;  %v2410_v31 = vadd.f32 1.0, %v5175_v25 }
 0x1c9   : > { %v5179_v35 = vpop.eup %5178  ;;  %v3422_v36 = vmul.f32 %v5177_v30, %v6708_v1  ;;  %5198 = vrcp.f32 %v2409_v26  ;;  %v375_v30 = vld [vmem:[%s6701_s6 + $0x680] sm:$0xff] }
 0x1ca   : > { %v5181_v40 = vpop.eup %5180  ;;  %v3423_v41 = vmul.f32 %v5179_v35, %v6708_v1  ;;  %5200 = vrcp.f32 %v2410_v31  ;;  %v888_v39 = vmul.f32 %v6708_v1, %v375_v30 }
 0x1cb   : > { %v5183_v45 = vpop.eup %5182  ;;  %3934 = vst [vmem:[%s6758_s21 + $0x5b0] sm:$0xff] %v3422_v36  ;;  %v3424_v46 = vmul.f32 %v5181_v40, %v6708_v1  ;;  %5202 = vpow2.f32 %v1582_v27  ;;  %v377_v36 = vld [vmem:[%s6701_s6 + $0x690] sm:$0xff]  ;;  %v378_v40 = vld [vmem:[%s6701_s6 + $0x698] sm:$0xff] }
 0x1cc   : > { %v5185_v50 = vpop.eup %5184  ;;  %3935 = vst [vmem:[%s6758_s21 + $0x5b8] sm:$0xff] %v3423_v41  ;;  %v3425_v51 = vmul.f32 %v5183_v45, %v6708_v1  ;;  %5204 = vpow2.f32 %v1584_v32 }
 0x1cd   : > { %v5187_v55 = vpop.eup %5186  ;;  %3936 = vst [vmem:[%s6758_s21 + $0x5c0] sm:$0xff] %v3424_v46  ;;  %v3426_v56 = vmul.f32 %v5185_v50, %v6708_v1  ;;  %5206 = vpow2.f32 %v1586_v37 }
 0x1ce   : > { %v5189_v59 = vpop.eup %5188  ;;  %3937 = vst [vmem:[%s6758_s21 + $0x5c8] sm:$0xff] %v3425_v51  ;;  %v3427_v60 = vmul.f32 %v5187_v55, %v6708_v1  ;;  %5208 = vpow2.f32 %v1588_v42  ;;  %v891_v51 = vmul.f32 %v6708_v1, %v378_v40  ;;  %v1608_v55 = vmul.f32 1.442695, %v888_v39 }
 0x1cf   : > { %v5191_v63 = vpop.eup %5190  ;;  %3938 = vst [vmem:[%s6758_s21 + $0x5d0] sm:$0xff] %v3426_v56  ;;  %v3428_v0 = vmul.f32 %v5189_v59, %v6708_v1  ;;  %5210 = vpow2.f32 %v1590_v47  ;;  %v890_v47 = vmul.f32 %v6708_v1, %v377_v36  ;;  %v892_v56 = vmul.f32 %v6708_v1, %v379_v44 }
 0x1d0   : > { %v5193_v4 = vpop.eup %5192  ;;  %3939 = vst [vmem:[%s6758_s21 + $0x5d8] sm:$0xff] %v3427_v60  ;;  %v3429_v5 = vmul.f32 %v5191_v63, %v6708_v1  ;;  %5212 = vpow2.f32 %v1592_v52  ;;  %v381_v52 = vld [vmem:[%s6701_s6 + $0x6b0] sm:$0xff]  ;;  %v1610_v60 = vmul.f32 1.442695, %v889_v43 }
 0x1d1   : > { %v5195_v7 = vpop.eup %5194  ;;  %3940 = vst [vmem:[%s6758_s21 + $0x5e0] sm:$0xff] %v3428_v0  ;;  %v3430_v8 = vmul.f32 %v5193_v4, %v6708_v1  ;;  %5214 = vpow2.f32 %v1594_v57  ;;  %v382_v57 = vld [vmem:[%s6701_s6 + $0x6b8] sm:$0xff]  ;;  %v894_v3 = vmul.f32 %v6708_v1, %v381_v52  ;;  %v384_v4 = vld [vmem:[%s6701_s6 + $0x6c8] sm:$0xff] }
 0x1d2   : > { %v5197_v10 = vpop.eup %5196  ;;  %3941 = vst [vmem:[%s6758_s21 + $0x5e8] sm:$0xff] %v3429_v5  ;;  %v3431_v11 = vmul.f32 %v5195_v7, %v6708_v1  ;;  %5216 = vpow2.f32 %v1596_v61  ;;  %v893_v61 = vmul.f32 %v6708_v1, %v380_v48  ;;  %v1614_v7 = vmul.f32 1.442695, %v891_v51 }
 0x1d3   : > { %v5199_v13 = vpop.eup %5198  ;;  %3942 = vst [vmem:[%s6758_s21 + $0x5f0] sm:$0xff] %v3430_v8  ;;  %v3432_v14 = vmul.f32 %v5197_v10, %v6708_v1  ;;  %5218 = vpow2.f32 %v1598_v2  ;;  %v1612_v2 = vmul.f32 1.442695, %v890_v47  ;;  %v895_v8 = vmul.f32 %v6708_v1, %v382_v57 }
 0x1d4   : > { %v5201_v16 = vpop.eup %5200  ;;  %3943 = vst [vmem:[%s6758_s21 + $0x5f8] sm:$0xff] %v3431_v11  ;;  %v3433_v17 = vmul.f32 %v5199_v13, %v6708_v1  ;;  %5220 = vpow2.f32 %v1600_v6  ;;  %v896_v13 = vmul.f32 %v6708_v1, %v383_v62 }
 0x1d5   : > { %v5203_v18 = vpop.eup %5202  ;;  %3944 = vst [vmem:[%s6758_s21 + $0x600] sm:$0xff] %v3432_v14  ;;  %v3434_v19 = vmul.f32 %v5201_v16, %v6708_v1  ;;  %5222 = vpow2.f32 %v1602_v9  ;;  %v385_v9 = vld [vmem:[%s6701_s6 + $0x6d0] sm:$0xff]  ;;  %v386_v14 = vld [vmem:[%s6701_s6 + $0x6d8] sm:$0xff] }
 0x1d6   : > { %v5205_v20 = vpop.eup %5204  ;;  %3945 = vst [vmem:[%s6758_s21 + $0x608] sm:$0xff] %v3433_v17  ;;  %v2411_v21 = vadd.f32 1.0, %v5203_v18  ;;  %5224 = vpow2.f32 %v1604_v12  ;;  %v1616_v12 = vmul.f32 1.442695, %v892_v56  ;;  %v1618_v17 = vmul.f32 1.442695, %v893_v61 }
 0x1d7   : > { %v5207_v22 = vpop.eup %5206  ;;  %3946 = vst [vmem:[%s6758_s21 + $0x610] sm:$0xff] %v3434_v19  ;;  %v2412_v23 = vadd.f32 1.0, %v5205_v20  ;;  %5226 = vpow2.f32 %v1606_v15  ;;  %v897_v18 = vmul.f32 %v6708_v1, %v384_v4  ;;  %v387_v19 = vld [vmem:[%s6701_s6 + $0x6e0] sm:$0xff]  ;;  %v1624_v30 = vmul.f32 1.442695, %v896_v13  ;;  %v389_v61 = vld [vmem:[%s6701_s6 + $0x6f0] sm:$0xff] }
 0x1d8   : > { %v5209_v24 = vpop.eup %5208  ;;  %5228 = vrcp.f32 %v2411_v21  ;;  %v2413_v25 = vadd.f32 1.0, %v5207_v22  ;;  %v1620_v22 = vmul.f32 1.442695, %v894_v3  ;;  %v393_v13 = vld [vmem:[%s6701_s6 + $0x710] sm:$0xff] }
 0x1d9   : > { %v5211_v26 = vpop.eup %5210  ;;  %5230 = vrcp.f32 %v2412_v23  ;;  %v2414_v27 = vadd.f32 1.0, %v5209_v24  ;;  %v898_v23 = vmul.f32 %v6708_v1, %v385_v9  ;;  %v392_v9 = vld [vmem:[%s6701_s6 + $0x708] sm:$0xff] }
 0x1da   : > { %v5213_v28 = vpop.eup %5212  ;;  %5232 = vrcp.f32 %v2413_v25  ;;  %v2415_v29 = vadd.f32 1.0, %v5211_v26  ;;  %v1622_v26 = vmul.f32 1.442695, %v895_v8  ;;  %v902_v8 = vmul.f32 %v6708_v1, %v389_v61 }
 0x1db   : > { %v5215_v31 = vpop.eup %5214  ;;  %5234 = vrcp.f32 %v2414_v27  ;;  %v2416_v32 = vadd.f32 1.0, %v5213_v28  ;;  %v899_v27 = vmul.f32 %v6708_v1, %v386_v14 }
 0x1dc   : > { %v5217_v34 = vpop.eup %5216  ;;  %5236 = vrcp.f32 %v2415_v29  ;;  %v2417_v35 = vadd.f32 1.0, %v5215_v31  ;;  %v900_v31 = vmul.f32 %v6708_v1, %v387_v19 }
 0x1dd   : > { %v5219_v37 = vpop.eup %5218  ;;  %5238 = vrcp.f32 %v2416_v32  ;;  %v2418_v38 = vadd.f32 1.0, %v5217_v34  ;;  %v1626_v34 = vmul.f32 1.442695, %v897_v18  ;;  %v1630_v40 = vmul.f32 1.442695, %v899_v27  ;;  %v396_v27 = vld [vmem:[%s6701_s6 + $0x728] sm:$0xff] }
 0x1de   : > { %v5221_v41 = vpop.eup %5220  ;;  %5240 = vrcp.f32 %v2417_v35  ;;  %v2419_v42 = vadd.f32 1.0, %v5219_v37  ;;  %v1628_v37 = vmul.f32 1.442695, %v898_v23  ;;  %v1632_v43 = vmul.f32 1.442695, %v900_v31 }
 0x1df   : > { %v5223_v45 = vpop.eup %5222  ;;  %5242 = vrcp.f32 %v2418_v38  ;;  %v2420_v46 = vadd.f32 1.0, %v5221_v41 }
 0x1e0   : > { %v5225_v49 = vpop.eup %5224  ;;  %5244 = vrcp.f32 %v2419_v42  ;;  %v2421_v50 = vadd.f32 1.0, %v5223_v45 }
 0x1e1   : > { %v5227_v53 = vpop.eup %5226  ;;  %5246 = vrcp.f32 %v2420_v46  ;;  %v2422_v54 = vadd.f32 1.0, %v5225_v49 }
 0x1e2   : > { %v5229_v58 = vpop.eup %5228  ;;  %5248 = vrcp.f32 %v2421_v50  ;;  %v2423_v59 = vadd.f32 1.0, %v5227_v53 }
 0x1e3   : > { %v5231_v63 = vpop.eup %5230  ;;  %v3435_v0 = vmul.f32 %v5229_v58, %v6708_v1  ;;  %5250 = vrcp.f32 %v2422_v54  ;;  %v388_v58 = vld [vmem:[%s6701_s6 + $0x6e8] sm:$0xff] }
 0x1e4   : > { %v5233_v5 = vpop.eup %5232  ;;  %v3436_v6 = vmul.f32 %v5231_v63, %v6708_v1  ;;  %5252 = vrcp.f32 %v2423_v59  ;;  %v901_v4 = vmul.f32 %v6708_v1, %v388_v58 }
 0x1e5   : > { %v5235_v10 = vpop.eup %5234  ;;  %3947 = vst [vmem:[%s6758_s21 + $0x618] sm:$0xff] %v3435_v0  ;;  %v3437_v11 = vmul.f32 %v5233_v5, %v6708_v1  ;;  %5254 = vpow2.f32 %v1608_v55  ;;  %v390_v0 = vld [vmem:[%s6701_s6 + $0x6f8] sm:$0xff]  ;;  %v391_v5 = vld [vmem:[%s6701_s6 + $0x700] sm:$0xff] }
 0x1e6   : > { %v5237_v15 = vpop.eup %5236  ;;  %3948 = vst [vmem:[%s6758_s21 + $0x620] sm:$0xff] %v3436_v6  ;;  %v3438_v16 = vmul.f32 %v5235_v10, %v6708_v1  ;;  %5256 = vpow2.f32 %v1610_v60 }
 0x1e7   : > { %v5239_v20 = vpop.eup %5238  ;;  %3949 = vst [vmem:[%s6758_s21 + $0x628] sm:$0xff] %v3437_v11  ;;  %v3439_v21 = vmul.f32 %v5237_v15, %v6708_v1  ;;  %5258 = vpow2.f32 %v1612_v2 }
 0x1e8   : > { %v5241_v24 = vpop.eup %5240  ;;  %3950 = vst [vmem:[%s6758_s21 + $0x630] sm:$0xff] %v3438_v16  ;;  %v3440_v25 = vmul.f32 %v5239_v20, %v6708_v1  ;;  %5260 = vpow2.f32 %v1614_v7  ;;  %v904_v16 = vmul.f32 %v6708_v1, %v391_v5  ;;  %v1634_v20 = vmul.f32 1.442695, %v901_v4 }
 0x1e9   : > { %v5243_v28 = vpop.eup %5242  ;;  %3951 = vst [vmem:[%s6758_s21 + $0x638] sm:$0xff] %v3439_v21  ;;  %v3441_v29 = vmul.f32 %v5241_v24, %v6708_v1  ;;  %5262 = vpow2.f32 %v1616_v12  ;;  %v903_v12 = vmul.f32 %v6708_v1, %v390_v0  ;;  %v905_v21 = vmul.f32 %v6708_v1, %v392_v9 }
 0x1ea   : > { %v5245_v32 = vpop.eup %5244  ;;  %3952 = vst [vmem:[%s6758_s21 + $0x640] sm:$0xff] %v3440_v25  ;;  %v3442_v33 = vmul.f32 %v5243_v28, %v6708_v1  ;;  %5264 = vpow2.f32 %v1618_v17  ;;  %v394_v17 = vld [vmem:[%s6701_s6 + $0x718] sm:$0xff]  ;;  %v1636_v25 = vmul.f32 1.442695, %v902_v8 }
 0x1eb   : > { %v5247_v35 = vpop.eup %5246  ;;  %3953 = vst [vmem:[%s6758_s21 + $0x648] sm:$0xff] %v3441_v29  ;;  %v3443_v36 = vmul.f32 %v5245_v32, %v6708_v1  ;;  %5266 = vpow2.f32 %v1620_v22  ;;  %v395_v22 = vld [vmem:[%s6701_s6 + $0x720] sm:$0xff]  ;;  %v907_v31 = vmul.f32 %v6708_v1, %v394_v17  ;;  %v397_v32 = vld [vmem:[%s6701_s6 + $0x730] sm:$0xff] }
 0x1ec   : > { %v5249_v38 = vpop.eup %5248  ;;  %3954 = vst [vmem:[%s6758_s21 + $0x650] sm:$0xff] %v3442_v33  ;;  %v3444_v39 = vmul.f32 %v5247_v35, %v6708_v1  ;;  %5268 = vpow2.f32 %v1622_v26  ;;  %v906_v26 = vmul.f32 %v6708_v1, %v393_v13  ;;  %v1640_v35 = vmul.f32 1.442695, %v904_v16 }
 0x1ed   : > { %v5251_v41 = vpop.eup %5250  ;;  %3955 = vst [vmem:[%s6758_s21 + $0x658] sm:$0xff] %v3443_v36  ;;  %v3445_v42 = vmul.f32 %v5249_v38, %v6708_v1  ;;  %5270 = vpow2.f32 %v1624_v30  ;;  %v1638_v30 = vmul.f32 1.442695, %v903_v12  ;;  %v908_v36 = vmul.f32 %v6708_v1, %v395_v22 }
 0x1ee   : > { %v5253_v44 = vpop.eup %5252  ;;  %3956 = vst [vmem:[%s6758_s21 + $0x660] sm:$0xff] %v3444_v39  ;;  %v3446_v45 = vmul.f32 %v5251_v41, %v6708_v1  ;;  %5272 = vpow2.f32 %v1626_v34  ;;  %v909_v41 = vmul.f32 %v6708_v1, %v396_v27 }
 0x1ef   : > { %v5255_v46 = vpop.eup %5254  ;;  %3957 = vst [vmem:[%s6758_s21 + $0x668] sm:$0xff] %v3445_v42  ;;  %v3447_v47 = vmul.f32 %v5253_v44, %v6708_v1  ;;  %5274 = vpow2.f32 %v1628_v37  ;;  %v398_v37 = vld [vmem:[%s6701_s6 + $0x738] sm:$0xff]  ;;  %v399_v42 = vld [vmem:[%s6701_s6 + $0x740] sm:$0xff] }
 0x1f0   : > { %v5257_v48 = vpop.eup %5256  ;;  %3958 = vst [vmem:[%s6758_s21 + $0x670] sm:$0xff] %v3446_v45  ;;  %v2424_v49 = vadd.f32 1.0, %v5255_v46  ;;  %5276 = vpow2.f32 %v1630_v40  ;;  %v1642_v40 = vmul.f32 1.442695, %v905_v21  ;;  %v1644_v45 = vmul.f32 1.442695, %v906_v26 }
 0x1f1   : > { %v5259_v50 = vpop.eup %5258  ;;  %3959 = vst [vmem:[%s6758_s21 + $0x678] sm:$0xff] %v3447_v47  ;;  %v2425_v51 = vadd.f32 1.0, %v5257_v48  ;;  %5278 = vpow2.f32 %v1632_v43  ;;  %v910_v46 = vmul.f32 %v6708_v1, %v397_v32  ;;  %v400_v47 = vld [vmem:[%s6701_s6 + $0x748] sm:$0xff]  ;;  %v1650_v58 = vmul.f32 1.442695, %v909_v41  ;;  %v402_v26 = vld [vmem:[%s6701_s6 + $0x758] sm:$0xff] }
 0x1f2   : > { %v5261_v52 = vpop.eup %5260  ;;  %5280 = vrcp.f32 %v2424_v49  ;;  %v2426_v53 = vadd.f32 1.0, %v5259_v50  ;;  %v1646_v50 = vmul.f32 1.442695, %v907_v31  ;;  %v406_v41 = vld [vmem:[%s6701_s6 + $0x778] sm:$0xff] }
 0x1f3   : > { %v5263_v54 = vpop.eup %5262  ;;  %5282 = vrcp.f32 %v2425_v51  ;;  %v2427_v55 = vadd.f32 1.0, %v5261_v52  ;;  %v911_v51 = vmul.f32 %v6708_v1, %v398_v37  ;;  %v405_v37 = vld [vmem:[%s6701_s6 + $0x770] sm:$0xff] }
 0x1f4   : > { %v5265_v56 = vpop.eup %5264  ;;  %5284 = vrcp.f32 %v2426_v53  ;;  %v2428_v57 = vadd.f32 1.0, %v5263_v54  ;;  %v1648_v54 = vmul.f32 1.442695, %v908_v36  ;;  %v915_v36 = vmul.f32 %v6708_v1, %v402_v26 }
 0x1f5   : > { %v5267_v59 = vpop.eup %5266  ;;  %5286 = vrcp.f32 %v2427_v55  ;;  %v2429_v60 = vadd.f32 1.0, %v5265_v56  ;;  %v912_v55 = vmul.f32 %v6708_v1, %v399_v42 }
 0x1f6   : > { %v5269_v62 = vpop.eup %5268  ;;  %5288 = vrcp.f32 %v2428_v57  ;;  %v2430_v63 = vadd.f32 1.0, %v5267_v59  ;;  %v913_v59 = vmul.f32 %v6708_v1, %v400_v47 }
 0x1f7   : > { %v5271_v2 = vpop.eup %5270  ;;  %5290 = vrcp.f32 %v2429_v60  ;;  %v2431_v3 = vadd.f32 1.0, %v5269_v62  ;;  %v1652_v62 = vmul.f32 1.442695, %v910_v46  ;;  %v1656_v5 = vmul.f32 1.442695, %v912_v55  ;;  %v409_v55 = vld [vmem:[%s6701_s6 + $0x790] sm:$0xff] }
 0x1f8   : > { %v5273_v6 = vpop.eup %5272  ;;  %5292 = vrcp.f32 %v2430_v63  ;;  %v2432_v7 = vadd.f32 1.0, %v5271_v2  ;;  %v1654_v2 = vmul.f32 1.442695, %v911_v51  ;;  %v1658_v8 = vmul.f32 1.442695, %v913_v59 }
 0x1f9   : > { %v5275_v10 = vpop.eup %5274  ;;  %5294 = vrcp.f32 %v2431_v3  ;;  %v2433_v11 = vadd.f32 1.0, %v5273_v6 }
 0x1fa   : > { %v5277_v14 = vpop.eup %5276  ;;  %5296 = vrcp.f32 %v2432_v7  ;;  %v2434_v15 = vadd.f32 1.0, %v5275_v10 }
 0x1fb   : > { %v5279_v18 = vpop.eup %5278  ;;  %5298 = vrcp.f32 %v2433_v11  ;;  %v2435_v19 = vadd.f32 1.0, %v5277_v14 }
 0x1fc   : > { %v5281_v23 = vpop.eup %5280  ;;  %5300 = vrcp.f32 %v2434_v15  ;;  %v2436_v24 = vadd.f32 1.0, %v5279_v18 }
 0x1fd   : > { %v5283_v28 = vpop.eup %5282  ;;  %v3448_v29 = vmul.f32 %v5281_v23, %v6708_v1  ;;  %5302 = vrcp.f32 %v2435_v19  ;;  %v401_v23 = vld [vmem:[%s6701_s6 + $0x750] sm:$0xff] }
 0x1fe   : > { %v5285_v33 = vpop.eup %5284  ;;  %v3449_v34 = vmul.f32 %v5283_v28, %v6708_v1  ;;  %5304 = vrcp.f32 %v2436_v24  ;;  %v914_v32 = vmul.f32 %v6708_v1, %v401_v23 }
 0x1ff   : > { %v5287_v38 = vpop.eup %5286  ;;  %3960 = vst [vmem:[%s6758_s21 + $0x680] sm:$0xff] %v3448_v29  ;;  %v3450_v39 = vmul.f32 %v5285_v33, %v6708_v1  ;;  %5306 = vpow2.f32 %v1634_v20  ;;  %v403_v29 = vld [vmem:[%s6701_s6 + $0x760] sm:$0xff]  ;;  %v404_v33 = vld [vmem:[%s6701_s6 + $0x768] sm:$0xff] }
 0x200   : > { %v5289_v43 = vpop.eup %5288  ;;  %3961 = vst [vmem:[%s6758_s21 + $0x688] sm:$0xff] %v3449_v34  ;;  %v3451_v44 = vmul.f32 %v5287_v38, %v6708_v1  ;;  %5308 = vpow2.f32 %v1636_v25 }
 0x201   : > { %v5291_v48 = vpop.eup %5290  ;;  %3962 = vst [vmem:[%s6758_s21 + $0x690] sm:$0xff] %v3450_v39  ;;  %v3452_v49 = vmul.f32 %v5289_v43, %v6708_v1  ;;  %5310 = vpow2.f32 %v1638_v30 }
 0x202   : > { %v5293_v52 = vpop.eup %5292  ;;  %3963 = vst [vmem:[%s6758_s21 + $0x698] sm:$0xff] %v3451_v44  ;;  %v3453_v53 = vmul.f32 %v5291_v48, %v6708_v1  ;;  %5312 = vpow2.f32 %v1640_v35  ;;  %v917_v44 = vmul.f32 %v6708_v1, %v404_v33  ;;  %v1660_v48 = vmul.f32 1.442695, %v914_v32 }
 0x203   : > { %v5295_v56 = vpop.eup %5294  ;;  %3964 = vst [vmem:[%s6758_s21 + $0x6a0] sm:$0xff] %v3452_v49  ;;  %v3454_v57 = vmul.f32 %v5293_v52, %v6708_v1  ;;  %5314 = vpow2.f32 %v1642_v40  ;;  %v916_v40 = vmul.f32 %v6708_v1, %v403_v29  ;;  %v918_v49 = vmul.f32 %v6708_v1, %v405_v37 }
 0x204   : > { %v5297_v60 = vpop.eup %5296  ;;  %3965 = vst [vmem:[%s6758_s21 + $0x6a8] sm:$0xff] %v3453_v53  ;;  %v3455_v61 = vmul.f32 %v5295_v56, %v6708_v1  ;;  %5316 = vpow2.f32 %v1644_v45  ;;  %v407_v45 = vld [vmem:[%s6701_s6 + $0x780] sm:$0xff]  ;;  %v1662_v53 = vmul.f32 1.442695, %v915_v36 }
 0x205   : > { %v5299_v63 = vpop.eup %5298  ;;  %3966 = vst [vmem:[%s6758_s21 + $0x6b0] sm:$0xff] %v3454_v57  ;;  %v3456_v0 = vmul.f32 %v5297_v60, %v6708_v1  ;;  %5318 = vpow2.f32 %v1646_v50  ;;  %v408_v50 = vld [vmem:[%s6701_s6 + $0x788] sm:$0xff]  ;;  %v920_v59 = vmul.f32 %v6708_v1, %v407_v45  ;;  %v410_v60 = vld [vmem:[%s6701_s6 + $0x798] sm:$0xff] }
 0x206   : > { %v5301_v3 = vpop.eup %5300  ;;  %3967 = vst [vmem:[%s6758_s21 + $0x6b8] sm:$0xff] %v3455_v61  ;;  %v3457_v4 = vmul.f32 %v5299_v63, %v6708_v1  ;;  %5320 = vpow2.f32 %v1648_v54  ;;  %v919_v54 = vmul.f32 %v6708_v1, %v406_v41  ;;  %v1666_v63 = vmul.f32 1.442695, %v917_v44 }
 0x207   : > { %v5303_v6 = vpop.eup %5302  ;;  %3968 = vst [vmem:[%s6758_s21 + $0x6c0] sm:$0xff] %v3456_v0  ;;  %v3458_v7 = vmul.f32 %v5301_v3, %v6708_v1  ;;  %5322 = vpow2.f32 %v1650_v58  ;;  %v1664_v58 = vmul.f32 1.442695, %v916_v40  ;;  %v921_v0 = vmul.f32 %v6708_v1, %v408_v50 }
 0x208   : > { %v5305_v9 = vpop.eup %5304  ;;  %3969 = vst [vmem:[%s6758_s21 + $0x6c8] sm:$0xff] %v3457_v4  ;;  %v3459_v10 = vmul.f32 %v5303_v6, %v6708_v1  ;;  %5324 = vpow2.f32 %v1652_v62  ;;  %v922_v6 = vmul.f32 %v6708_v1, %v409_v55 }
 0x209   : > { %v5307_v11 = vpop.eup %5306  ;;  %3970 = vst [vmem:[%s6758_s21 + $0x6d0] sm:$0xff] %v3458_v7  ;;  %v3460_v12 = vmul.f32 %v5305_v9, %v6708_v1  ;;  %5326 = vpow2.f32 %v1654_v2  ;;  %v411_v2 = vld [vmem:[%s6701_s6 + $0x7a0] sm:$0xff]  ;;  %v412_v7 = vld [vmem:[%s6701_s6 + $0x7a8] sm:$0xff] }
 0x20a   : > { %v5309_v13 = vpop.eup %5308  ;;  %3971 = vst [vmem:[%s6758_s21 + $0x6d8] sm:$0xff] %v3459_v10  ;;  %v2437_v14 = vadd.f32 1.0, %v5307_v11  ;;  %5328 = vpow2.f32 %v1656_v5  ;;  %v1668_v5 = vmul.f32 1.442695, %v918_v49  ;;  %v1670_v10 = vmul.f32 1.442695, %v919_v54 }
 0x20b   : > { %v5311_v15 = vpop.eup %5310  ;;  %3972 = vst [vmem:[%s6758_s21 + $0x6e0] sm:$0xff] %v3460_v12  ;;  %v2438_v16 = vadd.f32 1.0, %v5309_v13  ;;  %5330 = vpow2.f32 %v1658_v8  ;;  %v923_v11 = vmul.f32 %v6708_v1, %v410_v60  ;;  %v413_v12 = vld [vmem:[%s6701_s6 + $0x7b0] sm:$0xff]  ;;  %v1676_v23 = vmul.f32 1.442695, %v922_v6  ;;  %v415_v54 = vld [vmem:[%s6701_s6 + $0x7c0] sm:$0xff] }
 0x20c   : > { %v5313_v17 = vpop.eup %5312  ;;  %5332 = vrcp.f32 %v2437_v14  ;;  %v2439_v18 = vadd.f32 1.0, %v5311_v15  ;;  %v1672_v15 = vmul.f32 1.442695, %v920_v59  ;;  %v419_v6 = vld [vmem:[%s6701_s6 + $0x7e0] sm:$0xff] }
 0x20d   : > { %v5315_v19 = vpop.eup %5314  ;;  %5334 = vrcp.f32 %v2438_v16  ;;  %v2440_v20 = vadd.f32 1.0, %v5313_v17  ;;  %v924_v16 = vmul.f32 %v6708_v1, %v411_v2  ;;  %v418_v2 = vld [vmem:[%s6701_s6 + $0x7d8] sm:$0xff] }
 0x20e   : > { %v5317_v21 = vpop.eup %5316  ;;  %5336 = vrcp.f32 %v2439_v18  ;;  %v2441_v22 = vadd.f32 1.0, %v5315_v19  ;;  %v1674_v19 = vmul.f32 1.442695, %v921_v0  ;;  %v928_v0 = vmul.f32 %v6708_v1, %v415_v54 }
 0x20f   : > { %v5319_v24 = vpop.eup %5318  ;;  %5338 = vrcp.f32 %v2440_v20  ;;  %v2442_v25 = vadd.f32 1.0, %v5317_v21  ;;  %v925_v20 = vmul.f32 %v6708_v1, %v412_v7 }
 0x210   : > { %v5321_v27 = vpop.eup %5320  ;;  %5340 = vrcp.f32 %v2441_v22  ;;  %v2443_v28 = vadd.f32 1.0, %v5319_v24  ;;  %v926_v24 = vmul.f32 %v6708_v1, %v413_v12 }
 0x211   : > { %v5323_v30 = vpop.eup %5322  ;;  %5342 = vrcp.f32 %v2442_v25  ;;  %v2444_v31 = vadd.f32 1.0, %v5321_v27  ;;  %v1678_v27 = vmul.f32 1.442695, %v923_v11  ;;  %v1682_v33 = vmul.f32 1.442695, %v925_v20  ;;  %v422_v20 = vld [vmem:[%s6701_s6 + $0x7f8] sm:$0xff] }
 0x212   : > { %v5325_v34 = vpop.eup %5324  ;;  %5344 = vrcp.f32 %v2443_v28  ;;  %v2445_v35 = vadd.f32 1.0, %v5323_v30  ;;  %v1680_v30 = vmul.f32 1.442695, %v924_v16  ;;  %v1684_v36 = vmul.f32 1.442695, %v926_v24 }
 0x213   : > { %v5327_v38 = vpop.eup %5326  ;;  %5346 = vrcp.f32 %v2444_v31  ;;  %v2446_v39 = vadd.f32 1.0, %v5325_v34 }
 0x214   : > { %v5329_v42 = vpop.eup %5328  ;;  %5348 = vrcp.f32 %v2445_v35  ;;  %v2447_v43 = vadd.f32 1.0, %v5327_v38 }
 0x215   : > { %v5331_v46 = vpop.eup %5330  ;;  %5350 = vrcp.f32 %v2446_v39  ;;  %v2448_v47 = vadd.f32 1.0, %v5329_v42 }
 0x216   : > { %v5333_v51 = vpop.eup %5332  ;;  %5352 = vrcp.f32 %v2447_v43  ;;  %v2449_v52 = vadd.f32 1.0, %v5331_v46 }
 0x217   : > { %v5335_v56 = vpop.eup %5334  ;;  %v3461_v57 = vmul.f32 %v5333_v51, %v6708_v1  ;;  %5354 = vrcp.f32 %v2448_v47  ;;  %v414_v51 = vld [vmem:[%s6701_s6 + $0x7b8] sm:$0xff] }
 0x218   : > { %v5337_v61 = vpop.eup %5336  ;;  %v3462_v62 = vmul.f32 %v5335_v56, %v6708_v1  ;;  %5356 = vrcp.f32 %v2449_v52  ;;  %v927_v60 = vmul.f32 %v6708_v1, %v414_v51 }
 0x219   : > { %v5339_v3 = vpop.eup %5338  ;;  %3973 = vst [vmem:[%s6758_s21 + $0x6e8] sm:$0xff] %v3461_v57  ;;  %v3463_v4 = vmul.f32 %v5337_v61, %v6708_v1  ;;  %5358 = vpow2.f32 %v1660_v48  ;;  %v416_v57 = vld [vmem:[%s6701_s6 + $0x7c8] sm:$0xff]  ;;  %v417_v61 = vld [vmem:[%s6701_s6 + $0x7d0] sm:$0xff] }
 0x21a   : > { %v5341_v8 = vpop.eup %5340  ;;  %3974 = vst [vmem:[%s6758_s21 + $0x6f0] sm:$0xff] %v3462_v62  ;;  %v3464_v9 = vmul.f32 %v5339_v3, %v6708_v1  ;;  %5360 = vpow2.f32 %v1662_v53 }
 0x21b   : > { %v5343_v13 = vpop.eup %5342  ;;  %3975 = vst [vmem:[%s6758_s21 + $0x6f8] sm:$0xff] %v3463_v4  ;;  %v3465_v14 = vmul.f32 %v5341_v8, %v6708_v1  ;;  %5362 = vpow2.f32 %v1664_v58 }
 0x21c   : > { %v5345_v17 = vpop.eup %5344  ;;  %3976 = vst [vmem:[%s6758_s21 + $0x700] sm:$0xff] %v3464_v9  ;;  %v3466_v18 = vmul.f32 %v5343_v13, %v6708_v1  ;;  %5364 = vpow2.f32 %v1666_v63  ;;  %v930_v9 = vmul.f32 %v6708_v1, %v417_v61  ;;  %v1686_v13 = vmul.f32 1.442695, %v927_v60 }
 0x21d   : > { %v5347_v21 = vpop.eup %5346  ;;  %3977 = vst [vmem:[%s6758_s21 + $0x708] sm:$0xff] %v3465_v14  ;;  %v3467_v22 = vmul.f32 %v5345_v17, %v6708_v1  ;;  %5366 = vpow2.f32 %v1668_v5  ;;  %v929_v5 = vmul.f32 %v6708_v1, %v416_v57  ;;  %v931_v14 = vmul.f32 %v6708_v1, %v418_v2 }
 0x21e   : > { %v5349_v25 = vpop.eup %5348  ;;  %3978 = vst [vmem:[%s6758_s21 + $0x710] sm:$0xff] %v3466_v18  ;;  %v3468_v26 = vmul.f32 %v5347_v21, %v6708_v1  ;;  %5368 = vpow2.f32 %v1670_v10  ;;  %v420_v10 = vld [vmem:[%s6701_s6 + $0x7e8] sm:$0xff]  ;;  %v1688_v18 = vmul.f32 1.442695, %v928_v0 }
 0x21f   : > { %v5351_v28 = vpop.eup %5350  ;;  %3979 = vst [vmem:[%s6758_s21 + $0x718] sm:$0xff] %v3467_v22  ;;  %v3469_v29 = vmul.f32 %v5349_v25, %v6708_v1  ;;  %5370 = vpow2.f32 %v1672_v15  ;;  %v421_v15 = vld [vmem:[%s6701_s6 + $0x7f0] sm:$0xff]  ;;  %v933_v24 = vmul.f32 %v6708_v1, %v420_v10  ;;  %v423_v25 = vld [vmem:[%s6701_s6 + $0x800] sm:$0xff] }
 0x220   : > { %v5353_v31 = vpop.eup %5352  ;;  %3980 = vst [vmem:[%s6758_s21 + $0x720] sm:$0xff] %v3468_v26  ;;  %v3470_v32 = vmul.f32 %v5351_v28, %v6708_v1  ;;  %5372 = vpow2.f32 %v1674_v19  ;;  %v932_v19 = vmul.f32 %v6708_v1, %v419_v6  ;;  %v1692_v28 = vmul.f32 1.442695, %v930_v9 }
 0x221   : > { %v5355_v34 = vpop.eup %5354  ;;  %3981 = vst [vmem:[%s6758_s21 + $0x728] sm:$0xff] %v3469_v29  ;;  %v3471_v35 = vmul.f32 %v5353_v31, %v6708_v1  ;;  %5374 = vpow2.f32 %v1676_v23  ;;  %v1690_v23 = vmul.f32 1.442695, %v929_v5  ;;  %v934_v29 = vmul.f32 %v6708_v1, %v421_v15 }
 0x222   : > { %v5357_v37 = vpop.eup %5356  ;;  %3982 = vst [vmem:[%s6758_s21 + $0x730] sm:$0xff] %v3470_v32  ;;  %v3472_v38 = vmul.f32 %v5355_v34, %v6708_v1  ;;  %5376 = vpow2.f32 %v1678_v27  ;;  %v935_v34 = vmul.f32 %v6708_v1, %v422_v20 }
 0x223   : > { %v5359_v39 = vpop.eup %5358  ;;  %3983 = vst [vmem:[%s6758_s21 + $0x738] sm:$0xff] %v3471_v35  ;;  %v3473_v40 = vmul.f32 %v5357_v37, %v6708_v1  ;;  %5378 = vpow2.f32 %v1680_v30  ;;  %v424_v30 = vld [vmem:[%s6701_s6 + $0x808] sm:$0xff]  ;;  %v425_v35 = vld [vmem:[%s6701_s6 + $0x810] sm:$0xff] }
 0x224   : > { %v5361_v41 = vpop.eup %5360  ;;  %3984 = vst [vmem:[%s6758_s21 + $0x740] sm:$0xff] %v3472_v38  ;;  %v2450_v42 = vadd.f32 1.0, %v5359_v39  ;;  %5380 = vpow2.f32 %v1682_v33  ;;  %v1694_v33 = vmul.f32 1.442695, %v931_v14  ;;  %v1696_v38 = vmul.f32 1.442695, %v932_v19 }
 0x225   : > { %v5363_v43 = vpop.eup %5362  ;;  %3985 = vst [vmem:[%s6758_s21 + $0x748] sm:$0xff] %v3473_v40  ;;  %v2451_v44 = vadd.f32 1.0, %v5361_v41  ;;  %5382 = vpow2.f32 %v1684_v36  ;;  %v936_v39 = vmul.f32 %v6708_v1, %v423_v25  ;;  %v426_v40 = vld [vmem:[%s6701_s6 + $0x818] sm:$0xff]  ;;  %v1702_v51 = vmul.f32 1.442695, %v935_v34  ;;  %v428_v19 = vld [vmem:[%s6701_s6 + $0x828] sm:$0xff] }
 0x226   : > { %v5365_v45 = vpop.eup %5364  ;;  %5384 = vrcp.f32 %v2450_v42  ;;  %v2452_v46 = vadd.f32 1.0, %v5363_v43  ;;  %v1698_v43 = vmul.f32 1.442695, %v933_v24  ;;  %v432_v34 = vld [vmem:[%s6701_s6 + $0x848] sm:$0xff] }
 0x227   : > { %v5367_v47 = vpop.eup %5366  ;;  %5386 = vrcp.f32 %v2451_v44  ;;  %v2453_v48 = vadd.f32 1.0, %v5365_v45  ;;  %v937_v44 = vmul.f32 %v6708_v1, %v424_v30  ;;  %v431_v30 = vld [vmem:[%s6701_s6 + $0x840] sm:$0xff] }
 0x228   : > { %v5369_v49 = vpop.eup %5368  ;;  %5388 = vrcp.f32 %v2452_v46  ;;  %v2454_v50 = vadd.f32 1.0, %v5367_v47  ;;  %v1700_v47 = vmul.f32 1.442695, %v934_v29  ;;  %v941_v29 = vmul.f32 %v6708_v1, %v428_v19 }
 0x229   : > { %v5371_v52 = vpop.eup %5370  ;;  %5390 = vrcp.f32 %v2453_v48  ;;  %v2455_v53 = vadd.f32 1.0, %v5369_v49  ;;  %v938_v48 = vmul.f32 %v6708_v1, %v425_v35 }
 0x22a   : > { %v5373_v55 = vpop.eup %5372  ;;  %5392 = vrcp.f32 %v2454_v50  ;;  %v2456_v56 = vadd.f32 1.0, %v5371_v52  ;;  %v939_v52 = vmul.f32 %v6708_v1, %v426_v40 }
 0x22b   : > { %v5375_v58 = vpop.eup %5374  ;;  %5394 = vrcp.f32 %v2455_v53  ;;  %v2457_v59 = vadd.f32 1.0, %v5373_v55  ;;  %v1704_v55 = vmul.f32 1.442695, %v936_v39  ;;  %v1708_v61 = vmul.f32 1.442695, %v938_v48  ;;  %v435_v48 = vld [vmem:[%s6701_s6 + $0x860] sm:$0xff] }
 0x22c   : > { %v5377_v62 = vpop.eup %5376  ;;  %5396 = vrcp.f32 %v2456_v56  ;;  %v2458_v63 = vadd.f32 1.0, %v5375_v58  ;;  %v1706_v58 = vmul.f32 1.442695, %v937_v44  ;;  %v1710_v0 = vmul.f32 1.442695, %v939_v52 }
 0x22d   : > { %v5379_v3 = vpop.eup %5378  ;;  %5398 = vrcp.f32 %v2457_v59  ;;  %v2459_v4 = vadd.f32 1.0, %v5377_v62 }
 0x22e   : > { %v5381_v7 = vpop.eup %5380  ;;  %5400 = vrcp.f32 %v2458_v63  ;;  %v2460_v8 = vadd.f32 1.0, %v5379_v3 }
 0x22f   : > { %v5383_v11 = vpop.eup %5382  ;;  %5402 = vrcp.f32 %v2459_v4  ;;  %v2461_v12 = vadd.f32 1.0, %v5381_v7 }
 0x230   : > { %v5385_v16 = vpop.eup %5384  ;;  %5404 = vrcp.f32 %v2460_v8  ;;  %v2462_v17 = vadd.f32 1.0, %v5383_v11 }
 0x231   : > { %v5387_v21 = vpop.eup %5386  ;;  %v3474_v22 = vmul.f32 %v5385_v16, %v6708_v1  ;;  %5406 = vrcp.f32 %v2461_v12  ;;  %v427_v16 = vld [vmem:[%s6701_s6 + $0x820] sm:$0xff] }
 0x232   : > { %v5389_v26 = vpop.eup %5388  ;;  %v3475_v27 = vmul.f32 %v5387_v21, %v6708_v1  ;;  %5408 = vrcp.f32 %v2462_v17  ;;  %v940_v25 = vmul.f32 %v6708_v1, %v427_v16 }
 0x233   : > { %v5391_v31 = vpop.eup %5390  ;;  %3986 = vst [vmem:[%s6758_s21 + $0x750] sm:$0xff] %v3474_v22  ;;  %v3476_v32 = vmul.f32 %v5389_v26, %v6708_v1  ;;  %5410 = vpow2.f32 %v1686_v13  ;;  %v429_v22 = vld [vmem:[%s6701_s6 + $0x830] sm:$0xff]  ;;  %v430_v26 = vld [vmem:[%s6701_s6 + $0x838] sm:$0xff] }
 0x234   : > { %v5393_v36 = vpop.eup %5392  ;;  %3987 = vst [vmem:[%s6758_s21 + $0x758] sm:$0xff] %v3475_v27  ;;  %v3477_v37 = vmul.f32 %v5391_v31, %v6708_v1  ;;  %5412 = vpow2.f32 %v1688_v18 }
 0x235   : > { %v5395_v41 = vpop.eup %5394  ;;  %3988 = vst [vmem:[%s6758_s21 + $0x760] sm:$0xff] %v3476_v32  ;;  %v3478_v42 = vmul.f32 %v5393_v36, %v6708_v1  ;;  %5414 = vpow2.f32 %v1690_v23 }
 0x236   : > { %v5397_v45 = vpop.eup %5396  ;;  %3989 = vst [vmem:[%s6758_s21 + $0x768] sm:$0xff] %v3477_v37  ;;  %v3479_v46 = vmul.f32 %v5395_v41, %v6708_v1  ;;  %5416 = vpow2.f32 %v1692_v28  ;;  %v943_v37 = vmul.f32 %v6708_v1, %v430_v26  ;;  %v1712_v41 = vmul.f32 1.442695, %v940_v25 }
 0x237   : > { %v5399_v49 = vpop.eup %5398  ;;  %3990 = vst [vmem:[%s6758_s21 + $0x770] sm:$0xff] %v3478_v42  ;;  %v3480_v50 = vmul.f32 %v5397_v45, %v6708_v1  ;;  %5418 = vpow2.f32 %v1694_v33  ;;  %v942_v33 = vmul.f32 %v6708_v1, %v429_v22  ;;  %v944_v42 = vmul.f32 %v6708_v1, %v431_v30 }
 0x238   : > { %v5401_v53 = vpop.eup %5400  ;;  %3991 = vst [vmem:[%s6758_s21 + $0x778] sm:$0xff] %v3479_v46  ;;  %v3481_v54 = vmul.f32 %v5399_v49, %v6708_v1  ;;  %5420 = vpow2.f32 %v1696_v38  ;;  %v433_v38 = vld [vmem:[%s6701_s6 + $0x850] sm:$0xff]  ;;  %v1714_v46 = vmul.f32 1.442695, %v941_v29 }
 0x239   : > { %v5403_v56 = vpop.eup %5402  ;;  %3992 = vst [vmem:[%s6758_s21 + $0x780] sm:$0xff] %v3480_v50  ;;  %v3482_v57 = vmul.f32 %v5401_v53, %v6708_v1  ;;  %5422 = vpow2.f32 %v1698_v43  ;;  %v434_v43 = vld [vmem:[%s6701_s6 + $0x858] sm:$0xff]  ;;  %v946_v52 = vmul.f32 %v6708_v1, %v433_v38  ;;  %v436_v53 = vld [vmem:[%s6701_s6 + $0x868] sm:$0xff] }
 0x23a   : > { %v5405_v59 = vpop.eup %5404  ;;  %3993 = vst [vmem:[%s6758_s21 + $0x788] sm:$0xff] %v3481_v54  ;;  %v3483_v60 = vmul.f32 %v5403_v56, %v6708_v1  ;;  %5424 = vpow2.f32 %v1700_v47  ;;  %v945_v47 = vmul.f32 %v6708_v1, %v432_v34  ;;  %v1718_v56 = vmul.f32 1.442695, %v943_v37 }
 0x23b   : > { %v5407_v62 = vpop.eup %5406  ;;  %3994 = vst [vmem:[%s6758_s21 + $0x790] sm:$0xff] %v3482_v57  ;;  %v3484_v63 = vmul.f32 %v5405_v59, %v6708_v1  ;;  %5426 = vpow2.f32 %v1702_v51  ;;  %v1716_v51 = vmul.f32 1.442695, %v942_v33  ;;  %v947_v57 = vmul.f32 %v6708_v1, %v434_v43 }
 0x23c   : > { %v5409_v2 = vpop.eup %5408  ;;  %3995 = vst [vmem:[%s6758_s21 + $0x798] sm:$0xff] %v3483_v60  ;;  %v3485_v3 = vmul.f32 %v5407_v62, %v6708_v1  ;;  %5428 = vpow2.f32 %v1704_v55  ;;  %v948_v62 = vmul.f32 %v6708_v1, %v435_v48 }
 0x23d   : > { %v5411_v4 = vpop.eup %5410  ;;  %3996 = vst [vmem:[%s6758_s21 + $0x7a0] sm:$0xff] %v3484_v63  ;;  %v3486_v5 = vmul.f32 %v5409_v2, %v6708_v1  ;;  %5430 = vpow2.f32 %v1706_v58  ;;  %v437_v58 = vld [vmem:[%s6701_s6 + $0x870] sm:$0xff]  ;;  %v438_v63 = vld [vmem:[%s6701_s6 + $0x878] sm:$0xff] }
 0x23e   : > { %v5413_v6 = vpop.eup %5412  ;;  %3997 = vst [vmem:[%s6758_s21 + $0x7a8] sm:$0xff] %v3485_v3  ;;  %v2463_v7 = vadd.f32 1.0, %v5411_v4  ;;  %5432 = vpow2.f32 %v1708_v61  ;;  %v1720_v61 = vmul.f32 1.442695, %v944_v42  ;;  %v1722_v3 = vmul.f32 1.442695, %v945_v47 }
 0x23f   : > { %v5415_v8 = vpop.eup %5414  ;;  %3998 = vst [vmem:[%s6758_s21 + $0x7b0] sm:$0xff] %v3486_v5  ;;  %v2464_v9 = vadd.f32 1.0, %v5413_v6  ;;  %5434 = vpow2.f32 %v1710_v0  ;;  %v949_v4 = vmul.f32 %v6708_v1, %v436_v53  ;;  %v439_v5 = vld [vmem:[%s6701_s6 + $0x880] sm:$0xff]  ;;  %v1728_v16 = vmul.f32 1.442695, %v948_v62  ;;  %v441_v47 = vld [vmem:[%s6701_s6 + $0x890] sm:$0xff] }
 0x240   : > { %v5417_v10 = vpop.eup %5416  ;;  %5436 = vrcp.f32 %v2463_v7  ;;  %v2465_v11 = vadd.f32 1.0, %v5415_v8  ;;  %v1724_v8 = vmul.f32 1.442695, %v946_v52  ;;  %v445_v62 = vld [vmem:[%s6701_s6 + $0x8b0] sm:$0xff] }
 0x241   : > { %v5419_v12 = vpop.eup %5418  ;;  %5438 = vrcp.f32 %v2464_v9  ;;  %v2466_v13 = vadd.f32 1.0, %v5417_v10  ;;  %v950_v9 = vmul.f32 %v6708_v1, %v437_v58  ;;  %v444_v58 = vld [vmem:[%s6701_s6 + $0x8a8] sm:$0xff] }
 0x242   : > { %v5421_v14 = vpop.eup %5420  ;;  %5440 = vrcp.f32 %v2465_v11  ;;  %v2467_v15 = vadd.f32 1.0, %v5419_v12  ;;  %v1726_v12 = vmul.f32 1.442695, %v947_v57  ;;  %v954_v57 = vmul.f32 %v6708_v1, %v441_v47 }
 0x243   : > { %v5423_v17 = vpop.eup %5422  ;;  %5442 = vrcp.f32 %v2466_v13  ;;  %v2468_v18 = vadd.f32 1.0, %v5421_v14  ;;  %v951_v13 = vmul.f32 %v6708_v1, %v438_v63 }
 0x244   : > { %v5425_v20 = vpop.eup %5424  ;;  %5444 = vrcp.f32 %v2467_v15  ;;  %v2469_v21 = vadd.f32 1.0, %v5423_v17  ;;  %v952_v17 = vmul.f32 %v6708_v1, %v439_v5 }
 0x245   : > { %v5427_v23 = vpop.eup %5426  ;;  %5446 = vrcp.f32 %v2468_v18  ;;  %v2470_v24 = vadd.f32 1.0, %v5425_v20  ;;  %v1730_v20 = vmul.f32 1.442695, %v949_v4  ;;  %v1734_v26 = vmul.f32 1.442695, %v951_v13  ;;  %v448_v13 = vld [vmem:[%s6701_s6 + $0x8c8] sm:$0xff] }
 0x246   : > { %v5429_v27 = vpop.eup %5428  ;;  %5448 = vrcp.f32 %v2469_v21  ;;  %v2471_v28 = vadd.f32 1.0, %v5427_v23  ;;  %v1732_v23 = vmul.f32 1.442695, %v950_v9  ;;  %v1736_v29 = vmul.f32 1.442695, %v952_v17 }
 0x247   : > { %v5431_v31 = vpop.eup %5430  ;;  %5450 = vrcp.f32 %v2470_v24  ;;  %v2472_v32 = vadd.f32 1.0, %v5429_v27 }
 0x248   : > { %v5433_v35 = vpop.eup %5432  ;;  %5452 = vrcp.f32 %v2471_v28  ;;  %v2473_v36 = vadd.f32 1.0, %v5431_v31 }
 0x249   : > { %v5435_v39 = vpop.eup %5434  ;;  %5454 = vrcp.f32 %v2472_v32  ;;  %v2474_v40 = vadd.f32 1.0, %v5433_v35 }
 0x24a   : > { %v5437_v44 = vpop.eup %5436  ;;  %5456 = vrcp.f32 %v2473_v36  ;;  %v2475_v45 = vadd.f32 1.0, %v5435_v39 }
 0x24b   : > { %v5439_v49 = vpop.eup %5438  ;;  %v3487_v50 = vmul.f32 %v5437_v44, %v6708_v1  ;;  %5458 = vrcp.f32 %v2474_v40  ;;  %v440_v44 = vld [vmem:[%s6701_s6 + $0x888] sm:$0xff] }
 0x24c   : > { %v5441_v54 = vpop.eup %5440  ;;  %v3488_v55 = vmul.f32 %v5439_v49, %v6708_v1  ;;  %5460 = vrcp.f32 %v2475_v45  ;;  %v953_v53 = vmul.f32 %v6708_v1, %v440_v44 }
 0x24d   : > { %v5443_v59 = vpop.eup %5442  ;;  %3999 = vst [vmem:[%s6758_s21 + $0x7b8] sm:$0xff] %v3487_v50  ;;  %v3489_v60 = vmul.f32 %v5441_v54, %v6708_v1  ;;  %5462 = vpow2.f32 %v1712_v41  ;;  %v442_v50 = vld [vmem:[%s6701_s6 + $0x898] sm:$0xff]  ;;  %v443_v54 = vld [vmem:[%s6701_s6 + $0x8a0] sm:$0xff] }
 0x24e   : > { %v5445_v0 = vpop.eup %5444  ;;  %4000 = vst [vmem:[%s6758_s21 + $0x7c0] sm:$0xff] %v3488_v55  ;;  %v3490_v2 = vmul.f32 %v5443_v59, %v6708_v1  ;;  %5464 = vpow2.f32 %v1714_v46 }
 0x24f   : > { %v5447_v6 = vpop.eup %5446  ;;  %4001 = vst [vmem:[%s6758_s21 + $0x7c8] sm:$0xff] %v3489_v60  ;;  %v3491_v7 = vmul.f32 %v5445_v0, %v6708_v1  ;;  %5466 = vpow2.f32 %v1716_v51 }
 0x250   : > { %v5449_v10 = vpop.eup %5448  ;;  %4002 = vst [vmem:[%s6758_s21 + $0x7d0] sm:$0xff] %v3490_v2  ;;  %v3492_v11 = vmul.f32 %v5447_v6, %v6708_v1  ;;  %5468 = vpow2.f32 %v1718_v56  ;;  %v956_v2 = vmul.f32 %v6708_v1, %v443_v54  ;;  %v1738_v6 = vmul.f32 1.442695, %v953_v53 }
 0x251   : > { %v5451_v14 = vpop.eup %5450  ;;  %4003 = vst [vmem:[%s6758_s21 + $0x7d8] sm:$0xff] %v3491_v7  ;;  %v3493_v15 = vmul.f32 %v5449_v10, %v6708_v1  ;;  %5470 = vpow2.f32 %v1720_v61  ;;  %v955_v61 = vmul.f32 %v6708_v1, %v442_v50  ;;  %v957_v7 = vmul.f32 %v6708_v1, %v444_v58 }
 0x252   : > { %v5453_v18 = vpop.eup %5452  ;;  %4004 = vst [vmem:[%s6758_s21 + $0x7e0] sm:$0xff] %v3492_v11  ;;  %v3494_v19 = vmul.f32 %v5451_v14, %v6708_v1  ;;  %5472 = vpow2.f32 %v1722_v3  ;;  %v446_v3 = vld [vmem:[%s6701_s6 + $0x8b8] sm:$0xff]  ;;  %v1740_v11 = vmul.f32 1.442695, %v954_v57 }
 0x253   : > { %v5455_v21 = vpop.eup %5454  ;;  %4005 = vst [vmem:[%s6758_s21 + $0x7e8] sm:$0xff] %v3493_v15  ;;  %v3495_v22 = vmul.f32 %v5453_v18, %v6708_v1  ;;  %5474 = vpow2.f32 %v1724_v8  ;;  %v447_v8 = vld [vmem:[%s6701_s6 + $0x8c0] sm:$0xff]  ;;  %v959_v17 = vmul.f32 %v6708_v1, %v446_v3  ;;  %v449_v18 = vld [vmem:[%s6701_s6 + $0x8d0] sm:$0xff] }
 0x254   : > { %v5457_v24 = vpop.eup %5456  ;;  %4006 = vst [vmem:[%s6758_s21 + $0x7f0] sm:$0xff] %v3494_v19  ;;  %v3496_v25 = vmul.f32 %v5455_v21, %v6708_v1  ;;  %5476 = vpow2.f32 %v1726_v12  ;;  %v958_v12 = vmul.f32 %v6708_v1, %v445_v62  ;;  %v1744_v21 = vmul.f32 1.442695, %v956_v2 }
 0x255   : > { %v5459_v27 = vpop.eup %5458  ;;  %4007 = vst [vmem:[%s6758_s21 + $0x7f8] sm:$0xff] %v3495_v22  ;;  %v3497_v28 = vmul.f32 %v5457_v24, %v6708_v1  ;;  %5478 = vpow2.f32 %v1728_v16  ;;  %v1742_v16 = vmul.f32 1.442695, %v955_v61  ;;  %v960_v22 = vmul.f32 %v6708_v1, %v447_v8 }
 0x256   : > { %v5461_v30 = vpop.eup %5460  ;;  %4008 = vst [vmem:[%s6758_s21 + $0x800] sm:$0xff] %v3496_v25  ;;  %v3498_v31 = vmul.f32 %v5459_v27, %v6708_v1  ;;  %5480 = vpow2.f32 %v1730_v20  ;;  %v961_v27 = vmul.f32 %v6708_v1, %v448_v13 }
 0x257   : > { %v5463_v32 = vpop.eup %5462  ;;  %4009 = vst [vmem:[%s6758_s21 + $0x808] sm:$0xff] %v3497_v28  ;;  %v3499_v33 = vmul.f32 %v5461_v30, %v6708_v1  ;;  %5482 = vpow2.f32 %v1732_v23  ;;  %v450_v23 = vld [vmem:[%s6701_s6 + $0x8d8] sm:$0xff]  ;;  %v451_v28 = vld [vmem:[%s6701_s6 + $0x8e0] sm:$0xff] }
 0x258   : > { %v5465_v34 = vpop.eup %5464  ;;  %4010 = vst [vmem:[%s6758_s21 + $0x810] sm:$0xff] %v3498_v31  ;;  %v2476_v35 = vadd.f32 1.0, %v5463_v32  ;;  %5484 = vpow2.f32 %v1734_v26  ;;  %v1746_v26 = vmul.f32 1.442695, %v957_v7  ;;  %v1748_v31 = vmul.f32 1.442695, %v958_v12 }
 0x259   : > { %v5467_v36 = vpop.eup %5466  ;;  %4011 = vst [vmem:[%s6758_s21 + $0x818] sm:$0xff] %v3499_v33  ;;  %v2477_v37 = vadd.f32 1.0, %v5465_v34  ;;  %5486 = vpow2.f32 %v1736_v29  ;;  %v962_v32 = vmul.f32 %v6708_v1, %v449_v18  ;;  %v452_v33 = vld [vmem:[%s6701_s6 + $0x8e8] sm:$0xff]  ;;  %v1754_v44 = vmul.f32 1.442695, %v961_v27  ;;  %v454_v12 = vld [vmem:[%s6701_s6 + $0x8f8] sm:$0xff] }
 0x25a   : > { %v5469_v38 = vpop.eup %5468  ;;  %5488 = vrcp.f32 %v2476_v35  ;;  %v2478_v39 = vadd.f32 1.0, %v5467_v36  ;;  %v1750_v36 = vmul.f32 1.442695, %v959_v17  ;;  %v458_v27 = vld [vmem:[%s6701_s6 + $0x918] sm:$0xff] }
 0x25b   : > { %v5471_v40 = vpop.eup %5470  ;;  %5490 = vrcp.f32 %v2477_v37  ;;  %v2479_v41 = vadd.f32 1.0, %v5469_v38  ;;  %v963_v37 = vmul.f32 %v6708_v1, %v450_v23  ;;  %v457_v23 = vld [vmem:[%s6701_s6 + $0x910] sm:$0xff] }
 0x25c   : > { %v5473_v42 = vpop.eup %5472  ;;  %5492 = vrcp.f32 %v2478_v39  ;;  %v2480_v43 = vadd.f32 1.0, %v5471_v40  ;;  %v1752_v40 = vmul.f32 1.442695, %v960_v22  ;;  %v967_v22 = vmul.f32 %v6708_v1, %v454_v12 }
 0x25d   : > { %v5475_v45 = vpop.eup %5474  ;;  %5494 = vrcp.f32 %v2479_v41  ;;  %v2481_v46 = vadd.f32 1.0, %v5473_v42  ;;  %v964_v41 = vmul.f32 %v6708_v1, %v451_v28 }
 0x25e   : > { %v5477_v48 = vpop.eup %5476  ;;  %5496 = vrcp.f32 %v2480_v43  ;;  %v2482_v49 = vadd.f32 1.0, %v5475_v45  ;;  %v965_v45 = vmul.f32 %v6708_v1, %v452_v33 }
 0x25f   : > { %v5479_v51 = vpop.eup %5478  ;;  %5498 = vrcp.f32 %v2481_v46  ;;  %v2483_v52 = vadd.f32 1.0, %v5477_v48  ;;  %v1756_v48 = vmul.f32 1.442695, %v962_v32  ;;  %v1760_v54 = vmul.f32 1.442695, %v964_v41  ;;  %v461_v41 = vld [vmem:[%s6701_s6 + $0x930] sm:$0xff] }
 0x260   : > { %v5481_v55 = vpop.eup %5480  ;;  %5500 = vrcp.f32 %v2482_v49  ;;  %v2484_v56 = vadd.f32 1.0, %v5479_v51  ;;  %v1758_v51 = vmul.f32 1.442695, %v963_v37  ;;  %v1762_v57 = vmul.f32 1.442695, %v965_v45 }
 0x261   : > { %v5483_v59 = vpop.eup %5482  ;;  %5502 = vrcp.f32 %v2483_v52  ;;  %v2485_v60 = vadd.f32 1.0, %v5481_v55 }
 0x262   : > { %v5485_v63 = vpop.eup %5484  ;;  %5504 = vrcp.f32 %v2484_v56  ;;  %v2486_v0 = vadd.f32 1.0, %v5483_v59 }
 0x263   : > { %v5487_v4 = vpop.eup %5486  ;;  %5506 = vrcp.f32 %v2485_v60  ;;  %v2487_v5 = vadd.f32 1.0, %v5485_v63 }
 0x264   : > { %v5489_v9 = vpop.eup %5488  ;;  %5508 = vrcp.f32 %v2486_v0  ;;  %v2488_v10 = vadd.f32 1.0, %v5487_v4 }
 0x265   : > { %v5491_v14 = vpop.eup %5490  ;;  %v3500_v15 = vmul.f32 %v5489_v9, %v6708_v1  ;;  %5510 = vrcp.f32 %v2487_v5  ;;  %v453_v9 = vld [vmem:[%s6701_s6 + $0x8f0] sm:$0xff] }
 0x266   : > { %v5493_v19 = vpop.eup %5492  ;;  %v3501_v20 = vmul.f32 %v5491_v14, %v6708_v1  ;;  %5512 = vrcp.f32 %v2488_v10  ;;  %v966_v18 = vmul.f32 %v6708_v1, %v453_v9 }
 0x267   : > { %v5495_v24 = vpop.eup %5494  ;;  %4012 = vst [vmem:[%s6758_s21 + $0x820] sm:$0xff] %v3500_v15  ;;  %v3502_v25 = vmul.f32 %v5493_v19, %v6708_v1  ;;  %5514 = vpow2.f32 %v1738_v6  ;;  %v455_v15 = vld [vmem:[%s6701_s6 + $0x900] sm:$0xff]  ;;  %v456_v19 = vld [vmem:[%s6701_s6 + $0x908] sm:$0xff] }
 0x268   : > { %v5497_v29 = vpop.eup %5496  ;;  %4013 = vst [vmem:[%s6758_s21 + $0x828] sm:$0xff] %v3501_v20  ;;  %v3503_v30 = vmul.f32 %v5495_v24, %v6708_v1  ;;  %5516 = vpow2.f32 %v1740_v11 }
 0x269   : > { %v5499_v34 = vpop.eup %5498  ;;  %4014 = vst [vmem:[%s6758_s21 + $0x830] sm:$0xff] %v3502_v25  ;;  %v3504_v35 = vmul.f32 %v5497_v29, %v6708_v1  ;;  %5518 = vpow2.f32 %v1742_v16 }
 0x26a   : > { %v5501_v38 = vpop.eup %5500  ;;  %4015 = vst [vmem:[%s6758_s21 + $0x838] sm:$0xff] %v3503_v30  ;;  %v3505_v39 = vmul.f32 %v5499_v34, %v6708_v1  ;;  %5520 = vpow2.f32 %v1744_v21  ;;  %v969_v30 = vmul.f32 %v6708_v1, %v456_v19  ;;  %v1764_v34 = vmul.f32 1.442695, %v966_v18 }
 0x26b   : > { %v5503_v42 = vpop.eup %5502  ;;  %4016 = vst [vmem:[%s6758_s21 + $0x840] sm:$0xff] %v3504_v35  ;;  %v3506_v43 = vmul.f32 %v5501_v38, %v6708_v1  ;;  %5522 = vpow2.f32 %v1746_v26  ;;  %v968_v26 = vmul.f32 %v6708_v1, %v455_v15  ;;  %v970_v35 = vmul.f32 %v6708_v1, %v457_v23 }
 0x26c   : > { %v5505_v46 = vpop.eup %5504  ;;  %4017 = vst [vmem:[%s6758_s21 + $0x848] sm:$0xff] %v3505_v39  ;;  %v3507_v47 = vmul.f32 %v5503_v42, %v6708_v1  ;;  %5524 = vpow2.f32 %v1748_v31  ;;  %v459_v31 = vld [vmem:[%s6701_s6 + $0x920] sm:$0xff]  ;;  %v1766_v39 = vmul.f32 1.442695, %v967_v22 }
 0x26d   : > { %v5507_v49 = vpop.eup %5506  ;;  %4018 = vst [vmem:[%s6758_s21 + $0x850] sm:$0xff] %v3506_v43  ;;  %v3508_v50 = vmul.f32 %v5505_v46, %v6708_v1  ;;  %5526 = vpow2.f32 %v1750_v36  ;;  %v460_v36 = vld [vmem:[%s6701_s6 + $0x928] sm:$0xff]  ;;  %v972_v45 = vmul.f32 %v6708_v1, %v459_v31  ;;  %v462_v46 = vld [vmem:[%s6701_s6 + $0x938] sm:$0xff] }
 0x26e   : > { %v5509_v52 = vpop.eup %5508  ;;  %4019 = vst [vmem:[%s6758_s21 + $0x858] sm:$0xff] %v3507_v47  ;;  %v3509_v53 = vmul.f32 %v5507_v49, %v6708_v1  ;;  %5528 = vpow2.f32 %v1752_v40  ;;  %v971_v40 = vmul.f32 %v6708_v1, %v458_v27  ;;  %v1770_v49 = vmul.f32 1.442695, %v969_v30 }
 0x26f   : > { %v5511_v55 = vpop.eup %5510  ;;  %4020 = vst [vmem:[%s6758_s21 + $0x860] sm:$0xff] %v3508_v50  ;;  %v3510_v56 = vmul.f32 %v5509_v52, %v6708_v1  ;;  %5530 = vpow2.f32 %v1754_v44  ;;  %v1768_v44 = vmul.f32 1.442695, %v968_v26  ;;  %v973_v50 = vmul.f32 %v6708_v1, %v460_v36 }
 0x270   : > { %v5513_v58 = vpop.eup %5512  ;;  %4021 = vst [vmem:[%s6758_s21 + $0x868] sm:$0xff] %v3509_v53  ;;  %v3511_v59 = vmul.f32 %v5511_v55, %v6708_v1  ;;  %5532 = vpow2.f32 %v1756_v48  ;;  %v974_v55 = vmul.f32 %v6708_v1, %v461_v41 }
 0x271   : > { %v5515_v60 = vpop.eup %5514  ;;  %4022 = vst [vmem:[%s6758_s21 + $0x870] sm:$0xff] %v3510_v56  ;;  %v3512_v61 = vmul.f32 %v5513_v58, %v6708_v1  ;;  %5534 = vpow2.f32 %v1758_v51  ;;  %v463_v51 = vld [vmem:[%s6701_s6 + $0x940] sm:$0xff]  ;;  %v464_v56 = vld [vmem:[%s6701_s6 + $0x948] sm:$0xff] }
 0x272   : > { %v5517_v62 = vpop.eup %5516  ;;  %4023 = vst [vmem:[%s6758_s21 + $0x878] sm:$0xff] %v3511_v59  ;;  %v2489_v63 = vadd.f32 1.0, %v5515_v60  ;;  %5536 = vpow2.f32 %v1760_v54  ;;  %v1772_v54 = vmul.f32 1.442695, %v970_v35  ;;  %v1774_v59 = vmul.f32 1.442695, %v971_v40 }
 0x273   : > { %v5519_v0 = vpop.eup %5518  ;;  %4024 = vst [vmem:[%s6758_s21 + $0x880] sm:$0xff] %v3512_v61  ;;  %v2490_v2 = vadd.f32 1.0, %v5517_v62  ;;  %5538 = vpow2.f32 %v1762_v57  ;;  %v975_v60 = vmul.f32 %v6708_v1, %v462_v46  ;;  %v465_v61 = vld [vmem:[%s6701_s6 + $0x950] sm:$0xff]  ;;  %v1780_v9 = vmul.f32 1.442695, %v974_v55  ;;  %v467_v40 = vld [vmem:[%s6701_s6 + $0x960] sm:$0xff] }
 0x274   : > { %v5521_v3 = vpop.eup %5520  ;;  %5540 = vrcp.f32 %v2489_v63  ;;  %v2491_v4 = vadd.f32 1.0, %v5519_v0  ;;  %v1776_v0 = vmul.f32 1.442695, %v972_v45  ;;  %v471_v55 = vld [vmem:[%s6701_s6 + $0x980] sm:$0xff] }
 0x275   : > { %v5523_v5 = vpop.eup %5522  ;;  %5542 = vrcp.f32 %v2490_v2  ;;  %v2492_v6 = vadd.f32 1.0, %v5521_v3  ;;  %v976_v2 = vmul.f32 %v6708_v1, %v463_v51  ;;  %v470_v51 = vld [vmem:[%s6701_s6 + $0x978] sm:$0xff] }
 0x276   : > { %v5525_v7 = vpop.eup %5524  ;;  %5544 = vrcp.f32 %v2491_v4  ;;  %v2493_v8 = vadd.f32 1.0, %v5523_v5  ;;  %v1778_v5 = vmul.f32 1.442695, %v973_v50  ;;  %v980_v50 = vmul.f32 %v6708_v1, %v467_v40 }
 0x277   : > { %v5527_v10 = vpop.eup %5526  ;;  %5546 = vrcp.f32 %v2492_v6  ;;  %v2494_v11 = vadd.f32 1.0, %v5525_v7  ;;  %v977_v6 = vmul.f32 %v6708_v1, %v464_v56 }
 0x278   : > { %v5529_v13 = vpop.eup %5528  ;;  %5548 = vrcp.f32 %v2493_v8  ;;  %v2495_v14 = vadd.f32 1.0, %v5527_v10  ;;  %v978_v10 = vmul.f32 %v6708_v1, %v465_v61 }
 0x279   : > { %v5531_v16 = vpop.eup %5530  ;;  %5550 = vrcp.f32 %v2494_v11  ;;  %v2496_v17 = vadd.f32 1.0, %v5529_v13  ;;  %v1782_v13 = vmul.f32 1.442695, %v975_v60  ;;  %v1786_v19 = vmul.f32 1.442695, %v977_v6  ;;  %v474_v6 = vld [vmem:[%s6701_s6 + $0x998] sm:$0xff] }
 0x27a   : > { %v5533_v20 = vpop.eup %5532  ;;  %5552 = vrcp.f32 %v2495_v14  ;;  %v2497_v21 = vadd.f32 1.0, %v5531_v16  ;;  %v1784_v16 = vmul.f32 1.442695, %v976_v2  ;;  %v1788_v22 = vmul.f32 1.442695, %v978_v10 }
 0x27b   : > { %v5535_v24 = vpop.eup %5534  ;;  %5554 = vrcp.f32 %v2496_v17  ;;  %v2498_v25 = vadd.f32 1.0, %v5533_v20 }
 0x27c   : > { %v5537_v28 = vpop.eup %5536  ;;  %5556 = vrcp.f32 %v2497_v21  ;;  %v2499_v29 = vadd.f32 1.0, %v5535_v24 }
 0x27d   : > { %v5539_v32 = vpop.eup %5538  ;;  %5558 = vrcp.f32 %v2498_v25  ;;  %v2500_v33 = vadd.f32 1.0, %v5537_v28 }
 0x27e   : > { %v5541_v37 = vpop.eup %5540  ;;  %5560 = vrcp.f32 %v2499_v29  ;;  %v2501_v38 = vadd.f32 1.0, %v5539_v32 }
 0x27f   : > { %v5543_v42 = vpop.eup %5542  ;;  %v3513_v43 = vmul.f32 %v5541_v37, %v6708_v1  ;;  %5562 = vrcp.f32 %v2500_v33  ;;  %v466_v37 = vld [vmem:[%s6701_s6 + $0x958] sm:$0xff] }
 0x280   : > { %v5545_v47 = vpop.eup %5544  ;;  %v3514_v48 = vmul.f32 %v5543_v42, %v6708_v1  ;;  %5564 = vrcp.f32 %v2501_v38  ;;  %v979_v46 = vmul.f32 %v6708_v1, %v466_v37 }
 0x281   : > { %v5547_v52 = vpop.eup %5546  ;;  %4025 = vst [vmem:[%s6758_s21 + $0x888] sm:$0xff] %v3513_v43  ;;  %v3515_v53 = vmul.f32 %v5545_v47, %v6708_v1  ;;  %5566 = vpow2.f32 %v1764_v34  ;;  %v468_v43 = vld [vmem:[%s6701_s6 + $0x968] sm:$0xff]  ;;  %v469_v47 = vld [vmem:[%s6701_s6 + $0x970] sm:$0xff] }
 0x282   : > { %v5549_v57 = vpop.eup %5548  ;;  %4026 = vst [vmem:[%s6758_s21 + $0x890] sm:$0xff] %v3514_v48  ;;  %v3516_v58 = vmul.f32 %v5547_v52, %v6708_v1  ;;  %5568 = vpow2.f32 %v1766_v39 }
 0x283   : > { %v5551_v62 = vpop.eup %5550  ;;  %4027 = vst [vmem:[%s6758_s21 + $0x898] sm:$0xff] %v3515_v53  ;;  %v3517_v63 = vmul.f32 %v5549_v57, %v6708_v1  ;;  %5570 = vpow2.f32 %v1768_v44 }
 0x284   : > { %v5553_v3 = vpop.eup %5552  ;;  %4028 = vst [vmem:[%s6758_s21 + $0x8a0] sm:$0xff] %v3516_v58  ;;  %v3518_v4 = vmul.f32 %v5551_v62, %v6708_v1  ;;  %5572 = vpow2.f32 %v1770_v49  ;;  %v982_v58 = vmul.f32 %v6708_v1, %v469_v47  ;;  %v1790_v62 = vmul.f32 1.442695, %v979_v46 }
 0x285   : > { %v5555_v7 = vpop.eup %5554  ;;  %4029 = vst [vmem:[%s6758_s21 + $0x8a8] sm:$0xff] %v3517_v63  ;;  %v3519_v8 = vmul.f32 %v5553_v3, %v6708_v1  ;;  %5574 = vpow2.f32 %v1772_v54  ;;  %v981_v54 = vmul.f32 %v6708_v1, %v468_v43  ;;  %v983_v63 = vmul.f32 %v6708_v1, %v470_v51 }
 0x286   : > { %v5557_v11 = vpop.eup %5556  ;;  %4030 = vst [vmem:[%s6758_s21 + $0x8b0] sm:$0xff] %v3518_v4  ;;  %v3520_v12 = vmul.f32 %v5555_v7, %v6708_v1  ;;  %5576 = vpow2.f32 %v1774_v59  ;;  %v472_v59 = vld [vmem:[%s6701_s6 + $0x988] sm:$0xff]  ;;  %v1792_v4 = vmul.f32 1.442695, %v980_v50 }
 0x287   : > { %v5559_v14 = vpop.eup %5558  ;;  %4031 = vst [vmem:[%s6758_s21 + $0x8b8] sm:$0xff] %v3519_v8  ;;  %v3521_v15 = vmul.f32 %v5557_v11, %v6708_v1  ;;  %5578 = vpow2.f32 %v1776_v0  ;;  %v473_v0 = vld [vmem:[%s6701_s6 + $0x990] sm:$0xff]  ;;  %v985_v10 = vmul.f32 %v6708_v1, %v472_v59  ;;  %v475_v11 = vld [vmem:[%s6701_s6 + $0x9a0] sm:$0xff] }
 0x288   : > { %v5561_v17 = vpop.eup %5560  ;;  %4032 = vst [vmem:[%s6758_s21 + $0x8c0] sm:$0xff] %v3520_v12  ;;  %v3522_v18 = vmul.f32 %v5559_v14, %v6708_v1  ;;  %5580 = vpow2.f32 %v1778_v5  ;;  %v984_v5 = vmul.f32 %v6708_v1, %v471_v55  ;;  %v1796_v14 = vmul.f32 1.442695, %v982_v58 }
 0x289   : > { %v5563_v20 = vpop.eup %5562  ;;  %4033 = vst [vmem:[%s6758_s21 + $0x8c8] sm:$0xff] %v3521_v15  ;;  %v3523_v21 = vmul.f32 %v5561_v17, %v6708_v1  ;;  %5582 = vpow2.f32 %v1780_v9  ;;  %v1794_v9 = vmul.f32 1.442695, %v981_v54  ;;  %v986_v15 = vmul.f32 %v6708_v1, %v473_v0 }
 0x28a   : > { %v5565_v23 = vpop.eup %5564  ;;  %4034 = vst [vmem:[%s6758_s21 + $0x8d0] sm:$0xff] %v3522_v18  ;;  %v3524_v24 = vmul.f32 %v5563_v20, %v6708_v1  ;;  %5584 = vpow2.f32 %v1782_v13  ;;  %v987_v20 = vmul.f32 %v6708_v1, %v474_v6 }
 0x28b   : > { %v5567_v25 = vpop.eup %5566  ;;  %4035 = vst [vmem:[%s6758_s21 + $0x8d8] sm:$0xff] %v3523_v21  ;;  %v3525_v26 = vmul.f32 %v5565_v23, %v6708_v1  ;;  %5586 = vpow2.f32 %v1784_v16  ;;  %v476_v16 = vld [vmem:[%s6701_s6 + $0x9a8] sm:$0xff]  ;;  %v477_v21 = vld [vmem:[%s6701_s6 + $0x9b0] sm:$0xff] }
 0x28c   : > { %v5569_v27 = vpop.eup %5568  ;;  %4036 = vst [vmem:[%s6758_s21 + $0x8e0] sm:$0xff] %v3524_v24  ;;  %v2502_v28 = vadd.f32 1.0, %v5567_v25  ;;  %5588 = vpow2.f32 %v1786_v19  ;;  %v1798_v19 = vmul.f32 1.442695, %v983_v63  ;;  %v1800_v24 = vmul.f32 1.442695, %v984_v5 }
 0x28d   : > { %v5571_v29 = vpop.eup %5570  ;;  %4037 = vst [vmem:[%s6758_s21 + $0x8e8] sm:$0xff] %v3525_v26  ;;  %v2503_v30 = vadd.f32 1.0, %v5569_v27  ;;  %5590 = vpow2.f32 %v1788_v22  ;;  %v988_v25 = vmul.f32 %v6708_v1, %v475_v11  ;;  %v478_v26 = vld [vmem:[%s6701_s6 + $0x9b8] sm:$0xff]  ;;  %v1806_v37 = vmul.f32 1.442695, %v987_v20  ;;  %v480_v5 = vld [vmem:[%s6701_s6 + $0x9c8] sm:$0xff] }
 0x28e   : > { %v5573_v31 = vpop.eup %5572  ;;  %5592 = vrcp.f32 %v2502_v28  ;;  %v2504_v32 = vadd.f32 1.0, %v5571_v29  ;;  %v1802_v29 = vmul.f32 1.442695, %v985_v10  ;;  %v484_v20 = vld [vmem:[%s6701_s6 + $0x9e8] sm:$0xff] }
 0x28f   : > { %v5575_v33 = vpop.eup %5574  ;;  %5594 = vrcp.f32 %v2503_v30  ;;  %v2505_v34 = vadd.f32 1.0, %v5573_v31  ;;  %v989_v30 = vmul.f32 %v6708_v1, %v476_v16  ;;  %v483_v16 = vld [vmem:[%s6701_s6 + $0x9e0] sm:$0xff] }
 0x290   : > { %v5577_v35 = vpop.eup %5576  ;;  %5596 = vrcp.f32 %v2504_v32  ;;  %v2506_v36 = vadd.f32 1.0, %v5575_v33  ;;  %v1804_v33 = vmul.f32 1.442695, %v986_v15  ;;  %v993_v15 = vmul.f32 %v6708_v1, %v480_v5 }
 0x291   : > { %v5579_v38 = vpop.eup %5578  ;;  %5598 = vrcp.f32 %v2505_v34  ;;  %v2507_v39 = vadd.f32 1.0, %v5577_v35  ;;  %v990_v34 = vmul.f32 %v6708_v1, %v477_v21 }
 0x292   : > { %v5581_v41 = vpop.eup %5580  ;;  %5600 = vrcp.f32 %v2506_v36  ;;  %v2508_v42 = vadd.f32 1.0, %v5579_v38  ;;  %v991_v38 = vmul.f32 %v6708_v1, %v478_v26 }
 0x293   : > { %v5583_v44 = vpop.eup %5582  ;;  %5602 = vrcp.f32 %v2507_v39  ;;  %v2509_v45 = vadd.f32 1.0, %v5581_v41  ;;  %v1808_v41 = vmul.f32 1.442695, %v988_v25  ;;  %v1812_v47 = vmul.f32 1.442695, %v990_v34  ;;  %v487_v34 = vld [vmem:[%s6701_s6 + $0xa00] sm:$0xff] }
 0x294   : > { %v5585_v48 = vpop.eup %5584  ;;  %5604 = vrcp.f32 %v2508_v42  ;;  %v2510_v49 = vadd.f32 1.0, %v5583_v44  ;;  %v1810_v44 = vmul.f32 1.442695, %v989_v30  ;;  %v1814_v50 = vmul.f32 1.442695, %v991_v38 }
 0x295   : > { %v5587_v52 = vpop.eup %5586  ;;  %5606 = vrcp.f32 %v2509_v45  ;;  %v2511_v53 = vadd.f32 1.0, %v5585_v48 }
 0x296   : > { %v5589_v56 = vpop.eup %5588  ;;  %5608 = vrcp.f32 %v2510_v49  ;;  %v2512_v57 = vadd.f32 1.0, %v5587_v52 }
 0x297   : > { %v5591_v60 = vpop.eup %5590  ;;  %5610 = vrcp.f32 %v2511_v53  ;;  %v2513_v61 = vadd.f32 1.0, %v5589_v56 }
 0x298   : > { %v5593_v2 = vpop.eup %5592  ;;  %5612 = vrcp.f32 %v2512_v57  ;;  %v2514_v3 = vadd.f32 1.0, %v5591_v60 }
 0x299   : > { %v5595_v7 = vpop.eup %5594  ;;  %v3526_v8 = vmul.f32 %v5593_v2, %v6708_v1  ;;  %5614 = vrcp.f32 %v2513_v61  ;;  %v479_v2 = vld [vmem:[%s6701_s6 + $0x9c0] sm:$0xff] }
 0x29a   : > { %v5597_v12 = vpop.eup %5596  ;;  %v3527_v13 = vmul.f32 %v5595_v7, %v6708_v1  ;;  %5616 = vrcp.f32 %v2514_v3  ;;  %v992_v11 = vmul.f32 %v6708_v1, %v479_v2 }
 0x29b   : > { %v5599_v17 = vpop.eup %5598  ;;  %4038 = vst [vmem:[%s6758_s21 + $0x8f0] sm:$0xff] %v3526_v8  ;;  %v3528_v18 = vmul.f32 %v5597_v12, %v6708_v1  ;;  %5618 = vpow2.f32 %v1790_v62  ;;  %v481_v8 = vld [vmem:[%s6701_s6 + $0x9d0] sm:$0xff]  ;;  %v482_v12 = vld [vmem:[%s6701_s6 + $0x9d8] sm:$0xff] }
 0x29c   : > { %v5601_v22 = vpop.eup %5600  ;;  %4039 = vst [vmem:[%s6758_s21 + $0x8f8] sm:$0xff] %v3527_v13  ;;  %v3529_v23 = vmul.f32 %v5599_v17, %v6708_v1  ;;  %5620 = vpow2.f32 %v1792_v4 }
 0x29d   : > { %v5603_v27 = vpop.eup %5602  ;;  %4040 = vst [vmem:[%s6758_s21 + $0x900] sm:$0xff] %v3528_v18  ;;  %v3530_v28 = vmul.f32 %v5601_v22, %v6708_v1  ;;  %5622 = vpow2.f32 %v1794_v9 }
 0x29e   : > { %v5605_v31 = vpop.eup %5604  ;;  %4041 = vst [vmem:[%s6758_s21 + $0x908] sm:$0xff] %v3529_v23  ;;  %v3531_v32 = vmul.f32 %v5603_v27, %v6708_v1  ;;  %5624 = vpow2.f32 %v1796_v14  ;;  %v995_v23 = vmul.f32 %v6708_v1, %v482_v12  ;;  %v1816_v27 = vmul.f32 1.442695, %v992_v11 }
 0x29f   : > { %v5607_v35 = vpop.eup %5606  ;;  %4042 = vst [vmem:[%s6758_s21 + $0x910] sm:$0xff] %v3530_v28  ;;  %v3532_v36 = vmul.f32 %v5605_v31, %v6708_v1  ;;  %5626 = vpow2.f32 %v1798_v19  ;;  %v994_v19 = vmul.f32 %v6708_v1, %v481_v8  ;;  %v996_v28 = vmul.f32 %v6708_v1, %v483_v16 }
 0x2a0   : > { %v5609_v39 = vpop.eup %5608  ;;  %4043 = vst [vmem:[%s6758_s21 + $0x918] sm:$0xff] %v3531_v32  ;;  %v3533_v40 = vmul.f32 %v5607_v35, %v6708_v1  ;;  %5628 = vpow2.f32 %v1800_v24  ;;  %v485_v24 = vld [vmem:[%s6701_s6 + $0x9f0] sm:$0xff]  ;;  %v1818_v32 = vmul.f32 1.442695, %v993_v15 }
 0x2a1   : > { %v5611_v42 = vpop.eup %5610  ;;  %4044 = vst [vmem:[%s6758_s21 + $0x920] sm:$0xff] %v3532_v36  ;;  %v3534_v43 = vmul.f32 %v5609_v39, %v6708_v1  ;;  %5630 = vpow2.f32 %v1802_v29  ;;  %v486_v29 = vld [vmem:[%s6701_s6 + $0x9f8] sm:$0xff]  ;;  %v998_v38 = vmul.f32 %v6708_v1, %v485_v24  ;;  %v488_v39 = vld [vmem:[%s6701_s6 + $0xa08] sm:$0xff] }
 0x2a2   : > { %v5613_v45 = vpop.eup %5612  ;;  %4045 = vst [vmem:[%s6758_s21 + $0x928] sm:$0xff] %v3533_v40  ;;  %v3535_v46 = vmul.f32 %v5611_v42, %v6708_v1  ;;  %5632 = vpow2.f32 %v1804_v33  ;;  %v997_v33 = vmul.f32 %v6708_v1, %v484_v20  ;;  %v1822_v42 = vmul.f32 1.442695, %v995_v23 }
 0x2a3   : > { %v5615_v48 = vpop.eup %5614  ;;  %4046 = vst [vmem:[%s6758_s21 + $0x930] sm:$0xff] %v3534_v43  ;;  %v3536_v49 = vmul.f32 %v5613_v45, %v6708_v1  ;;  %5634 = vpow2.f32 %v1806_v37  ;;  %v1820_v37 = vmul.f32 1.442695, %v994_v19  ;;  %v999_v43 = vmul.f32 %v6708_v1, %v486_v29 }
 0x2a4   : > { %v5617_v51 = vpop.eup %5616  ;;  %4047 = vst [vmem:[%s6758_s21 + $0x938] sm:$0xff] %v3535_v46  ;;  %v3537_v52 = vmul.f32 %v5615_v48, %v6708_v1  ;;  %5636 = vpow2.f32 %v1808_v41  ;;  %v1000_v48 = vmul.f32 %v6708_v1, %v487_v34 }
 0x2a5   : > { %v5619_v53 = vpop.eup %5618  ;;  %4048 = vst [vmem:[%s6758_s21 + $0x940] sm:$0xff] %v3536_v49  ;;  %v3538_v54 = vmul.f32 %v5617_v51, %v6708_v1  ;;  %5638 = vpow2.f32 %v1810_v44  ;;  %v489_v44 = vld [vmem:[%s6701_s6 + $0xa10] sm:$0xff]  ;;  %v490_v49 = vld [vmem:[%s6701_s6 + $0xa18] sm:$0xff] }
 0x2a6   : > { %v5621_v55 = vpop.eup %5620  ;;  %4049 = vst [vmem:[%s6758_s21 + $0x948] sm:$0xff] %v3537_v52  ;;  %v2515_v56 = vadd.f32 1.0, %v5619_v53  ;;  %5640 = vpow2.f32 %v1812_v47  ;;  %v1824_v47 = vmul.f32 1.442695, %v996_v28  ;;  %v1826_v52 = vmul.f32 1.442695, %v997_v33 }
 0x2a7   : > { %v5623_v57 = vpop.eup %5622  ;;  %4050 = vst [vmem:[%s6758_s21 + $0x950] sm:$0xff] %v3538_v54  ;;  %v2516_v58 = vadd.f32 1.0, %v5621_v55  ;;  %5642 = vpow2.f32 %v1814_v50  ;;  %v1001_v53 = vmul.f32 %v6708_v1, %v488_v39  ;;  %v491_v54 = vld [vmem:[%s6701_s6 + $0xa20] sm:$0xff]  ;;  %v1832_v2 = vmul.f32 1.442695, %v1000_v48  ;;  %v493_v33 = vld [vmem:[%s6701_s6 + $0xa30] sm:$0xff] }
 0x2a8   : > { %v5625_v59 = vpop.eup %5624  ;;  %5644 = vrcp.f32 %v2515_v56  ;;  %v2517_v60 = vadd.f32 1.0, %v5623_v57  ;;  %v1828_v57 = vmul.f32 1.442695, %v998_v38  ;;  %v497_v48 = vld [vmem:[%s6701_s6 + $0xa50] sm:$0xff] }
 0x2a9   : > { %v5627_v61 = vpop.eup %5626  ;;  %5646 = vrcp.f32 %v2516_v58  ;;  %v2518_v62 = vadd.f32 1.0, %v5625_v59  ;;  %v1002_v58 = vmul.f32 %v6708_v1, %v489_v44  ;;  %v496_v44 = vld [vmem:[%s6701_s6 + $0xa48] sm:$0xff] }
 0x2aa   : > { %v5629_v63 = vpop.eup %5628  ;;  %5648 = vrcp.f32 %v2517_v60  ;;  %v2519_v0 = vadd.f32 1.0, %v5627_v61  ;;  %v1830_v61 = vmul.f32 1.442695, %v999_v43  ;;  %v1006_v43 = vmul.f32 %v6708_v1, %v493_v33 }
 0x2ab   : > { %v5631_v3 = vpop.eup %5630  ;;  %5650 = vrcp.f32 %v2518_v62  ;;  %v2520_v4 = vadd.f32 1.0, %v5629_v63  ;;  %v1003_v62 = vmul.f32 %v6708_v1, %v490_v49 }
 0x2ac   : > { %v5633_v6 = vpop.eup %5632  ;;  %5652 = vrcp.f32 %v2519_v0  ;;  %v2521_v7 = vadd.f32 1.0, %v5631_v3  ;;  %v1004_v3 = vmul.f32 %v6708_v1, %v491_v54 }
 0x2ad   : > { %v5635_v9 = vpop.eup %5634  ;;  %5654 = vrcp.f32 %v2520_v4  ;;  %v2522_v10 = vadd.f32 1.0, %v5633_v6  ;;  %v1834_v6 = vmul.f32 1.442695, %v1001_v53  ;;  %v1838_v12 = vmul.f32 1.442695, %v1003_v62  ;;  %v500_v62 = vld [vmem:[%s6701_s6 + $0xa68] sm:$0xff] }
 0x2ae   : > { %v5637_v13 = vpop.eup %5636  ;;  %5656 = vrcp.f32 %v2521_v7  ;;  %v2523_v14 = vadd.f32 1.0, %v5635_v9  ;;  %v1836_v9 = vmul.f32 1.442695, %v1002_v58  ;;  %v1840_v15 = vmul.f32 1.442695, %v1004_v3 }
 0x2af   : > { %v5639_v17 = vpop.eup %5638  ;;  %5658 = vrcp.f32 %v2522_v10  ;;  %v2524_v18 = vadd.f32 1.0, %v5637_v13 }
 0x2b0   : > { %v5641_v21 = vpop.eup %5640  ;;  %5660 = vrcp.f32 %v2523_v14  ;;  %v2525_v22 = vadd.f32 1.0, %v5639_v17 }
 0x2b1   : > { %v5643_v25 = vpop.eup %5642  ;;  %5662 = vrcp.f32 %v2524_v18  ;;  %v2526_v26 = vadd.f32 1.0, %v5641_v21 }
 0x2b2   : > { %v5645_v30 = vpop.eup %5644  ;;  %5664 = vrcp.f32 %v2525_v22  ;;  %v2527_v31 = vadd.f32 1.0, %v5643_v25 }
 0x2b3   : > { %v5647_v35 = vpop.eup %5646  ;;  %v3539_v36 = vmul.f32 %v5645_v30, %v6708_v1  ;;  %5666 = vrcp.f32 %v2526_v26  ;;  %v492_v30 = vld [vmem:[%s6701_s6 + $0xa28] sm:$0xff] }
 0x2b4   : > { %v5649_v40 = vpop.eup %5648  ;;  %v3540_v41 = vmul.f32 %v5647_v35, %v6708_v1  ;;  %5668 = vrcp.f32 %v2527_v31  ;;  %v1005_v39 = vmul.f32 %v6708_v1, %v492_v30 }
 0x2b5   : > { %v5651_v45 = vpop.eup %5650  ;;  %4051 = vst [vmem:[%s6758_s21 + $0x958] sm:$0xff] %v3539_v36  ;;  %v3541_v46 = vmul.f32 %v5649_v40, %v6708_v1  ;;  %5670 = vpow2.f32 %v1816_v27  ;;  %v494_v36 = vld [vmem:[%s6701_s6 + $0xa38] sm:$0xff]  ;;  %v495_v40 = vld [vmem:[%s6701_s6 + $0xa40] sm:$0xff] }
 0x2b6   : > { %v5653_v50 = vpop.eup %5652  ;;  %4052 = vst [vmem:[%s6758_s21 + $0x960] sm:$0xff] %v3540_v41  ;;  %v3542_v51 = vmul.f32 %v5651_v45, %v6708_v1  ;;  %5672 = vpow2.f32 %v1818_v32 }
 0x2b7   : > { %v5655_v55 = vpop.eup %5654  ;;  %4053 = vst [vmem:[%s6758_s21 + $0x968] sm:$0xff] %v3541_v46  ;;  %v3543_v56 = vmul.f32 %v5653_v50, %v6708_v1  ;;  %5674 = vpow2.f32 %v1820_v37 }
 0x2b8   : > { %v5657_v59 = vpop.eup %5656  ;;  %4054 = vst [vmem:[%s6758_s21 + $0x970] sm:$0xff] %v3542_v51  ;;  %v3544_v60 = vmul.f32 %v5655_v55, %v6708_v1  ;;  %5676 = vpow2.f32 %v1822_v42  ;;  %v1008_v51 = vmul.f32 %v6708_v1, %v495_v40  ;;  %v1842_v55 = vmul.f32 1.442695, %v1005_v39 }
 0x2b9   : > { %v5659_v63 = vpop.eup %5658  ;;  %4055 = vst [vmem:[%s6758_s21 + $0x978] sm:$0xff] %v3543_v56  ;;  %v3545_v0 = vmul.f32 %v5657_v59, %v6708_v1  ;;  %5678 = vpow2.f32 %v1824_v47  ;;  %v1007_v47 = vmul.f32 %v6708_v1, %v494_v36  ;;  %v1009_v56 = vmul.f32 %v6708_v1, %v496_v44 }
 0x2ba   : > { %v5661_v4 = vpop.eup %5660  ;;  %4056 = vst [vmem:[%s6758_s21 + $0x980] sm:$0xff] %v3544_v60  ;;  %v3546_v5 = vmul.f32 %v5659_v63, %v6708_v1  ;;  %5680 = vpow2.f32 %v1826_v52  ;;  %v498_v52 = vld [vmem:[%s6701_s6 + $0xa58] sm:$0xff]  ;;  %v1844_v60 = vmul.f32 1.442695, %v1006_v43 }
 0x2bb   : > { %v5663_v7 = vpop.eup %5662  ;;  %4057 = vst [vmem:[%s6758_s21 + $0x988] sm:$0xff] %v3545_v0  ;;  %v3547_v8 = vmul.f32 %v5661_v4, %v6708_v1  ;;  %5682 = vpow2.f32 %v1828_v57  ;;  %v499_v57 = vld [vmem:[%s6701_s6 + $0xa60] sm:$0xff]  ;;  %v1011_v3 = vmul.f32 %v6708_v1, %v498_v52  ;;  %v501_v4 = vld [vmem:[%s6701_s6 + $0xa70] sm:$0xff] }
 0x2bc   : > { %v5665_v10 = vpop.eup %5664  ;;  %4058 = vst [vmem:[%s6758_s21 + $0x990] sm:$0xff] %v3546_v5  ;;  %v3548_v11 = vmul.f32 %v5663_v7, %v6708_v1  ;;  %5684 = vpow2.f32 %v1830_v61  ;;  %v1010_v61 = vmul.f32 %v6708_v1, %v497_v48  ;;  %v1848_v7 = vmul.f32 1.442695, %v1008_v51 }
 0x2bd   : > { %v5667_v13 = vpop.eup %5666  ;;  %4059 = vst [vmem:[%s6758_s21 + $0x998] sm:$0xff] %v3547_v8  ;;  %v3549_v14 = vmul.f32 %v5665_v10, %v6708_v1  ;;  %5686 = vpow2.f32 %v1832_v2  ;;  %v1846_v2 = vmul.f32 1.442695, %v1007_v47  ;;  %v1012_v8 = vmul.f32 %v6708_v1, %v499_v57 }
 0x2be   : > { %v5669_v16 = vpop.eup %5668  ;;  %4060 = vst [vmem:[%s6758_s21 + $0x9a0] sm:$0xff] %v3548_v11  ;;  %v3550_v17 = vmul.f32 %v5667_v13, %v6708_v1  ;;  %5688 = vpow2.f32 %v1834_v6  ;;  %v1013_v13 = vmul.f32 %v6708_v1, %v500_v62 }
 0x2bf   : > { %v5671_v18 = vpop.eup %5670  ;;  %4061 = vst [vmem:[%s6758_s21 + $0x9a8] sm:$0xff] %v3549_v14  ;;  %v3551_v19 = vmul.f32 %v5669_v16, %v6708_v1  ;;  %5690 = vpow2.f32 %v1836_v9  ;;  %v502_v9 = vld [vmem:[%s6701_s6 + $0xa78] sm:$0xff]  ;;  %v503_v14 = vld [vmem:[%s6701_s6 + $0xa80] sm:$0xff] }
 0x2c0   : > { %v5673_v20 = vpop.eup %5672  ;;  %4062 = vst [vmem:[%s6758_s21 + $0x9b0] sm:$0xff] %v3550_v17  ;;  %v2528_v21 = vadd.f32 1.0, %v5671_v18  ;;  %5692 = vpow2.f32 %v1838_v12  ;;  %v1850_v12 = vmul.f32 1.442695, %v1009_v56  ;;  %v1852_v17 = vmul.f32 1.442695, %v1010_v61 }
 0x2c1   : > { %v5675_v22 = vpop.eup %5674  ;;  %4063 = vst [vmem:[%s6758_s21 + $0x9b8] sm:$0xff] %v3551_v19  ;;  %v2529_v23 = vadd.f32 1.0, %v5673_v20  ;;  %5694 = vpow2.f32 %v1840_v15  ;;  %v1014_v18 = vmul.f32 %v6708_v1, %v501_v4  ;;  %v504_v19 = vld [vmem:[%s6701_s6 + $0xa88] sm:$0xff]  ;;  %v1858_v30 = vmul.f32 1.442695, %v1013_v13  ;;  %v506_v61 = vld [vmem:[%s6701_s6 + $0xa98] sm:$0xff] }
 0x2c2   : > { %v5677_v24 = vpop.eup %5676  ;;  %5696 = vrcp.f32 %v2528_v21  ;;  %v2530_v25 = vadd.f32 1.0, %v5675_v22  ;;  %v1854_v22 = vmul.f32 1.442695, %v1011_v3  ;;  %v510_v13 = vld [vmem:[%s6701_s6 + $0xab8] sm:$0xff] }
 0x2c3   : > { %v5679_v26 = vpop.eup %5678  ;;  %5698 = vrcp.f32 %v2529_v23  ;;  %v2531_v27 = vadd.f32 1.0, %v5677_v24  ;;  %v1015_v23 = vmul.f32 %v6708_v1, %v502_v9  ;;  %v509_v9 = vld [vmem:[%s6701_s6 + $0xab0] sm:$0xff] }
 0x2c4   : > { %v5681_v28 = vpop.eup %5680  ;;  %5700 = vrcp.f32 %v2530_v25  ;;  %v2532_v29 = vadd.f32 1.0, %v5679_v26  ;;  %v1856_v26 = vmul.f32 1.442695, %v1012_v8  ;;  %v1019_v8 = vmul.f32 %v6708_v1, %v506_v61 }
 0x2c5   : > { %v5683_v31 = vpop.eup %5682  ;;  %5702 = vrcp.f32 %v2531_v27  ;;  %v2533_v32 = vadd.f32 1.0, %v5681_v28  ;;  %v1016_v27 = vmul.f32 %v6708_v1, %v503_v14 }
 0x2c6   : > { %v5685_v34 = vpop.eup %5684  ;;  %5704 = vrcp.f32 %v2532_v29  ;;  %v2534_v35 = vadd.f32 1.0, %v5683_v31  ;;  %v1017_v31 = vmul.f32 %v6708_v1, %v504_v19 }
 0x2c7   : > { %v5687_v37 = vpop.eup %5686  ;;  %5706 = vrcp.f32 %v2533_v32  ;;  %v2535_v38 = vadd.f32 1.0, %v5685_v34  ;;  %v1860_v34 = vmul.f32 1.442695, %v1014_v18  ;;  %v1864_v40 = vmul.f32 1.442695, %v1016_v27  ;;  %v513_v27 = vld [vmem:[%s6701_s6 + $0xad0] sm:$0xff] }
 0x2c8   : > { %v5689_v41 = vpop.eup %5688  ;;  %5708 = vrcp.f32 %v2534_v35  ;;  %v2536_v42 = vadd.f32 1.0, %v5687_v37  ;;  %v1862_v37 = vmul.f32 1.442695, %v1015_v23  ;;  %v1866_v43 = vmul.f32 1.442695, %v1017_v31 }
 0x2c9   : > { %v5691_v45 = vpop.eup %5690  ;;  %5710 = vrcp.f32 %v2535_v38  ;;  %v2537_v46 = vadd.f32 1.0, %v5689_v41 }
 0x2ca   : > { %v5693_v49 = vpop.eup %5692  ;;  %5712 = vrcp.f32 %v2536_v42  ;;  %v2538_v50 = vadd.f32 1.0, %v5691_v45 }
 0x2cb   : > { %v5695_v53 = vpop.eup %5694  ;;  %5714 = vrcp.f32 %v2537_v46  ;;  %v2539_v54 = vadd.f32 1.0, %v5693_v49 }
 0x2cc   : > { %v5697_v58 = vpop.eup %5696  ;;  %5716 = vrcp.f32 %v2538_v50  ;;  %v2540_v59 = vadd.f32 1.0, %v5695_v53 }
 0x2cd   : > { %v5699_v63 = vpop.eup %5698  ;;  %v3552_v0 = vmul.f32 %v5697_v58, %v6708_v1  ;;  %5718 = vrcp.f32 %v2539_v54  ;;  %v505_v58 = vld [vmem:[%s6701_s6 + $0xa90] sm:$0xff] }
 0x2ce   : > { %v5701_v5 = vpop.eup %5700  ;;  %v3553_v6 = vmul.f32 %v5699_v63, %v6708_v1  ;;  %5720 = vrcp.f32 %v2540_v59  ;;  %v1018_v4 = vmul.f32 %v6708_v1, %v505_v58 }
 0x2cf   : > { %v5703_v10 = vpop.eup %5702  ;;  %4064 = vst [vmem:[%s6758_s21 + $0x9c0] sm:$0xff] %v3552_v0  ;;  %v3554_v11 = vmul.f32 %v5701_v5, %v6708_v1  ;;  %5722 = vpow2.f32 %v1842_v55  ;;  %v507_v0 = vld [vmem:[%s6701_s6 + $0xaa0] sm:$0xff]  ;;  %v508_v5 = vld [vmem:[%s6701_s6 + $0xaa8] sm:$0xff] }
 0x2d0   : > { %v5705_v15 = vpop.eup %5704  ;;  %4065 = vst [vmem:[%s6758_s21 + $0x9c8] sm:$0xff] %v3553_v6  ;;  %v3555_v16 = vmul.f32 %v5703_v10, %v6708_v1  ;;  %5724 = vpow2.f32 %v1844_v60 }
 0x2d1   : > { %v5707_v20 = vpop.eup %5706  ;;  %4066 = vst [vmem:[%s6758_s21 + $0x9d0] sm:$0xff] %v3554_v11  ;;  %v3556_v21 = vmul.f32 %v5705_v15, %v6708_v1  ;;  %5726 = vpow2.f32 %v1846_v2 }
 0x2d2   : > { %v5709_v24 = vpop.eup %5708  ;;  %4067 = vst [vmem:[%s6758_s21 + $0x9d8] sm:$0xff] %v3555_v16  ;;  %v3557_v25 = vmul.f32 %v5707_v20, %v6708_v1  ;;  %5728 = vpow2.f32 %v1848_v7  ;;  %v1021_v16 = vmul.f32 %v6708_v1, %v508_v5  ;;  %v1868_v20 = vmul.f32 1.442695, %v1018_v4 }
 0x2d3   : > { %v5711_v28 = vpop.eup %5710  ;;  %4068 = vst [vmem:[%s6758_s21 + $0x9e0] sm:$0xff] %v3556_v21  ;;  %v3558_v29 = vmul.f32 %v5709_v24, %v6708_v1  ;;  %5730 = vpow2.f32 %v1850_v12  ;;  %v1020_v12 = vmul.f32 %v6708_v1, %v507_v0  ;;  %v1022_v21 = vmul.f32 %v6708_v1, %v509_v9 }
 0x2d4   : > { %v5713_v32 = vpop.eup %5712  ;;  %4069 = vst [vmem:[%s6758_s21 + $0x9e8] sm:$0xff] %v3557_v25  ;;  %v3559_v33 = vmul.f32 %v5711_v28, %v6708_v1  ;;  %5732 = vpow2.f32 %v1852_v17  ;;  %v511_v17 = vld [vmem:[%s6701_s6 + $0xac0] sm:$0xff]  ;;  %v1870_v25 = vmul.f32 1.442695, %v1019_v8 }
 0x2d5   : > { %v5715_v35 = vpop.eup %5714  ;;  %4070 = vst [vmem:[%s6758_s21 + $0x9f0] sm:$0xff] %v3558_v29  ;;  %v3560_v36 = vmul.f32 %v5713_v32, %v6708_v1  ;;  %5734 = vpow2.f32 %v1854_v22  ;;  %v512_v22 = vld [vmem:[%s6701_s6 + $0xac8] sm:$0xff]  ;;  %v1024_v31 = vmul.f32 %v6708_v1, %v511_v17  ;;  %v514_v32 = vld [vmem:[%s6701_s6 + $0xad8] sm:$0xff] }
 0x2d6   : > { %v5717_v38 = vpop.eup %5716  ;;  %4071 = vst [vmem:[%s6758_s21 + $0x9f8] sm:$0xff] %v3559_v33  ;;  %v3561_v39 = vmul.f32 %v5715_v35, %v6708_v1  ;;  %5736 = vpow2.f32 %v1856_v26  ;;  %v1023_v26 = vmul.f32 %v6708_v1, %v510_v13  ;;  %v1874_v35 = vmul.f32 1.442695, %v1021_v16 }
 0x2d7   : > { %v5719_v41 = vpop.eup %5718  ;;  %4072 = vst [vmem:[%s6758_s21 + $0xa00] sm:$0xff] %v3560_v36  ;;  %v3562_v42 = vmul.f32 %v5717_v38, %v6708_v1  ;;  %5738 = vpow2.f32 %v1858_v30  ;;  %v1872_v30 = vmul.f32 1.442695, %v1020_v12  ;;  %v1025_v36 = vmul.f32 %v6708_v1, %v512_v22 }
 0x2d8   : > { %v5721_v44 = vpop.eup %5720  ;;  %4073 = vst [vmem:[%s6758_s21 + $0xa08] sm:$0xff] %v3561_v39  ;;  %v3563_v45 = vmul.f32 %v5719_v41, %v6708_v1  ;;  %5740 = vpow2.f32 %v1860_v34  ;;  %v1026_v41 = vmul.f32 %v6708_v1, %v513_v27 }
 0x2d9   : > { %v5723_v46 = vpop.eup %5722  ;;  %4074 = vst [vmem:[%s6758_s21 + $0xa10] sm:$0xff] %v3562_v42  ;;  %v3564_v47 = vmul.f32 %v5721_v44, %v6708_v1  ;;  %5742 = vpow2.f32 %v1862_v37  ;;  %v515_v37 = vld [vmem:[%s6701_s6 + $0xae0] sm:$0xff]  ;;  %v516_v42 = vld [vmem:[%s6701_s6 + $0xae8] sm:$0xff] }
 0x2da   : > { %v5725_v48 = vpop.eup %5724  ;;  %4075 = vst [vmem:[%s6758_s21 + $0xa18] sm:$0xff] %v3563_v45  ;;  %v2541_v49 = vadd.f32 1.0, %v5723_v46  ;;  %5744 = vpow2.f32 %v1864_v40  ;;  %v1876_v40 = vmul.f32 1.442695, %v1022_v21  ;;  %v1878_v45 = vmul.f32 1.442695, %v1023_v26 }
 0x2db   : > { %v5727_v50 = vpop.eup %5726  ;;  %4076 = vst [vmem:[%s6758_s21 + $0xa20] sm:$0xff] %v3564_v47  ;;  %v2542_v51 = vadd.f32 1.0, %v5725_v48  ;;  %5746 = vpow2.f32 %v1866_v43  ;;  %v1027_v46 = vmul.f32 %v6708_v1, %v514_v32  ;;  %v517_v47 = vld [vmem:[%s6701_s6 + $0xaf0] sm:$0xff]  ;;  %v1884_v58 = vmul.f32 1.442695, %v1026_v41  ;;  %v519_v26 = vld [vmem:[%s6701_s6 + $0xb00] sm:$0xff] }
 0x2dc   : > { %v5729_v52 = vpop.eup %5728  ;;  %5748 = vrcp.f32 %v2541_v49  ;;  %v2543_v53 = vadd.f32 1.0, %v5727_v50  ;;  %v1880_v50 = vmul.f32 1.442695, %v1024_v31  ;;  %v523_v41 = vld [vmem:[%s6701_s6 + $0xb20] sm:$0xff] }
 0x2dd   : > { %v5731_v54 = vpop.eup %5730  ;;  %5750 = vrcp.f32 %v2542_v51  ;;  %v2544_v55 = vadd.f32 1.0, %v5729_v52  ;;  %v1028_v51 = vmul.f32 %v6708_v1, %v515_v37  ;;  %v522_v37 = vld [vmem:[%s6701_s6 + $0xb18] sm:$0xff] }
 0x2de   : > { %v5733_v56 = vpop.eup %5732  ;;  %5752 = vrcp.f32 %v2543_v53  ;;  %v2545_v57 = vadd.f32 1.0, %v5731_v54  ;;  %v1882_v54 = vmul.f32 1.442695, %v1025_v36  ;;  %v1032_v36 = vmul.f32 %v6708_v1, %v519_v26 }
 0x2df   : > { %v5735_v59 = vpop.eup %5734  ;;  %5754 = vrcp.f32 %v2544_v55  ;;  %v2546_v60 = vadd.f32 1.0, %v5733_v56  ;;  %v1029_v55 = vmul.f32 %v6708_v1, %v516_v42 }
 0x2e0   : > { %v5737_v62 = vpop.eup %5736  ;;  %5756 = vrcp.f32 %v2545_v57  ;;  %v2547_v63 = vadd.f32 1.0, %v5735_v59  ;;  %v1030_v59 = vmul.f32 %v6708_v1, %v517_v47 }
 0x2e1   : > { %v5739_v2 = vpop.eup %5738  ;;  %5758 = vrcp.f32 %v2546_v60  ;;  %v2548_v3 = vadd.f32 1.0, %v5737_v62  ;;  %v1886_v62 = vmul.f32 1.442695, %v1027_v46  ;;  %v1890_v5 = vmul.f32 1.442695, %v1029_v55  ;;  %v526_v55 = vld [vmem:[%s6701_s6 + $0xb38] sm:$0xff] }
 0x2e2   : > { %v5741_v6 = vpop.eup %5740  ;;  %5760 = vrcp.f32 %v2547_v63  ;;  %v2549_v7 = vadd.f32 1.0, %v5739_v2  ;;  %v1888_v2 = vmul.f32 1.442695, %v1028_v51  ;;  %v1892_v8 = vmul.f32 1.442695, %v1030_v59 }
 0x2e3   : > { %v5743_v10 = vpop.eup %5742  ;;  %5762 = vrcp.f32 %v2548_v3  ;;  %v2550_v11 = vadd.f32 1.0, %v5741_v6 }
 0x2e4   : > { %v5745_v14 = vpop.eup %5744  ;;  %5764 = vrcp.f32 %v2549_v7  ;;  %v2551_v15 = vadd.f32 1.0, %v5743_v10 }
 0x2e5   : > { %v5747_v18 = vpop.eup %5746  ;;  %5766 = vrcp.f32 %v2550_v11  ;;  %v2552_v19 = vadd.f32 1.0, %v5745_v14 }
 0x2e6   : > { %v5749_v23 = vpop.eup %5748  ;;  %5768 = vrcp.f32 %v2551_v15  ;;  %v2553_v24 = vadd.f32 1.0, %v5747_v18 }
 0x2e7   : > { %v5751_v28 = vpop.eup %5750  ;;  %v3565_v29 = vmul.f32 %v5749_v23, %v6708_v1  ;;  %5770 = vrcp.f32 %v2552_v19  ;;  %v518_v23 = vld [vmem:[%s6701_s6 + $0xaf8] sm:$0xff] }
 0x2e8   : > { %v5753_v33 = vpop.eup %5752  ;;  %v3566_v34 = vmul.f32 %v5751_v28, %v6708_v1  ;;  %5772 = vrcp.f32 %v2553_v24  ;;  %v1031_v32 = vmul.f32 %v6708_v1, %v518_v23 }
 0x2e9   : > { %v5755_v38 = vpop.eup %5754  ;;  %4077 = vst [vmem:[%s6758_s21 + $0xa28] sm:$0xff] %v3565_v29  ;;  %v3567_v39 = vmul.f32 %v5753_v33, %v6708_v1  ;;  %5774 = vpow2.f32 %v1868_v20  ;;  %v520_v29 = vld [vmem:[%s6701_s6 + $0xb08] sm:$0xff]  ;;  %v521_v33 = vld [vmem:[%s6701_s6 + $0xb10] sm:$0xff] }
 0x2ea   : > { %v5757_v43 = vpop.eup %5756  ;;  %4078 = vst [vmem:[%s6758_s21 + $0xa30] sm:$0xff] %v3566_v34  ;;  %v3568_v44 = vmul.f32 %v5755_v38, %v6708_v1  ;;  %5776 = vpow2.f32 %v1870_v25 }
 0x2eb   : > { %v5759_v48 = vpop.eup %5758  ;;  %4079 = vst [vmem:[%s6758_s21 + $0xa38] sm:$0xff] %v3567_v39  ;;  %v3569_v49 = vmul.f32 %v5757_v43, %v6708_v1  ;;  %5778 = vpow2.f32 %v1872_v30 }
 0x2ec   : > { %v5761_v52 = vpop.eup %5760  ;;  %4080 = vst [vmem:[%s6758_s21 + $0xa40] sm:$0xff] %v3568_v44  ;;  %v3570_v53 = vmul.f32 %v5759_v48, %v6708_v1  ;;  %5780 = vpow2.f32 %v1874_v35  ;;  %v1034_v44 = vmul.f32 %v6708_v1, %v521_v33  ;;  %v1894_v48 = vmul.f32 1.442695, %v1031_v32 }
 0x2ed   : > { %v5763_v56 = vpop.eup %5762  ;;  %4081 = vst [vmem:[%s6758_s21 + $0xa48] sm:$0xff] %v3569_v49  ;;  %v3571_v57 = vmul.f32 %v5761_v52, %v6708_v1  ;;  %5782 = vpow2.f32 %v1876_v40  ;;  %v1033_v40 = vmul.f32 %v6708_v1, %v520_v29  ;;  %v1035_v49 = vmul.f32 %v6708_v1, %v522_v37 }
 0x2ee   : > { %v5765_v60 = vpop.eup %5764  ;;  %4082 = vst [vmem:[%s6758_s21 + $0xa50] sm:$0xff] %v3570_v53  ;;  %v3572_v61 = vmul.f32 %v5763_v56, %v6708_v1  ;;  %5784 = vpow2.f32 %v1878_v45  ;;  %v524_v45 = vld [vmem:[%s6701_s6 + $0xb28] sm:$0xff]  ;;  %v1896_v53 = vmul.f32 1.442695, %v1032_v36 }
 0x2ef   : > { %v5767_v63 = vpop.eup %5766  ;;  %4083 = vst [vmem:[%s6758_s21 + $0xa58] sm:$0xff] %v3571_v57  ;;  %v3573_v0 = vmul.f32 %v5765_v60, %v6708_v1  ;;  %5786 = vpow2.f32 %v1880_v50  ;;  %v525_v50 = vld [vmem:[%s6701_s6 + $0xb30] sm:$0xff]  ;;  %v1037_v59 = vmul.f32 %v6708_v1, %v524_v45  ;;  %v527_v60 = vld [vmem:[%s6701_s6 + $0xb40] sm:$0xff] }
 0x2f0   : > { %v5769_v3 = vpop.eup %5768  ;;  %4084 = vst [vmem:[%s6758_s21 + $0xa60] sm:$0xff] %v3572_v61  ;;  %v3574_v4 = vmul.f32 %v5767_v63, %v6708_v1  ;;  %5788 = vpow2.f32 %v1882_v54  ;;  %v1036_v54 = vmul.f32 %v6708_v1, %v523_v41  ;;  %v1900_v63 = vmul.f32 1.442695, %v1034_v44 }
 0x2f1   : > { %v5771_v6 = vpop.eup %5770  ;;  %4085 = vst [vmem:[%s6758_s21 + $0xa68] sm:$0xff] %v3573_v0  ;;  %v3575_v7 = vmul.f32 %v5769_v3, %v6708_v1  ;;  %5790 = vpow2.f32 %v1884_v58  ;;  %v1898_v58 = vmul.f32 1.442695, %v1033_v40  ;;  %v1038_v0 = vmul.f32 %v6708_v1, %v525_v50 }
 0x2f2   : > { %v5773_v9 = vpop.eup %5772  ;;  %4086 = vst [vmem:[%s6758_s21 + $0xa70] sm:$0xff] %v3574_v4  ;;  %v3576_v10 = vmul.f32 %v5771_v6, %v6708_v1  ;;  %5792 = vpow2.f32 %v1886_v62  ;;  %v1039_v6 = vmul.f32 %v6708_v1, %v526_v55 }
 0x2f3   : > { %v5775_v11 = vpop.eup %5774  ;;  %4087 = vst [vmem:[%s6758_s21 + $0xa78] sm:$0xff] %v3575_v7  ;;  %v3577_v12 = vmul.f32 %v5773_v9, %v6708_v1  ;;  %5794 = vpow2.f32 %v1888_v2  ;;  %v528_v2 = vld [vmem:[%s6701_s6 + $0xb48] sm:$0xff]  ;;  %v529_v7 = vld [vmem:[%s6701_s6 + $0xb50] sm:$0xff] }
 0x2f4   : > { %v5777_v13 = vpop.eup %5776  ;;  %4088 = vst [vmem:[%s6758_s21 + $0xa80] sm:$0xff] %v3576_v10  ;;  %v2554_v14 = vadd.f32 1.0, %v5775_v11  ;;  %5796 = vpow2.f32 %v1890_v5  ;;  %v1902_v5 = vmul.f32 1.442695, %v1035_v49  ;;  %v1904_v10 = vmul.f32 1.442695, %v1036_v54 }
 0x2f5   : > { %v5779_v15 = vpop.eup %5778  ;;  %4089 = vst [vmem:[%s6758_s21 + $0xa88] sm:$0xff] %v3577_v12  ;;  %v2555_v16 = vadd.f32 1.0, %v5777_v13  ;;  %5798 = vpow2.f32 %v1892_v8  ;;  %v1040_v11 = vmul.f32 %v6708_v1, %v527_v60  ;;  %v530_v12 = vld [vmem:[%s6701_s6 + $0xb58] sm:$0xff]  ;;  %v1910_v23 = vmul.f32 1.442695, %v1039_v6  ;;  %v532_v54 = vld [vmem:[%s6701_s6 + $0xb68] sm:$0xff] }
 0x2f6   : > { %v5781_v17 = vpop.eup %5780  ;;  %5800 = vrcp.f32 %v2554_v14  ;;  %v2556_v18 = vadd.f32 1.0, %v5779_v15  ;;  %v1906_v15 = vmul.f32 1.442695, %v1037_v59  ;;  %v536_v6 = vld [vmem:[%s6701_s6 + $0xb88] sm:$0xff] }
 0x2f7   : > { %v5783_v19 = vpop.eup %5782  ;;  %5802 = vrcp.f32 %v2555_v16  ;;  %v2557_v20 = vadd.f32 1.0, %v5781_v17  ;;  %v1041_v16 = vmul.f32 %v6708_v1, %v528_v2  ;;  %v535_v2 = vld [vmem:[%s6701_s6 + $0xb80] sm:$0xff] }
 0x2f8   : > { %v5785_v21 = vpop.eup %5784  ;;  %5804 = vrcp.f32 %v2556_v18  ;;  %v2558_v22 = vadd.f32 1.0, %v5783_v19  ;;  %v1908_v19 = vmul.f32 1.442695, %v1038_v0  ;;  %v1045_v0 = vmul.f32 %v6708_v1, %v532_v54 }
 0x2f9   : > { %v5787_v24 = vpop.eup %5786  ;;  %5806 = vrcp.f32 %v2557_v20  ;;  %v2559_v25 = vadd.f32 1.0, %v5785_v21  ;;  %v1042_v20 = vmul.f32 %v6708_v1, %v529_v7 }
 0x2fa   : > { %v5789_v27 = vpop.eup %5788  ;;  %5808 = vrcp.f32 %v2558_v22  ;;  %v2560_v28 = vadd.f32 1.0, %v5787_v24  ;;  %v1043_v24 = vmul.f32 %v6708_v1, %v530_v12 }
 0x2fb   : > { %v5791_v30 = vpop.eup %5790  ;;  %5810 = vrcp.f32 %v2559_v25  ;;  %v2561_v31 = vadd.f32 1.0, %v5789_v27  ;;  %v1912_v27 = vmul.f32 1.442695, %v1040_v11  ;;  %v1916_v33 = vmul.f32 1.442695, %v1042_v20  ;;  %v539_v20 = vld [vmem:[%s6701_s6 + $0xba0] sm:$0xff] }
 0x2fc   : > { %v5793_v34 = vpop.eup %5792  ;;  %5812 = vrcp.f32 %v2560_v28  ;;  %v2562_v35 = vadd.f32 1.0, %v5791_v30  ;;  %v1914_v30 = vmul.f32 1.442695, %v1041_v16  ;;  %v1918_v36 = vmul.f32 1.442695, %v1043_v24 }
 0x2fd   : > { %v5795_v38 = vpop.eup %5794  ;;  %5814 = vrcp.f32 %v2561_v31  ;;  %v2563_v39 = vadd.f32 1.0, %v5793_v34 }
 0x2fe   : > { %v5797_v42 = vpop.eup %5796  ;;  %5816 = vrcp.f32 %v2562_v35  ;;  %v2564_v43 = vadd.f32 1.0, %v5795_v38 }
 0x2ff   : > { %v5799_v46 = vpop.eup %5798  ;;  %5818 = vrcp.f32 %v2563_v39  ;;  %v2565_v47 = vadd.f32 1.0, %v5797_v42 }
 0x300   : > { %v5801_v51 = vpop.eup %5800  ;;  %5820 = vrcp.f32 %v2564_v43  ;;  %v2566_v52 = vadd.f32 1.0, %v5799_v46 }
 0x301   : > { %v5803_v56 = vpop.eup %5802  ;;  %v3578_v57 = vmul.f32 %v5801_v51, %v6708_v1  ;;  %5822 = vrcp.f32 %v2565_v47  ;;  %v531_v51 = vld [vmem:[%s6701_s6 + $0xb60] sm:$0xff] }
 0x302   : > { %v5805_v61 = vpop.eup %5804  ;;  %v3579_v62 = vmul.f32 %v5803_v56, %v6708_v1  ;;  %5824 = vrcp.f32 %v2566_v52  ;;  %v1044_v60 = vmul.f32 %v6708_v1, %v531_v51 }
 0x303   : > { %v5807_v3 = vpop.eup %5806  ;;  %4090 = vst [vmem:[%s6758_s21 + $0xa90] sm:$0xff] %v3578_v57  ;;  %v3580_v4 = vmul.f32 %v5805_v61, %v6708_v1  ;;  %5826 = vpow2.f32 %v1894_v48  ;;  %v533_v57 = vld [vmem:[%s6701_s6 + $0xb70] sm:$0xff]  ;;  %v534_v61 = vld [vmem:[%s6701_s6 + $0xb78] sm:$0xff] }
 0x304   : > { %v5809_v8 = vpop.eup %5808  ;;  %4091 = vst [vmem:[%s6758_s21 + $0xa98] sm:$0xff] %v3579_v62  ;;  %v3581_v9 = vmul.f32 %v5807_v3, %v6708_v1  ;;  %5828 = vpow2.f32 %v1896_v53 }
 0x305   : > { %v5811_v13 = vpop.eup %5810  ;;  %4092 = vst [vmem:[%s6758_s21 + $0xaa0] sm:$0xff] %v3580_v4  ;;  %v3582_v14 = vmul.f32 %v5809_v8, %v6708_v1  ;;  %5830 = vpow2.f32 %v1898_v58 }
 0x306   : > { %v5813_v17 = vpop.eup %5812  ;;  %4093 = vst [vmem:[%s6758_s21 + $0xaa8] sm:$0xff] %v3581_v9  ;;  %v3583_v18 = vmul.f32 %v5811_v13, %v6708_v1  ;;  %5832 = vpow2.f32 %v1900_v63  ;;  %v1047_v9 = vmul.f32 %v6708_v1, %v534_v61  ;;  %v1920_v13 = vmul.f32 1.442695, %v1044_v60 }
 0x307   : > { %v5815_v21 = vpop.eup %5814  ;;  %4094 = vst [vmem:[%s6758_s21 + $0xab0] sm:$0xff] %v3582_v14  ;;  %v3584_v22 = vmul.f32 %v5813_v17, %v6708_v1  ;;  %5834 = vpow2.f32 %v1902_v5  ;;  %v1046_v5 = vmul.f32 %v6708_v1, %v533_v57  ;;  %v1048_v14 = vmul.f32 %v6708_v1, %v535_v2 }
 0x308   : > { %v5817_v25 = vpop.eup %5816  ;;  %4095 = vst [vmem:[%s6758_s21 + $0xab8] sm:$0xff] %v3583_v18  ;;  %v3585_v26 = vmul.f32 %v5815_v21, %v6708_v1  ;;  %5836 = vpow2.f32 %v1904_v10  ;;  %v537_v10 = vld [vmem:[%s6701_s6 + $0xb90] sm:$0xff]  ;;  %v1922_v18 = vmul.f32 1.442695, %v1045_v0 }
 0x309   : > { %v5819_v28 = vpop.eup %5818  ;;  %4096 = vst [vmem:[%s6758_s21 + $0xac0] sm:$0xff] %v3584_v22  ;;  %v3586_v29 = vmul.f32 %v5817_v25, %v6708_v1  ;;  %5838 = vpow2.f32 %v1906_v15  ;;  %v538_v15 = vld [vmem:[%s6701_s6 + $0xb98] sm:$0xff]  ;;  %v1050_v24 = vmul.f32 %v6708_v1, %v537_v10  ;;  %v540_v25 = vld [vmem:[%s6701_s6 + $0xba8] sm:$0xff] }
 0x30a   : > { %v5821_v31 = vpop.eup %5820  ;;  %4097 = vst [vmem:[%s6758_s21 + $0xac8] sm:$0xff] %v3585_v26  ;;  %v3587_v32 = vmul.f32 %v5819_v28, %v6708_v1  ;;  %5840 = vpow2.f32 %v1908_v19  ;;  %v1049_v19 = vmul.f32 %v6708_v1, %v536_v6  ;;  %v1926_v28 = vmul.f32 1.442695, %v1047_v9 }
 0x30b   : > { %v5823_v34 = vpop.eup %5822  ;;  %4098 = vst [vmem:[%s6758_s21 + $0xad0] sm:$0xff] %v3586_v29  ;;  %v3588_v35 = vmul.f32 %v5821_v31, %v6708_v1  ;;  %5842 = vpow2.f32 %v1910_v23  ;;  %v1924_v23 = vmul.f32 1.442695, %v1046_v5  ;;  %v1051_v29 = vmul.f32 %v6708_v1, %v538_v15 }
 0x30c   : > { %v5825_v37 = vpop.eup %5824  ;;  %4099 = vst [vmem:[%s6758_s21 + $0xad8] sm:$0xff] %v3587_v32  ;;  %v3589_v38 = vmul.f32 %v5823_v34, %v6708_v1  ;;  %5844 = vpow2.f32 %v1912_v27  ;;  %v1052_v34 = vmul.f32 %v6708_v1, %v539_v20 }
 0x30d   : > { %v5827_v39 = vpop.eup %5826  ;;  %4100 = vst [vmem:[%s6758_s21 + $0xae0] sm:$0xff] %v3588_v35  ;;  %v3590_v40 = vmul.f32 %v5825_v37, %v6708_v1  ;;  %5846 = vpow2.f32 %v1914_v30  ;;  %v541_v30 = vld [vmem:[%s6701_s6 + $0xbb0] sm:$0xff]  ;;  %v542_v35 = vld [vmem:[%s6701_s6 + $0xbb8] sm:$0xff] }
 0x30e   : > { %v5829_v41 = vpop.eup %5828  ;;  %4101 = vst [vmem:[%s6758_s21 + $0xae8] sm:$0xff] %v3589_v38  ;;  %v2567_v42 = vadd.f32 1.0, %v5827_v39  ;;  %5848 = vpow2.f32 %v1916_v33  ;;  %v1928_v33 = vmul.f32 1.442695, %v1048_v14  ;;  %v1930_v38 = vmul.f32 1.442695, %v1049_v19 }
 0x30f   : > { %v5831_v43 = vpop.eup %5830  ;;  %4102 = vst [vmem:[%s6758_s21 + $0xaf0] sm:$0xff] %v3590_v40  ;;  %v2568_v44 = vadd.f32 1.0, %v5829_v41  ;;  %5850 = vpow2.f32 %v1918_v36  ;;  %v1053_v39 = vmul.f32 %v6708_v1, %v540_v25  ;;  %v543_v40 = vld [vmem:[%s6701_s6 + $0xbc0] sm:$0xff]  ;;  %v1936_v51 = vmul.f32 1.442695, %v1052_v34  ;;  %v545_v19 = vld [vmem:[%s6701_s6 + $0xbd0] sm:$0xff] }
 0x310   : > { %v5833_v45 = vpop.eup %5832  ;;  %5852 = vrcp.f32 %v2567_v42  ;;  %v2569_v46 = vadd.f32 1.0, %v5831_v43  ;;  %v1932_v43 = vmul.f32 1.442695, %v1050_v24  ;;  %v549_v34 = vld [vmem:[%s6701_s6 + $0xbf0] sm:$0xff] }
 0x311   : > { %v5835_v47 = vpop.eup %5834  ;;  %5854 = vrcp.f32 %v2568_v44  ;;  %v2570_v48 = vadd.f32 1.0, %v5833_v45  ;;  %v1054_v44 = vmul.f32 %v6708_v1, %v541_v30  ;;  %v548_v30 = vld [vmem:[%s6701_s6 + $0xbe8] sm:$0xff] }
 0x312   : > { %v5837_v49 = vpop.eup %5836  ;;  %5856 = vrcp.f32 %v2569_v46  ;;  %v2571_v50 = vadd.f32 1.0, %v5835_v47  ;;  %v1934_v47 = vmul.f32 1.442695, %v1051_v29  ;;  %v1058_v29 = vmul.f32 %v6708_v1, %v545_v19 }
 0x313   : > { %v5839_v52 = vpop.eup %5838  ;;  %5858 = vrcp.f32 %v2570_v48  ;;  %v2572_v53 = vadd.f32 1.0, %v5837_v49  ;;  %v1055_v48 = vmul.f32 %v6708_v1, %v542_v35 }
 0x314   : > { %v5841_v55 = vpop.eup %5840  ;;  %5860 = vrcp.f32 %v2571_v50  ;;  %v2573_v56 = vadd.f32 1.0, %v5839_v52  ;;  %v1056_v52 = vmul.f32 %v6708_v1, %v543_v40 }
 0x315   : > { %v5843_v58 = vpop.eup %5842  ;;  %5862 = vrcp.f32 %v2572_v53  ;;  %v2574_v59 = vadd.f32 1.0, %v5841_v55  ;;  %v1938_v55 = vmul.f32 1.442695, %v1053_v39  ;;  %v1942_v61 = vmul.f32 1.442695, %v1055_v48  ;;  %v552_v48 = vld [vmem:[%s6701_s6 + $0xc08] sm:$0xff] }
 0x316   : > { %v5845_v62 = vpop.eup %5844  ;;  %5864 = vrcp.f32 %v2573_v56  ;;  %v2575_v63 = vadd.f32 1.0, %v5843_v58  ;;  %v1940_v58 = vmul.f32 1.442695, %v1054_v44  ;;  %v1944_v0 = vmul.f32 1.442695, %v1056_v52 }
 0x317   : > { %v5847_v3 = vpop.eup %5846  ;;  %5866 = vrcp.f32 %v2574_v59  ;;  %v2576_v4 = vadd.f32 1.0, %v5845_v62 }
 0x318   : > { %v5849_v7 = vpop.eup %5848  ;;  %5868 = vrcp.f32 %v2575_v63  ;;  %v2577_v8 = vadd.f32 1.0, %v5847_v3 }
 0x319   : > { %v5851_v11 = vpop.eup %5850  ;;  %5870 = vrcp.f32 %v2576_v4  ;;  %v2578_v12 = vadd.f32 1.0, %v5849_v7 }
 0x31a   : > { %v5853_v16 = vpop.eup %5852  ;;  %5872 = vrcp.f32 %v2577_v8  ;;  %v2579_v17 = vadd.f32 1.0, %v5851_v11 }
 0x31b   : > { %v5855_v21 = vpop.eup %5854  ;;  %v3591_v22 = vmul.f32 %v5853_v16, %v6708_v1  ;;  %5874 = vrcp.f32 %v2578_v12  ;;  %v544_v16 = vld [vmem:[%s6701_s6 + $0xbc8] sm:$0xff] }
 0x31c   : > { %v5857_v26 = vpop.eup %5856  ;;  %v3592_v27 = vmul.f32 %v5855_v21, %v6708_v1  ;;  %5876 = vrcp.f32 %v2579_v17  ;;  %v1057_v25 = vmul.f32 %v6708_v1, %v544_v16 }
 0x31d   : > { %v5859_v31 = vpop.eup %5858  ;;  %4103 = vst [vmem:[%s6758_s21 + $0xaf8] sm:$0xff] %v3591_v22  ;;  %v3593_v32 = vmul.f32 %v5857_v26, %v6708_v1  ;;  %5878 = vpow2.f32 %v1920_v13  ;;  %v546_v22 = vld [vmem:[%s6701_s6 + $0xbd8] sm:$0xff]  ;;  %v547_v26 = vld [vmem:[%s6701_s6 + $0xbe0] sm:$0xff] }
 0x31e   : > { %v5861_v36 = vpop.eup %5860  ;;  %4104 = vst [vmem:[%s6758_s21 + $0xb00] sm:$0xff] %v3592_v27  ;;  %v3594_v37 = vmul.f32 %v5859_v31, %v6708_v1  ;;  %5880 = vpow2.f32 %v1922_v18 }
 0x31f   : > { %v5863_v41 = vpop.eup %5862  ;;  %4105 = vst [vmem:[%s6758_s21 + $0xb08] sm:$0xff] %v3593_v32  ;;  %v3595_v42 = vmul.f32 %v5861_v36, %v6708_v1  ;;  %5882 = vpow2.f32 %v1924_v23 }
 0x320   : > { %v5865_v45 = vpop.eup %5864  ;;  %4106 = vst [vmem:[%s6758_s21 + $0xb10] sm:$0xff] %v3594_v37  ;;  %v3596_v46 = vmul.f32 %v5863_v41, %v6708_v1  ;;  %5884 = vpow2.f32 %v1926_v28  ;;  %v1060_v37 = vmul.f32 %v6708_v1, %v547_v26  ;;  %v1946_v41 = vmul.f32 1.442695, %v1057_v25 }
 0x321   : > { %v5867_v49 = vpop.eup %5866  ;;  %4107 = vst [vmem:[%s6758_s21 + $0xb18] sm:$0xff] %v3595_v42  ;;  %v3597_v50 = vmul.f32 %v5865_v45, %v6708_v1  ;;  %5886 = vpow2.f32 %v1928_v33  ;;  %v1059_v33 = vmul.f32 %v6708_v1, %v546_v22  ;;  %v1061_v42 = vmul.f32 %v6708_v1, %v548_v30 }
 0x322   : > { %v5869_v53 = vpop.eup %5868  ;;  %4108 = vst [vmem:[%s6758_s21 + $0xb20] sm:$0xff] %v3596_v46  ;;  %v3598_v54 = vmul.f32 %v5867_v49, %v6708_v1  ;;  %5888 = vpow2.f32 %v1930_v38  ;;  %v550_v38 = vld [vmem:[%s6701_s6 + $0xbf8] sm:$0xff]  ;;  %v1948_v46 = vmul.f32 1.442695, %v1058_v29 }
 0x323   : > { %v5871_v56 = vpop.eup %5870  ;;  %4109 = vst [vmem:[%s6758_s21 + $0xb28] sm:$0xff] %v3597_v50  ;;  %v3599_v57 = vmul.f32 %v5869_v53, %v6708_v1  ;;  %5890 = vpow2.f32 %v1932_v43  ;;  %v551_v43 = vld [vmem:[%s6701_s6 + $0xc00] sm:$0xff]  ;;  %v1063_v52 = vmul.f32 %v6708_v1, %v550_v38  ;;  %v553_v53 = vld [vmem:[%s6701_s6 + $0xc10] sm:$0xff] }
 0x324   : > { %v5873_v59 = vpop.eup %5872  ;;  %4110 = vst [vmem:[%s6758_s21 + $0xb30] sm:$0xff] %v3598_v54  ;;  %v3600_v60 = vmul.f32 %v5871_v56, %v6708_v1  ;;  %5892 = vpow2.f32 %v1934_v47  ;;  %v1062_v47 = vmul.f32 %v6708_v1, %v549_v34  ;;  %v1952_v56 = vmul.f32 1.442695, %v1060_v37 }
 0x325   : > { %v5875_v62 = vpop.eup %5874  ;;  %4111 = vst [vmem:[%s6758_s21 + $0xb38] sm:$0xff] %v3599_v57  ;;  %v3601_v63 = vmul.f32 %v5873_v59, %v6708_v1  ;;  %5894 = vpow2.f32 %v1936_v51  ;;  %v1950_v51 = vmul.f32 1.442695, %v1059_v33  ;;  %v1064_v57 = vmul.f32 %v6708_v1, %v551_v43 }
 0x326   : > { %v5877_v2 = vpop.eup %5876  ;;  %4112 = vst [vmem:[%s6758_s21 + $0xb40] sm:$0xff] %v3600_v60  ;;  %v3602_v3 = vmul.f32 %v5875_v62, %v6708_v1  ;;  %5896 = vpow2.f32 %v1938_v55  ;;  %v1065_v62 = vmul.f32 %v6708_v1, %v552_v48 }
 0x327   : > { %v5879_v4 = vpop.eup %5878  ;;  %4113 = vst [vmem:[%s6758_s21 + $0xb48] sm:$0xff] %v3601_v63  ;;  %v3603_v5 = vmul.f32 %v5877_v2, %v6708_v1  ;;  %5898 = vpow2.f32 %v1940_v58  ;;  %v554_v58 = vld [vmem:[%s6701_s6 + $0xc18] sm:$0xff]  ;;  %v555_v63 = vld [vmem:[%s6701_s6 + $0xc20] sm:$0xff] }
 0x328   : > { %v5881_v6 = vpop.eup %5880  ;;  %4114 = vst [vmem:[%s6758_s21 + $0xb50] sm:$0xff] %v3602_v3  ;;  %v2580_v7 = vadd.f32 1.0, %v5879_v4  ;;  %5900 = vpow2.f32 %v1942_v61  ;;  %v1954_v61 = vmul.f32 1.442695, %v1061_v42  ;;  %v1956_v3 = vmul.f32 1.442695, %v1062_v47 }
 0x329   : > { %v5883_v8 = vpop.eup %5882  ;;  %4115 = vst [vmem:[%s6758_s21 + $0xb58] sm:$0xff] %v3603_v5  ;;  %v2581_v9 = vadd.f32 1.0, %v5881_v6  ;;  %5902 = vpow2.f32 %v1944_v0  ;;  %v1066_v4 = vmul.f32 %v6708_v1, %v553_v53  ;;  %v556_v5 = vld [vmem:[%s6701_s6 + $0xc28] sm:$0xff]  ;;  %v1962_v16 = vmul.f32 1.442695, %v1065_v62  ;;  %v558_v47 = vld [vmem:[%s6701_s6 + $0xc38] sm:$0xff] }
 0x32a   : > { %v5885_v10 = vpop.eup %5884  ;;  %5904 = vrcp.f32 %v2580_v7  ;;  %v2582_v11 = vadd.f32 1.0, %v5883_v8  ;;  %v1958_v8 = vmul.f32 1.442695, %v1063_v52  ;;  %v562_v62 = vld [vmem:[%s6701_s6 + $0xc58] sm:$0xff] }
 0x32b   : > { %v5887_v12 = vpop.eup %5886  ;;  %5906 = vrcp.f32 %v2581_v9  ;;  %v2583_v13 = vadd.f32 1.0, %v5885_v10  ;;  %v1067_v9 = vmul.f32 %v6708_v1, %v554_v58  ;;  %v561_v58 = vld [vmem:[%s6701_s6 + $0xc50] sm:$0xff] }
 0x32c   : > { %v5889_v14 = vpop.eup %5888  ;;  %5908 = vrcp.f32 %v2582_v11  ;;  %v2584_v15 = vadd.f32 1.0, %v5887_v12  ;;  %v1960_v12 = vmul.f32 1.442695, %v1064_v57  ;;  %v1071_v57 = vmul.f32 %v6708_v1, %v558_v47 }
 0x32d   : > { %v5891_v17 = vpop.eup %5890  ;;  %5910 = vrcp.f32 %v2583_v13  ;;  %v2585_v18 = vadd.f32 1.0, %v5889_v14  ;;  %v1068_v13 = vmul.f32 %v6708_v1, %v555_v63 }
 0x32e   : > { %v5893_v20 = vpop.eup %5892  ;;  %5912 = vrcp.f32 %v2584_v15  ;;  %v2586_v21 = vadd.f32 1.0, %v5891_v17  ;;  %v1069_v17 = vmul.f32 %v6708_v1, %v556_v5 }
 0x32f   : > { %v5895_v23 = vpop.eup %5894  ;;  %5914 = vrcp.f32 %v2585_v18  ;;  %v2587_v24 = vadd.f32 1.0, %v5893_v20  ;;  %v1964_v20 = vmul.f32 1.442695, %v1066_v4  ;;  %v1968_v26 = vmul.f32 1.442695, %v1068_v13  ;;  %v565_v13 = vld [vmem:[%s6701_s6 + $0xc70] sm:$0xff] }
 0x330   : > { %v5897_v27 = vpop.eup %5896  ;;  %5916 = vrcp.f32 %v2586_v21  ;;  %v2588_v28 = vadd.f32 1.0, %v5895_v23  ;;  %v1966_v23 = vmul.f32 1.442695, %v1067_v9  ;;  %v1970_v29 = vmul.f32 1.442695, %v1069_v17 }
 0x331   : > { %v5899_v31 = vpop.eup %5898  ;;  %5918 = vrcp.f32 %v2587_v24  ;;  %v2589_v32 = vadd.f32 1.0, %v5897_v27 }
 0x332   : > { %v5901_v35 = vpop.eup %5900  ;;  %5920 = vrcp.f32 %v2588_v28  ;;  %v2590_v36 = vadd.f32 1.0, %v5899_v31 }
 0x333   : > { %v5903_v39 = vpop.eup %5902  ;;  %5922 = vrcp.f32 %v2589_v32  ;;  %v2591_v40 = vadd.f32 1.0, %v5901_v35 }
 0x334   : > { %v5905_v44 = vpop.eup %5904  ;;  %5924 = vrcp.f32 %v2590_v36  ;;  %v2592_v45 = vadd.f32 1.0, %v5903_v39 }
 0x335   : > { %v5907_v49 = vpop.eup %5906  ;;  %v3604_v50 = vmul.f32 %v5905_v44, %v6708_v1  ;;  %5926 = vrcp.f32 %v2591_v40  ;;  %v557_v44 = vld [vmem:[%s6701_s6 + $0xc30] sm:$0xff] }
 0x336   : > { %v5909_v54 = vpop.eup %5908  ;;  %v3605_v55 = vmul.f32 %v5907_v49, %v6708_v1  ;;  %5928 = vrcp.f32 %v2592_v45  ;;  %v1070_v53 = vmul.f32 %v6708_v1, %v557_v44 }
 0x337   : > { %v5911_v59 = vpop.eup %5910  ;;  %4116 = vst [vmem:[%s6758_s21 + $0xb60] sm:$0xff] %v3604_v50  ;;  %v3606_v60 = vmul.f32 %v5909_v54, %v6708_v1  ;;  %5930 = vpow2.f32 %v1946_v41  ;;  %v559_v50 = vld [vmem:[%s6701_s6 + $0xc40] sm:$0xff]  ;;  %v560_v54 = vld [vmem:[%s6701_s6 + $0xc48] sm:$0xff] }
 0x338   : > { %v5913_v0 = vpop.eup %5912  ;;  %4117 = vst [vmem:[%s6758_s21 + $0xb68] sm:$0xff] %v3605_v55  ;;  %v3607_v2 = vmul.f32 %v5911_v59, %v6708_v1  ;;  %5932 = vpow2.f32 %v1948_v46 }
 0x339   : > { %v5915_v6 = vpop.eup %5914  ;;  %4118 = vst [vmem:[%s6758_s21 + $0xb70] sm:$0xff] %v3606_v60  ;;  %v3608_v7 = vmul.f32 %v5913_v0, %v6708_v1  ;;  %5934 = vpow2.f32 %v1950_v51 }
 0x33a   : > { %v5917_v10 = vpop.eup %5916  ;;  %4119 = vst [vmem:[%s6758_s21 + $0xb78] sm:$0xff] %v3607_v2  ;;  %v3609_v11 = vmul.f32 %v5915_v6, %v6708_v1  ;;  %5936 = vpow2.f32 %v1952_v56  ;;  %v1073_v2 = vmul.f32 %v6708_v1, %v560_v54  ;;  %v1972_v6 = vmul.f32 1.442695, %v1070_v53 }
 0x33b   : > { %v5919_v14 = vpop.eup %5918  ;;  %4120 = vst [vmem:[%s6758_s21 + $0xb80] sm:$0xff] %v3608_v7  ;;  %v3610_v15 = vmul.f32 %v5917_v10, %v6708_v1  ;;  %5938 = vpow2.f32 %v1954_v61  ;;  %v1072_v61 = vmul.f32 %v6708_v1, %v559_v50  ;;  %v1074_v7 = vmul.f32 %v6708_v1, %v561_v58 }
 0x33c   : > { %v5921_v18 = vpop.eup %5920  ;;  %4121 = vst [vmem:[%s6758_s21 + $0xb88] sm:$0xff] %v3609_v11  ;;  %v3611_v19 = vmul.f32 %v5919_v14, %v6708_v1  ;;  %5940 = vpow2.f32 %v1956_v3  ;;  %v563_v3 = vld [vmem:[%s6701_s6 + $0xc60] sm:$0xff]  ;;  %v1974_v11 = vmul.f32 1.442695, %v1071_v57 }
 0x33d   : > { %v5923_v21 = vpop.eup %5922  ;;  %4122 = vst [vmem:[%s6758_s21 + $0xb90] sm:$0xff] %v3610_v15  ;;  %v3612_v22 = vmul.f32 %v5921_v18, %v6708_v1  ;;  %5942 = vpow2.f32 %v1958_v8  ;;  %v564_v8 = vld [vmem:[%s6701_s6 + $0xc68] sm:$0xff]  ;;  %v1076_v17 = vmul.f32 %v6708_v1, %v563_v3  ;;  %v566_v18 = vld [vmem:[%s6701_s6 + $0xc78] sm:$0xff] }
 0x33e   : > { %v5925_v24 = vpop.eup %5924  ;;  %4123 = vst [vmem:[%s6758_s21 + $0xb98] sm:$0xff] %v3611_v19  ;;  %v3613_v25 = vmul.f32 %v5923_v21, %v6708_v1  ;;  %5944 = vpow2.f32 %v1960_v12  ;;  %v1075_v12 = vmul.f32 %v6708_v1, %v562_v62  ;;  %v1978_v21 = vmul.f32 1.442695, %v1073_v2 }
 0x33f   : > { %v5927_v27 = vpop.eup %5926  ;;  %4124 = vst [vmem:[%s6758_s21 + $0xba0] sm:$0xff] %v3612_v22  ;;  %v3614_v28 = vmul.f32 %v5925_v24, %v6708_v1  ;;  %5946 = vpow2.f32 %v1962_v16  ;;  %v1976_v16 = vmul.f32 1.442695, %v1072_v61  ;;  %v1077_v22 = vmul.f32 %v6708_v1, %v564_v8 }
 0x340   : > { %v5929_v30 = vpop.eup %5928  ;;  %4125 = vst [vmem:[%s6758_s21 + $0xba8] sm:$0xff] %v3613_v25  ;;  %v3615_v31 = vmul.f32 %v5927_v27, %v6708_v1  ;;  %5948 = vpow2.f32 %v1964_v20  ;;  %v1078_v27 = vmul.f32 %v6708_v1, %v565_v13 }
 0x341   : > { %v5931_v32 = vpop.eup %5930  ;;  %4126 = vst [vmem:[%s6758_s21 + $0xbb0] sm:$0xff] %v3614_v28  ;;  %v3616_v33 = vmul.f32 %v5929_v30, %v6708_v1  ;;  %5950 = vpow2.f32 %v1966_v23  ;;  %v567_v23 = vld [vmem:[%s6701_s6 + $0xc80] sm:$0xff]  ;;  %v568_v28 = vld [vmem:[%s6701_s6 + $0xc88] sm:$0xff] }
 0x342   : > { %v5933_v34 = vpop.eup %5932  ;;  %4127 = vst [vmem:[%s6758_s21 + $0xbb8] sm:$0xff] %v3615_v31  ;;  %v2593_v35 = vadd.f32 1.0, %v5931_v32  ;;  %5952 = vpow2.f32 %v1968_v26  ;;  %v1980_v26 = vmul.f32 1.442695, %v1074_v7  ;;  %v1982_v31 = vmul.f32 1.442695, %v1075_v12 }
 0x343   : > { %v5935_v36 = vpop.eup %5934  ;;  %4128 = vst [vmem:[%s6758_s21 + $0xbc0] sm:$0xff] %v3616_v33  ;;  %v2594_v37 = vadd.f32 1.0, %v5933_v34  ;;  %5954 = vpow2.f32 %v1970_v29  ;;  %v1079_v32 = vmul.f32 %v6708_v1, %v566_v18  ;;  %v569_v33 = vld [vmem:[%s6701_s6 + $0xc90] sm:$0xff]  ;;  %v1988_v44 = vmul.f32 1.442695, %v1078_v27  ;;  %v571_v12 = vld [vmem:[%s6701_s6 + $0xca0] sm:$0xff] }
 0x344   : > { %v5937_v38 = vpop.eup %5936  ;;  %5956 = vrcp.f32 %v2593_v35  ;;  %v2595_v39 = vadd.f32 1.0, %v5935_v36  ;;  %v1984_v36 = vmul.f32 1.442695, %v1076_v17  ;;  %v575_v27 = vld [vmem:[%s6701_s6 + $0xcc0] sm:$0xff] }
 0x345   : > { %v5939_v40 = vpop.eup %5938  ;;  %5958 = vrcp.f32 %v2594_v37  ;;  %v2596_v41 = vadd.f32 1.0, %v5937_v38  ;;  %v1080_v37 = vmul.f32 %v6708_v1, %v567_v23  ;;  %v574_v23 = vld [vmem:[%s6701_s6 + $0xcb8] sm:$0xff] }
 0x346   : > { %v5941_v42 = vpop.eup %5940  ;;  %5960 = vrcp.f32 %v2595_v39  ;;  %v2597_v43 = vadd.f32 1.0, %v5939_v40  ;;  %v1986_v40 = vmul.f32 1.442695, %v1077_v22  ;;  %v1084_v22 = vmul.f32 %v6708_v1, %v571_v12 }
 0x347   : > { %v5943_v45 = vpop.eup %5942  ;;  %5962 = vrcp.f32 %v2596_v41  ;;  %v2598_v46 = vadd.f32 1.0, %v5941_v42  ;;  %v1081_v41 = vmul.f32 %v6708_v1, %v568_v28 }
 0x348   : > { %v5945_v48 = vpop.eup %5944  ;;  %5964 = vrcp.f32 %v2597_v43  ;;  %v2599_v49 = vadd.f32 1.0, %v5943_v45  ;;  %v1082_v45 = vmul.f32 %v6708_v1, %v569_v33 }
 0x349   : > { %v5947_v51 = vpop.eup %5946  ;;  %5966 = vrcp.f32 %v2598_v46  ;;  %v2600_v52 = vadd.f32 1.0, %v5945_v48  ;;  %v1990_v48 = vmul.f32 1.442695, %v1079_v32  ;;  %v1994_v54 = vmul.f32 1.442695, %v1081_v41  ;;  %v578_v41 = vld [vmem:[%s6701_s6 + $0xcd8] sm:$0xff] }
 0x34a   : > { %v5949_v55 = vpop.eup %5948  ;;  %5968 = vrcp.f32 %v2599_v49  ;;  %v2601_v56 = vadd.f32 1.0, %v5947_v51  ;;  %v1992_v51 = vmul.f32 1.442695, %v1080_v37  ;;  %v1996_v57 = vmul.f32 1.442695, %v1082_v45 }
 0x34b   : > { %v5951_v59 = vpop.eup %5950  ;;  %5970 = vrcp.f32 %v2600_v52  ;;  %v2602_v60 = vadd.f32 1.0, %v5949_v55 }
 0x34c   : > { %v5953_v63 = vpop.eup %5952  ;;  %5972 = vrcp.f32 %v2601_v56  ;;  %v2603_v0 = vadd.f32 1.0, %v5951_v59 }
 0x34d   : > { %v5955_v4 = vpop.eup %5954  ;;  %5974 = vrcp.f32 %v2602_v60  ;;  %v2604_v5 = vadd.f32 1.0, %v5953_v63 }
 0x34e   : > { %v5957_v9 = vpop.eup %5956  ;;  %5976 = vrcp.f32 %v2603_v0  ;;  %v2605_v10 = vadd.f32 1.0, %v5955_v4 }
 0x34f   : > { %v5959_v14 = vpop.eup %5958  ;;  %v3617_v15 = vmul.f32 %v5957_v9, %v6708_v1  ;;  %5978 = vrcp.f32 %v2604_v5  ;;  %v570_v9 = vld [vmem:[%s6701_s6 + $0xc98] sm:$0xff] }
 0x350   : > { %v5961_v19 = vpop.eup %5960  ;;  %v3618_v20 = vmul.f32 %v5959_v14, %v6708_v1  ;;  %5980 = vrcp.f32 %v2605_v10  ;;  %v1083_v18 = vmul.f32 %v6708_v1, %v570_v9 }
 0x351   : > { %v5963_v24 = vpop.eup %5962  ;;  %4129 = vst [vmem:[%s6758_s21 + $0xbc8] sm:$0xff] %v3617_v15  ;;  %v3619_v25 = vmul.f32 %v5961_v19, %v6708_v1  ;;  %5982 = vpow2.f32 %v1972_v6  ;;  %v572_v15 = vld [vmem:[%s6701_s6 + $0xca8] sm:$0xff]  ;;  %v573_v19 = vld [vmem:[%s6701_s6 + $0xcb0] sm:$0xff] }
 0x352   : > { %v5965_v29 = vpop.eup %5964  ;;  %4130 = vst [vmem:[%s6758_s21 + $0xbd0] sm:$0xff] %v3618_v20  ;;  %v3620_v30 = vmul.f32 %v5963_v24, %v6708_v1  ;;  %5984 = vpow2.f32 %v1974_v11 }
 0x353   : > { %v5967_v34 = vpop.eup %5966  ;;  %4131 = vst [vmem:[%s6758_s21 + $0xbd8] sm:$0xff] %v3619_v25  ;;  %v3621_v35 = vmul.f32 %v5965_v29, %v6708_v1  ;;  %5986 = vpow2.f32 %v1976_v16 }
 0x354   : > { %v5969_v38 = vpop.eup %5968  ;;  %4132 = vst [vmem:[%s6758_s21 + $0xbe0] sm:$0xff] %v3620_v30  ;;  %v3622_v39 = vmul.f32 %v5967_v34, %v6708_v1  ;;  %5988 = vpow2.f32 %v1978_v21  ;;  %v1086_v30 = vmul.f32 %v6708_v1, %v573_v19  ;;  %v1998_v34 = vmul.f32 1.442695, %v1083_v18 }
 0x355   : > { %v5971_v42 = vpop.eup %5970  ;;  %4133 = vst [vmem:[%s6758_s21 + $0xbe8] sm:$0xff] %v3621_v35  ;;  %v3623_v43 = vmul.f32 %v5969_v38, %v6708_v1  ;;  %5990 = vpow2.f32 %v1980_v26  ;;  %v1085_v26 = vmul.f32 %v6708_v1, %v572_v15  ;;  %v1087_v35 = vmul.f32 %v6708_v1, %v574_v23 }
 0x356   : > { %v5973_v46 = vpop.eup %5972  ;;  %4134 = vst [vmem:[%s6758_s21 + $0xbf0] sm:$0xff] %v3622_v39  ;;  %v3624_v47 = vmul.f32 %v5971_v42, %v6708_v1  ;;  %5992 = vpow2.f32 %v1982_v31  ;;  %v576_v31 = vld [vmem:[%s6701_s6 + $0xcc8] sm:$0xff]  ;;  %v2000_v39 = vmul.f32 1.442695, %v1084_v22 }
 0x357   : > { %v5975_v49 = vpop.eup %5974  ;;  %4135 = vst [vmem:[%s6758_s21 + $0xbf8] sm:$0xff] %v3623_v43  ;;  %v3625_v50 = vmul.f32 %v5973_v46, %v6708_v1  ;;  %5994 = vpow2.f32 %v1984_v36  ;;  %v577_v36 = vld [vmem:[%s6701_s6 + $0xcd0] sm:$0xff]  ;;  %v1089_v45 = vmul.f32 %v6708_v1, %v576_v31  ;;  %v579_v46 = vld [vmem:[%s6701_s6 + $0xce0] sm:$0xff] }
 0x358   : > { %v5977_v52 = vpop.eup %5976  ;;  %4136 = vst [vmem:[%s6758_s21 + $0xc00] sm:$0xff] %v3624_v47  ;;  %v3626_v53 = vmul.f32 %v5975_v49, %v6708_v1  ;;  %5996 = vpow2.f32 %v1986_v40  ;;  %v1088_v40 = vmul.f32 %v6708_v1, %v575_v27  ;;  %v2004_v49 = vmul.f32 1.442695, %v1086_v30 }
 0x359   : > { %v5979_v55 = vpop.eup %5978  ;;  %4137 = vst [vmem:[%s6758_s21 + $0xc08] sm:$0xff] %v3625_v50  ;;  %v3627_v56 = vmul.f32 %v5977_v52, %v6708_v1  ;;  %5998 = vpow2.f32 %v1988_v44  ;;  %v2002_v44 = vmul.f32 1.442695, %v1085_v26  ;;  %v1090_v50 = vmul.f32 %v6708_v1, %v577_v36 }
 0x35a   : > { %v5981_v58 = vpop.eup %5980  ;;  %4138 = vst [vmem:[%s6758_s21 + $0xc10] sm:$0xff] %v3626_v53  ;;  %v3628_v59 = vmul.f32 %v5979_v55, %v6708_v1  ;;  %6000 = vpow2.f32 %v1990_v48  ;;  %v1091_v55 = vmul.f32 %v6708_v1, %v578_v41 }
 0x35b   : > { %v5983_v60 = vpop.eup %5982  ;;  %4139 = vst [vmem:[%s6758_s21 + $0xc18] sm:$0xff] %v3627_v56  ;;  %v3629_v61 = vmul.f32 %v5981_v58, %v6708_v1  ;;  %6002 = vpow2.f32 %v1992_v51  ;;  %v580_v51 = vld [vmem:[%s6701_s6 + $0xce8] sm:$0xff]  ;;  %v581_v56 = vld [vmem:[%s6701_s6 + $0xcf0] sm:$0xff] }
 0x35c   : > { %v5985_v62 = vpop.eup %5984  ;;  %4140 = vst [vmem:[%s6758_s21 + $0xc20] sm:$0xff] %v3628_v59  ;;  %v2606_v63 = vadd.f32 1.0, %v5983_v60  ;;  %6004 = vpow2.f32 %v1994_v54  ;;  %v2006_v54 = vmul.f32 1.442695, %v1087_v35  ;;  %v2008_v59 = vmul.f32 1.442695, %v1088_v40 }
 0x35d   : > { %v5987_v0 = vpop.eup %5986  ;;  %4141 = vst [vmem:[%s6758_s21 + $0xc28] sm:$0xff] %v3629_v61  ;;  %v2607_v2 = vadd.f32 1.0, %v5985_v62  ;;  %6006 = vpow2.f32 %v1996_v57  ;;  %v1092_v60 = vmul.f32 %v6708_v1, %v579_v46  ;;  %v582_v61 = vld [vmem:[%s6701_s6 + $0xcf8] sm:$0xff]  ;;  %v2014_v9 = vmul.f32 1.442695, %v1091_v55  ;;  %v584_v40 = vld [vmem:[%s6701_s6 + $0xd08] sm:$0xff] }
 0x35e   : > { %v5989_v3 = vpop.eup %5988  ;;  %6008 = vrcp.f32 %v2606_v63  ;;  %v2608_v4 = vadd.f32 1.0, %v5987_v0  ;;  %v2010_v0 = vmul.f32 1.442695, %v1089_v45  ;;  %v588_v55 = vld [vmem:[%s6701_s6 + $0xd28] sm:$0xff] }
 0x35f   : > { %v5991_v5 = vpop.eup %5990  ;;  %6010 = vrcp.f32 %v2607_v2  ;;  %v2609_v6 = vadd.f32 1.0, %v5989_v3  ;;  %v1093_v2 = vmul.f32 %v6708_v1, %v580_v51  ;;  %v587_v51 = vld [vmem:[%s6701_s6 + $0xd20] sm:$0xff] }
 0x360   : > { %v5993_v7 = vpop.eup %5992  ;;  %6012 = vrcp.f32 %v2608_v4  ;;  %v2610_v8 = vadd.f32 1.0, %v5991_v5  ;;  %v2012_v5 = vmul.f32 1.442695, %v1090_v50  ;;  %v1097_v50 = vmul.f32 %v6708_v1, %v584_v40 }
 0x361   : > { %v5995_v10 = vpop.eup %5994  ;;  %6014 = vrcp.f32 %v2609_v6  ;;  %v2611_v11 = vadd.f32 1.0, %v5993_v7  ;;  %v1094_v6 = vmul.f32 %v6708_v1, %v581_v56 }
 0x362   : > { %v5997_v13 = vpop.eup %5996  ;;  %6016 = vrcp.f32 %v2610_v8  ;;  %v2612_v14 = vadd.f32 1.0, %v5995_v10  ;;  %v1095_v10 = vmul.f32 %v6708_v1, %v582_v61 }
 0x363   : > { %v5999_v16 = vpop.eup %5998  ;;  %6018 = vrcp.f32 %v2611_v11  ;;  %v2613_v17 = vadd.f32 1.0, %v5997_v13  ;;  %v2016_v13 = vmul.f32 1.442695, %v1092_v60  ;;  %v2020_v19 = vmul.f32 1.442695, %v1094_v6  ;;  %v591_v6 = vld [vmem:[%s6701_s6 + $0xd40] sm:$0xff] }
 0x364   : > { %v6001_v20 = vpop.eup %6000  ;;  %6020 = vrcp.f32 %v2612_v14  ;;  %v2614_v21 = vadd.f32 1.0, %v5999_v16  ;;  %v2018_v16 = vmul.f32 1.442695, %v1093_v2  ;;  %v2022_v22 = vmul.f32 1.442695, %v1095_v10 }
 0x365   : > { %v6003_v24 = vpop.eup %6002  ;;  %6022 = vrcp.f32 %v2613_v17  ;;  %v2615_v25 = vadd.f32 1.0, %v6001_v20 }
 0x366   : > { %v6005_v28 = vpop.eup %6004  ;;  %6024 = vrcp.f32 %v2614_v21  ;;  %v2616_v29 = vadd.f32 1.0, %v6003_v24 }
 0x367   : > { %v6007_v32 = vpop.eup %6006  ;;  %6026 = vrcp.f32 %v2615_v25  ;;  %v2617_v33 = vadd.f32 1.0, %v6005_v28 }
 0x368   : > { %v6009_v37 = vpop.eup %6008  ;;  %6028 = vrcp.f32 %v2616_v29  ;;  %v2618_v38 = vadd.f32 1.0, %v6007_v32 }
 0x369   : > { %v6011_v42 = vpop.eup %6010  ;;  %v3630_v43 = vmul.f32 %v6009_v37, %v6708_v1  ;;  %6030 = vrcp.f32 %v2617_v33  ;;  %v583_v37 = vld [vmem:[%s6701_s6 + $0xd00] sm:$0xff] }
 0x36a   : > { %v6013_v47 = vpop.eup %6012  ;;  %v3631_v48 = vmul.f32 %v6011_v42, %v6708_v1  ;;  %6032 = vrcp.f32 %v2618_v38  ;;  %v1096_v46 = vmul.f32 %v6708_v1, %v583_v37 }
 0x36b   : > { %v6015_v52 = vpop.eup %6014  ;;  %4142 = vst [vmem:[%s6758_s21 + $0xc30] sm:$0xff] %v3630_v43  ;;  %v3632_v53 = vmul.f32 %v6013_v47, %v6708_v1  ;;  %6034 = vpow2.f32 %v1998_v34  ;;  %v585_v43 = vld [vmem:[%s6701_s6 + $0xd10] sm:$0xff]  ;;  %v586_v47 = vld [vmem:[%s6701_s6 + $0xd18] sm:$0xff] }
 0x36c   : > { %v6017_v57 = vpop.eup %6016  ;;  %4143 = vst [vmem:[%s6758_s21 + $0xc38] sm:$0xff] %v3631_v48  ;;  %v3633_v58 = vmul.f32 %v6015_v52, %v6708_v1  ;;  %6036 = vpow2.f32 %v2000_v39 }
 0x36d   : > { %v6019_v62 = vpop.eup %6018  ;;  %4144 = vst [vmem:[%s6758_s21 + $0xc40] sm:$0xff] %v3632_v53  ;;  %v3634_v63 = vmul.f32 %v6017_v57, %v6708_v1  ;;  %6038 = vpow2.f32 %v2002_v44 }
 0x36e   : > { %v6021_v3 = vpop.eup %6020  ;;  %4145 = vst [vmem:[%s6758_s21 + $0xc48] sm:$0xff] %v3633_v58  ;;  %v3635_v4 = vmul.f32 %v6019_v62, %v6708_v1  ;;  %6040 = vpow2.f32 %v2004_v49  ;;  %v1099_v58 = vmul.f32 %v6708_v1, %v586_v47  ;;  %v2024_v62 = vmul.f32 1.442695, %v1096_v46 }
 0x36f   : > { %v6023_v7 = vpop.eup %6022  ;;  %4146 = vst [vmem:[%s6758_s21 + $0xc50] sm:$0xff] %v3634_v63  ;;  %v3636_v8 = vmul.f32 %v6021_v3, %v6708_v1  ;;  %6042 = vpow2.f32 %v2006_v54  ;;  %v1098_v54 = vmul.f32 %v6708_v1, %v585_v43  ;;  %v1100_v63 = vmul.f32 %v6708_v1, %v587_v51 }
 0x370   : > { %v6025_v11 = vpop.eup %6024  ;;  %4147 = vst [vmem:[%s6758_s21 + $0xc58] sm:$0xff] %v3635_v4  ;;  %v3637_v12 = vmul.f32 %v6023_v7, %v6708_v1  ;;  %6044 = vpow2.f32 %v2008_v59  ;;  %v589_v59 = vld [vmem:[%s6701_s6 + $0xd30] sm:$0xff]  ;;  %v2026_v4 = vmul.f32 1.442695, %v1097_v50 }
 0x371   : > { %v6027_v14 = vpop.eup %6026  ;;  %4148 = vst [vmem:[%s6758_s21 + $0xc60] sm:$0xff] %v3636_v8  ;;  %v3638_v15 = vmul.f32 %v6025_v11, %v6708_v1  ;;  %6046 = vpow2.f32 %v2010_v0  ;;  %v590_v0 = vld [vmem:[%s6701_s6 + $0xd38] sm:$0xff]  ;;  %v1102_v10 = vmul.f32 %v6708_v1, %v589_v59  ;;  %v592_v11 = vld [vmem:[%s6701_s6 + $0xd48] sm:$0xff] }
 0x372   : > { %v6029_v17 = vpop.eup %6028  ;;  %4149 = vst [vmem:[%s6758_s21 + $0xc68] sm:$0xff] %v3637_v12  ;;  %v3639_v18 = vmul.f32 %v6027_v14, %v6708_v1  ;;  %6048 = vpow2.f32 %v2012_v5  ;;  %v1101_v5 = vmul.f32 %v6708_v1, %v588_v55  ;;  %v2030_v14 = vmul.f32 1.442695, %v1099_v58 }
 0x373   : > { %v6031_v20 = vpop.eup %6030  ;;  %4150 = vst [vmem:[%s6758_s21 + $0xc70] sm:$0xff] %v3638_v15  ;;  %v3640_v21 = vmul.f32 %v6029_v17, %v6708_v1  ;;  %6050 = vpow2.f32 %v2014_v9  ;;  %v2028_v9 = vmul.f32 1.442695, %v1098_v54  ;;  %v1103_v15 = vmul.f32 %v6708_v1, %v590_v0 }
 0x374   : > { %v6033_v23 = vpop.eup %6032  ;;  %4151 = vst [vmem:[%s6758_s21 + $0xc78] sm:$0xff] %v3639_v18  ;;  %v3641_v24 = vmul.f32 %v6031_v20, %v6708_v1  ;;  %6052 = vpow2.f32 %v2016_v13  ;;  %v1104_v20 = vmul.f32 %v6708_v1, %v591_v6 }
 0x375   : > { %v6035_v25 = vpop.eup %6034  ;;  %4152 = vst [vmem:[%s6758_s21 + $0xc80] sm:$0xff] %v3640_v21  ;;  %v3642_v26 = vmul.f32 %v6033_v23, %v6708_v1  ;;  %6054 = vpow2.f32 %v2018_v16  ;;  %v593_v16 = vld [vmem:[%s6701_s6 + $0xd50] sm:$0xff]  ;;  %v594_v21 = vld [vmem:[%s6701_s6 + $0xd58] sm:$0xff] }
 0x376   : > { %v6037_v27 = vpop.eup %6036  ;;  %4153 = vst [vmem:[%s6758_s21 + $0xc88] sm:$0xff] %v3641_v24  ;;  %v2619_v28 = vadd.f32 1.0, %v6035_v25  ;;  %6056 = vpow2.f32 %v2020_v19  ;;  %v2032_v19 = vmul.f32 1.442695, %v1100_v63  ;;  %v2034_v24 = vmul.f32 1.442695, %v1101_v5 }
 0x377   : > { %v6039_v29 = vpop.eup %6038  ;;  %4154 = vst [vmem:[%s6758_s21 + $0xc90] sm:$0xff] %v3642_v26  ;;  %v2620_v30 = vadd.f32 1.0, %v6037_v27  ;;  %6058 = vpow2.f32 %v2022_v22  ;;  %v1105_v25 = vmul.f32 %v6708_v1, %v592_v11  ;;  %v595_v26 = vld [vmem:[%s6701_s6 + $0xd60] sm:$0xff]  ;;  %v2040_v37 = vmul.f32 1.442695, %v1104_v20  ;;  %v597_v5 = vld [vmem:[%s6701_s6 + $0xd70] sm:$0xff] }
 0x378   : > { %v6041_v31 = vpop.eup %6040  ;;  %6060 = vrcp.f32 %v2619_v28  ;;  %v2621_v32 = vadd.f32 1.0, %v6039_v29  ;;  %v2036_v29 = vmul.f32 1.442695, %v1102_v10  ;;  %v601_v20 = vld [vmem:[%s6701_s6 + $0xd90] sm:$0xff] }
 0x379   : > { %v6043_v33 = vpop.eup %6042  ;;  %6062 = vrcp.f32 %v2620_v30  ;;  %v2622_v34 = vadd.f32 1.0, %v6041_v31  ;;  %v1106_v30 = vmul.f32 %v6708_v1, %v593_v16  ;;  %v600_v16 = vld [vmem:[%s6701_s6 + $0xd88] sm:$0xff] }
 0x37a   : > { %v6045_v35 = vpop.eup %6044  ;;  %6064 = vrcp.f32 %v2621_v32  ;;  %v2623_v36 = vadd.f32 1.0, %v6043_v33  ;;  %v2038_v33 = vmul.f32 1.442695, %v1103_v15  ;;  %v1110_v15 = vmul.f32 %v6708_v1, %v597_v5 }
 0x37b   : > { %v6047_v38 = vpop.eup %6046  ;;  %6066 = vrcp.f32 %v2622_v34  ;;  %v2624_v39 = vadd.f32 1.0, %v6045_v35  ;;  %v1107_v34 = vmul.f32 %v6708_v1, %v594_v21 }
 0x37c   : > { %v6049_v41 = vpop.eup %6048  ;;  %6068 = vrcp.f32 %v2623_v36  ;;  %v2625_v42 = vadd.f32 1.0, %v6047_v38  ;;  %v1108_v38 = vmul.f32 %v6708_v1, %v595_v26 }
 0x37d   : > { %v6051_v44 = vpop.eup %6050  ;;  %6070 = vrcp.f32 %v2624_v39  ;;  %v2626_v45 = vadd.f32 1.0, %v6049_v41  ;;  %v2042_v41 = vmul.f32 1.442695, %v1105_v25  ;;  %v2046_v47 = vmul.f32 1.442695, %v1107_v34  ;;  %v604_v34 = vld [vmem:[%s6701_s6 + $0xda8] sm:$0xff] }
 0x37e   : > { %v6053_v48 = vpop.eup %6052  ;;  %6072 = vrcp.f32 %v2625_v42  ;;  %v2627_v49 = vadd.f32 1.0, %v6051_v44  ;;  %v2044_v44 = vmul.f32 1.442695, %v1106_v30  ;;  %v2048_v50 = vmul.f32 1.442695, %v1108_v38 }
 0x37f   : > { %v6055_v52 = vpop.eup %6054  ;;  %6074 = vrcp.f32 %v2626_v45  ;;  %v2628_v53 = vadd.f32 1.0, %v6053_v48 }
 0x380   : > { %v6057_v56 = vpop.eup %6056  ;;  %6076 = vrcp.f32 %v2627_v49  ;;  %v2629_v57 = vadd.f32 1.0, %v6055_v52 }
 0x381   : > { %v6059_v60 = vpop.eup %6058  ;;  %6078 = vrcp.f32 %v2628_v53  ;;  %v2630_v61 = vadd.f32 1.0, %v6057_v56 }
 0x382   : > { %v6061_v2 = vpop.eup %6060  ;;  %6080 = vrcp.f32 %v2629_v57  ;;  %v2631_v3 = vadd.f32 1.0, %v6059_v60 }
 0x383   : > { %v6063_v7 = vpop.eup %6062  ;;  %v3643_v8 = vmul.f32 %v6061_v2, %v6708_v1  ;;  %6082 = vrcp.f32 %v2630_v61  ;;  %v596_v2 = vld [vmem:[%s6701_s6 + $0xd68] sm:$0xff] }
 0x384   : > { %v6065_v12 = vpop.eup %6064  ;;  %v3644_v13 = vmul.f32 %v6063_v7, %v6708_v1  ;;  %6084 = vrcp.f32 %v2631_v3  ;;  %v1109_v11 = vmul.f32 %v6708_v1, %v596_v2 }
 0x385   : > { %v6067_v17 = vpop.eup %6066  ;;  %4155 = vst [vmem:[%s6758_s21 + $0xc98] sm:$0xff] %v3643_v8  ;;  %v3645_v18 = vmul.f32 %v6065_v12, %v6708_v1  ;;  %6086 = vpow2.f32 %v2024_v62  ;;  %v598_v8 = vld [vmem:[%s6701_s6 + $0xd78] sm:$0xff]  ;;  %v599_v12 = vld [vmem:[%s6701_s6 + $0xd80] sm:$0xff] }
 0x386   : > { %v6069_v22 = vpop.eup %6068  ;;  %4156 = vst [vmem:[%s6758_s21 + $0xca0] sm:$0xff] %v3644_v13  ;;  %v3646_v23 = vmul.f32 %v6067_v17, %v6708_v1  ;;  %6088 = vpow2.f32 %v2026_v4 }
 0x387   : > { %v6071_v27 = vpop.eup %6070  ;;  %4157 = vst [vmem:[%s6758_s21 + $0xca8] sm:$0xff] %v3645_v18  ;;  %v3647_v28 = vmul.f32 %v6069_v22, %v6708_v1  ;;  %6090 = vpow2.f32 %v2028_v9 }
 0x388   : > { %v6073_v31 = vpop.eup %6072  ;;  %4158 = vst [vmem:[%s6758_s21 + $0xcb0] sm:$0xff] %v3646_v23  ;;  %v3648_v32 = vmul.f32 %v6071_v27, %v6708_v1  ;;  %6092 = vpow2.f32 %v2030_v14  ;;  %v1112_v23 = vmul.f32 %v6708_v1, %v599_v12  ;;  %v2050_v27 = vmul.f32 1.442695, %v1109_v11 }
 0x389   : > { %v6075_v35 = vpop.eup %6074  ;;  %4159 = vst [vmem:[%s6758_s21 + $0xcb8] sm:$0xff] %v3647_v28  ;;  %v3649_v36 = vmul.f32 %v6073_v31, %v6708_v1  ;;  %6094 = vpow2.f32 %v2032_v19  ;;  %v1111_v19 = vmul.f32 %v6708_v1, %v598_v8  ;;  %v1113_v28 = vmul.f32 %v6708_v1, %v600_v16 }
 0x38a   : > { %v6077_v39 = vpop.eup %6076  ;;  %4160 = vst [vmem:[%s6758_s21 + $0xcc0] sm:$0xff] %v3648_v32  ;;  %v3650_v40 = vmul.f32 %v6075_v35, %v6708_v1  ;;  %6096 = vpow2.f32 %v2034_v24  ;;  %v602_v24 = vld [vmem:[%s6701_s6 + $0xd98] sm:$0xff]  ;;  %v2052_v32 = vmul.f32 1.442695, %v1110_v15 }
 0x38b   : > { %v6079_v42 = vpop.eup %6078  ;;  %4161 = vst [vmem:[%s6758_s21 + $0xcc8] sm:$0xff] %v3649_v36  ;;  %v3651_v43 = vmul.f32 %v6077_v39, %v6708_v1  ;;  %6098 = vpow2.f32 %v2036_v29  ;;  %v603_v29 = vld [vmem:[%s6701_s6 + $0xda0] sm:$0xff]  ;;  %v1115_v38 = vmul.f32 %v6708_v1, %v602_v24  ;;  %v605_v39 = vld [vmem:[%s6701_s6 + $0xdb0] sm:$0xff] }
 0x38c   : > { %v6081_v45 = vpop.eup %6080  ;;  %4162 = vst [vmem:[%s6758_s21 + $0xcd0] sm:$0xff] %v3650_v40  ;;  %v3652_v46 = vmul.f32 %v6079_v42, %v6708_v1  ;;  %6100 = vpow2.f32 %v2038_v33  ;;  %v1114_v33 = vmul.f32 %v6708_v1, %v601_v20  ;;  %v2056_v42 = vmul.f32 1.442695, %v1112_v23 }
 0x38d   : > { %v6083_v48 = vpop.eup %6082  ;;  %4163 = vst [vmem:[%s6758_s21 + $0xcd8] sm:$0xff] %v3651_v43  ;;  %v3653_v49 = vmul.f32 %v6081_v45, %v6708_v1  ;;  %6102 = vpow2.f32 %v2040_v37  ;;  %v2054_v37 = vmul.f32 1.442695, %v1111_v19  ;;  %v1116_v43 = vmul.f32 %v6708_v1, %v603_v29 }
 0x38e   : > { %v6085_v51 = vpop.eup %6084  ;;  %4164 = vst [vmem:[%s6758_s21 + $0xce0] sm:$0xff] %v3652_v46  ;;  %v3654_v52 = vmul.f32 %v6083_v48, %v6708_v1  ;;  %6104 = vpow2.f32 %v2042_v41  ;;  %v1117_v48 = vmul.f32 %v6708_v1, %v604_v34 }
 0x38f   : > { %v6087_v53 = vpop.eup %6086  ;;  %4165 = vst [vmem:[%s6758_s21 + $0xce8] sm:$0xff] %v3653_v49  ;;  %v3655_v54 = vmul.f32 %v6085_v51, %v6708_v1  ;;  %6106 = vpow2.f32 %v2044_v44  ;;  %v606_v44 = vld [vmem:[%s6701_s6 + $0xdb8] sm:$0xff]  ;;  %v607_v49 = vld [vmem:[%s6701_s6 + $0xdc0] sm:$0xff] }
 0x390   : > { %v6089_v55 = vpop.eup %6088  ;;  %4166 = vst [vmem:[%s6758_s21 + $0xcf0] sm:$0xff] %v3654_v52  ;;  %v2632_v56 = vadd.f32 1.0, %v6087_v53  ;;  %6108 = vpow2.f32 %v2046_v47  ;;  %v2058_v47 = vmul.f32 1.442695, %v1113_v28  ;;  %v2060_v52 = vmul.f32 1.442695, %v1114_v33 }
 0x391   : > { %v6091_v57 = vpop.eup %6090  ;;  %4167 = vst [vmem:[%s6758_s21 + $0xcf8] sm:$0xff] %v3655_v54  ;;  %v2633_v58 = vadd.f32 1.0, %v6089_v55  ;;  %6110 = vpow2.f32 %v2048_v50  ;;  %v1118_v53 = vmul.f32 %v6708_v1, %v605_v39  ;;  %v608_v54 = vld [vmem:[%s6701_s6 + $0xdc8] sm:$0xff]  ;;  %v2066_v2 = vmul.f32 1.442695, %v1117_v48  ;;  %v610_v33 = vld [vmem:[%s6701_s6 + $0xdd8] sm:$0xff] }
 0x392   : > { %v6093_v59 = vpop.eup %6092  ;;  %6112 = vrcp.f32 %v2632_v56  ;;  %v2634_v60 = vadd.f32 1.0, %v6091_v57  ;;  %v2062_v57 = vmul.f32 1.442695, %v1115_v38  ;;  %v614_v48 = vld [vmem:[%s6701_s6 + $0xdf8] sm:$0xff] }
 0x393   : > { %v6095_v61 = vpop.eup %6094  ;;  %6114 = vrcp.f32 %v2633_v58  ;;  %v2635_v62 = vadd.f32 1.0, %v6093_v59  ;;  %v1119_v58 = vmul.f32 %v6708_v1, %v606_v44  ;;  %v613_v44 = vld [vmem:[%s6701_s6 + $0xdf0] sm:$0xff] }
 0x394   : > { %v6097_v63 = vpop.eup %6096  ;;  %6116 = vrcp.f32 %v2634_v60  ;;  %v2636_v0 = vadd.f32 1.0, %v6095_v61  ;;  %v2064_v61 = vmul.f32 1.442695, %v1116_v43  ;;  %v1123_v43 = vmul.f32 %v6708_v1, %v610_v33 }
 0x395   : > { %v6099_v3 = vpop.eup %6098  ;;  %6118 = vrcp.f32 %v2635_v62  ;;  %v2637_v4 = vadd.f32 1.0, %v6097_v63  ;;  %v1120_v62 = vmul.f32 %v6708_v1, %v607_v49 }
 0x396   : > { %v6101_v6 = vpop.eup %6100  ;;  %6120 = vrcp.f32 %v2636_v0  ;;  %v2638_v7 = vadd.f32 1.0, %v6099_v3  ;;  %v1121_v3 = vmul.f32 %v6708_v1, %v608_v54 }
 0x397   : > { %v6103_v9 = vpop.eup %6102  ;;  %6122 = vrcp.f32 %v2637_v4  ;;  %v2639_v10 = vadd.f32 1.0, %v6101_v6  ;;  %v2068_v6 = vmul.f32 1.442695, %v1118_v53  ;;  %v2072_v12 = vmul.f32 1.442695, %v1120_v62  ;;  %v617_v62 = vld [vmem:[%s6701_s6 + $0xe10] sm:$0xff] }
 0x398   : > { %v6105_v13 = vpop.eup %6104  ;;  %6124 = vrcp.f32 %v2638_v7  ;;  %v2640_v14 = vadd.f32 1.0, %v6103_v9  ;;  %v2070_v9 = vmul.f32 1.442695, %v1119_v58  ;;  %v2074_v15 = vmul.f32 1.442695, %v1121_v3 }
 0x399   : > { %v6107_v17 = vpop.eup %6106  ;;  %6126 = vrcp.f32 %v2639_v10  ;;  %v2641_v18 = vadd.f32 1.0, %v6105_v13 }
 0x39a   : > { %v6109_v21 = vpop.eup %6108  ;;  %6128 = vrcp.f32 %v2640_v14  ;;  %v2642_v22 = vadd.f32 1.0, %v6107_v17 }
 0x39b   : > { %v6111_v25 = vpop.eup %6110  ;;  %6130 = vrcp.f32 %v2641_v18  ;;  %v2643_v26 = vadd.f32 1.0, %v6109_v21 }
 0x39c   : > { %v6113_v30 = vpop.eup %6112  ;;  %6132 = vrcp.f32 %v2642_v22  ;;  %v2644_v31 = vadd.f32 1.0, %v6111_v25 }
 0x39d   : > { %v6115_v35 = vpop.eup %6114  ;;  %v3656_v36 = vmul.f32 %v6113_v30, %v6708_v1  ;;  %6134 = vrcp.f32 %v2643_v26  ;;  %v609_v30 = vld [vmem:[%s6701_s6 + $0xdd0] sm:$0xff] }
 0x39e   : > { %v6117_v40 = vpop.eup %6116  ;;  %v3657_v41 = vmul.f32 %v6115_v35, %v6708_v1  ;;  %6136 = vrcp.f32 %v2644_v31  ;;  %v1122_v39 = vmul.f32 %v6708_v1, %v609_v30 }
 0x39f   : > { %v6119_v45 = vpop.eup %6118  ;;  %4168 = vst [vmem:[%s6758_s21 + $0xd00] sm:$0xff] %v3656_v36  ;;  %v3658_v46 = vmul.f32 %v6117_v40, %v6708_v1  ;;  %6138 = vpow2.f32 %v2050_v27  ;;  %v611_v36 = vld [vmem:[%s6701_s6 + $0xde0] sm:$0xff]  ;;  %v612_v40 = vld [vmem:[%s6701_s6 + $0xde8] sm:$0xff] }
 0x3a0   : > { %v6121_v50 = vpop.eup %6120  ;;  %4169 = vst [vmem:[%s6758_s21 + $0xd08] sm:$0xff] %v3657_v41  ;;  %v3659_v51 = vmul.f32 %v6119_v45, %v6708_v1  ;;  %6140 = vpow2.f32 %v2052_v32 }
 0x3a1   : > { %v6123_v55 = vpop.eup %6122  ;;  %4170 = vst [vmem:[%s6758_s21 + $0xd10] sm:$0xff] %v3658_v46  ;;  %v3660_v56 = vmul.f32 %v6121_v50, %v6708_v1  ;;  %6142 = vpow2.f32 %v2054_v37 }
 0x3a2   : > { %v6125_v59 = vpop.eup %6124  ;;  %4171 = vst [vmem:[%s6758_s21 + $0xd18] sm:$0xff] %v3659_v51  ;;  %v3661_v60 = vmul.f32 %v6123_v55, %v6708_v1  ;;  %6144 = vpow2.f32 %v2056_v42  ;;  %v1125_v51 = vmul.f32 %v6708_v1, %v612_v40  ;;  %v2076_v55 = vmul.f32 1.442695, %v1122_v39 }
 0x3a3   : > { %v6127_v63 = vpop.eup %6126  ;;  %4172 = vst [vmem:[%s6758_s21 + $0xd20] sm:$0xff] %v3660_v56  ;;  %v3662_v0 = vmul.f32 %v6125_v59, %v6708_v1  ;;  %6146 = vpow2.f32 %v2058_v47  ;;  %v1124_v47 = vmul.f32 %v6708_v1, %v611_v36  ;;  %v1126_v56 = vmul.f32 %v6708_v1, %v613_v44 }
 0x3a4   : > { %v6129_v4 = vpop.eup %6128  ;;  %4173 = vst [vmem:[%s6758_s21 + $0xd28] sm:$0xff] %v3661_v60  ;;  %v3663_v5 = vmul.f32 %v6127_v63, %v6708_v1  ;;  %6148 = vpow2.f32 %v2060_v52  ;;  %v615_v52 = vld [vmem:[%s6701_s6 + $0xe00] sm:$0xff]  ;;  %v2078_v60 = vmul.f32 1.442695, %v1123_v43 }
 0x3a5   : > { %v6131_v7 = vpop.eup %6130  ;;  %4174 = vst [vmem:[%s6758_s21 + $0xd30] sm:$0xff] %v3662_v0  ;;  %v3664_v8 = vmul.f32 %v6129_v4, %v6708_v1  ;;  %6150 = vpow2.f32 %v2062_v57  ;;  %v616_v57 = vld [vmem:[%s6701_s6 + $0xe08] sm:$0xff]  ;;  %v1128_v3 = vmul.f32 %v6708_v1, %v615_v52  ;;  %v618_v4 = vld [vmem:[%s6701_s6 + $0xe18] sm:$0xff] }
 0x3a6   : > { %v6133_v10 = vpop.eup %6132  ;;  %4175 = vst [vmem:[%s6758_s21 + $0xd38] sm:$0xff] %v3663_v5  ;;  %v3665_v11 = vmul.f32 %v6131_v7, %v6708_v1  ;;  %6152 = vpow2.f32 %v2064_v61  ;;  %v1127_v61 = vmul.f32 %v6708_v1, %v614_v48  ;;  %v2082_v7 = vmul.f32 1.442695, %v1125_v51 }
 0x3a7   : > { %v6135_v13 = vpop.eup %6134  ;;  %4176 = vst [vmem:[%s6758_s21 + $0xd40] sm:$0xff] %v3664_v8  ;;  %v3666_v14 = vmul.f32 %v6133_v10, %v6708_v1  ;;  %6154 = vpow2.f32 %v2066_v2  ;;  %v2080_v2 = vmul.f32 1.442695, %v1124_v47  ;;  %v1129_v8 = vmul.f32 %v6708_v1, %v616_v57 }
 0x3a8   : > { %v6137_v16 = vpop.eup %6136  ;;  %4177 = vst [vmem:[%s6758_s21 + $0xd48] sm:$0xff] %v3665_v11  ;;  %v3667_v17 = vmul.f32 %v6135_v13, %v6708_v1  ;;  %6156 = vpow2.f32 %v2068_v6  ;;  %v1130_v13 = vmul.f32 %v6708_v1, %v617_v62 }
 0x3a9   : > { %v6139_v18 = vpop.eup %6138  ;;  %4178 = vst [vmem:[%s6758_s21 + $0xd50] sm:$0xff] %v3666_v14  ;;  %v3668_v19 = vmul.f32 %v6137_v16, %v6708_v1  ;;  %6158 = vpow2.f32 %v2070_v9  ;;  %v619_v9 = vld [vmem:[%s6701_s6 + $0xe20] sm:$0xff]  ;;  %v620_v14 = vld [vmem:[%s6701_s6 + $0xe28] sm:$0xff] }
 0x3aa   : > { %v6141_v20 = vpop.eup %6140  ;;  %4179 = vst [vmem:[%s6758_s21 + $0xd58] sm:$0xff] %v3667_v17  ;;  %v2645_v21 = vadd.f32 1.0, %v6139_v18  ;;  %6160 = vpow2.f32 %v2072_v12  ;;  %v2084_v12 = vmul.f32 1.442695, %v1126_v56  ;;  %v2086_v17 = vmul.f32 1.442695, %v1127_v61 }
 0x3ab   : > { %v6143_v22 = vpop.eup %6142  ;;  %4180 = vst [vmem:[%s6758_s21 + $0xd60] sm:$0xff] %v3668_v19  ;;  %v2646_v23 = vadd.f32 1.0, %v6141_v20  ;;  %6162 = vpow2.f32 %v2074_v15  ;;  %v1131_v18 = vmul.f32 %v6708_v1, %v618_v4  ;;  %v621_v19 = vld [vmem:[%s6701_s6 + $0xe30] sm:$0xff]  ;;  %v2092_v30 = vmul.f32 1.442695, %v1130_v13  ;;  %v623_v61 = vld [vmem:[%s6701_s6 + $0xe40] sm:$0xff] }
 0x3ac   : > { %v6145_v24 = vpop.eup %6144  ;;  %6164 = vrcp.f32 %v2645_v21  ;;  %v2647_v25 = vadd.f32 1.0, %v6143_v22  ;;  %v2088_v22 = vmul.f32 1.442695, %v1128_v3  ;;  %v627_v13 = vld [vmem:[%s6701_s6 + $0xe60] sm:$0xff] }
 0x3ad   : > { %v6147_v26 = vpop.eup %6146  ;;  %6166 = vrcp.f32 %v2646_v23  ;;  %v2648_v27 = vadd.f32 1.0, %v6145_v24  ;;  %v1132_v23 = vmul.f32 %v6708_v1, %v619_v9  ;;  %v626_v9 = vld [vmem:[%s6701_s6 + $0xe58] sm:$0xff] }
 0x3ae   : > { %v6149_v28 = vpop.eup %6148  ;;  %6168 = vrcp.f32 %v2647_v25  ;;  %v2649_v29 = vadd.f32 1.0, %v6147_v26  ;;  %v2090_v26 = vmul.f32 1.442695, %v1129_v8  ;;  %v1136_v8 = vmul.f32 %v6708_v1, %v623_v61 }
 0x3af   : > { %v6151_v31 = vpop.eup %6150  ;;  %6170 = vrcp.f32 %v2648_v27  ;;  %v2650_v32 = vadd.f32 1.0, %v6149_v28  ;;  %v1133_v27 = vmul.f32 %v6708_v1, %v620_v14 }
 0x3b0   : > { %v6153_v34 = vpop.eup %6152  ;;  %6172 = vrcp.f32 %v2649_v29  ;;  %v2651_v35 = vadd.f32 1.0, %v6151_v31  ;;  %v1134_v31 = vmul.f32 %v6708_v1, %v621_v19 }
 0x3b1   : > { %v6155_v37 = vpop.eup %6154  ;;  %6174 = vrcp.f32 %v2650_v32  ;;  %v2652_v38 = vadd.f32 1.0, %v6153_v34  ;;  %v2094_v34 = vmul.f32 1.442695, %v1131_v18  ;;  %v2098_v40 = vmul.f32 1.442695, %v1133_v27  ;;  %v630_v27 = vld [vmem:[%s6701_s6 + $0xe78] sm:$0xff] }
 0x3b2   : > { %v6157_v41 = vpop.eup %6156  ;;  %6176 = vrcp.f32 %v2651_v35  ;;  %v2653_v42 = vadd.f32 1.0, %v6155_v37  ;;  %v2096_v37 = vmul.f32 1.442695, %v1132_v23  ;;  %v2100_v43 = vmul.f32 1.442695, %v1134_v31 }
 0x3b3   : > { %v6159_v45 = vpop.eup %6158  ;;  %6178 = vrcp.f32 %v2652_v38  ;;  %v2654_v46 = vadd.f32 1.0, %v6157_v41 }
 0x3b4   : > { %v6161_v49 = vpop.eup %6160  ;;  %6180 = vrcp.f32 %v2653_v42  ;;  %v2655_v50 = vadd.f32 1.0, %v6159_v45 }
 0x3b5   : > { %v6163_v53 = vpop.eup %6162  ;;  %6182 = vrcp.f32 %v2654_v46  ;;  %v2656_v54 = vadd.f32 1.0, %v6161_v49 }
 0x3b6   : > { %v6165_v58 = vpop.eup %6164  ;;  %6184 = vrcp.f32 %v2655_v50  ;;  %v2657_v59 = vadd.f32 1.0, %v6163_v53 }
 0x3b7   : > { %v6167_v63 = vpop.eup %6166  ;;  %v3669_v0 = vmul.f32 %v6165_v58, %v6708_v1  ;;  %6186 = vrcp.f32 %v2656_v54  ;;  %v622_v58 = vld [vmem:[%s6701_s6 + $0xe38] sm:$0xff] }
 0x3b8   : > { %v6169_v5 = vpop.eup %6168  ;;  %v3670_v6 = vmul.f32 %v6167_v63, %v6708_v1  ;;  %6188 = vrcp.f32 %v2657_v59  ;;  %v1135_v4 = vmul.f32 %v6708_v1, %v622_v58 }
 0x3b9   : > { %v6171_v10 = vpop.eup %6170  ;;  %4181 = vst [vmem:[%s6758_s21 + $0xd68] sm:$0xff] %v3669_v0  ;;  %v3671_v11 = vmul.f32 %v6169_v5, %v6708_v1  ;;  %6190 = vpow2.f32 %v2076_v55  ;;  %v624_v0 = vld [vmem:[%s6701_s6 + $0xe48] sm:$0xff]  ;;  %v625_v5 = vld [vmem:[%s6701_s6 + $0xe50] sm:$0xff] }
 0x3ba   : > { %v6173_v15 = vpop.eup %6172  ;;  %4182 = vst [vmem:[%s6758_s21 + $0xd70] sm:$0xff] %v3670_v6  ;;  %v3672_v16 = vmul.f32 %v6171_v10, %v6708_v1  ;;  %6192 = vpow2.f32 %v2078_v60 }
 0x3bb   : > { %v6175_v20 = vpop.eup %6174  ;;  %4183 = vst [vmem:[%s6758_s21 + $0xd78] sm:$0xff] %v3671_v11  ;;  %v3673_v21 = vmul.f32 %v6173_v15, %v6708_v1  ;;  %6194 = vpow2.f32 %v2080_v2 }
 0x3bc   : > { %v6177_v24 = vpop.eup %6176  ;;  %4184 = vst [vmem:[%s6758_s21 + $0xd80] sm:$0xff] %v3672_v16  ;;  %v3674_v25 = vmul.f32 %v6175_v20, %v6708_v1  ;;  %6196 = vpow2.f32 %v2082_v7  ;;  %v1138_v16 = vmul.f32 %v6708_v1, %v625_v5  ;;  %v2102_v20 = vmul.f32 1.442695, %v1135_v4 }
 0x3bd   : > { %v6179_v28 = vpop.eup %6178  ;;  %4185 = vst [vmem:[%s6758_s21 + $0xd88] sm:$0xff] %v3673_v21  ;;  %v3675_v29 = vmul.f32 %v6177_v24, %v6708_v1  ;;  %6198 = vpow2.f32 %v2084_v12  ;;  %v1137_v12 = vmul.f32 %v6708_v1, %v624_v0  ;;  %v1139_v21 = vmul.f32 %v6708_v1, %v626_v9 }
 0x3be   : > { %v6181_v32 = vpop.eup %6180  ;;  %4186 = vst [vmem:[%s6758_s21 + $0xd90] sm:$0xff] %v3674_v25  ;;  %v3676_v33 = vmul.f32 %v6179_v28, %v6708_v1  ;;  %6200 = vpow2.f32 %v2086_v17  ;;  %v628_v17 = vld [vmem:[%s6701_s6 + $0xe68] sm:$0xff]  ;;  %v2104_v25 = vmul.f32 1.442695, %v1136_v8 }
 0x3bf   : > { %v6183_v35 = vpop.eup %6182  ;;  %4187 = vst [vmem:[%s6758_s21 + $0xd98] sm:$0xff] %v3675_v29  ;;  %v3677_v36 = vmul.f32 %v6181_v32, %v6708_v1  ;;  %6202 = vpow2.f32 %v2088_v22  ;;  %v629_v22 = vld [vmem:[%s6701_s6 + $0xe70] sm:$0xff]  ;;  %v1141_v31 = vmul.f32 %v6708_v1, %v628_v17  ;;  %v631_v32 = vld [vmem:[%s6701_s6 + $0xe80] sm:$0xff] }
 0x3c0   : > { %v6185_v38 = vpop.eup %6184  ;;  %4188 = vst [vmem:[%s6758_s21 + $0xda0] sm:$0xff] %v3676_v33  ;;  %v3678_v39 = vmul.f32 %v6183_v35, %v6708_v1  ;;  %6204 = vpow2.f32 %v2090_v26  ;;  %v1140_v26 = vmul.f32 %v6708_v1, %v627_v13  ;;  %v2108_v35 = vmul.f32 1.442695, %v1138_v16 }
 0x3c1   : > { %v6187_v41 = vpop.eup %6186  ;;  %4189 = vst [vmem:[%s6758_s21 + $0xda8] sm:$0xff] %v3677_v36  ;;  %v3679_v42 = vmul.f32 %v6185_v38, %v6708_v1  ;;  %6206 = vpow2.f32 %v2092_v30  ;;  %v2106_v30 = vmul.f32 1.442695, %v1137_v12  ;;  %v1142_v36 = vmul.f32 %v6708_v1, %v629_v22 }
 0x3c2   : > { %v6189_v44 = vpop.eup %6188  ;;  %4190 = vst [vmem:[%s6758_s21 + $0xdb0] sm:$0xff] %v3678_v39  ;;  %v3680_v45 = vmul.f32 %v6187_v41, %v6708_v1  ;;  %6208 = vpow2.f32 %v2094_v34  ;;  %v1143_v41 = vmul.f32 %v6708_v1, %v630_v27 }
 0x3c3   : > { %v6191_v46 = vpop.eup %6190  ;;  %4191 = vst [vmem:[%s6758_s21 + $0xdb8] sm:$0xff] %v3679_v42  ;;  %v3681_v47 = vmul.f32 %v6189_v44, %v6708_v1  ;;  %6210 = vpow2.f32 %v2096_v37  ;;  %v632_v37 = vld [vmem:[%s6701_s6 + $0xe88] sm:$0xff]  ;;  %v633_v42 = vld [vmem:[%s6701_s6 + $0xe90] sm:$0xff] }
 0x3c4   : > { %v6193_v48 = vpop.eup %6192  ;;  %4192 = vst [vmem:[%s6758_s21 + $0xdc0] sm:$0xff] %v3680_v45  ;;  %v2658_v49 = vadd.f32 1.0, %v6191_v46  ;;  %6212 = vpow2.f32 %v2098_v40  ;;  %v2110_v40 = vmul.f32 1.442695, %v1139_v21  ;;  %v2112_v45 = vmul.f32 1.442695, %v1140_v26 }
 0x3c5   : > { %v6195_v50 = vpop.eup %6194  ;;  %4193 = vst [vmem:[%s6758_s21 + $0xdc8] sm:$0xff] %v3681_v47  ;;  %v2659_v51 = vadd.f32 1.0, %v6193_v48  ;;  %6214 = vpow2.f32 %v2100_v43  ;;  %v1144_v46 = vmul.f32 %v6708_v1, %v631_v32  ;;  %v634_v47 = vld [vmem:[%s6701_s6 + $0xe98] sm:$0xff]  ;;  %v2118_v58 = vmul.f32 1.442695, %v1143_v41  ;;  %v636_v26 = vld [vmem:[%s6701_s6 + $0xea8] sm:$0xff] }
 0x3c6   : > { %v6197_v52 = vpop.eup %6196  ;;  %6216 = vrcp.f32 %v2658_v49  ;;  %v2660_v53 = vadd.f32 1.0, %v6195_v50  ;;  %v2114_v50 = vmul.f32 1.442695, %v1141_v31  ;;  %v640_v41 = vld [vmem:[%s6701_s6 + $0xec8] sm:$0xff] }
 0x3c7   : > { %v6199_v54 = vpop.eup %6198  ;;  %6218 = vrcp.f32 %v2659_v51  ;;  %v2661_v55 = vadd.f32 1.0, %v6197_v52  ;;  %v1145_v51 = vmul.f32 %v6708_v1, %v632_v37  ;;  %v639_v37 = vld [vmem:[%s6701_s6 + $0xec0] sm:$0xff] }
 0x3c8   : > { %v6201_v56 = vpop.eup %6200  ;;  %6220 = vrcp.f32 %v2660_v53  ;;  %v2662_v57 = vadd.f32 1.0, %v6199_v54  ;;  %v2116_v54 = vmul.f32 1.442695, %v1142_v36  ;;  %v1149_v36 = vmul.f32 %v6708_v1, %v636_v26 }
 0x3c9   : > { %v6203_v59 = vpop.eup %6202  ;;  %6222 = vrcp.f32 %v2661_v55  ;;  %v2663_v60 = vadd.f32 1.0, %v6201_v56  ;;  %v1146_v55 = vmul.f32 %v6708_v1, %v633_v42 }
 0x3ca   : > { %v6205_v62 = vpop.eup %6204  ;;  %6224 = vrcp.f32 %v2662_v57  ;;  %v2664_v63 = vadd.f32 1.0, %v6203_v59  ;;  %v1147_v59 = vmul.f32 %v6708_v1, %v634_v47 }
 0x3cb   : > { %v6207_v2 = vpop.eup %6206  ;;  %6226 = vrcp.f32 %v2663_v60  ;;  %v2665_v3 = vadd.f32 1.0, %v6205_v62  ;;  %v2120_v62 = vmul.f32 1.442695, %v1144_v46  ;;  %v2124_v5 = vmul.f32 1.442695, %v1146_v55  ;;  %v643_v55 = vld [vmem:[%s6701_s6 + $0xee0] sm:$0xff] }
 0x3cc   : > { %v6209_v6 = vpop.eup %6208  ;;  %6228 = vrcp.f32 %v2664_v63  ;;  %v2666_v7 = vadd.f32 1.0, %v6207_v2  ;;  %v2122_v2 = vmul.f32 1.442695, %v1145_v51  ;;  %v2126_v8 = vmul.f32 1.442695, %v1147_v59 }
 0x3cd   : > { %v6211_v10 = vpop.eup %6210  ;;  %6230 = vrcp.f32 %v2665_v3  ;;  %v2667_v11 = vadd.f32 1.0, %v6209_v6 }
 0x3ce   : > { %v6213_v14 = vpop.eup %6212  ;;  %6232 = vrcp.f32 %v2666_v7  ;;  %v2668_v15 = vadd.f32 1.0, %v6211_v10 }
 0x3cf   : > { %v6215_v18 = vpop.eup %6214  ;;  %6234 = vrcp.f32 %v2667_v11  ;;  %v2669_v19 = vadd.f32 1.0, %v6213_v14 }
 0x3d0   : > { %v6217_v23 = vpop.eup %6216  ;;  %6236 = vrcp.f32 %v2668_v15  ;;  %v2670_v24 = vadd.f32 1.0, %v6215_v18 }
 0x3d1   : > { %v6219_v28 = vpop.eup %6218  ;;  %v3682_v29 = vmul.f32 %v6217_v23, %v6708_v1  ;;  %6238 = vrcp.f32 %v2669_v19  ;;  %v635_v23 = vld [vmem:[%s6701_s6 + $0xea0] sm:$0xff] }
 0x3d2   : > { %v6221_v33 = vpop.eup %6220  ;;  %v3683_v34 = vmul.f32 %v6219_v28, %v6708_v1  ;;  %6240 = vrcp.f32 %v2670_v24  ;;  %v1148_v32 = vmul.f32 %v6708_v1, %v635_v23 }
 0x3d3   : > { %v6223_v38 = vpop.eup %6222  ;;  %4194 = vst [vmem:[%s6758_s21 + $0xdd0] sm:$0xff] %v3682_v29  ;;  %v3684_v39 = vmul.f32 %v6221_v33, %v6708_v1  ;;  %6242 = vpow2.f32 %v2102_v20  ;;  %v637_v29 = vld [vmem:[%s6701_s6 + $0xeb0] sm:$0xff]  ;;  %v638_v33 = vld [vmem:[%s6701_s6 + $0xeb8] sm:$0xff] }
 0x3d4   : > { %v6225_v43 = vpop.eup %6224  ;;  %4195 = vst [vmem:[%s6758_s21 + $0xdd8] sm:$0xff] %v3683_v34  ;;  %v3685_v44 = vmul.f32 %v6223_v38, %v6708_v1  ;;  %6244 = vpow2.f32 %v2104_v25 }
 0x3d5   : > { %v6227_v48 = vpop.eup %6226  ;;  %4196 = vst [vmem:[%s6758_s21 + $0xde0] sm:$0xff] %v3684_v39  ;;  %v3686_v49 = vmul.f32 %v6225_v43, %v6708_v1  ;;  %6246 = vpow2.f32 %v2106_v30 }
 0x3d6   : > { %v6229_v52 = vpop.eup %6228  ;;  %4197 = vst [vmem:[%s6758_s21 + $0xde8] sm:$0xff] %v3685_v44  ;;  %v3687_v53 = vmul.f32 %v6227_v48, %v6708_v1  ;;  %6248 = vpow2.f32 %v2108_v35  ;;  %v1151_v44 = vmul.f32 %v6708_v1, %v638_v33  ;;  %v2128_v48 = vmul.f32 1.442695, %v1148_v32 }
 0x3d7   : > { %v6231_v56 = vpop.eup %6230  ;;  %4198 = vst [vmem:[%s6758_s21 + $0xdf0] sm:$0xff] %v3686_v49  ;;  %v3688_v57 = vmul.f32 %v6229_v52, %v6708_v1  ;;  %6250 = vpow2.f32 %v2110_v40  ;;  %v1150_v40 = vmul.f32 %v6708_v1, %v637_v29  ;;  %v1152_v49 = vmul.f32 %v6708_v1, %v639_v37 }
 0x3d8   : > { %v6233_v60 = vpop.eup %6232  ;;  %4199 = vst [vmem:[%s6758_s21 + $0xdf8] sm:$0xff] %v3687_v53  ;;  %v3689_v61 = vmul.f32 %v6231_v56, %v6708_v1  ;;  %6252 = vpow2.f32 %v2112_v45  ;;  %v641_v45 = vld [vmem:[%s6701_s6 + $0xed0] sm:$0xff]  ;;  %v2130_v53 = vmul.f32 1.442695, %v1149_v36 }
 0x3d9   : > { %v6235_v63 = vpop.eup %6234  ;;  %4200 = vst [vmem:[%s6758_s21 + $0xe00] sm:$0xff] %v3688_v57  ;;  %v3690_v0 = vmul.f32 %v6233_v60, %v6708_v1  ;;  %6254 = vpow2.f32 %v2114_v50  ;;  %v642_v50 = vld [vmem:[%s6701_s6 + $0xed8] sm:$0xff]  ;;  %v1154_v59 = vmul.f32 %v6708_v1, %v641_v45  ;;  %v644_v60 = vld [vmem:[%s6701_s6 + $0xee8] sm:$0xff] }
 0x3da   : > { %v6237_v3 = vpop.eup %6236  ;;  %4201 = vst [vmem:[%s6758_s21 + $0xe08] sm:$0xff] %v3689_v61  ;;  %v3691_v4 = vmul.f32 %v6235_v63, %v6708_v1  ;;  %6256 = vpow2.f32 %v2116_v54  ;;  %v1153_v54 = vmul.f32 %v6708_v1, %v640_v41  ;;  %v2134_v63 = vmul.f32 1.442695, %v1151_v44 }
 0x3db   : > { %v6239_v6 = vpop.eup %6238  ;;  %4202 = vst [vmem:[%s6758_s21 + $0xe10] sm:$0xff] %v3690_v0  ;;  %v3692_v7 = vmul.f32 %v6237_v3, %v6708_v1  ;;  %6258 = vpow2.f32 %v2118_v58  ;;  %v2132_v58 = vmul.f32 1.442695, %v1150_v40  ;;  %v1155_v0 = vmul.f32 %v6708_v1, %v642_v50 }
 0x3dc   : > { %v6241_v9 = vpop.eup %6240  ;;  %4203 = vst [vmem:[%s6758_s21 + $0xe18] sm:$0xff] %v3691_v4  ;;  %v3693_v10 = vmul.f32 %v6239_v6, %v6708_v1  ;;  %6260 = vpow2.f32 %v2120_v62  ;;  %v1156_v6 = vmul.f32 %v6708_v1, %v643_v55 }
 0x3dd   : > { %v6243_v11 = vpop.eup %6242  ;;  %4204 = vst [vmem:[%s6758_s21 + $0xe20] sm:$0xff] %v3692_v7  ;;  %v3694_v12 = vmul.f32 %v6241_v9, %v6708_v1  ;;  %6262 = vpow2.f32 %v2122_v2  ;;  %v645_v2 = vld [vmem:[%s6701_s6 + $0xef0] sm:$0xff]  ;;  %v646_v7 = vld [vmem:[%s6701_s6 + $0xef8] sm:$0xff] }
 0x3de   : > { %v6245_v13 = vpop.eup %6244  ;;  %4205 = vst [vmem:[%s6758_s21 + $0xe28] sm:$0xff] %v3693_v10  ;;  %v2671_v14 = vadd.f32 1.0, %v6243_v11  ;;  %6264 = vpow2.f32 %v2124_v5  ;;  %v2136_v5 = vmul.f32 1.442695, %v1152_v49  ;;  %v2138_v10 = vmul.f32 1.442695, %v1153_v54 }
 0x3df   : > { %v6247_v15 = vpop.eup %6246  ;;  %4206 = vst [vmem:[%s6758_s21 + $0xe30] sm:$0xff] %v3694_v12  ;;  %v2672_v16 = vadd.f32 1.0, %v6245_v13  ;;  %6266 = vpow2.f32 %v2126_v8  ;;  %v1157_v11 = vmul.f32 %v6708_v1, %v644_v60  ;;  %v647_v12 = vld [vmem:[%s6701_s6 + $0xf00] sm:$0xff]  ;;  %v2144_v23 = vmul.f32 1.442695, %v1156_v6  ;;  %v649_v54 = vld [vmem:[%s6701_s6 + $0xf10] sm:$0xff] }
 0x3e0   : > { %v6249_v17 = vpop.eup %6248  ;;  %6268 = vrcp.f32 %v2671_v14  ;;  %v2673_v18 = vadd.f32 1.0, %v6247_v15  ;;  %v2140_v15 = vmul.f32 1.442695, %v1154_v59  ;;  %v653_v6 = vld [vmem:[%s6701_s6 + $0xf30] sm:$0xff] }
 0x3e1   : > { %v6251_v19 = vpop.eup %6250  ;;  %6270 = vrcp.f32 %v2672_v16  ;;  %v2674_v20 = vadd.f32 1.0, %v6249_v17  ;;  %v1158_v16 = vmul.f32 %v6708_v1, %v645_v2  ;;  %v652_v2 = vld [vmem:[%s6701_s6 + $0xf28] sm:$0xff] }
 0x3e2   : > { %v6253_v21 = vpop.eup %6252  ;;  %6272 = vrcp.f32 %v2673_v18  ;;  %v2675_v22 = vadd.f32 1.0, %v6251_v19  ;;  %v2142_v19 = vmul.f32 1.442695, %v1155_v0  ;;  %v1162_v0 = vmul.f32 %v6708_v1, %v649_v54 }
 0x3e3   : > { %v6255_v24 = vpop.eup %6254  ;;  %6274 = vrcp.f32 %v2674_v20  ;;  %v2676_v25 = vadd.f32 1.0, %v6253_v21  ;;  %v1159_v20 = vmul.f32 %v6708_v1, %v646_v7 }
 0x3e4   : > { %v6257_v27 = vpop.eup %6256  ;;  %6276 = vrcp.f32 %v2675_v22  ;;  %v2677_v28 = vadd.f32 1.0, %v6255_v24  ;;  %v1160_v24 = vmul.f32 %v6708_v1, %v647_v12 }
 0x3e5   : > { %v6259_v30 = vpop.eup %6258  ;;  %6278 = vrcp.f32 %v2676_v25  ;;  %v2678_v31 = vadd.f32 1.0, %v6257_v27  ;;  %v2146_v27 = vmul.f32 1.442695, %v1157_v11  ;;  %v2150_v33 = vmul.f32 1.442695, %v1159_v20  ;;  %v656_v20 = vld [vmem:[%s6701_s6 + $0xf48] sm:$0xff] }
 0x3e6   : > { %v6261_v34 = vpop.eup %6260  ;;  %6280 = vrcp.f32 %v2677_v28  ;;  %v2679_v35 = vadd.f32 1.0, %v6259_v30  ;;  %v2148_v30 = vmul.f32 1.442695, %v1158_v16  ;;  %v2152_v36 = vmul.f32 1.442695, %v1160_v24 }
 0x3e7   : > { %v6263_v38 = vpop.eup %6262  ;;  %6282 = vrcp.f32 %v2678_v31  ;;  %v2680_v39 = vadd.f32 1.0, %v6261_v34 }
 0x3e8   : > { %v6265_v42 = vpop.eup %6264  ;;  %6284 = vrcp.f32 %v2679_v35  ;;  %v2681_v43 = vadd.f32 1.0, %v6263_v38 }
 0x3e9   : > { %v6267_v46 = vpop.eup %6266  ;;  %6286 = vrcp.f32 %v2680_v39  ;;  %v2682_v47 = vadd.f32 1.0, %v6265_v42 }
 0x3ea   : > { %v6269_v51 = vpop.eup %6268  ;;  %6288 = vrcp.f32 %v2681_v43  ;;  %v2683_v52 = vadd.f32 1.0, %v6267_v46 }
 0x3eb   : > { %v6271_v56 = vpop.eup %6270  ;;  %v3695_v57 = vmul.f32 %v6269_v51, %v6708_v1  ;;  %6290 = vrcp.f32 %v2682_v47  ;;  %v648_v51 = vld [vmem:[%s6701_s6 + $0xf08] sm:$0xff] }
 0x3ec   : > { %v6273_v61 = vpop.eup %6272  ;;  %v3696_v62 = vmul.f32 %v6271_v56, %v6708_v1  ;;  %6292 = vrcp.f32 %v2683_v52  ;;  %v1161_v60 = vmul.f32 %v6708_v1, %v648_v51 }
 0x3ed   : > { %v6275_v3 = vpop.eup %6274  ;;  %4207 = vst [vmem:[%s6758_s21 + $0xe38] sm:$0xff] %v3695_v57  ;;  %v3697_v4 = vmul.f32 %v6273_v61, %v6708_v1  ;;  %6294 = vpow2.f32 %v2128_v48  ;;  %v650_v57 = vld [vmem:[%s6701_s6 + $0xf18] sm:$0xff]  ;;  %v651_v61 = vld [vmem:[%s6701_s6 + $0xf20] sm:$0xff] }
 0x3ee   : > { %v6277_v8 = vpop.eup %6276  ;;  %4208 = vst [vmem:[%s6758_s21 + $0xe40] sm:$0xff] %v3696_v62  ;;  %v3698_v9 = vmul.f32 %v6275_v3, %v6708_v1  ;;  %6296 = vpow2.f32 %v2130_v53 }
 0x3ef   : > { %v6279_v13 = vpop.eup %6278  ;;  %4209 = vst [vmem:[%s6758_s21 + $0xe48] sm:$0xff] %v3697_v4  ;;  %v3699_v14 = vmul.f32 %v6277_v8, %v6708_v1  ;;  %6298 = vpow2.f32 %v2132_v58 }
 0x3f0   : > { %v6281_v17 = vpop.eup %6280  ;;  %4210 = vst [vmem:[%s6758_s21 + $0xe50] sm:$0xff] %v3698_v9  ;;  %v3700_v18 = vmul.f32 %v6279_v13, %v6708_v1  ;;  %6300 = vpow2.f32 %v2134_v63  ;;  %v1164_v9 = vmul.f32 %v6708_v1, %v651_v61  ;;  %v2154_v13 = vmul.f32 1.442695, %v1161_v60 }
 0x3f1   : > { %v6283_v21 = vpop.eup %6282  ;;  %4211 = vst [vmem:[%s6758_s21 + $0xe58] sm:$0xff] %v3699_v14  ;;  %v3701_v22 = vmul.f32 %v6281_v17, %v6708_v1  ;;  %6302 = vpow2.f32 %v2136_v5  ;;  %v1163_v5 = vmul.f32 %v6708_v1, %v650_v57  ;;  %v1165_v14 = vmul.f32 %v6708_v1, %v652_v2 }
 0x3f2   : > { %v6285_v25 = vpop.eup %6284  ;;  %4212 = vst [vmem:[%s6758_s21 + $0xe60] sm:$0xff] %v3700_v18  ;;  %v3702_v26 = vmul.f32 %v6283_v21, %v6708_v1  ;;  %6304 = vpow2.f32 %v2138_v10  ;;  %v654_v10 = vld [vmem:[%s6701_s6 + $0xf38] sm:$0xff]  ;;  %v2156_v18 = vmul.f32 1.442695, %v1162_v0 }
 0x3f3   : > { %v6287_v28 = vpop.eup %6286  ;;  %4213 = vst [vmem:[%s6758_s21 + $0xe68] sm:$0xff] %v3701_v22  ;;  %v3703_v29 = vmul.f32 %v6285_v25, %v6708_v1  ;;  %6306 = vpow2.f32 %v2140_v15  ;;  %v655_v15 = vld [vmem:[%s6701_s6 + $0xf40] sm:$0xff]  ;;  %v1167_v24 = vmul.f32 %v6708_v1, %v654_v10  ;;  %v657_v25 = vld [vmem:[%s6701_s6 + $0xf50] sm:$0xff] }
 0x3f4   : > { %v6289_v31 = vpop.eup %6288  ;;  %4214 = vst [vmem:[%s6758_s21 + $0xe70] sm:$0xff] %v3702_v26  ;;  %v3704_v32 = vmul.f32 %v6287_v28, %v6708_v1  ;;  %6308 = vpow2.f32 %v2142_v19  ;;  %v1166_v19 = vmul.f32 %v6708_v1, %v653_v6  ;;  %v2160_v28 = vmul.f32 1.442695, %v1164_v9 }
 0x3f5   : > { %v6291_v34 = vpop.eup %6290  ;;  %4215 = vst [vmem:[%s6758_s21 + $0xe78] sm:$0xff] %v3703_v29  ;;  %v3705_v35 = vmul.f32 %v6289_v31, %v6708_v1  ;;  %6310 = vpow2.f32 %v2144_v23  ;;  %v2158_v23 = vmul.f32 1.442695, %v1163_v5  ;;  %v1168_v29 = vmul.f32 %v6708_v1, %v655_v15 }
 0x3f6   : > { %v6293_v37 = vpop.eup %6292  ;;  %4216 = vst [vmem:[%s6758_s21 + $0xe80] sm:$0xff] %v3704_v32  ;;  %v3706_v38 = vmul.f32 %v6291_v34, %v6708_v1  ;;  %6312 = vpow2.f32 %v2146_v27  ;;  %v1169_v34 = vmul.f32 %v6708_v1, %v656_v20 }
 0x3f7   : > { %v6295_v39 = vpop.eup %6294  ;;  %4217 = vst [vmem:[%s6758_s21 + $0xe88] sm:$0xff] %v3705_v35  ;;  %v3707_v40 = vmul.f32 %v6293_v37, %v6708_v1  ;;  %6314 = vpow2.f32 %v2148_v30  ;;  %v658_v30 = vld [vmem:[%s6701_s6 + $0xf58] sm:$0xff]  ;;  %v659_v35 = vld [vmem:[%s6701_s6 + $0xf60] sm:$0xff] }
 0x3f8   : > { %v6297_v41 = vpop.eup %6296  ;;  %4218 = vst [vmem:[%s6758_s21 + $0xe90] sm:$0xff] %v3706_v38  ;;  %v2684_v42 = vadd.f32 1.0, %v6295_v39  ;;  %6316 = vpow2.f32 %v2150_v33  ;;  %v2162_v33 = vmul.f32 1.442695, %v1165_v14  ;;  %v2164_v38 = vmul.f32 1.442695, %v1166_v19 }
 0x3f9   : > { %v6299_v43 = vpop.eup %6298  ;;  %4219 = vst [vmem:[%s6758_s21 + $0xe98] sm:$0xff] %v3707_v40  ;;  %v2685_v44 = vadd.f32 1.0, %v6297_v41  ;;  %6318 = vpow2.f32 %v2152_v36  ;;  %v1170_v39 = vmul.f32 %v6708_v1, %v657_v25  ;;  %v660_v40 = vld [vmem:[%s6701_s6 + $0xf68] sm:$0xff]  ;;  %v2170_v51 = vmul.f32 1.442695, %v1169_v34  ;;  %v662_v19 = vld [vmem:[%s6701_s6 + $0xf78] sm:$0xff] }
 0x3fa   : > { %v6301_v45 = vpop.eup %6300  ;;  %6320 = vrcp.f32 %v2684_v42  ;;  %v2686_v46 = vadd.f32 1.0, %v6299_v43  ;;  %v2166_v43 = vmul.f32 1.442695, %v1167_v24  ;;  %v666_v34 = vld [vmem:[%s6701_s6 + $0xf98] sm:$0xff] }
 0x3fb   : > { %v6303_v47 = vpop.eup %6302  ;;  %6322 = vrcp.f32 %v2685_v44  ;;  %v2687_v48 = vadd.f32 1.0, %v6301_v45  ;;  %v1171_v44 = vmul.f32 %v6708_v1, %v658_v30  ;;  %v665_v30 = vld [vmem:[%s6701_s6 + $0xf90] sm:$0xff] }
 0x3fc   : > { %v6305_v49 = vpop.eup %6304  ;;  %6324 = vrcp.f32 %v2686_v46  ;;  %v2688_v50 = vadd.f32 1.0, %v6303_v47  ;;  %v2168_v47 = vmul.f32 1.442695, %v1168_v29  ;;  %v1175_v29 = vmul.f32 %v6708_v1, %v662_v19 }
 0x3fd   : > { %v6307_v52 = vpop.eup %6306  ;;  %6326 = vrcp.f32 %v2687_v48  ;;  %v2689_v53 = vadd.f32 1.0, %v6305_v49  ;;  %v1172_v48 = vmul.f32 %v6708_v1, %v659_v35 }
 0x3fe   : > { %v6309_v55 = vpop.eup %6308  ;;  %6328 = vrcp.f32 %v2688_v50  ;;  %v2690_v56 = vadd.f32 1.0, %v6307_v52  ;;  %v1173_v52 = vmul.f32 %v6708_v1, %v660_v40 }
 0x3ff   : > { %v6311_v58 = vpop.eup %6310  ;;  %6330 = vrcp.f32 %v2689_v53  ;;  %v2691_v59 = vadd.f32 1.0, %v6309_v55  ;;  %v2172_v55 = vmul.f32 1.442695, %v1170_v39  ;;  %v2176_v61 = vmul.f32 1.442695, %v1172_v48  ;;  %v669_v48 = vld [vmem:[%s6701_s6 + $0xfb0] sm:$0xff] }
 0x400   : > { %v6313_v62 = vpop.eup %6312  ;;  %6332 = vrcp.f32 %v2690_v56  ;;  %v2692_v63 = vadd.f32 1.0, %v6311_v58  ;;  %v2174_v58 = vmul.f32 1.442695, %v1171_v44  ;;  %v2178_v0 = vmul.f32 1.442695, %v1173_v52 }
 0x401   : > { %v6315_v3 = vpop.eup %6314  ;;  %6334 = vrcp.f32 %v2691_v59  ;;  %v2693_v4 = vadd.f32 1.0, %v6313_v62 }
 0x402   : > { %v6317_v7 = vpop.eup %6316  ;;  %6336 = vrcp.f32 %v2692_v63  ;;  %v2694_v8 = vadd.f32 1.0, %v6315_v3 }
 0x403   : > { %v6319_v11 = vpop.eup %6318  ;;  %6338 = vrcp.f32 %v2693_v4  ;;  %v2695_v12 = vadd.f32 1.0, %v6317_v7 }
 0x404   : > { %v6321_v16 = vpop.eup %6320  ;;  %6340 = vrcp.f32 %v2694_v8  ;;  %v2696_v17 = vadd.f32 1.0, %v6319_v11 }
 0x405   : > { %v6323_v21 = vpop.eup %6322  ;;  %v3708_v22 = vmul.f32 %v6321_v16, %v6708_v1  ;;  %6342 = vrcp.f32 %v2695_v12  ;;  %v661_v16 = vld [vmem:[%s6701_s6 + $0xf70] sm:$0xff] }
 0x406   : > { %v6325_v26 = vpop.eup %6324  ;;  %v3709_v27 = vmul.f32 %v6323_v21, %v6708_v1  ;;  %6344 = vrcp.f32 %v2696_v17  ;;  %v1174_v25 = vmul.f32 %v6708_v1, %v661_v16 }
 0x407   : > { %v6327_v31 = vpop.eup %6326  ;;  %4220 = vst [vmem:[%s6758_s21 + $0xea0] sm:$0xff] %v3708_v22  ;;  %v3710_v32 = vmul.f32 %v6325_v26, %v6708_v1  ;;  %6346 = vpow2.f32 %v2154_v13  ;;  %v663_v22 = vld [vmem:[%s6701_s6 + $0xf80] sm:$0xff]  ;;  %v664_v26 = vld [vmem:[%s6701_s6 + $0xf88] sm:$0xff] }
 0x408   : > { %v6329_v36 = vpop.eup %6328  ;;  %4221 = vst [vmem:[%s6758_s21 + $0xea8] sm:$0xff] %v3709_v27  ;;  %v3711_v37 = vmul.f32 %v6327_v31, %v6708_v1  ;;  %6348 = vpow2.f32 %v2156_v18 }
 0x409   : > { %v6331_v41 = vpop.eup %6330  ;;  %4222 = vst [vmem:[%s6758_s21 + $0xeb0] sm:$0xff] %v3710_v32  ;;  %v3712_v42 = vmul.f32 %v6329_v36, %v6708_v1  ;;  %6350 = vpow2.f32 %v2158_v23 }
 0x40a   : > { %v6333_v45 = vpop.eup %6332  ;;  %4223 = vst [vmem:[%s6758_s21 + $0xeb8] sm:$0xff] %v3711_v37  ;;  %v3713_v46 = vmul.f32 %v6331_v41, %v6708_v1  ;;  %6352 = vpow2.f32 %v2160_v28  ;;  %v1177_v37 = vmul.f32 %v6708_v1, %v664_v26  ;;  %v2180_v41 = vmul.f32 1.442695, %v1174_v25 }
 0x40b   : > { %v6335_v49 = vpop.eup %6334  ;;  %4224 = vst [vmem:[%s6758_s21 + $0xec0] sm:$0xff] %v3712_v42  ;;  %v3714_v50 = vmul.f32 %v6333_v45, %v6708_v1  ;;  %6354 = vpow2.f32 %v2162_v33  ;;  %v1176_v33 = vmul.f32 %v6708_v1, %v663_v22  ;;  %v1178_v42 = vmul.f32 %v6708_v1, %v665_v30 }
 0x40c   : > { %v6337_v53 = vpop.eup %6336  ;;  %4225 = vst [vmem:[%s6758_s21 + $0xec8] sm:$0xff] %v3713_v46  ;;  %v3715_v54 = vmul.f32 %v6335_v49, %v6708_v1  ;;  %6356 = vpow2.f32 %v2164_v38  ;;  %v667_v38 = vld [vmem:[%s6701_s6 + $0xfa0] sm:$0xff]  ;;  %v2182_v46 = vmul.f32 1.442695, %v1175_v29 }
 0x40d   : > { %v6339_v56 = vpop.eup %6338  ;;  %4226 = vst [vmem:[%s6758_s21 + $0xed0] sm:$0xff] %v3714_v50  ;;  %v3716_v57 = vmul.f32 %v6337_v53, %v6708_v1  ;;  %6358 = vpow2.f32 %v2166_v43  ;;  %v668_v43 = vld [vmem:[%s6701_s6 + $0xfa8] sm:$0xff]  ;;  %v1180_v52 = vmul.f32 %v6708_v1, %v667_v38  ;;  %v670_v53 = vld [vmem:[%s6701_s6 + $0xfb8] sm:$0xff] }
 0x40e   : > { %v6341_v59 = vpop.eup %6340  ;;  %4227 = vst [vmem:[%s6758_s21 + $0xed8] sm:$0xff] %v3715_v54  ;;  %v3717_v60 = vmul.f32 %v6339_v56, %v6708_v1  ;;  %6360 = vpow2.f32 %v2168_v47  ;;  %v1179_v47 = vmul.f32 %v6708_v1, %v666_v34  ;;  %v2186_v56 = vmul.f32 1.442695, %v1177_v37 }
 0x40f   : > { %v6343_v62 = vpop.eup %6342  ;;  %4228 = vst [vmem:[%s6758_s21 + $0xee0] sm:$0xff] %v3716_v57  ;;  %v3718_v63 = vmul.f32 %v6341_v59, %v6708_v1  ;;  %6362 = vpow2.f32 %v2170_v51  ;;  %v2184_v51 = vmul.f32 1.442695, %v1176_v33  ;;  %v1181_v57 = vmul.f32 %v6708_v1, %v668_v43 }
 0x410   : > { %v6345_v2 = vpop.eup %6344  ;;  %4229 = vst [vmem:[%s6758_s21 + $0xee8] sm:$0xff] %v3717_v60  ;;  %v3719_v3 = vmul.f32 %v6343_v62, %v6708_v1  ;;  %6364 = vpow2.f32 %v2172_v55  ;;  %v1182_v62 = vmul.f32 %v6708_v1, %v669_v48 }
 0x411   : > { %v6347_v4 = vpop.eup %6346  ;;  %4230 = vst [vmem:[%s6758_s21 + $0xef0] sm:$0xff] %v3718_v63  ;;  %v3720_v5 = vmul.f32 %v6345_v2, %v6708_v1  ;;  %6366 = vpow2.f32 %v2174_v58  ;;  %v671_v58 = vld [vmem:[%s6701_s6 + $0xfc0] sm:$0xff]  ;;  %v672_v63 = vld [vmem:[%s6701_s6 + $0xfc8] sm:$0xff] }
 0x412   : > { %v6349_v6 = vpop.eup %6348  ;;  %4231 = vst [vmem:[%s6758_s21 + $0xef8] sm:$0xff] %v3719_v3  ;;  %v2697_v7 = vadd.f32 1.0, %v6347_v4  ;;  %6368 = vpow2.f32 %v2176_v61  ;;  %v2188_v61 = vmul.f32 1.442695, %v1178_v42  ;;  %v2190_v3 = vmul.f32 1.442695, %v1179_v47 }
 0x413   : > { %v6351_v8 = vpop.eup %6350  ;;  %4232 = vst [vmem:[%s6758_s21 + $0xf00] sm:$0xff] %v3720_v5  ;;  %v2698_v9 = vadd.f32 1.0, %v6349_v6  ;;  %6370 = vpow2.f32 %v2178_v0  ;;  %v1183_v4 = vmul.f32 %v6708_v1, %v670_v53  ;;  %v673_v5 = vld [vmem:[%s6701_s6 + $0xfd0] sm:$0xff]  ;;  %v2196_v16 = vmul.f32 1.442695, %v1182_v62  ;;  %v675_v47 = vld [vmem:[%s6701_s6 + $0xfe0] sm:$0xff] }
 0x414   : > { %v6353_v10 = vpop.eup %6352  ;;  %6372 = vrcp.f32 %v2697_v7  ;;  %v2699_v11 = vadd.f32 1.0, %v6351_v8  ;;  %v2192_v8 = vmul.f32 1.442695, %v1180_v52 }
 0x415   : > { %v6355_v12 = vpop.eup %6354  ;;  %6374 = vrcp.f32 %v2698_v9  ;;  %v2700_v13 = vadd.f32 1.0, %v6353_v10  ;;  %v1184_v9 = vmul.f32 %v6708_v1, %v671_v58  ;;  %v678_v58 = vld [vmem:[%s6701_s6 + $0xff8] sm:$0xff] }
 0x416   : > { %v6357_v14 = vpop.eup %6356  ;;  %6376 = vrcp.f32 %v2699_v11  ;;  %v2701_v15 = vadd.f32 1.0, %v6355_v12  ;;  %v2194_v12 = vmul.f32 1.442695, %v1181_v57  ;;  %v1188_v57 = vmul.f32 %v6708_v1, %v675_v47 }
 0x417   : > { %v6359_v17 = vpop.eup %6358  ;;  %6378 = vrcp.f32 %v2700_v13  ;;  %v2702_v18 = vadd.f32 1.0, %v6357_v14  ;;  %v1185_v13 = vmul.f32 %v6708_v1, %v672_v63 }
 0x418   : > { %v6361_v20 = vpop.eup %6360  ;;  %6380 = vrcp.f32 %v2701_v15  ;;  %v2703_v21 = vadd.f32 1.0, %v6359_v17  ;;  %v1186_v17 = vmul.f32 %v6708_v1, %v673_v5  ;;  %v1191_v5 = vmul.f32 %v6708_v1, %v678_v58 }
 0x419   : > { %v6363_v23 = vpop.eup %6362  ;;  %6382 = vrcp.f32 %v2702_v18  ;;  %v2704_v24 = vadd.f32 1.0, %v6361_v20  ;;  %v2198_v20 = vmul.f32 1.442695, %v1183_v4  ;;  %v2202_v26 = vmul.f32 1.442695, %v1185_v13 }
 0x41a   : > { %v6365_v27 = vpop.eup %6364  ;;  %6384 = vrcp.f32 %v2703_v21  ;;  %v2705_v28 = vadd.f32 1.0, %v6363_v23  ;;  %v2200_v23 = vmul.f32 1.442695, %v1184_v9  ;;  %v2204_v29 = vmul.f32 1.442695, %v1186_v17 }
 0x41b   : > { %v6367_v31 = vpop.eup %6366  ;;  %6386 = vrcp.f32 %v2704_v24  ;;  %v2706_v32 = vadd.f32 1.0, %v6365_v27  ;;  %v2214_v17 = vmul.f32 1.442695, %v1191_v5 }
 0x41c   : > { %v6369_v35 = vpop.eup %6368  ;;  %6388 = vrcp.f32 %v2705_v28  ;;  %v2707_v36 = vadd.f32 1.0, %v6367_v31 }
 0x41d   : > { %v6371_v39 = vpop.eup %6370  ;;  %6390 = vrcp.f32 %v2706_v32  ;;  %v2708_v40 = vadd.f32 1.0, %v6369_v35 }
 0x41e   : > { %v6373_v44 = vpop.eup %6372  ;;  %6392 = vrcp.f32 %v2707_v36  ;;  %v2709_v45 = vadd.f32 1.0, %v6371_v39 }
 0x41f   : > { %v6375_v49 = vpop.eup %6374  ;;  %v3721_v50 = vmul.f32 %v6373_v44, %v6708_v1  ;;  %6394 = vrcp.f32 %v2708_v40  ;;  %v674_v44 = vld [vmem:[%s6701_s6 + $0xfd8] sm:$0xff] }
 0x420   : > { %v6377_v54 = vpop.eup %6376  ;;  %v3722_v55 = vmul.f32 %v6375_v49, %v6708_v1  ;;  %6396 = vrcp.f32 %v2709_v45  ;;  %v1187_v53 = vmul.f32 %v6708_v1, %v674_v44 }
 0x421   : > { %v6379_v59 = vpop.eup %6378  ;;  %4233 = vst [vmem:[%s6758_s21 + $0xf08] sm:$0xff] %v3721_v50  ;;  %v3723_v60 = vmul.f32 %v6377_v54, %v6708_v1  ;;  %6398 = vpow2.f32 %v2180_v41  ;;  %v676_v50 = vld [vmem:[%s6701_s6 + $0xfe8] sm:$0xff]  ;;  %v677_v54 = vld [vmem:[%s6701_s6 + $0xff0] sm:$0xff] }
 0x422   : > { %v6381_v0 = vpop.eup %6380  ;;  %4234 = vst [vmem:[%s6758_s21 + $0xf10] sm:$0xff] %v3722_v55  ;;  %v3724_v2 = vmul.f32 %v6379_v59, %v6708_v1  ;;  %6400 = vpow2.f32 %v2182_v46  ;;  %v2206_v4 = vmul.f32 1.442695, %v1187_v53 }
 0x423   : > { %v6383_v6 = vpop.eup %6382  ;;  %4235 = vst [vmem:[%s6758_s21 + $0xf18] sm:$0xff] %v3723_v60  ;;  %v3725_v7 = vmul.f32 %v6381_v0, %v6708_v1  ;;  %6402 = vpow2.f32 %v2184_v51  ;;  %v1190_v0 = vmul.f32 %v6708_v1, %v677_v54 }
 0x424   : > { %v6385_v10 = vpop.eup %6384  ;;  %4236 = vst [vmem:[%s6758_s21 + $0xf20] sm:$0xff] %v3724_v2  ;;  %v3726_v11 = vmul.f32 %v6383_v6, %v6708_v1  ;;  %6404 = vpow2.f32 %v2186_v56 }
 0x425   : > { %v6387_v14 = vpop.eup %6386  ;;  %4237 = vst [vmem:[%s6758_s21 + $0xf28] sm:$0xff] %v3725_v7  ;;  %v3727_v15 = vmul.f32 %v6385_v10, %v6708_v1  ;;  %6406 = vpow2.f32 %v2188_v61  ;;  %v1189_v61 = vmul.f32 %v6708_v1, %v676_v50 }
 0x426   : > { %v6389_v18 = vpop.eup %6388  ;;  %4238 = vst [vmem:[%s6758_s21 + $0xf30] sm:$0xff] %v3726_v11  ;;  %v3728_v19 = vmul.f32 %v6387_v14, %v6708_v1  ;;  %6408 = vpow2.f32 %v2190_v3  ;;  %v2212_v14 = vmul.f32 1.442695, %v1190_v0 }
 0x427   : > { %v6391_v21 = vpop.eup %6390  ;;  %4239 = vst [vmem:[%s6758_s21 + $0xf38] sm:$0xff] %v3727_v15  ;;  %v3729_v22 = vmul.f32 %v6389_v18, %v6708_v1  ;;  %6410 = vpow2.f32 %v2192_v8  ;;  %v2208_v8 = vmul.f32 1.442695, %v1188_v57  ;;  %v2210_v11 = vmul.f32 1.442695, %v1189_v61 }
 0x428   : > { %v6393_v24 = vpop.eup %6392  ;;  %4240 = vst [vmem:[%s6758_s21 + $0xf40] sm:$0xff] %v3728_v19  ;;  %v3730_v25 = vmul.f32 %v6391_v21, %v6708_v1  ;;  %6412 = vpow2.f32 %v2194_v12 }
 0x429   : > { %v6395_v27 = vpop.eup %6394  ;;  %4241 = vst [vmem:[%s6758_s21 + $0xf48] sm:$0xff] %v3729_v22  ;;  %v3731_v28 = vmul.f32 %v6393_v24, %v6708_v1  ;;  %6414 = vpow2.f32 %v2196_v16 }
 0x42a   : > { %v6397_v30 = vpop.eup %6396  ;;  %4242 = vst [vmem:[%s6758_s21 + $0xf50] sm:$0xff] %v3730_v25  ;;  %v3732_v31 = vmul.f32 %v6395_v27, %v6708_v1  ;;  %6416 = vpow2.f32 %v2198_v20 }
 0x42b   : > { %v6399_v32 = vpop.eup %6398  ;;  %4243 = vst [vmem:[%s6758_s21 + $0xf58] sm:$0xff] %v3731_v28  ;;  %v3733_v33 = vmul.f32 %v6397_v30, %v6708_v1  ;;  %6418 = vpow2.f32 %v2200_v23 }
 0x42c   : > { %v6401_v34 = vpop.eup %6400  ;;  %4244 = vst [vmem:[%s6758_s21 + $0xf60] sm:$0xff] %v3732_v31  ;;  %v2710_v35 = vadd.f32 1.0, %v6399_v32  ;;  %6420 = vpow2.f32 %v2202_v26 }
 0x42d   : > { %v6403_v36 = vpop.eup %6402  ;;  %4245 = vst [vmem:[%s6758_s21 + $0xf68] sm:$0xff] %v3733_v33  ;;  %v2711_v37 = vadd.f32 1.0, %v6401_v34  ;;  %6422 = vpow2.f32 %v2204_v29 }
 0x42e   : > { %v6405_v38 = vpop.eup %6404  ;;  %6424 = vrcp.f32 %v2710_v35  ;;  %v2712_v39 = vadd.f32 1.0, %v6403_v36 }
 0x42f   : > { %v6407_v40 = vpop.eup %6406  ;;  %6426 = vrcp.f32 %v2711_v37  ;;  %v2713_v41 = vadd.f32 1.0, %v6405_v38 }
 0x430   : > { %v6409_v42 = vpop.eup %6408  ;;  %6428 = vrcp.f32 %v2712_v39  ;;  %v2714_v43 = vadd.f32 1.0, %v6407_v40 }
 0x431   : > { %v6411_v45 = vpop.eup %6410  ;;  %6430 = vrcp.f32 %v2713_v41  ;;  %v2715_v46 = vadd.f32 1.0, %v6409_v42 }
 0x432   : > { %v6413_v48 = vpop.eup %6412  ;;  %6432 = vrcp.f32 %v2714_v43  ;;  %v2716_v49 = vadd.f32 1.0, %v6411_v45 }
 0x433   : > { %v6415_v51 = vpop.eup %6414  ;;  %6434 = vrcp.f32 %v2715_v46  ;;  %v2717_v52 = vadd.f32 1.0, %v6413_v48 }
 0x434   : > { %v6417_v55 = vpop.eup %6416  ;;  %6436 = vrcp.f32 %v2716_v49  ;;  %v2718_v56 = vadd.f32 1.0, %v6415_v51 }
 0x435   : > { %v6419_v59 = vpop.eup %6418  ;;  %6438 = vrcp.f32 %v2717_v52  ;;  %v2719_v60 = vadd.f32 1.0, %v6417_v55 }
 0x436   : > { %v6421_v62 = vpop.eup %6420  ;;  %6440 = vrcp.f32 %v2718_v56  ;;  %v2720_v63 = vadd.f32 1.0, %v6419_v59 }
 0x437   : > { %v6423_v2 = vpop.eup %6422  ;;  %6442 = vrcp.f32 %v2719_v60  ;;  %v2721_v3 = vadd.f32 1.0, %v6421_v62 }
 0x438   : > { %v6425_v6 = vpop.eup %6424  ;;  %6444 = vrcp.f32 %v2720_v63  ;;  %v2722_v7 = vadd.f32 1.0, %v6423_v2 }
 0x439   : > { %v6427_v9 = vpop.eup %6426  ;;  %v3734_v10 = vmul.f32 %v6425_v6, %v6708_v1  ;;  %6446 = vrcp.f32 %v2721_v3 }
 0x43a   : > { %v6429_v12 = vpop.eup %6428  ;;  %v3735_v13 = vmul.f32 %v6427_v9, %v6708_v1  ;;  %6448 = vrcp.f32 %v2722_v7 }
 0x43b   : > { %v6431_v15 = vpop.eup %6430  ;;  %4246 = vst [vmem:[%s6758_s21 + $0xf70] sm:$0xff] %v3734_v10  ;;  %v3736_v16 = vmul.f32 %v6429_v12, %v6708_v1  ;;  %6450 = vpow2.f32 %v2206_v4 }
 0x43c   : > { %v6433_v18 = vpop.eup %6432  ;;  %4247 = vst [vmem:[%s6758_s21 + $0xf78] sm:$0xff] %v3735_v13  ;;  %v3737_v19 = vmul.f32 %v6431_v15, %v6708_v1  ;;  %6452 = vpow2.f32 %v2208_v8 }
 0x43d   : > { %v6435_v20 = vpop.eup %6434  ;;  %4248 = vst [vmem:[%s6758_s21 + $0xf80] sm:$0xff] %v3736_v16  ;;  %v3738_v21 = vmul.f32 %v6433_v18, %v6708_v1  ;;  %6454 = vpow2.f32 %v2210_v11 }
 0x43e   : > { %v6437_v22 = vpop.eup %6436  ;;  %4249 = vst [vmem:[%s6758_s21 + $0xf88] sm:$0xff] %v3737_v19  ;;  %v3739_v23 = vmul.f32 %v6435_v20, %v6708_v1  ;;  %6456 = vpow2.f32 %v2212_v14 }
 0x43f   : > { %v6439_v24 = vpop.eup %6438  ;;  %4250 = vst [vmem:[%s6758_s21 + $0xf90] sm:$0xff] %v3738_v21  ;;  %v3740_v25 = vmul.f32 %v6437_v22, %v6708_v1  ;;  %6458 = vpow2.f32 %v2214_v17 }
 0x440   : > { %v6441_v26 = vpop.eup %6440  ;;  %4251 = vst [vmem:[%s6758_s21 + $0xf98] sm:$0xff] %v3739_v23  ;;  %v3741_v27 = vmul.f32 %v6439_v24, %v6708_v1 }
 0x441   : > { %v6443_v28 = vpop.eup %6442  ;;  %4252 = vst [vmem:[%s6758_s21 + $0xfa0] sm:$0xff] %v3740_v25  ;;  %v3742_v29 = vmul.f32 %v6441_v26, %v6708_v1 }
 0x442   : > { %v6445_v30 = vpop.eup %6444  ;;  %4253 = vst [vmem:[%s6758_s21 + $0xfa8] sm:$0xff] %v3741_v27  ;;  %v3743_v31 = vmul.f32 %v6443_v28, %v6708_v1 }
 0x443   : > { %v6447_v32 = vpop.eup %6446  ;;  %4254 = vst [vmem:[%s6758_s21 + $0xfb0] sm:$0xff] %v3742_v29  ;;  %v3744_v33 = vmul.f32 %v6445_v30, %v6708_v1 }
 0x444   : > { %v6449_v34 = vpop.eup %6448  ;;  %4255 = vst [vmem:[%s6758_s21 + $0xfb8] sm:$0xff] %v3743_v31  ;;  %v3745_v35 = vmul.f32 %v6447_v32, %v6708_v1 }
 0x445   : > { %v6451_v36 = vpop.eup %6450  ;;  %4256 = vst [vmem:[%s6758_s21 + $0xfc0] sm:$0xff] %v3744_v33  ;;  %v3746_v37 = vmul.f32 %v6449_v34, %v6708_v1 }
 0x446   : > { %v6453_v38 = vpop.eup %6452  ;;  %4257 = vst [vmem:[%s6758_s21 + $0xfc8] sm:$0xff] %v3745_v35  ;;  %v2723_v39 = vadd.f32 1.0, %v6451_v36 }
 0x447   : > { %v6455_v40 = vpop.eup %6454  ;;  %4258 = vst [vmem:[%s6758_s21 + $0xfd0] sm:$0xff] %v3746_v37  ;;  %v2724_v41 = vadd.f32 1.0, %v6453_v38 }
 0x448   : > { %v6457_v42 = vpop.eup %6456  ;;  %6460 = vrcp.f32 %v2723_v39  ;;  %v2725_v43 = vadd.f32 1.0, %v6455_v40 }
 0x449   : > { %v6459_v44 = vpop.eup %6458  ;;  %6462 = vrcp.f32 %v2724_v41  ;;  %v2726_v45 = vadd.f32 1.0, %v6457_v42 }
 0x44a   : > { %6464 = vrcp.f32 %v2725_v43  ;;  %v2727_v46 = vadd.f32 1.0, %v6459_v44 }
 0x44b   : > { %6466 = vrcp.f32 %v2726_v45 }
 0x44c   : > { %6468 = vrcp.f32 %v2727_v46 }
 0x452   : > { %v6461_v47 = vpop.eup %6460 }
 0x453   : > { %v6463_v48 = vpop.eup %6462  ;;  %v3747_v49 = vmul.f32 %v6461_v47, %v6708_v1 }
 0x454   : > { %v6465_v50 = vpop.eup %6464  ;;  %v3748_v51 = vmul.f32 %v6463_v48, %v6708_v1 }
 0x455   : > { %v6467_v52 = vpop.eup %6466  ;;  %4259 = vst [vmem:[%s6758_s21 + $0xfd8] sm:$0xff] %v3747_v49  ;;  %v3749_v53 = vmul.f32 %v6465_v50, %v6708_v1 }
 0x456   : > { %v6469_v54 = vpop.eup %6468  ;;  %4260 = vst [vmem:[%s6758_s21 + $0xfe0] sm:$0xff] %v3748_v51  ;;  %v3750_v55 = vmul.f32 %v6467_v52, %v6708_v1 }
 0x457   : > { %4261 = vst [vmem:[%s6758_s21 + $0xfe8] sm:$0xff] %v3749_v53  ;;  %v3751_v56 = vmul.f32 %v6469_v54, %v6708_v1 }
 0x458   : > { %4262 = vst [vmem:[%s6758_s21 + $0xff0] sm:$0xff] %v3750_v55 }
 0x459   : > { %4263 = vst [vmem:[%s6758_s21 + $0xff8] sm:$0xff] %v3751_v56 }
 0x45a   : > { %6513 = shalt.err (!%p6510_p1)
}
 0x45b   : > { %s6514_s18 = scalar_lea.hbm %s8762_s8, 65536  ;;  %s6518_s25 = scalar_lea.hbm %s8813_s2, 262144 }
 0x45c   : > { %p6515_p3 = scmp.ne.s32.totalorder %s8762_s8, %s6514_s18  ;;  %p6519_p0 = scmp.lt.u32.totalorder %s8762_s8, %s8813_s2 }
 0x45d   : > { %p6520_p2 = scmp.lt.u32.totalorder %s6518_s25, %s6514_s18  ;;  %p6522_p6 = scmp.lt.u32.totalorder %s6514_s18, %s8762_s8 }
 0x45e   : > { %p6516_p4 = pnand %p6515_p3, %p8820_p10 }
 0x45f   : > { %p6521_p7 = por %p6520_p2, %p6519_p0 }
 0x460   : > { %p6517_p5 = pneg %p6516_p4 }
 0x461   : > { %p6523_p11 = por %p6522_p6, %p6521_p7 }
 0x463   : > { %p6524_p12 = pnand %p6523_p11, %p6517_p5 }
 0x465   : > { %6527 = shalt.err (!%p6524_p12)
}
 0x466   : > { %s6572_s30 = smov 2048   ;;  %s6573_s6 = smov 128  }
 0x467   : > { %4374 = dma.vmem_to_hbm [thread:$0]  (%p8820_p10), %s8764_s4, 65536, %s8762_s8, %s4265_s0, %s6572_s30, %s6572_s30, %s6573_s6  }
 0x468 PF: > { %p4385_p8 = scmp.ge.s32.totalorder %s6566_s14, 2  ;;  %s4294_s29 = sand.u32 1, %s6554_s11  }
 0x469   : > { %p8821_p9 = scmp.ne.s32.totalorder %s8818_s23, 0  ;;  %s4295_s21 = scalar_lea.sflag [#allocation5], %s4294_s29 }
 0x46b   : > { %p4381_p13 = pnand %p4385_p8, %p8821_p9 }
 0x46d   : > { %6549 = dma.done.wait (!%p4381_p13), %s4295_s21, 65536  }
 0x46e   : > { %6551 = vsyncadd (!%p4381_p13), %s4295_s21, 4294901760  ;;  %p16_p1 = scmp.ge.s32.totalorder %s6617_s16, 6   ;;  %s8822_s11 = smov %s6558_s12 }
 0x46f   : > { %s8823_s12 = smov %s6562_s13  ;;  %s8824_s13 = smov %s6629_s19 }
 0x470   : > { %s8825_s14 = smov %s6617_s16  ;;  %18 = sbr.rel (!%p16_p1) target bundleno = 7 (0x7), region = 73 }
 0x477   :  { %4300 = vsyncpa [#allocation4], 1 }
 0x478   :  { %4302 = vsyncpa [#allocation4 + $0x1], 1 }
 0x479   :  { %4303 = vsyncpa [#allocation5], 1 }
 0x47a   :  { %4305 = vsyncpa [#allocation5 + $0x1], 1 }

</bundles_post_ra>
